<compile_context>
chip_gen: v5e
topology: v5e:2x2
jax: 0.10.0
libtpu: 0.0.40
codegen_flags: <defaults>
</compile_context>

<pallas_src>
import functools
import math

import jax
import jax.numpy as jnp
from jax import lax
from jax.experimental import pallas as pl
from jax.experimental.pallas import tpu as pltpu


def _round_up(x, m):
    return (x + m - 1) // m * m


# ----------------------------------------------------------------------------
# Fused Conv3d(k=3, s=2, p=1) + BatchNorm3d(eval) + ReLU kernel
# (one grid step per sample; all output depths handled inside the kernel)
# ----------------------------------------------------------------------------
def _conv_s2d_kernel(x_ref, w_ref, scale_ref, bias_ref, o_ref, *,
                     od_n, od_chunk, m_blk, pw, gsize):
    """Whole-sample fused conv.

    x_ref:     (PD, R, C8)    bf16  space-to-depth folded input (resident)
    w_ref:     (8//gsize, gsize*C8, Cpad) bf16  K-grouped folded weights
    scale_ref: (1, Cpad)      f32   folded BN scale
    bias_ref:  (1, Cpad)      f32   folded BN bias (+ conv bias)
    o_ref:     (od_n*m_blk, Cpad)   bf16  lane-dense output rows
    """
    cpad = o_ref.shape[-1]
    n_groups = w_ref.shape[0]
    scale = scale_ref[...]
    bias = bias_ref[...]

    # Static loop over output-depth chunks: keeps the f32 accumulator small
    # while giving every MXU matmul a large M (od_chunk * m_blk rows).
    for od0 in range(0, od_n, od_chunk):
        m_rows = od_chunk * m_blk
        acc = jnp.zeros((m_rows, cpad), jnp.float32)
        for g in range(n_groups):
            od_pieces = []
            for od in range(od0, od0 + od_chunk):
                shift_pieces = []
                for j in range(gsize):
                    s = g * gsize + j
                    a, b, c = s // 4, (s // 2) % 2, s % 2
                    r0 = b * pw + c               # static row offset
                    # Slice directly from the ref (no materialized shifted
                    # plane copies).  For the garbage column ow'=PW-1, c=1
                    # wraps into the next spatial row; that column is sliced
                    # off by the wrapper.
                    shift_pieces.append(x_ref[od + a, r0:r0 + m_blk, :])
                piece = (shift_pieces[0] if gsize == 1
                         else jnp.concatenate(shift_pieces, axis=-1))
                od_pieces.append(piece)
            lhs = (od_pieces[0] if od_chunk == 1
                   else jnp.concatenate(od_pieces, axis=0))
            acc = acc + jnp.dot(lhs, w_ref[g],
                                preferred_element_type=jnp.float32)
        # Epilogue (f32): BN scale/bias + ReLU, lane-dense bf16 store.
        y = acc * scale + bias
        o_ref[od0 * m_blk:(od0 + od_chunk) * m_blk, :] = (
            jnp.maximum(y, 0.0).astype(o_ref.dtype))


def conv3d_bn_relu(x, w, b, gamma, beta, mean, var, *, eps=1e-5):
    """Fused Conv3d(k=3, s=2, p=1) + BatchNorm3d(eval) + ReLU.

    x: (N, D, H, W, Cin) channels-last activations (any float dtype).
    w: (Cout, Cin, 3, 3, 3) PyTorch-layout conv weight, b: (Cout,) conv bias.
    Returns (N, OD, OH, OW, Cout) channels-last, bf16.
    """
    N, D, H, W, Cin = x.shape
    Cout = w.shape[0]
    OD, OH, OW = (D + 1) // 2, (H + 1) // 2, (W + 1) // 2
    PD, PH, PW = OD + 1, OH + 1, OW + 1
    C8 = 8 * Cin
    Cpad = _round_up(Cout, 128)              # lane-dense output channels
    M_blk = _round_up(OH * PW, 16)           # rows per output-depth slab
    R = _round_up(max(PH * PW, PW + 1 + M_blk), 8)
    # The wrap of the c=1 shift (last width column) is only safe because
    # PW = OW + 1 and that column is sliced off below.
    assert PW == OW + 1 and M_blk >= OH * PW and R >= PW + 1 + M_blk

    # K-group the 8 (a,b,c) shifts so each matmul fills the 256-wide MXU
    # contraction (v6e/v7x); on v5e K=256 simply splits into two pushes.
    gsize = max(1, min(8, 256 // C8))
    while 8 % gsize:
        gsize -= 1
    n_groups = 8 // gsize

    # Fold output depths into matmul M in chunks of <= ~256 rows.
    od_chunk = 1
    for cand in range(1, OD + 1):
        if OD % cand == 0 and cand * M_blk <= 256:
            od_chunk = cand

    # ---- wrapper-side layout plumbing (no im2col materialization) --------
    # Zero-pad (conv padding=1, rounded to even extents) then fold the
    # stride-2 phases into channels (space-to-depth): a k=3/s=2 conv becomes
    # a k=2/s=1 conv on the folded tensor.  HBM footprint stays ~1x input.
    xb = x.astype(jnp.bfloat16)
    xp = jnp.pad(xb, ((0, 0), (1, 2 * PD - D - 1), (1, 2 * PH - H - 1),
                      (1, 2 * PW - W - 1), (0, 0)))
    s2d = xp.reshape(N, PD, 2, PH, 2, PW, 2, Cin)
    s2d = s2d.transpose(0, 1, 3, 5, 2, 4, 6, 7).reshape(N, PD, PH * PW, C8)
    s2d = jnp.pad(s2d, ((0, 0), (0, 0), (0, R - PH * PW), (0, 0)))

    # Folded weights for the 8 (a,b,c) shifts, grouped along K:
    # (8//gsize, gsize*8*Cin, Cpad), bf16.
    wp = jnp.pad(w, ((0, 0), (0, 0), (0, 1), (0, 1), (0, 1)))   # k: 3 -> 4
    w2 = wp.reshape(Cout, Cin, 2, 2, 2, 2, 2, 2)
    w2 = w2.transpose(2, 4, 6, 3, 5, 7, 1, 0).reshape(8, C8, Cout)
    w2 = jnp.pad(w2, ((0, 0), (0, 0), (0, Cpad - Cout)))
    wg = w2.reshape(n_groups, gsize * C8, Cpad).astype(jnp.bfloat16)

    # Fold conv bias + eval-mode BN into per-channel scale / bias (f32).
    scale = gamma * lax.rsqrt(var + eps)
    bias = (b - mean) * scale + beta
    scale = jnp.pad(scale, (0, Cpad - Cout)).reshape(1, Cpad).astype(jnp.float32)
    bias = jnp.pad(bias, (0, Cpad - Cout)).reshape(1, Cpad).astype(jnp.float32)

    kernel = functools.partial(_conv_s2d_kernel, od_n=OD, od_chunk=od_chunk,
                               m_blk=M_blk, pw=PW, gsize=gsize)
    out = pl.pallas_call(
        kernel,
        grid=(N,),
        in_specs=[
            # Whole per-sample (depth, rows, channels) slab, resident.
            pl.BlockSpec((None, PD, R, C8), lambda n: (n, 0, 0, 0)),
            # Folded weights / BN scale / BN bias: single resident block each.
            pl.BlockSpec((n_groups, gsize * C8, Cpad), lambda n: (0, 0, 0)),
            pl.BlockSpec((1, Cpad), lambda n: (0, 0)),
            pl.BlockSpec((1, Cpad), lambda n: (0, 0)),
        ],
        out_specs=pl.BlockSpec((None, OD * M_blk, Cpad), lambda n: (n, 0, 0)),
        out_shape=jax.ShapeDtypeStruct((N, OD * M_blk, Cpad), jnp.bfloat16),
        compiler_params=pltpu.CompilerParams(
            dimension_semantics=("parallel",),        # 2-TC split on v7x
            vmem_limit_bytes=32 * 1024 * 1024),
    )(s2d, wg, scale, bias)

    # Drop channel padding, padded rows, and the extra wrap column (PW=OW+1).
    out = out.reshape(N, OD, M_blk, Cpad)[:, :, :OH * PW, :Cout]
    out = out.reshape(N, OD, OH, PW, Cout)[:, :, :, :OW, :]
    return out


# ----------------------------------------------------------------------------
# Fused Linear + bias + ReLU: single-step kernel, everything resident in VMEM
# ----------------------------------------------------------------------------
def _linear_kernel(x_ref, w_ref, b_ref, o_ref, *, apply_relu):
    y = jnp.dot(x_ref[...], w_ref[...],
                preferred_element_type=jnp.float32) + b_ref[...]
    if apply_relu:                            # trace-time specialization
        y = jnp.maximum(y, 0.0)
    o_ref[...] = y.astype(o_ref.dtype)


def linear_bias_relu(x, w, b, *, apply_relu=True):
    """relu(x @ w + b): one grid step, bf16 operands, f32 accumulation."""
    M, K = x.shape
    Nf = w.shape[1]
    Mp, Kp, Np = _round_up(M, 8), _round_up(K, 128), _round_up(Nf, 128)
    xp = jnp.pad(x.astype(jnp.bfloat16), ((0, Mp - M), (0, Kp - K)))
    wp = jnp.pad(w.astype(jnp.bfloat16), ((0, Kp - K), (0, Np - Nf)))
    bp = jnp.pad(b.astype(jnp.float32), (0, Np - Nf)).reshape(1, Np)
    out = pl.pallas_call(
        functools.partial(_linear_kernel, apply_relu=apply_relu),
        out_shape=jax.ShapeDtypeStruct((Mp, Np), jnp.float32),
        compiler_params=pltpu.CompilerParams(
            vmem_limit_bytes=32 * 1024 * 1024),
    )(xp, wp, bp)
    return out[:M, :Nf]


# ----------------------------------------------------------------------------
# Full encoder (Pallas) and pure-JAX reference
# ----------------------------------------------------------------------------
def pallas_encoder(x, conv_params, wl, bl):
    """x: (N, Cin, D, H, W) NCDHW (PyTorch layout)."""
    y = jnp.transpose(x, (0, 2, 3, 4, 1)).astype(jnp.bfloat16)   # -> NDHWC
    for (w, b, gamma, beta, mean, var) in conv_params:
        y = conv3d_bn_relu(y, w, b, gamma, beta, mean, var)
    n, D3, H3, W3, C3 = y.shape
    # PyTorch Flatten is channel-major (NCDHW); instead of transposing the
    # activations we permute the (static) linear weight once so the
    # channel-last conv output flattens directly.
    L = wl.shape[0]
    wl_p = wl.reshape(L, C3, D3, H3, W3).transpose(0, 2, 3, 4, 1).reshape(L, -1)
    yf = y.reshape(n, -1)
    return linear_bias_relu(yf, wl_p.T, bl, apply_relu=True)


def reference_encoder(x, conv_params, wl, bl):
    y = x
    for (w, b, gamma, beta, mean, var) in conv_params:
        y = lax.conv_general_dilated(
            y, w, window_strides=(2, 2, 2),
            padding=((1, 1), (1, 1), (1, 1)),
            dimension_numbers=("NCDHW", "OIDHW", "NCDHW"),
            precision=lax.Precision.HIGHEST)
        y = y + b[None, :, None, None, None]
        inv = gamma * lax.rsqrt(var + 1e-5)
        y = (y - mean[None, :, None, None, None]) * inv[None, :, None, None, None] \
            + beta[None, :, None, None, None]
        y = jnp.maximum(y, 0.0)
    yf = y.reshape(y.shape[0], -1)
    return jnp.maximum(
        jnp.dot(yf, wl.T, precision=lax.Precision.HIGHEST) + bl, 0.0)


if __name__ == "__main__":
    key = jax.random.PRNGKey(0)
    k_in, k_l1, k_l2, k_l3, k_wl, k_bl = jax.random.split(key, 6)

    # Small shapes consistent with the module: NCDHW input, latent_dim=256.
    N, C_in, D, H, W = 2, 1, 16, 16, 16
    latent_dim = 256

    def make_conv(k, cin, cout):
        ks = jax.random.split(k, 6)
        fan_in = cin * 27
        w = jax.random.normal(ks[0], (cout, cin, 3, 3, 3), jnp.float32) / math.sqrt(fan_in)
        b = 0.1 * jax.random.normal(ks[1], (cout,), jnp.float32)
        gamma = jax.random.uniform(ks[2], (cout,), jnp.float32, minval=0.5, maxval=1.5)
        beta = 0.1 * jax.random.normal(ks[3], (cout,), jnp.float32)
        mean = 0.1 * jax.random.normal(ks[4], (cout,), jnp.float32)
        var = jax.random.uniform(ks[5], (cout,), jnp.float32, minval=0.5, maxval=1.5)
        return (w, b, gamma, beta, mean, var)

    conv_params = (make_conv(k_l1, C_in, 16),
                   make_conv(k_l2, 16, 32),
                   make_conv(k_l3, 32, 64))

    feat = 64 * (D // 8) * (H // 8) * (W // 8)
    wl = jax.random.normal(k_wl, (latent_dim, feat), jnp.float32) / math.sqrt(feat)
    bl = 0.1 * jax.random.normal(k_bl, (latent_dim,), jnp.float32)

    x = jax.random.normal(k_in, (N, C_in, D, H, W), jnp.float32)

    out = jax.jit(pallas_encoder)(x, conv_params, wl, bl)
    out = jax.block_until_ready(out)

    ref = reference_encoder(x, conv_params, wl, bl)
    max_err = float(jnp.max(jnp.abs(out - ref)))
    rel_err = float(jnp.linalg.norm(out - ref) / (jnp.linalg.norm(ref) + 1e-12))
    # bf16 activations/weights with f32 accumulation: allow a small tolerance.
    if out.shape != (N, latent_dim) or max_err > 2e-1 or rel_err > 3e-2:
        raise AssertionError(
            f"mismatch vs reference: shape={out.shape} max={max_err} rel={rel_err}")
    print("KERNEL_OK")
</pallas_src>

<mosaic_0001>
module attributes {stable_mosaic.version = 11 : i64} {
  func.func @_conv_s2d_kernel(%arg0: i32, %arg1: memref<1x9x96x8xbf16, #tpu.memory_space<vmem>>, %arg2: memref<1x64x128xbf16, #tpu.memory_space<vmem>>, %arg3: memref<1x128xf32, #tpu.memory_space<vmem>>, %arg4: memref<1x128xf32, #tpu.memory_space<vmem>>, %arg5: memref<1x640x128xbf16, #tpu.memory_space<vmem>>) attributes {dimension_semantics = [#tpu.dimension_semantics<parallel>], iteration_bounds = array<i64: 2>, scalar_prefetch = 0 : i64, scratch_operands = 0 : i64, tpu.core_type = #tpu.core_type<tc>, window_params = [{transform_indices = @transform_0, window_bounds = array<i64: 1, 9, 96, 8>}, {pipeline_mode = #tpu.pipeline_mode<synchronous>, transform_indices = @transform_1, window_bounds = array<i64: 1, 64, 128>}, {pipeline_mode = #tpu.pipeline_mode<synchronous>, transform_indices = @transform_2, window_bounds = array<i64: 1, 128>}, {pipeline_mode = #tpu.pipeline_mode<synchronous>, transform_indices = @transform_3, window_bounds = array<i64: 1, 128>}, {transform_indices = @transform_4, window_bounds = array<i64: 1, 640, 128>}]} {
    %c0 = arith.constant 0 : index
    %c0_0 = arith.constant 0 : index
    %0 = vector.load %arg3[%c0, %c0_0] : memref<1x128xf32, #tpu.memory_space<vmem>>, vector<1x128xf32>
    %c0_1 = arith.constant 0 : index
    %c0_2 = arith.constant 0 : index
    %1 = vector.load %arg4[%c0_1, %c0_2] : memref<1x128xf32, #tpu.memory_space<vmem>>, vector<1x128xf32>
    %cst = arith.constant 0.000000e+00 : f32
    %2 = vector.broadcast %cst : f32 to vector<160x128xf32>
    %c0_3 = arith.constant 0 : index
    %c0_4 = arith.constant 0 : index
    %c0_5 = arith.constant 0 : index
    %c0_6 = arith.constant 0 : index
    %3 = vector.load %arg1[%c0_3, %c0_4, %c0_5, %c0_6] : memref<1x9x96x8xbf16, #tpu.memory_space<vmem>>, vector<1x1x80x8xbf16>
    %4 = vector.shape_cast %3 : vector<1x1x80x8xbf16> to vector<80x8xbf16>
    %c0_7 = arith.constant 0 : index
    %c0_8 = arith.constant 0 : index
    %c1 = arith.constant 1 : index
    %c0_9 = arith.constant 0 : index
    %5 = vector.load %arg1[%c0_7, %c0_8, %c1, %c0_9] : memref<1x9x96x8xbf16, #tpu.memory_space<vmem>>, vector<1x1x80x8xbf16>
    %6 = vector.shape_cast %5 : vector<1x1x80x8xbf16> to vector<80x8xbf16>
    %c0_10 = arith.constant 0 : index
    %c0_11 = arith.constant 0 : index
    %c9 = arith.constant 9 : index
    %c0_12 = arith.constant 0 : index
    %7 = vector.load %arg1[%c0_10, %c0_11, %c9, %c0_12] : memref<1x9x96x8xbf16, #tpu.memory_space<vmem>>, vector<1x1x80x8xbf16>
    %8 = vector.shape_cast %7 : vector<1x1x80x8xbf16> to vector<80x8xbf16>
    %c0_13 = arith.constant 0 : index
    %c0_14 = arith.constant 0 : index
    %c10 = arith.constant 10 : index
    %c0_15 = arith.constant 0 : index
    %9 = vector.load %arg1[%c0_13, %c0_14, %c10, %c0_15] : memref<1x9x96x8xbf16, #tpu.memory_space<vmem>>, vector<1x1x80x8xbf16>
    %10 = vector.shape_cast %9 : vector<1x1x80x8xbf16> to vector<80x8xbf16>
    %c0_16 = arith.constant 0 : index
    %c1_17 = arith.constant 1 : index
    %c0_18 = arith.constant 0 : index
    %c0_19 = arith.constant 0 : index
    %11 = vector.load %arg1[%c0_16, %c1_17, %c0_18, %c0_19] : memref<1x9x96x8xbf16, #tpu.memory_space<vmem>>, vector<1x1x80x8xbf16>
    %12 = vector.shape_cast %11 : vector<1x1x80x8xbf16> to vector<80x8xbf16>
    %c0_20 = arith.constant 0 : index
    %c1_21 = arith.constant 1 : index
    %c1_22 = arith.constant 1 : index
    %c0_23 = arith.constant 0 : index
    %13 = vector.load %arg1[%c0_20, %c1_21, %c1_22, %c0_23] : memref<1x9x96x8xbf16, #tpu.memory_space<vmem>>, vector<1x1x80x8xbf16>
    %14 = vector.shape_cast %13 : vector<1x1x80x8xbf16> to vector<80x8xbf16>
    %c0_24 = arith.constant 0 : index
    %c1_25 = arith.constant 1 : index
    %c9_26 = arith.constant 9 : index
    %c0_27 = arith.constant 0 : index
    %15 = vector.load %arg1[%c0_24, %c1_25, %c9_26, %c0_27] : memref<1x9x96x8xbf16, #tpu.memory_space<vmem>>, vector<1x1x80x8xbf16>
    %16 = vector.shape_cast %15 : vector<1x1x80x8xbf16> to vector<80x8xbf16>
    %c0_28 = arith.constant 0 : index
    %c1_29 = arith.constant 1 : index
    %c10_30 = arith.constant 10 : index
    %c0_31 = arith.constant 0 : index
    %17 = vector.load %arg1[%c0_28, %c1_29, %c10_30, %c0_31] : memref<1x9x96x8xbf16, #tpu.memory_space<vmem>>, vector<1x1x80x8xbf16>
    %18 = vector.shape_cast %17 : vector<1x1x80x8xbf16> to vector<80x8xbf16>
    %19 = tpu.concatenate %4, %6, %8, %10, %12, %14, %16, %18 in 1 : vector<80x8xbf16>, vector<80x8xbf16>, vector<80x8xbf16>, vector<80x8xbf16>, vector<80x8xbf16>, vector<80x8xbf16>, vector<80x8xbf16>, vector<80x8xbf16> -> vector<80x64xbf16>
    %c0_32 = arith.constant 0 : index
    %c1_33 = arith.constant 1 : index
    %c0_34 = arith.constant 0 : index
    %c0_35 = arith.constant 0 : index
    %20 = vector.load %arg1[%c0_32, %c1_33, %c0_34, %c0_35] : memref<1x9x96x8xbf16, #tpu.memory_space<vmem>>, vector<1x1x80x8xbf16>
    %21 = vector.shape_cast %20 : vector<1x1x80x8xbf16> to vector<80x8xbf16>
    %c0_36 = arith.constant 0 : index
    %c1_37 = arith.constant 1 : index
    %c1_38 = arith.constant 1 : index
    %c0_39 = arith.constant 0 : index
    %22 = vector.load %arg1[%c0_36, %c1_37, %c1_38, %c0_39] : memref<1x9x96x8xbf16, #tpu.memory_space<vmem>>, vector<1x1x80x8xbf16>
    %23 = vector.shape_cast %22 : vector<1x1x80x8xbf16> to vector<80x8xbf16>
    %c0_40 = arith.constant 0 : index
    %c1_41 = arith.constant 1 : index
    %c9_42 = arith.constant 9 : index
    %c0_43 = arith.constant 0 : index
    %24 = vector.load %arg1[%c0_40, %c1_41, %c9_42, %c0_43] : memref<1x9x96x8xbf16, #tpu.memory_space<vmem>>, vector<1x1x80x8xbf16>
    %25 = vector.shape_cast %24 : vector<1x1x80x8xbf16> to vector<80x8xbf16>
    %c0_44 = arith.constant 0 : index
    %c1_45 = arith.constant 1 : index
    %c10_46 = arith.constant 10 : index
    %c0_47 = arith.constant 0 : index
    %26 = vector.load %arg1[%c0_44, %c1_45, %c10_46, %c0_47] : memref<1x9x96x8xbf16, #tpu.memory_space<vmem>>, vector<1x1x80x8xbf16>
    %27 = vector.shape_cast %26 : vector<1x1x80x8xbf16> to vector<80x8xbf16>
    %c0_48 = arith.constant 0 : index
    %c2 = arith.constant 2 : index
    %c0_49 = arith.constant 0 : index
    %c0_50 = arith.constant 0 : index
    %28 = vector.load %arg1[%c0_48, %c2, %c0_49, %c0_50] : memref<1x9x96x8xbf16, #tpu.memory_space<vmem>>, vector<1x1x80x8xbf16>
    %29 = vector.shape_cast %28 : vector<1x1x80x8xbf16> to vector<80x8xbf16>
    %c0_51 = arith.constant 0 : index
    %c2_52 = arith.constant 2 : index
    %c1_53 = arith.constant 1 : index
    %c0_54 = arith.constant 0 : index
    %30 = vector.load %arg1[%c0_51, %c2_52, %c1_53, %c0_54] : memref<1x9x96x8xbf16, #tpu.memory_space<vmem>>, vector<1x1x80x8xbf16>
    %31 = vector.shape_cast %30 : vector<1x1x80x8xbf16> to vector<80x8xbf16>
    %c0_55 = arith.constant 0 : index
    %c2_56 = arith.constant 2 : index
    %c9_57 = arith.constant 9 : index
    %c0_58 = arith.constant 0 : index
    %32 = vector.load %arg1[%c0_55, %c2_56, %c9_57, %c0_58] : memref<1x9x96x8xbf16, #tpu.memory_space<vmem>>, vector<1x1x80x8xbf16>
    %33 = vector.shape_cast %32 : vector<1x1x80x8xbf16> to vector<80x8xbf16>
    %c0_59 = arith.constant 0 : index
    %c2_60 = arith.constant 2 : index
    %c10_61 = arith.constant 10 : index
    %c0_62 = arith.constant 0 : index
    %34 = vector.load %arg1[%c0_59, %c2_60, %c10_61, %c0_62] : memref<1x9x96x8xbf16, #tpu.memory_space<vmem>>, vector<1x1x80x8xbf16>
    %35 = vector.shape_cast %34 : vector<1x1x80x8xbf16> to vector<80x8xbf16>
    %36 = tpu.concatenate %21, %23, %25, %27, %29, %31, %33, %35 in 1 : vector<80x8xbf16>, vector<80x8xbf16>, vector<80x8xbf16>, vector<80x8xbf16>, vector<80x8xbf16>, vector<80x8xbf16>, vector<80x8xbf16>, vector<80x8xbf16> -> vector<80x64xbf16>
    %37 = tpu.concatenate %19, %36 in 0 : vector<80x64xbf16>, vector<80x64xbf16> -> vector<160x64xbf16>
    %c0_63 = arith.constant 0 : index
    %c0_64 = arith.constant 0 : index
    %c0_65 = arith.constant 0 : index
    %38 = vector.load %arg2[%c0_63, %c0_64, %c0_65] : memref<1x64x128xbf16, #tpu.memory_space<vmem>>, vector<1x64x128xbf16>
    %39 = vector.shape_cast %38 : vector<1x64x128xbf16> to vector<64x128xbf16>
    %cst_66 = arith.constant dense<0.000000e+00> : vector<160x128xf32>
    %40 = tpu.matmul %37, %39, %cst_66 {dimension_numbers = #tpu.dot_dimension_numbers<[1], [0], [0], [1], [0, 0, 1, 1], [], []>} : vector<160x64xbf16>, vector<64x128xbf16>, vector<160x128xf32> -> vector<160x128xf32>
    %41 = arith.addf %2, %40 : vector<160x128xf32>
    %42 = vector.broadcast %0 : vector<1x128xf32> to vector<160x128xf32>
    %43 = arith.mulf %41, %42 : vector<160x128xf32>
    %44 = vector.broadcast %1 : vector<1x128xf32> to vector<160x128xf32>
    %45 = arith.addf %43, %44 : vector<160x128xf32>
    %cst_67 = arith.constant 0.000000e+00 : f32
    %46 = vector.broadcast %cst_67 : f32 to vector<160x128xf32>
    %47 = arith.maximumf %45, %46 : vector<160x128xf32>
    %48 = arith.truncf %47 : vector<160x128xf32> to vector<160x128xbf16>
    %c0_68 = arith.constant 0 : index
    %c0_69 = arith.constant 0 : index
    %c0_70 = arith.constant 0 : index
    %49 = vector.load %arg5[%c0_68, %c0_69, %c0_70] : memref<1x640x128xbf16, #tpu.memory_space<vmem>>, vector<1x160x128xbf16>
    %50 = vector.shape_cast %49 : vector<1x160x128xbf16> to vector<160x128xbf16>
    %51 = vector.shape_cast %48 : vector<160x128xbf16> to vector<1x160x128xbf16>
    tpu.vector_store %arg5[%c0_68, %c0_69, %c0_70], %51 {strides = array<i32>} : memref<1x640x128xbf16, #tpu.memory_space<vmem>>, vector<1x160x128xbf16>,
    %cst_71 = arith.constant 0.000000e+00 : f32
    %52 = vector.broadcast %cst_71 : f32 to vector<160x128xf32>
    %c0_72 = arith.constant 0 : index
    %c2_73 = arith.constant 2 : index
    %c0_74 = arith.constant 0 : index
    %c0_75 = arith.constant 0 : index
    %53 = vector.load %arg1[%c0_72, %c2_73, %c0_74, %c0_75] : memref<1x9x96x8xbf16, #tpu.memory_space<vmem>>, vector<1x1x80x8xbf16>
    %54 = vector.shape_cast %53 : vector<1x1x80x8xbf16> to vector<80x8xbf16>
    %c0_76 = arith.constant 0 : index
    %c2_77 = arith.constant 2 : index
    %c1_78 = arith.constant 1 : index
    %c0_79 = arith.constant 0 : index
    %55 = vector.load %arg1[%c0_76, %c2_77, %c1_78, %c0_79] : memref<1x9x96x8xbf16, #tpu.memory_space<vmem>>, vector<1x1x80x8xbf16>
    %56 = vector.shape_cast %55 : vector<1x1x80x8xbf16> to vector<80x8xbf16>
    %c0_80 = arith.constant 0 : index
    %c2_81 = arith.constant 2 : index
    %c9_82 = arith.constant 9 : index
    %c0_83 = arith.constant 0 : index
    %57 = vector.load %arg1[%c0_80, %c2_81, %c9_82, %c0_83] : memref<1x9x96x8xbf16, #tpu.memory_space<vmem>>, vector<1x1x80x8xbf16>
    %58 = vector.shape_cast %57 : vector<1x1x80x8xbf16> to vector<80x8xbf16>
    %c0_84 = arith.constant 0 : index
    %c2_85 = arith.constant 2 : index
    %c10_86 = arith.constant 10 : index
    %c0_87 = arith.constant 0 : index
    %59 = vector.load %arg1[%c0_84, %c2_85, %c10_86, %c0_87] : memref<1x9x96x8xbf16, #tpu.memory_space<vmem>>, vector<1x1x80x8xbf16>
    %60 = vector.shape_cast %59 : vector<1x1x80x8xbf16> to vector<80x8xbf16>
    %c0_88 = arith.constant 0 : index
    %c3 = arith.constant 3 : index
    %c0_89 = arith.constant 0 : index
    %c0_90 = arith.constant 0 : index
    %61 = vector.load %arg1[%c0_88, %c3, %c0_89, %c0_90] : memref<1x9x96x8xbf16, #tpu.memory_space<vmem>>, vector<1x1x80x8xbf16>
    %62 = vector.shape_cast %61 : vector<1x1x80x8xbf16> to vector<80x8xbf16>
    %c0_91 = arith.constant 0 : index
    %c3_92 = arith.constant 3 : index
    %c1_93 = arith.constant 1 : index
    %c0_94 = arith.constant 0 : index
    %63 = vector.load %arg1[%c0_91, %c3_92, %c1_93, %c0_94] : memref<1x9x96x8xbf16, #tpu.memory_space<vmem>>, vector<1x1x80x8xbf16>
    %64 = vector.shape_cast %63 : vector<1x1x80x8xbf16> to vector<80x8xbf16>
    %c0_95 = arith.constant 0 : index
    %c3_96 = arith.constant 3 : index
    %c9_97 = arith.constant 9 : index
    %c0_98 = arith.constant 0 : index
    %65 = vector.load %arg1[%c0_95, %c3_96, %c9_97, %c0_98] : memref<1x9x96x8xbf16, #tpu.memory_space<vmem>>, vector<1x1x80x8xbf16>
    %66 = vector.shape_cast %65 : vector<1x1x80x8xbf16> to vector<80x8xbf16>
    %c0_99 = arith.constant 0 : index
    %c3_100 = arith.constant 3 : index
    %c10_101 = arith.constant 10 : index
    %c0_102 = arith.constant 0 : index
    %67 = vector.load %arg1[%c0_99, %c3_100, %c10_101, %c0_102] : memref<1x9x96x8xbf16, #tpu.memory_space<vmem>>, vector<1x1x80x8xbf16>
    %68 = vector.shape_cast %67 : vector<1x1x80x8xbf16> to vector<80x8xbf16>
    %69 = tpu.concatenate %54, %56, %58, %60, %62, %64, %66, %68 in 1 : vector<80x8xbf16>, vector<80x8xbf16>, vector<80x8xbf16>, vector<80x8xbf16>, vector<80x8xbf16>, vector<80x8xbf16>, vector<80x8xbf16>, vector<80x8xbf16> -> vector<80x64xbf16>
    %c0_103 = arith.constant 0 : index
    %c3_104 = arith.constant 3 : index
    %c0_105 = arith.constant 0 : index
    %c0_106 = arith.constant 0 : index
    %70 = vector.load %arg1[%c0_103, %c3_104, %c0_105, %c0_106] : memref<1x9x96x8xbf16, #tpu.memory_space<vmem>>, vector<1x1x80x8xbf16>
    %71 = vector.shape_cast %70 : vector<1x1x80x8xbf16> to vector<80x8xbf16>
    %c0_107 = arith.constant 0 : index
    %c3_108 = arith.constant 3 : index
    %c1_109 = arith.constant 1 : index
    %c0_110 = arith.constant 0 : index
    %72 = vector.load %arg1[%c0_107, %c3_108, %c1_109, %c0_110] : memref<1x9x96x8xbf16, #tpu.memory_space<vmem>>, vector<1x1x80x8xbf16>
    %73 = vector.shape_cast %72 : vector<1x1x80x8xbf16> to vector<80x8xbf16>
    %c0_111 = arith.constant 0 : index
    %c3_112 = arith.constant 3 : index
    %c9_113 = arith.constant 9 : index
    %c0_114 = arith.constant 0 : index
    %74 = vector.load %arg1[%c0_111, %c3_112, %c9_113, %c0_114] : memref<1x9x96x8xbf16, #tpu.memory_space<vmem>>, vector<1x1x80x8xbf16>
    %75 = vector.shape_cast %74 : vector<1x1x80x8xbf16> to vector<80x8xbf16>
    %c0_115 = arith.constant 0 : index
    %c3_116 = arith.constant 3 : index
    %c10_117 = arith.constant 10 : index
    %c0_118 = arith.constant 0 : index
    %76 = vector.load %arg1[%c0_115, %c3_116, %c10_117, %c0_118] : memref<1x9x96x8xbf16, #tpu.memory_space<vmem>>, vector<1x1x80x8xbf16>
    %77 = vector.shape_cast %76 : vector<1x1x80x8xbf16> to vector<80x8xbf16>
    %c0_119 = arith.constant 0 : index
    %c4 = arith.constant 4 : index
    %c0_120 = arith.constant 0 : index
    %c0_121 = arith.constant 0 : index
    %78 = vector.load %arg1[%c0_119, %c4, %c0_120, %c0_121] : memref<1x9x96x8xbf16, #tpu.memory_space<vmem>>, vector<1x1x80x8xbf16>
    %79 = vector.shape_cast %78 : vector<1x1x80x8xbf16> to vector<80x8xbf16>
    %c0_122 = arith.constant 0 : index
    %c4_123 = arith.constant 4 : index
    %c1_124 = arith.constant 1 : index
    %c0_125 = arith.constant 0 : index
    %80 = vector.load %arg1[%c0_122, %c4_123, %c1_124, %c0_125] : memref<1x9x96x8xbf16, #tpu.memory_space<vmem>>, vector<1x1x80x8xbf16>
    %81 = vector.shape_cast %80 : vector<1x1x80x8xbf16> to vector<80x8xbf16>
    %c0_126 = arith.constant 0 : index
    %c4_127 = arith.constant 4 : index
    %c9_128 = arith.constant 9 : index
    %c0_129 = arith.constant 0 : index
    %82 = vector.load %arg1[%c0_126, %c4_127, %c9_128, %c0_129] : memref<1x9x96x8xbf16, #tpu.memory_space<vmem>>, vector<1x1x80x8xbf16>
    %83 = vector.shape_cast %82 : vector<1x1x80x8xbf16> to vector<80x8xbf16>
    %c0_130 = arith.constant 0 : index
    %c4_131 = arith.constant 4 : index
    %c10_132 = arith.constant 10 : index
    %c0_133 = arith.constant 0 : index
    %84 = vector.load %arg1[%c0_130, %c4_131, %c10_132, %c0_133] : memref<1x9x96x8xbf16, #tpu.memory_space<vmem>>, vector<1x1x80x8xbf16>
    %85 = vector.shape_cast %84 : vector<1x1x80x8xbf16> to vector<80x8xbf16>
    %86 = tpu.concatenate %71, %73, %75, %77, %79, %81, %83, %85 in 1 : vector<80x8xbf16>, vector<80x8xbf16>, vector<80x8xbf16>, vector<80x8xbf16>, vector<80x8xbf16>, vector<80x8xbf16>, vector<80x8xbf16>, vector<80x8xbf16> -> vector<80x64xbf16>
    %87 = tpu.concatenate %69, %86 in 0 : vector<80x64xbf16>, vector<80x64xbf16> -> vector<160x64xbf16>
    %c0_134 = arith.constant 0 : index
    %c0_135 = arith.constant 0 : index
    %c0_136 = arith.constant 0 : index
    %88 = vector.load %arg2[%c0_134, %c0_135, %c0_136] : memref<1x64x128xbf16, #tpu.memory_space<vmem>>, vector<1x64x128xbf16>
    %89 = vector.shape_cast %88 : vector<1x64x128xbf16> to vector<64x128xbf16>
    %cst_137 = arith.constant dense<0.000000e+00> : vector<160x128xf32>
    %90 = tpu.matmul %87, %89, %cst_137 {dimension_numbers = #tpu.dot_dimension_numbers<[1], [0], [0], [1], [0, 0, 1, 1], [], []>} : vector<160x64xbf16>, vector<64x128xbf16>, vector<160x128xf32> -> vector<160x128xf32>
    %91 = arith.addf %52, %90 : vector<160x128xf32>
    %92 = vector.broadcast %0 : vector<1x128xf32> to vector<160x128xf32>
    %93 = arith.mulf %91, %92 : vector<160x128xf32>
    %94 = vector.broadcast %1 : vector<1x128xf32> to vector<160x128xf32>
    %95 = arith.addf %93, %94 : vector<160x128xf32>
    %cst_138 = arith.constant 0.000000e+00 : f32
    %96 = vector.broadcast %cst_138 : f32 to vector<160x128xf32>
    %97 = arith.maximumf %95, %96 : vector<160x128xf32>
    %98 = arith.truncf %97 : vector<160x128xf32> to vector<160x128xbf16>
    %c0_139 = arith.constant 0 : index
    %c160 = arith.constant 160 : index
    %c0_140 = arith.constant 0 : index
    %99 = vector.load %arg5[%c0_139, %c160, %c0_140] : memref<1x640x128xbf16, #tpu.memory_space<vmem>>, vector<1x160x128xbf16>
    %100 = vector.shape_cast %99 : vector<1x160x128xbf16> to vector<160x128xbf16>
    %101 = vector.shape_cast %98 : vector<160x128xbf16> to vector<1x160x128xbf16>
    tpu.vector_store %arg5[%c0_139, %c160, %c0_140], %101 {strides = array<i32>} : memref<1x640x128xbf16, #tpu.memory_space<vmem>>, vector<1x160x128xbf16>,
    %cst_141 = arith.constant 0.000000e+00 : f32
    %102 = vector.broadcast %cst_141 : f32 to vector<160x128xf32>
    %c0_142 = arith.constant 0 : index
    %c4_143 = arith.constant 4 : index
    %c0_144 = arith.constant 0 : index
    %c0_145 = arith.constant 0 : index
    %103 = vector.load %arg1[%c0_142, %c4_143, %c0_144, %c0_145] : memref<1x9x96x8xbf16, #tpu.memory_space<vmem>>, vector<1x1x80x8xbf16>
    %104 = vector.shape_cast %103 : vector<1x1x80x8xbf16> to vector<80x8xbf16>
    %c0_146 = arith.constant 0 : index
    %c4_147 = arith.constant 4 : index
    %c1_148 = arith.constant 1 : index
    %c0_149 = arith.constant 0 : index
    %105 = vector.load %arg1[%c0_146, %c4_147, %c1_148, %c0_149] : memref<1x9x96x8xbf16, #tpu.memory_space<vmem>>, vector<1x1x80x8xbf16>
    %106 = vector.shape_cast %105 : vector<1x1x80x8xbf16> to vector<80x8xbf16>
    %c0_150 = arith.constant 0 : index
    %c4_151 = arith.constant 4 : index
    %c9_152 = arith.constant 9 : index
    %c0_153 = arith.constant 0 : index
    %107 = vector.load %arg1[%c0_150, %c4_151, %c9_152, %c0_153] : memref<1x9x96x8xbf16, #tpu.memory_space<vmem>>, vector<1x1x80x8xbf16>
    %108 = vector.shape_cast %107 : vector<1x1x80x8xbf16> to vector<80x8xbf16>
    %c0_154 = arith.constant 0 : index
    %c4_155 = arith.constant 4 : index
    %c10_156 = arith.constant 10 : index
    %c0_157 = arith.constant 0 : index
    %109 = vector.load %arg1[%c0_154, %c4_155, %c10_156, %c0_157] : memref<1x9x96x8xbf16, #tpu.memory_space<vmem>>, vector<1x1x80x8xbf16>
    %110 = vector.shape_cast %109 : vector<1x1x80x8xbf16> to vector<80x8xbf16>
    %c0_158 = arith.constant 0 : index
    %c5 = arith.constant 5 : index
    %c0_159 = arith.constant 0 : index
    %c0_160 = arith.constant 0 : index
    %111 = vector.load %arg1[%c0_158, %c5, %c0_159, %c0_160] : memref<1x9x96x8xbf16, #tpu.memory_space<vmem>>, vector<1x1x80x8xbf16>
    %112 = vector.shape_cast %111 : vector<1x1x80x8xbf16> to vector<80x8xbf16>
    %c0_161 = arith.constant 0 : index
    %c5_162 = arith.constant 5 : index
    %c1_163 = arith.constant 1 : index
    %c0_164 = arith.constant 0 : index
    %113 = vector.load %arg1[%c0_161, %c5_162, %c1_163, %c0_164] : memref<1x9x96x8xbf16, #tpu.memory_space<vmem>>, vector<1x1x80x8xbf16>
    %114 = vector.shape_cast %113 : vector<1x1x80x8xbf16> to vector<80x8xbf16>
    %c0_165 = arith.constant 0 : index
    %c5_166 = arith.constant 5 : index
    %c9_167 = arith.constant 9 : index
    %c0_168 = arith.constant 0 : index
    %115 = vector.load %arg1[%c0_165, %c5_166, %c9_167, %c0_168] : memref<1x9x96x8xbf16, #tpu.memory_space<vmem>>, vector<1x1x80x8xbf16>
    %116 = vector.shape_cast %115 : vector<1x1x80x8xbf16> to vector<80x8xbf16>
    %c0_169 = arith.constant 0 : index
    %c5_170 = arith.constant 5 : index
    %c10_171 = arith.constant 10 : index
    %c0_172 = arith.constant 0 : index
    %117 = vector.load %arg1[%c0_169, %c5_170, %c10_171, %c0_172] : memref<1x9x96x8xbf16, #tpu.memory_space<vmem>>, vector<1x1x80x8xbf16>
    %118 = vector.shape_cast %117 : vector<1x1x80x8xbf16> to vector<80x8xbf16>
    %119 = tpu.concatenate %104, %106, %108, %110, %112, %114, %116, %118 in 1 : vector<80x8xbf16>, vector<80x8xbf16>, vector<80x8xbf16>, vector<80x8xbf16>, vector<80x8xbf16>, vector<80x8xbf16>, vector<80x8xbf16>, vector<80x8xbf16> -> vector<80x64xbf16>
    %c0_173 = arith.constant 0 : index
    %c5_174 = arith.constant 5 : index
    %c0_175 = arith.constant 0 : index
    %c0_176 = arith.constant 0 : index
    %120 = vector.load %arg1[%c0_173, %c5_174, %c0_175, %c0_176] : memref<1x9x96x8xbf16, #tpu.memory_space<vmem>>, vector<1x1x80x8xbf16>
    %121 = vector.shape_cast %120 : vector<1x1x80x8xbf16> to vector<80x8xbf16>
    %c0_177 = arith.constant 0 : index
    %c5_178 = arith.constant 5 : index
    %c1_179 = arith.constant 1 : index
    %c0_180 = arith.constant 0 : index
    %122 = vector.load %arg1[%c0_177, %c5_178, %c1_179, %c0_180] : memref<1x9x96x8xbf16, #tpu.memory_space<vmem>>, vector<1x1x80x8xbf16>
    %123 = vector.shape_cast %122 : vector<1x1x80x8xbf16> to vector<80x8xbf16>
    %c0_181 = arith.constant 0 : index
    %c5_182 = arith.constant 5 : index
    %c9_183 = arith.constant 9 : index
    %c0_184 = arith.constant 0 : index
    %124 = vector.load %arg1[%c0_181, %c5_182, %c9_183, %c0_184] : memref<1x9x96x8xbf16, #tpu.memory_space<vmem>>, vector<1x1x80x8xbf16>
    %125 = vector.shape_cast %124 : vector<1x1x80x8xbf16> to vector<80x8xbf16>
    %c0_185 = arith.constant 0 : index
    %c5_186 = arith.constant 5 : index
    %c10_187 = arith.constant 10 : index
    %c0_188 = arith.constant 0 : index
    %126 = vector.load %arg1[%c0_185, %c5_186, %c10_187, %c0_188] : memref<1x9x96x8xbf16, #tpu.memory_space<vmem>>, vector<1x1x80x8xbf16>
    %127 = vector.shape_cast %126 : vector<1x1x80x8xbf16> to vector<80x8xbf16>
    %c0_189 = arith.constant 0 : index
    %c6 = arith.constant 6 : index
    %c0_190 = arith.constant 0 : index
    %c0_191 = arith.constant 0 : index
    %128 = vector.load %arg1[%c0_189, %c6, %c0_190, %c0_191] : memref<1x9x96x8xbf16, #tpu.memory_space<vmem>>, vector<1x1x80x8xbf16>
    %129 = vector.shape_cast %128 : vector<1x1x80x8xbf16> to vector<80x8xbf16>
    %c0_192 = arith.constant 0 : index
    %c6_193 = arith.constant 6 : index
    %c1_194 = arith.constant 1 : index
    %c0_195 = arith.constant 0 : index
    %130 = vector.load %arg1[%c0_192, %c6_193, %c1_194, %c0_195] : memref<1x9x96x8xbf16, #tpu.memory_space<vmem>>, vector<1x1x80x8xbf16>
    %131 = vector.shape_cast %130 : vector<1x1x80x8xbf16> to vector<80x8xbf16>
    %c0_196 = arith.constant 0 : index
    %c6_197 = arith.constant 6 : index
    %c9_198 = arith.constant 9 : index
    %c0_199 = arith.constant 0 : index
    %132 = vector.load %arg1[%c0_196, %c6_197, %c9_198, %c0_199] : memref<1x9x96x8xbf16, #tpu.memory_space<vmem>>, vector<1x1x80x8xbf16>
    %133 = vector.shape_cast %132 : vector<1x1x80x8xbf16> to vector<80x8xbf16>
    %c0_200 = arith.constant 0 : index
    %c6_201 = arith.constant 6 : index
    %c10_202 = arith.constant 10 : index
    %c0_203 = arith.constant 0 : index
    %134 = vector.load %arg1[%c0_200, %c6_201, %c10_202, %c0_203] : memref<1x9x96x8xbf16, #tpu.memory_space<vmem>>, vector<1x1x80x8xbf16>
    %135 = vector.shape_cast %134 : vector<1x1x80x8xbf16> to vector<80x8xbf16>
    %136 = tpu.concatenate %121, %123, %125, %127, %129, %131, %133, %135 in 1 : vector<80x8xbf16>, vector<80x8xbf16>, vector<80x8xbf16>, vector<80x8xbf16>, vector<80x8xbf16>, vector<80x8xbf16>, vector<80x8xbf16>, vector<80x8xbf16> -> vector<80x64xbf16>
    %137 = tpu.concatenate %119, %136 in 0 : vector<80x64xbf16>, vector<80x64xbf16> -> vector<160x64xbf16>
    %c0_204 = arith.constant 0 : index
    %c0_205 = arith.constant 0 : index
    %c0_206 = arith.constant 0 : index
    %138 = vector.load %arg2[%c0_204, %c0_205, %c0_206] : memref<1x64x128xbf16, #tpu.memory_space<vmem>>, vector<1x64x128xbf16>
    %139 = vector.shape_cast %138 : vector<1x64x128xbf16> to vector<64x128xbf16>
    %cst_207 = arith.constant dense<0.000000e+00> : vector<160x128xf32>
    %140 = tpu.matmul %137, %139, %cst_207 {dimension_numbers = #tpu.dot_dimension_numbers<[1], [0], [0], [1], [0, 0, 1, 1], [], []>} : vector<160x64xbf16>, vector<64x128xbf16>, vector<160x128xf32> -> vector<160x128xf32>
    %141 = arith.addf %102, %140 : vector<160x128xf32>
    %142 = vector.broadcast %0 : vector<1x128xf32> to vector<160x128xf32>
    %143 = arith.mulf %141, %142 : vector<160x128xf32>
    %144 = vector.broadcast %1 : vector<1x128xf32> to vector<160x128xf32>
    %145 = arith.addf %143, %144 : vector<160x128xf32>
    %cst_208 = arith.constant 0.000000e+00 : f32
    %146 = vector.broadcast %cst_208 : f32 to vector<160x128xf32>
    %147 = arith.maximumf %145, %146 : vector<160x128xf32>
    %148 = arith.truncf %147 : vector<160x128xf32> to vector<160x128xbf16>
    %c0_209 = arith.constant 0 : index
    %c320 = arith.constant 320 : index
    %c0_210 = arith.constant 0 : index
    %149 = vector.load %arg5[%c0_209, %c320, %c0_210] : memref<1x640x128xbf16, #tpu.memory_space<vmem>>, vector<1x160x128xbf16>
    %150 = vector.shape_cast %149 : vector<1x160x128xbf16> to vector<160x128xbf16>
    %151 = vector.shape_cast %148 : vector<160x128xbf16> to vector<1x160x128xbf16>
    tpu.vector_store %arg5[%c0_209, %c320, %c0_210], %151 {strides = array<i32>} : memref<1x640x128xbf16, #tpu.memory_space<vmem>>, vector<1x160x128xbf16>,
    %cst_211 = arith.constant 0.000000e+00 : f32
    %152 = vector.broadcast %cst_211 : f32 to vector<160x128xf32>
    %c0_212 = arith.constant 0 : index
    %c6_213 = arith.constant 6 : index
    %c0_214 = arith.constant 0 : index
    %c0_215 = arith.constant 0 : index
    %153 = vector.load %arg1[%c0_212, %c6_213, %c0_214, %c0_215] : memref<1x9x96x8xbf16, #tpu.memory_space<vmem>>, vector<1x1x80x8xbf16>
    %154 = vector.shape_cast %153 : vector<1x1x80x8xbf16> to vector<80x8xbf16>
    %c0_216 = arith.constant 0 : index
    %c6_217 = arith.constant 6 : index
    %c1_218 = arith.constant 1 : index
    %c0_219 = arith.constant 0 : index
    %155 = vector.load %arg1[%c0_216, %c6_217, %c1_218, %c0_219] : memref<1x9x96x8xbf16, #tpu.memory_space<vmem>>, vector<1x1x80x8xbf16>
    %156 = vector.shape_cast %155 : vector<1x1x80x8xbf16> to vector<80x8xbf16>
    %c0_220 = arith.constant 0 : index
    %c6_221 = arith.constant 6 : index
    %c9_222 = arith.constant 9 : index
    %c0_223 = arith.constant 0 : index
    %157 = vector.load %arg1[%c0_220, %c6_221, %c9_222, %c0_223] : memref<1x9x96x8xbf16, #tpu.memory_space<vmem>>, vector<1x1x80x8xbf16>
    %158 = vector.shape_cast %157 : vector<1x1x80x8xbf16> to vector<80x8xbf16>
    %c0_224 = arith.constant 0 : index
    %c6_225 = arith.constant 6 : index
    %c10_226 = arith.constant 10 : index
    %c0_227 = arith.constant 0 : index
    %159 = vector.load %arg1[%c0_224, %c6_225, %c10_226, %c0_227] : memref<1x9x96x8xbf16, #tpu.memory_space<vmem>>, vector<1x1x80x8xbf16>
    %160 = vector.shape_cast %159 : vector<1x1x80x8xbf16> to vector<80x8xbf16>
    %c0_228 = arith.constant 0 : index
    %c7 = arith.constant 7 : index
    %c0_229 = arith.constant 0 : index
    %c0_230 = arith.constant 0 : index
    %161 = vector.load %arg1[%c0_228, %c7, %c0_229, %c0_230] : memref<1x9x96x8xbf16, #tpu.memory_space<vmem>>, vector<1x1x80x8xbf16>
    %162 = vector.shape_cast %161 : vector<1x1x80x8xbf16> to vector<80x8xbf16>
    %c0_231 = arith.constant 0 : index
    %c7_232 = arith.constant 7 : index
    %c1_233 = arith.constant 1 : index
    %c0_234 = arith.constant 0 : index
    %163 = vector.load %arg1[%c0_231, %c7_232, %c1_233, %c0_234] : memref<1x9x96x8xbf16, #tpu.memory_space<vmem>>, vector<1x1x80x8xbf16>
    %164 = vector.shape_cast %163 : vector<1x1x80x8xbf16> to vector<80x8xbf16>
    %c0_235 = arith.constant 0 : index
    %c7_236 = arith.constant 7 : index
    %c9_237 = arith.constant 9 : index
    %c0_238 = arith.constant 0 : index
    %165 = vector.load %arg1[%c0_235, %c7_236, %c9_237, %c0_238] : memref<1x9x96x8xbf16, #tpu.memory_space<vmem>>, vector<1x1x80x8xbf16>
    %166 = vector.shape_cast %165 : vector<1x1x80x8xbf16> to vector<80x8xbf16>
    %c0_239 = arith.constant 0 : index
    %c7_240 = arith.constant 7 : index
    %c10_241 = arith.constant 10 : index
    %c0_242 = arith.constant 0 : index
    %167 = vector.load %arg1[%c0_239, %c7_240, %c10_241, %c0_242] : memref<1x9x96x8xbf16, #tpu.memory_space<vmem>>, vector<1x1x80x8xbf16>
    %168 = vector.shape_cast %167 : vector<1x1x80x8xbf16> to vector<80x8xbf16>
    %169 = tpu.concatenate %154, %156, %158, %160, %162, %164, %166, %168 in 1 : vector<80x8xbf16>, vector<80x8xbf16>, vector<80x8xbf16>, vector<80x8xbf16>, vector<80x8xbf16>, vector<80x8xbf16>, vector<80x8xbf16>, vector<80x8xbf16> -> vector<80x64xbf16>
    %c0_243 = arith.constant 0 : index
    %c7_244 = arith.constant 7 : index
    %c0_245 = arith.constant 0 : index
    %c0_246 = arith.constant 0 : index
    %170 = vector.load %arg1[%c0_243, %c7_244, %c0_245, %c0_246] : memref<1x9x96x8xbf16, #tpu.memory_space<vmem>>, vector<1x1x80x8xbf16>
    %171 = vector.shape_cast %170 : vector<1x1x80x8xbf16> to vector<80x8xbf16>
    %c0_247 = arith.constant 0 : index
    %c7_248 = arith.constant 7 : index
    %c1_249 = arith.constant 1 : index
    %c0_250 = arith.constant 0 : index
    %172 = vector.load %arg1[%c0_247, %c7_248, %c1_249, %c0_250] : memref<1x9x96x8xbf16, #tpu.memory_space<vmem>>, vector<1x1x80x8xbf16>
    %173 = vector.shape_cast %172 : vector<1x1x80x8xbf16> to vector<80x8xbf16>
    %c0_251 = arith.constant 0 : index
    %c7_252 = arith.constant 7 : index
    %c9_253 = arith.constant 9 : index
    %c0_254 = arith.constant 0 : index
    %174 = vector.load %arg1[%c0_251, %c7_252, %c9_253, %c0_254] : memref<1x9x96x8xbf16, #tpu.memory_space<vmem>>, vector<1x1x80x8xbf16>
    %175 = vector.shape_cast %174 : vector<1x1x80x8xbf16> to vector<80x8xbf16>
    %c0_255 = arith.constant 0 : index
    %c7_256 = arith.constant 7 : index
    %c10_257 = arith.constant 10 : index
    %c0_258 = arith.constant 0 : index
    %176 = vector.load %arg1[%c0_255, %c7_256, %c10_257, %c0_258] : memref<1x9x96x8xbf16, #tpu.memory_space<vmem>>, vector<1x1x80x8xbf16>
    %177 = vector.shape_cast %176 : vector<1x1x80x8xbf16> to vector<80x8xbf16>
    %c0_259 = arith.constant 0 : index
    %c8 = arith.constant 8 : index
    %c0_260 = arith.constant 0 : index
    %c0_261 = arith.constant 0 : index
    %178 = vector.load %arg1[%c0_259, %c8, %c0_260, %c0_261] : memref<1x9x96x8xbf16, #tpu.memory_space<vmem>>, vector<1x1x80x8xbf16>
    %179 = vector.shape_cast %178 : vector<1x1x80x8xbf16> to vector<80x8xbf16>
    %c0_262 = arith.constant 0 : index
    %c8_263 = arith.constant 8 : index
    %c1_264 = arith.constant 1 : index
    %c0_265 = arith.constant 0 : index
    %180 = vector.load %arg1[%c0_262, %c8_263, %c1_264, %c0_265] : memref<1x9x96x8xbf16, #tpu.memory_space<vmem>>, vector<1x1x80x8xbf16>
    %181 = vector.shape_cast %180 : vector<1x1x80x8xbf16> to vector<80x8xbf16>
    %c0_266 = arith.constant 0 : index
    %c8_267 = arith.constant 8 : index
    %c9_268 = arith.constant 9 : index
    %c0_269 = arith.constant 0 : index
    %182 = vector.load %arg1[%c0_266, %c8_267, %c9_268, %c0_269] : memref<1x9x96x8xbf16, #tpu.memory_space<vmem>>, vector<1x1x80x8xbf16>
    %183 = vector.shape_cast %182 : vector<1x1x80x8xbf16> to vector<80x8xbf16>
    %c0_270 = arith.constant 0 : index
    %c8_271 = arith.constant 8 : index
    %c10_272 = arith.constant 10 : index
    %c0_273 = arith.constant 0 : index
    %184 = vector.load %arg1[%c0_270, %c8_271, %c10_272, %c0_273] : memref<1x9x96x8xbf16, #tpu.memory_space<vmem>>, vector<1x1x80x8xbf16>
    %185 = vector.shape_cast %184 : vector<1x1x80x8xbf16> to vector<80x8xbf16>
    %186 = tpu.concatenate %171, %173, %175, %177, %179, %181, %183, %185 in 1 : vector<80x8xbf16>, vector<80x8xbf16>, vector<80x8xbf16>, vector<80x8xbf16>, vector<80x8xbf16>, vector<80x8xbf16>, vector<80x8xbf16>, vector<80x8xbf16> -> vector<80x64xbf16>
    %187 = tpu.concatenate %169, %186 in 0 : vector<80x64xbf16>, vector<80x64xbf16> -> vector<160x64xbf16>
    %c0_274 = arith.constant 0 : index
    %c0_275 = arith.constant 0 : index
    %c0_276 = arith.constant 0 : index
    %188 = vector.load %arg2[%c0_274, %c0_275, %c0_276] : memref<1x64x128xbf16, #tpu.memory_space<vmem>>, vector<1x64x128xbf16>
    %189 = vector.shape_cast %188 : vector<1x64x128xbf16> to vector<64x128xbf16>
    %cst_277 = arith.constant dense<0.000000e+00> : vector<160x128xf32>
    %190 = tpu.matmul %187, %189, %cst_277 {dimension_numbers = #tpu.dot_dimension_numbers<[1], [0], [0], [1], [0, 0, 1, 1], [], []>} : vector<160x64xbf16>, vector<64x128xbf16>, vector<160x128xf32> -> vector<160x128xf32>
    %191 = arith.addf %152, %190 : vector<160x128xf32>
    %192 = vector.broadcast %0 : vector<1x128xf32> to vector<160x128xf32>
    %193 = arith.mulf %191, %192 : vector<160x128xf32>
    %194 = vector.broadcast %1 : vector<1x128xf32> to vector<160x128xf32>
    %195 = arith.addf %193, %194 : vector<160x128xf32>
    %cst_278 = arith.constant 0.000000e+00 : f32
    %196 = vector.broadcast %cst_278 : f32 to vector<160x128xf32>
    %197 = arith.maximumf %195, %196 : vector<160x128xf32>
    %198 = arith.truncf %197 : vector<160x128xf32> to vector<160x128xbf16>
    %c0_279 = arith.constant 0 : index
    %c480 = arith.constant 480 : index
    %c0_280 = arith.constant 0 : index
    %199 = vector.load %arg5[%c0_279, %c480, %c0_280] : memref<1x640x128xbf16, #tpu.memory_space<vmem>>, vector<1x160x128xbf16>
    %200 = vector.shape_cast %199 : vector<1x160x128xbf16> to vector<160x128xbf16>
    %201 = vector.shape_cast %198 : vector<160x128xbf16> to vector<1x160x128xbf16>
    tpu.vector_store %arg5[%c0_279, %c480, %c0_280], %201 {strides = array<i32>} : memref<1x640x128xbf16, #tpu.memory_space<vmem>>, vector<1x160x128xbf16>,
    return
  }
  func.func @transform_0(%arg0: i32) -> (i32, i32, i32, i32) {
    %c0_i32 = arith.constant 0 : i32
    %c0_i32_0 = arith.constant 0 : i32
    %c0_i32_1 = arith.constant 0 : i32
    %c0_i32_2 = arith.constant 0 : i32
    return %arg0, %c0_i32, %c0_i32_0, %c0_i32_1 : i32, i32, i32, i32
  }
  func.func @transform_1(%arg0: i32) -> (i32, i32, i32) {
    %c0_i32 = arith.constant 0 : i32
    %c0_i32_0 = arith.constant 0 : i32
    %c0_i32_1 = arith.constant 0 : i32
    %c0_i32_2 = arith.constant 0 : i32
    return %c0_i32, %c0_i32_0, %c0_i32_1 : i32, i32, i32
  }
  func.func @transform_2(%arg0: i32) -> (i32, i32) {
    %c0_i32 = arith.constant 0 : i32
    %c0_i32_0 = arith.constant 0 : i32
    %c0_i32_1 = arith.constant 0 : i32
    return %c0_i32, %c0_i32_0 : i32, i32
  }
  func.func @transform_3(%arg0: i32) -> (i32, i32) {
    %c0_i32 = arith.constant 0 : i32
    %c0_i32_0 = arith.constant 0 : i32
    %c0_i32_1 = arith.constant 0 : i32
    return %c0_i32, %c0_i32_0 : i32, i32
  }
  func.func @transform_4(%arg0: i32) -> (i32, i32, i32) {
    %c0_i32 = arith.constant 0 : i32
    %c0_i32_0 = arith.constant 0 : i32
    %c0_i32_1 = arith.constant 0 : i32
    return %arg0, %c0_i32, %c0_i32_0 : i32, i32, i32
  }
}

module attributes {stable_mosaic.version = 11 : i64} {
  func.func @_conv_s2d_kernel(%arg0: i32, %arg1: memref<1x5x40x128xbf16, #tpu.memory_space<vmem>>, %arg2: memref<4x256x128xbf16, #tpu.memory_space<vmem>>, %arg3: memref<1x128xf32, #tpu.memory_space<vmem>>, %arg4: memref<1x128xf32, #tpu.memory_space<vmem>>, %arg5: memref<1x128x128xbf16, #tpu.memory_space<vmem>>) attributes {dimension_semantics = [#tpu.dimension_semantics<parallel>], iteration_bounds = array<i64: 2>, scalar_prefetch = 0 : i64, scratch_operands = 0 : i64, tpu.core_type = #tpu.core_type<tc>, window_params = [{transform_indices = @transform_0, window_bounds = array<i64: 1, 5, 40, 128>}, {pipeline_mode = #tpu.pipeline_mode<synchronous>, transform_indices = @transform_1, window_bounds = array<i64: 4, 256, 128>}, {pipeline_mode = #tpu.pipeline_mode<synchronous>, transform_indices = @transform_2, window_bounds = array<i64: 1, 128>}, {pipeline_mode = #tpu.pipeline_mode<synchronous>, transform_indices = @transform_3, window_bounds = array<i64: 1, 128>}, {transform_indices = @transform_4, window_bounds = array<i64: 1, 128, 128>}]} {
    %c0 = arith.constant 0 : index
    %c0_0 = arith.constant 0 : index
    %0 = vector.load %arg3[%c0, %c0_0] : memref<1x128xf32, #tpu.memory_space<vmem>>, vector<1x128xf32>
    %c0_1 = arith.constant 0 : index
    %c0_2 = arith.constant 0 : index
    %1 = vector.load %arg4[%c0_1, %c0_2] : memref<1x128xf32, #tpu.memory_space<vmem>>, vector<1x128xf32>
    %cst = arith.constant 0.000000e+00 : f32
    %2 = vector.broadcast %cst : f32 to vector<128x128xf32>
    %c0_3 = arith.constant 0 : index
    %c0_4 = arith.constant 0 : index
    %c0_5 = arith.constant 0 : index
    %c0_6 = arith.constant 0 : index
    %3 = vector.load %arg1[%c0_3, %c0_4, %c0_5, %c0_6] : memref<1x5x40x128xbf16, #tpu.memory_space<vmem>>, vector<1x1x32x128xbf16>
    %4 = vector.shape_cast %3 : vector<1x1x32x128xbf16> to vector<32x128xbf16>
    %c0_7 = arith.constant 0 : index
    %c0_8 = arith.constant 0 : index
    %c1 = arith.constant 1 : index
    %c0_9 = arith.constant 0 : index
    %5 = vector.load %arg1[%c0_7, %c0_8, %c1, %c0_9] : memref<1x5x40x128xbf16, #tpu.memory_space<vmem>>, vector<1x1x32x128xbf16>
    %6 = vector.shape_cast %5 : vector<1x1x32x128xbf16> to vector<32x128xbf16>
    %7 = tpu.concatenate %4, %6 in 1 : vector<32x128xbf16>, vector<32x128xbf16> -> vector<32x256xbf16>
    %c0_10 = arith.constant 0 : index
    %c1_11 = arith.constant 1 : index
    %c0_12 = arith.constant 0 : index
    %c0_13 = arith.constant 0 : index
    %8 = vector.load %arg1[%c0_10, %c1_11, %c0_12, %c0_13] : memref<1x5x40x128xbf16, #tpu.memory_space<vmem>>, vector<1x1x32x128xbf16>
    %9 = vector.shape_cast %8 : vector<1x1x32x128xbf16> to vector<32x128xbf16>
    %c0_14 = arith.constant 0 : index
    %c1_15 = arith.constant 1 : index
    %c1_16 = arith.constant 1 : index
    %c0_17 = arith.constant 0 : index
    %10 = vector.load %arg1[%c0_14, %c1_15, %c1_16, %c0_17] : memref<1x5x40x128xbf16, #tpu.memory_space<vmem>>, vector<1x1x32x128xbf16>
    %11 = vector.shape_cast %10 : vector<1x1x32x128xbf16> to vector<32x128xbf16>
    %12 = tpu.concatenate %9, %11 in 1 : vector<32x128xbf16>, vector<32x128xbf16> -> vector<32x256xbf16>
    %c0_18 = arith.constant 0 : index
    %c2 = arith.constant 2 : index
    %c0_19 = arith.constant 0 : index
    %c0_20 = arith.constant 0 : index
    %13 = vector.load %arg1[%c0_18, %c2, %c0_19, %c0_20] : memref<1x5x40x128xbf16, #tpu.memory_space<vmem>>, vector<1x1x32x128xbf16>
    %14 = vector.shape_cast %13 : vector<1x1x32x128xbf16> to vector<32x128xbf16>
    %c0_21 = arith.constant 0 : index
    %c2_22 = arith.constant 2 : index
    %c1_23 = arith.constant 1 : index
    %c0_24 = arith.constant 0 : index
    %15 = vector.load %arg1[%c0_21, %c2_22, %c1_23, %c0_24] : memref<1x5x40x128xbf16, #tpu.memory_space<vmem>>, vector<1x1x32x128xbf16>
    %16 = vector.shape_cast %15 : vector<1x1x32x128xbf16> to vector<32x128xbf16>
    %17 = tpu.concatenate %14, %16 in 1 : vector<32x128xbf16>, vector<32x128xbf16> -> vector<32x256xbf16>
    %c0_25 = arith.constant 0 : index
    %c3 = arith.constant 3 : index
    %c0_26 = arith.constant 0 : index
    %c0_27 = arith.constant 0 : index
    %18 = vector.load %arg1[%c0_25, %c3, %c0_26, %c0_27] : memref<1x5x40x128xbf16, #tpu.memory_space<vmem>>, vector<1x1x32x128xbf16>
    %19 = vector.shape_cast %18 : vector<1x1x32x128xbf16> to vector<32x128xbf16>
    %c0_28 = arith.constant 0 : index
    %c3_29 = arith.constant 3 : index
    %c1_30 = arith.constant 1 : index
    %c0_31 = arith.constant 0 : index
    %20 = vector.load %arg1[%c0_28, %c3_29, %c1_30, %c0_31] : memref<1x5x40x128xbf16, #tpu.memory_space<vmem>>, vector<1x1x32x128xbf16>
    %21 = vector.shape_cast %20 : vector<1x1x32x128xbf16> to vector<32x128xbf16>
    %22 = tpu.concatenate %19, %21 in 1 : vector<32x128xbf16>, vector<32x128xbf16> -> vector<32x256xbf16>
    %23 = tpu.concatenate %7, %12, %17, %22 in 0 : vector<32x256xbf16>, vector<32x256xbf16>, vector<32x256xbf16>, vector<32x256xbf16> -> vector<128x256xbf16>
    %c0_32 = arith.constant 0 : index
    %c0_33 = arith.constant 0 : index
    %c0_34 = arith.constant 0 : index
    %24 = vector.load %arg2[%c0_32, %c0_33, %c0_34] : memref<4x256x128xbf16, #tpu.memory_space<vmem>>, vector<1x256x128xbf16>
    %25 = vector.shape_cast %24 : vector<1x256x128xbf16> to vector<256x128xbf16>
    %cst_35 = arith.constant dense<0.000000e+00> : vector<128x128xf32>
    %26 = tpu.matmul %23, %25, %cst_35 {dimension_numbers = #tpu.dot_dimension_numbers<[1], [0], [0], [1], [0, 0, 1, 1], [], []>} : vector<128x256xbf16>, vector<256x128xbf16>, vector<128x128xf32> -> vector<128x128xf32>
    %27 = arith.addf %2, %26 : vector<128x128xf32>
    %c0_36 = arith.constant 0 : index
    %c0_37 = arith.constant 0 : index
    %c5 = arith.constant 5 : index
    %c0_38 = arith.constant 0 : index
    %28 = vector.load %arg1[%c0_36, %c0_37, %c5, %c0_38] : memref<1x5x40x128xbf16, #tpu.memory_space<vmem>>, vector<1x1x32x128xbf16>
    %29 = vector.shape_cast %28 : vector<1x1x32x128xbf16> to vector<32x128xbf16>
    %c0_39 = arith.constant 0 : index
    %c0_40 = arith.constant 0 : index
    %c6 = arith.constant 6 : index
    %c0_41 = arith.constant 0 : index
    %30 = vector.load %arg1[%c0_39, %c0_40, %c6, %c0_41] : memref<1x5x40x128xbf16, #tpu.memory_space<vmem>>, vector<1x1x32x128xbf16>
    %31 = vector.shape_cast %30 : vector<1x1x32x128xbf16> to vector<32x128xbf16>
    %32 = tpu.concatenate %29, %31 in 1 : vector<32x128xbf16>, vector<32x128xbf16> -> vector<32x256xbf16>
    %c0_42 = arith.constant 0 : index
    %c1_43 = arith.constant 1 : index
    %c5_44 = arith.constant 5 : index
    %c0_45 = arith.constant 0 : index
    %33 = vector.load %arg1[%c0_42, %c1_43, %c5_44, %c0_45] : memref<1x5x40x128xbf16, #tpu.memory_space<vmem>>, vector<1x1x32x128xbf16>
    %34 = vector.shape_cast %33 : vector<1x1x32x128xbf16> to vector<32x128xbf16>
    %c0_46 = arith.constant 0 : index
    %c1_47 = arith.constant 1 : index
    %c6_48 = arith.constant 6 : index
    %c0_49 = arith.constant 0 : index
    %35 = vector.load %arg1[%c0_46, %c1_47, %c6_48, %c0_49] : memref<1x5x40x128xbf16, #tpu.memory_space<vmem>>, vector<1x1x32x128xbf16>
    %36 = vector.shape_cast %35 : vector<1x1x32x128xbf16> to vector<32x128xbf16>
    %37 = tpu.concatenate %34, %36 in 1 : vector<32x128xbf16>, vector<32x128xbf16> -> vector<32x256xbf16>
    %c0_50 = arith.constant 0 : index
    %c2_51 = arith.constant 2 : index
    %c5_52 = arith.constant 5 : index
    %c0_53 = arith.constant 0 : index
    %38 = vector.load %arg1[%c0_50, %c2_51, %c5_52, %c0_53] : memref<1x5x40x128xbf16, #tpu.memory_space<vmem>>, vector<1x1x32x128xbf16>
    %39 = vector.shape_cast %38 : vector<1x1x32x128xbf16> to vector<32x128xbf16>
    %c0_54 = arith.constant 0 : index
    %c2_55 = arith.constant 2 : index
    %c6_56 = arith.constant 6 : index
    %c0_57 = arith.constant 0 : index
    %40 = vector.load %arg1[%c0_54, %c2_55, %c6_56, %c0_57] : memref<1x5x40x128xbf16, #tpu.memory_space<vmem>>, vector<1x1x32x128xbf16>
    %41 = vector.shape_cast %40 : vector<1x1x32x128xbf16> to vector<32x128xbf16>
    %42 = tpu.concatenate %39, %41 in 1 : vector<32x128xbf16>, vector<32x128xbf16> -> vector<32x256xbf16>
    %c0_58 = arith.constant 0 : index
    %c3_59 = arith.constant 3 : index
    %c5_60 = arith.constant 5 : index
    %c0_61 = arith.constant 0 : index
    %43 = vector.load %arg1[%c0_58, %c3_59, %c5_60, %c0_61] : memref<1x5x40x128xbf16, #tpu.memory_space<vmem>>, vector<1x1x32x128xbf16>
    %44 = vector.shape_cast %43 : vector<1x1x32x128xbf16> to vector<32x128xbf16>
    %c0_62 = arith.constant 0 : index
    %c3_63 = arith.constant 3 : index
    %c6_64 = arith.constant 6 : index
    %c0_65 = arith.constant 0 : index
    %45 = vector.load %arg1[%c0_62, %c3_63, %c6_64, %c0_65] : memref<1x5x40x128xbf16, #tpu.memory_space<vmem>>, vector<1x1x32x128xbf16>
    %46 = vector.shape_cast %45 : vector<1x1x32x128xbf16> to vector<32x128xbf16>
    %47 = tpu.concatenate %44, %46 in 1 : vector<32x128xbf16>, vector<32x128xbf16> -> vector<32x256xbf16>
    %48 = tpu.concatenate %32, %37, %42, %47 in 0 : vector<32x256xbf16>, vector<32x256xbf16>, vector<32x256xbf16>, vector<32x256xbf16> -> vector<128x256xbf16>
    %c1_66 = arith.constant 1 : index
    %c0_67 = arith.constant 0 : index
    %c0_68 = arith.constant 0 : index
    %49 = vector.load %arg2[%c1_66, %c0_67, %c0_68] : memref<4x256x128xbf16, #tpu.memory_space<vmem>>, vector<1x256x128xbf16>
    %50 = vector.shape_cast %49 : vector<1x256x128xbf16> to vector<256x128xbf16>
    %cst_69 = arith.constant dense<0.000000e+00> : vector<128x128xf32>
    %51 = tpu.matmul %48, %50, %cst_69 {dimension_numbers = #tpu.dot_dimension_numbers<[1], [0], [0], [1], [0, 0, 1, 1], [], []>} : vector<128x256xbf16>, vector<256x128xbf16>, vector<128x128xf32> -> vector<128x128xf32>
    %52 = arith.addf %27, %51 : vector<128x128xf32>
    %c0_70 = arith.constant 0 : index
    %c1_71 = arith.constant 1 : index
    %c0_72 = arith.constant 0 : index
    %c0_73 = arith.constant 0 : index
    %53 = vector.load %arg1[%c0_70, %c1_71, %c0_72, %c0_73] : memref<1x5x40x128xbf16, #tpu.memory_space<vmem>>, vector<1x1x32x128xbf16>
    %54 = vector.shape_cast %53 : vector<1x1x32x128xbf16> to vector<32x128xbf16>
    %c0_74 = arith.constant 0 : index
    %c1_75 = arith.constant 1 : index
    %c1_76 = arith.constant 1 : index
    %c0_77 = arith.constant 0 : index
    %55 = vector.load %arg1[%c0_74, %c1_75, %c1_76, %c0_77] : memref<1x5x40x128xbf16, #tpu.memory_space<vmem>>, vector<1x1x32x128xbf16>
    %56 = vector.shape_cast %55 : vector<1x1x32x128xbf16> to vector<32x128xbf16>
    %57 = tpu.concatenate %54, %56 in 1 : vector<32x128xbf16>, vector<32x128xbf16> -> vector<32x256xbf16>
    %c0_78 = arith.constant 0 : index
    %c2_79 = arith.constant 2 : index
    %c0_80 = arith.constant 0 : index
    %c0_81 = arith.constant 0 : index
    %58 = vector.load %arg1[%c0_78, %c2_79, %c0_80, %c0_81] : memref<1x5x40x128xbf16, #tpu.memory_space<vmem>>, vector<1x1x32x128xbf16>
    %59 = vector.shape_cast %58 : vector<1x1x32x128xbf16> to vector<32x128xbf16>
    %c0_82 = arith.constant 0 : index
    %c2_83 = arith.constant 2 : index
    %c1_84 = arith.constant 1 : index
    %c0_85 = arith.constant 0 : index
    %60 = vector.load %arg1[%c0_82, %c2_83, %c1_84, %c0_85] : memref<1x5x40x128xbf16, #tpu.memory_space<vmem>>, vector<1x1x32x128xbf16>
    %61 = vector.shape_cast %60 : vector<1x1x32x128xbf16> to vector<32x128xbf16>
    %62 = tpu.concatenate %59, %61 in 1 : vector<32x128xbf16>, vector<32x128xbf16> -> vector<32x256xbf16>
    %c0_86 = arith.constant 0 : index
    %c3_87 = arith.constant 3 : index
    %c0_88 = arith.constant 0 : index
    %c0_89 = arith.constant 0 : index
    %63 = vector.load %arg1[%c0_86, %c3_87, %c0_88, %c0_89] : memref<1x5x40x128xbf16, #tpu.memory_space<vmem>>, vector<1x1x32x128xbf16>
    %64 = vector.shape_cast %63 : vector<1x1x32x128xbf16> to vector<32x128xbf16>
    %c0_90 = arith.constant 0 : index
    %c3_91 = arith.constant 3 : index
    %c1_92 = arith.constant 1 : index
    %c0_93 = arith.constant 0 : index
    %65 = vector.load %arg1[%c0_90, %c3_91, %c1_92, %c0_93] : memref<1x5x40x128xbf16, #tpu.memory_space<vmem>>, vector<1x1x32x128xbf16>
    %66 = vector.shape_cast %65 : vector<1x1x32x128xbf16> to vector<32x128xbf16>
    %67 = tpu.concatenate %64, %66 in 1 : vector<32x128xbf16>, vector<32x128xbf16> -> vector<32x256xbf16>
    %c0_94 = arith.constant 0 : index
    %c4 = arith.constant 4 : index
    %c0_95 = arith.constant 0 : index
    %c0_96 = arith.constant 0 : index
    %68 = vector.load %arg1[%c0_94, %c4, %c0_95, %c0_96] : memref<1x5x40x128xbf16, #tpu.memory_space<vmem>>, vector<1x1x32x128xbf16>
    %69 = vector.shape_cast %68 : vector<1x1x32x128xbf16> to vector<32x128xbf16>
    %c0_97 = arith.constant 0 : index
    %c4_98 = arith.constant 4 : index
    %c1_99 = arith.constant 1 : index
    %c0_100 = arith.constant 0 : index
    %70 = vector.load %arg1[%c0_97, %c4_98, %c1_99, %c0_100] : memref<1x5x40x128xbf16, #tpu.memory_space<vmem>>, vector<1x1x32x128xbf16>
    %71 = vector.shape_cast %70 : vector<1x1x32x128xbf16> to vector<32x128xbf16>
    %72 = tpu.concatenate %69, %71 in 1 : vector<32x128xbf16>, vector<32x128xbf16> -> vector<32x256xbf16>
    %73 = tpu.concatenate %57, %62, %67, %72 in 0 : vector<32x256xbf16>, vector<32x256xbf16>, vector<32x256xbf16>, vector<32x256xbf16> -> vector<128x256xbf16>
    %c2_101 = arith.constant 2 : index
    %c0_102 = arith.constant 0 : index
    %c0_103 = arith.constant 0 : index
    %74 = vector.load %arg2[%c2_101, %c0_102, %c0_103] : memref<4x256x128xbf16, #tpu.memory_space<vmem>>, vector<1x256x128xbf16>
    %75 = vector.shape_cast %74 : vector<1x256x128xbf16> to vector<256x128xbf16>
    %cst_104 = arith.constant dense<0.000000e+00> : vector<128x128xf32>
    %76 = tpu.matmul %73, %75, %cst_104 {dimension_numbers = #tpu.dot_dimension_numbers<[1], [0], [0], [1], [0, 0, 1, 1], [], []>} : vector<128x256xbf16>, vector<256x128xbf16>, vector<128x128xf32> -> vector<128x128xf32>
    %77 = arith.addf %52, %76 : vector<128x128xf32>
    %c0_105 = arith.constant 0 : index
    %c1_106 = arith.constant 1 : index
    %c5_107 = arith.constant 5 : index
    %c0_108 = arith.constant 0 : index
    %78 = vector.load %arg1[%c0_105, %c1_106, %c5_107, %c0_108] : memref<1x5x40x128xbf16, #tpu.memory_space<vmem>>, vector<1x1x32x128xbf16>
    %79 = vector.shape_cast %78 : vector<1x1x32x128xbf16> to vector<32x128xbf16>
    %c0_109 = arith.constant 0 : index
    %c1_110 = arith.constant 1 : index
    %c6_111 = arith.constant 6 : index
    %c0_112 = arith.constant 0 : index
    %80 = vector.load %arg1[%c0_109, %c1_110, %c6_111, %c0_112] : memref<1x5x40x128xbf16, #tpu.memory_space<vmem>>, vector<1x1x32x128xbf16>
    %81 = vector.shape_cast %80 : vector<1x1x32x128xbf16> to vector<32x128xbf16>
    %82 = tpu.concatenate %79, %81 in 1 : vector<32x128xbf16>, vector<32x128xbf16> -> vector<32x256xbf16>
    %c0_113 = arith.constant 0 : index
    %c2_114 = arith.constant 2 : index
    %c5_115 = arith.constant 5 : index
    %c0_116 = arith.constant 0 : index
    %83 = vector.load %arg1[%c0_113, %c2_114, %c5_115, %c0_116] : memref<1x5x40x128xbf16, #tpu.memory_space<vmem>>, vector<1x1x32x128xbf16>
    %84 = vector.shape_cast %83 : vector<1x1x32x128xbf16> to vector<32x128xbf16>
    %c0_117 = arith.constant 0 : index
    %c2_118 = arith.constant 2 : index
    %c6_119 = arith.constant 6 : index
    %c0_120 = arith.constant 0 : index
    %85 = vector.load %arg1[%c0_117, %c2_118, %c6_119, %c0_120] : memref<1x5x40x128xbf16, #tpu.memory_space<vmem>>, vector<1x1x32x128xbf16>
    %86 = vector.shape_cast %85 : vector<1x1x32x128xbf16> to vector<32x128xbf16>
    %87 = tpu.concatenate %84, %86 in 1 : vector<32x128xbf16>, vector<32x128xbf16> -> vector<32x256xbf16>
    %c0_121 = arith.constant 0 : index
    %c3_122 = arith.constant 3 : index
    %c5_123 = arith.constant 5 : index
    %c0_124 = arith.constant 0 : index
    %88 = vector.load %arg1[%c0_121, %c3_122, %c5_123, %c0_124] : memref<1x5x40x128xbf16, #tpu.memory_space<vmem>>, vector<1x1x32x128xbf16>
    %89 = vector.shape_cast %88 : vector<1x1x32x128xbf16> to vector<32x128xbf16>
    %c0_125 = arith.constant 0 : index
    %c3_126 = arith.constant 3 : index
    %c6_127 = arith.constant 6 : index
    %c0_128 = arith.constant 0 : index
    %90 = vector.load %arg1[%c0_125, %c3_126, %c6_127, %c0_128] : memref<1x5x40x128xbf16, #tpu.memory_space<vmem>>, vector<1x1x32x128xbf16>
    %91 = vector.shape_cast %90 : vector<1x1x32x128xbf16> to vector<32x128xbf16>
    %92 = tpu.concatenate %89, %91 in 1 : vector<32x128xbf16>, vector<32x128xbf16> -> vector<32x256xbf16>
    %c0_129 = arith.constant 0 : index
    %c4_130 = arith.constant 4 : index
    %c5_131 = arith.constant 5 : index
    %c0_132 = arith.constant 0 : index
    %93 = vector.load %arg1[%c0_129, %c4_130, %c5_131, %c0_132] : memref<1x5x40x128xbf16, #tpu.memory_space<vmem>>, vector<1x1x32x128xbf16>
    %94 = vector.shape_cast %93 : vector<1x1x32x128xbf16> to vector<32x128xbf16>
    %c0_133 = arith.constant 0 : index
    %c4_134 = arith.constant 4 : index
    %c6_135 = arith.constant 6 : index
    %c0_136 = arith.constant 0 : index
    %95 = vector.load %arg1[%c0_133, %c4_134, %c6_135, %c0_136] : memref<1x5x40x128xbf16, #tpu.memory_space<vmem>>, vector<1x1x32x128xbf16>
    %96 = vector.shape_cast %95 : vector<1x1x32x128xbf16> to vector<32x128xbf16>
    %97 = tpu.concatenate %94, %96 in 1 : vector<32x128xbf16>, vector<32x128xbf16> -> vector<32x256xbf16>
    %98 = tpu.concatenate %82, %87, %92, %97 in 0 : vector<32x256xbf16>, vector<32x256xbf16>, vector<32x256xbf16>, vector<32x256xbf16> -> vector<128x256xbf16>
    %c3_137 = arith.constant 3 : index
    %c0_138 = arith.constant 0 : index
    %c0_139 = arith.constant 0 : index
    %99 = vector.load %arg2[%c3_137, %c0_138, %c0_139] : memref<4x256x128xbf16, #tpu.memory_space<vmem>>, vector<1x256x128xbf16>
    %100 = vector.shape_cast %99 : vector<1x256x128xbf16> to vector<256x128xbf16>
    %cst_140 = arith.constant dense<0.000000e+00> : vector<128x128xf32>
    %101 = tpu.matmul %98, %100, %cst_140 {dimension_numbers = #tpu.dot_dimension_numbers<[1], [0], [0], [1], [0, 0, 1, 1], [], []>} : vector<128x256xbf16>, vector<256x128xbf16>, vector<128x128xf32> -> vector<128x128xf32>
    %102 = arith.addf %77, %101 : vector<128x128xf32>
    %103 = vector.broadcast %0 : vector<1x128xf32> to vector<128x128xf32>
    %104 = arith.mulf %102, %103 : vector<128x128xf32>
    %105 = vector.broadcast %1 : vector<1x128xf32> to vector<128x128xf32>
    %106 = arith.addf %104, %105 : vector<128x128xf32>
    %cst_141 = arith.constant 0.000000e+00 : f32
    %107 = vector.broadcast %cst_141 : f32 to vector<128x128xf32>
    %108 = arith.maximumf %106, %107 : vector<128x128xf32>
    %109 = arith.truncf %108 : vector<128x128xf32> to vector<128x128xbf16>
    %c0_142 = arith.constant 0 : index
    %c0_143 = arith.constant 0 : index
    %c0_144 = arith.constant 0 : index
    %110 = vector.load %arg5[%c0_142, %c0_143, %c0_144] : memref<1x128x128xbf16, #tpu.memory_space<vmem>>, vector<1x128x128xbf16>
    %111 = vector.shape_cast %110 : vector<1x128x128xbf16> to vector<128x128xbf16>
    %112 = vector.shape_cast %109 : vector<128x128xbf16> to vector<1x128x128xbf16>
    tpu.vector_store %arg5[%c0_142, %c0_143, %c0_144], %112 {strides = array<i32>} : memref<1x128x128xbf16, #tpu.memory_space<vmem>>, vector<1x128x128xbf16>,
    return
  }
  func.func @transform_0(%arg0: i32) -> (i32, i32, i32, i32) {
    %c0_i32 = arith.constant 0 : i32
    %c0_i32_0 = arith.constant 0 : i32
    %c0_i32_1 = arith.constant 0 : i32
    %c0_i32_2 = arith.constant 0 : i32
    return %arg0, %c0_i32, %c0_i32_0, %c0_i32_1 : i32, i32, i32, i32
  }
  func.func @transform_1(%arg0: i32) -> (i32, i32, i32) {
    %c0_i32 = arith.constant 0 : i32
    %c0_i32_0 = arith.constant 0 : i32
    %c0_i32_1 = arith.constant 0 : i32
    %c0_i32_2 = arith.constant 0 : i32
    return %c0_i32, %c0_i32_0, %c0_i32_1 : i32, i32, i32
  }
  func.func @transform_2(%arg0: i32) -> (i32, i32) {
    %c0_i32 = arith.constant 0 : i32
    %c0_i32_0 = arith.constant 0 : i32
    %c0_i32_1 = arith.constant 0 : i32
    return %c0_i32, %c0_i32_0 : i32, i32
  }
  func.func @transform_3(%arg0: i32) -> (i32, i32) {
    %c0_i32 = arith.constant 0 : i32
    %c0_i32_0 = arith.constant 0 : i32
    %c0_i32_1 = arith.constant 0 : i32
    return %c0_i32, %c0_i32_0 : i32, i32
  }
  func.func @transform_4(%arg0: i32) -> (i32, i32, i32) {
    %c0_i32 = arith.constant 0 : i32
    %c0_i32_0 = arith.constant 0 : i32
    %c0_i32_1 = arith.constant 0 : i32
    return %arg0, %c0_i32, %c0_i32_0 : i32, i32, i32
  }
}

module attributes {stable_mosaic.version = 11 : i64} {
  func.func @_conv_s2d_kernel(%arg0: i32, %arg1: memref<1x3x24x256xbf16, #tpu.memory_space<vmem>>, %arg2: memref<8x256x128xbf16, #tpu.memory_space<vmem>>, %arg3: memref<1x128xf32, #tpu.memory_space<vmem>>, %arg4: memref<1x128xf32, #tpu.memory_space<vmem>>, %arg5: memref<1x32x128xbf16, #tpu.memory_space<vmem>>) attributes {dimension_semantics = [#tpu.dimension_semantics<parallel>], iteration_bounds = array<i64: 2>, scalar_prefetch = 0 : i64, scratch_operands = 0 : i64, tpu.core_type = #tpu.core_type<tc>, window_params = [{transform_indices = @transform_0, window_bounds = array<i64: 1, 3, 24, 256>}, {pipeline_mode = #tpu.pipeline_mode<synchronous>, transform_indices = @transform_1, window_bounds = array<i64: 8, 256, 128>}, {pipeline_mode = #tpu.pipeline_mode<synchronous>, transform_indices = @transform_2, window_bounds = array<i64: 1, 128>}, {pipeline_mode = #tpu.pipeline_mode<synchronous>, transform_indices = @transform_3, window_bounds = array<i64: 1, 128>}, {transform_indices = @transform_4, window_bounds = array<i64: 1, 32, 128>}]} {
    %c0 = arith.constant 0 : index
    %c0_0 = arith.constant 0 : index
    %0 = vector.load %arg3[%c0, %c0_0] : memref<1x128xf32, #tpu.memory_space<vmem>>, vector<1x128xf32>
    %c0_1 = arith.constant 0 : index
    %c0_2 = arith.constant 0 : index
    %1 = vector.load %arg4[%c0_1, %c0_2] : memref<1x128xf32, #tpu.memory_space<vmem>>, vector<1x128xf32>
    %cst = arith.constant 0.000000e+00 : f32
    %2 = vector.broadcast %cst : f32 to vector<32x128xf32>
    %c0_3 = arith.constant 0 : index
    %c0_4 = arith.constant 0 : index
    %c0_5 = arith.constant 0 : index
    %c0_6 = arith.constant 0 : index
    %3 = vector.load %arg1[%c0_3, %c0_4, %c0_5, %c0_6] : memref<1x3x24x256xbf16, #tpu.memory_space<vmem>>, vector<1x1x16x256xbf16>
    %4 = vector.shape_cast %3 : vector<1x1x16x256xbf16> to vector<16x256xbf16>
    %c0_7 = arith.constant 0 : index
    %c1 = arith.constant 1 : index
    %c0_8 = arith.constant 0 : index
    %c0_9 = arith.constant 0 : index
    %5 = vector.load %arg1[%c0_7, %c1, %c0_8, %c0_9] : memref<1x3x24x256xbf16, #tpu.memory_space<vmem>>, vector<1x1x16x256xbf16>
    %6 = vector.shape_cast %5 : vector<1x1x16x256xbf16> to vector<16x256xbf16>
    %7 = tpu.concatenate %4, %6 in 0 : vector<16x256xbf16>, vector<16x256xbf16> -> vector<32x256xbf16>
    %c0_10 = arith.constant 0 : index
    %c0_11 = arith.constant 0 : index
    %c0_12 = arith.constant 0 : index
    %8 = vector.load %arg2[%c0_10, %c0_11, %c0_12] : memref<8x256x128xbf16, #tpu.memory_space<vmem>>, vector<1x256x128xbf16>
    %9 = vector.shape_cast %8 : vector<1x256x128xbf16> to vector<256x128xbf16>
    %cst_13 = arith.constant dense<0.000000e+00> : vector<32x128xf32>
    %10 = tpu.matmul %7, %9, %cst_13 {dimension_numbers = #tpu.dot_dimension_numbers<[1], [0], [0], [1], [0, 0, 1, 1], [], []>} : vector<32x256xbf16>, vector<256x128xbf16>, vector<32x128xf32> -> vector<32x128xf32>
    %11 = arith.addf %2, %10 : vector<32x128xf32>
    %c0_14 = arith.constant 0 : index
    %c0_15 = arith.constant 0 : index
    %c1_16 = arith.constant 1 : index
    %c0_17 = arith.constant 0 : index
    %12 = vector.load %arg1[%c0_14, %c0_15, %c1_16, %c0_17] : memref<1x3x24x256xbf16, #tpu.memory_space<vmem>>, vector<1x1x16x256xbf16>
    %13 = vector.shape_cast %12 : vector<1x1x16x256xbf16> to vector<16x256xbf16>
    %c0_18 = arith.constant 0 : index
    %c1_19 = arith.constant 1 : index
    %c1_20 = arith.constant 1 : index
    %c0_21 = arith.constant 0 : index
    %14 = vector.load %arg1[%c0_18, %c1_19, %c1_20, %c0_21] : memref<1x3x24x256xbf16, #tpu.memory_space<vmem>>, vector<1x1x16x256xbf16>
    %15 = vector.shape_cast %14 : vector<1x1x16x256xbf16> to vector<16x256xbf16>
    %16 = tpu.concatenate %13, %15 in 0 : vector<16x256xbf16>, vector<16x256xbf16> -> vector<32x256xbf16>
    %c1_22 = arith.constant 1 : index
    %c0_23 = arith.constant 0 : index
    %c0_24 = arith.constant 0 : index
    %17 = vector.load %arg2[%c1_22, %c0_23, %c0_24] : memref<8x256x128xbf16, #tpu.memory_space<vmem>>, vector<1x256x128xbf16>
    %18 = vector.shape_cast %17 : vector<1x256x128xbf16> to vector<256x128xbf16>
    %cst_25 = arith.constant dense<0.000000e+00> : vector<32x128xf32>
    %19 = tpu.matmul %16, %18, %cst_25 {dimension_numbers = #tpu.dot_dimension_numbers<[1], [0], [0], [1], [0, 0, 1, 1], [], []>} : vector<32x256xbf16>, vector<256x128xbf16>, vector<32x128xf32> -> vector<32x128xf32>
    %20 = arith.addf %11, %19 : vector<32x128xf32>
    %c0_26 = arith.constant 0 : index
    %c0_27 = arith.constant 0 : index
    %c3 = arith.constant 3 : index
    %c0_28 = arith.constant 0 : index
    %21 = vector.load %arg1[%c0_26, %c0_27, %c3, %c0_28] : memref<1x3x24x256xbf16, #tpu.memory_space<vmem>>, vector<1x1x16x256xbf16>
    %22 = vector.shape_cast %21 : vector<1x1x16x256xbf16> to vector<16x256xbf16>
    %c0_29 = arith.constant 0 : index
    %c1_30 = arith.constant 1 : index
    %c3_31 = arith.constant 3 : index
    %c0_32 = arith.constant 0 : index
    %23 = vector.load %arg1[%c0_29, %c1_30, %c3_31, %c0_32] : memref<1x3x24x256xbf16, #tpu.memory_space<vmem>>, vector<1x1x16x256xbf16>
    %24 = vector.shape_cast %23 : vector<1x1x16x256xbf16> to vector<16x256xbf16>
    %25 = tpu.concatenate %22, %24 in 0 : vector<16x256xbf16>, vector<16x256xbf16> -> vector<32x256xbf16>
    %c2 = arith.constant 2 : index
    %c0_33 = arith.constant 0 : index
    %c0_34 = arith.constant 0 : index
    %26 = vector.load %arg2[%c2, %c0_33, %c0_34] : memref<8x256x128xbf16, #tpu.memory_space<vmem>>, vector<1x256x128xbf16>
    %27 = vector.shape_cast %26 : vector<1x256x128xbf16> to vector<256x128xbf16>
    %cst_35 = arith.constant dense<0.000000e+00> : vector<32x128xf32>
    %28 = tpu.matmul %25, %27, %cst_35 {dimension_numbers = #tpu.dot_dimension_numbers<[1], [0], [0], [1], [0, 0, 1, 1], [], []>} : vector<32x256xbf16>, vector<256x128xbf16>, vector<32x128xf32> -> vector<32x128xf32>
    %29 = arith.addf %20, %28 : vector<32x128xf32>
    %c0_36 = arith.constant 0 : index
    %c0_37 = arith.constant 0 : index
    %c4 = arith.constant 4 : index
    %c0_38 = arith.constant 0 : index
    %30 = vector.load %arg1[%c0_36, %c0_37, %c4, %c0_38] : memref<1x3x24x256xbf16, #tpu.memory_space<vmem>>, vector<1x1x16x256xbf16>
    %31 = vector.shape_cast %30 : vector<1x1x16x256xbf16> to vector<16x256xbf16>
    %c0_39 = arith.constant 0 : index
    %c1_40 = arith.constant 1 : index
    %c4_41 = arith.constant 4 : index
    %c0_42 = arith.constant 0 : index
    %32 = vector.load %arg1[%c0_39, %c1_40, %c4_41, %c0_42] : memref<1x3x24x256xbf16, #tpu.memory_space<vmem>>, vector<1x1x16x256xbf16>
    %33 = vector.shape_cast %32 : vector<1x1x16x256xbf16> to vector<16x256xbf16>
    %34 = tpu.concatenate %31, %33 in 0 : vector<16x256xbf16>, vector<16x256xbf16> -> vector<32x256xbf16>
    %c3_43 = arith.constant 3 : index
    %c0_44 = arith.constant 0 : index
    %c0_45 = arith.constant 0 : index
    %35 = vector.load %arg2[%c3_43, %c0_44, %c0_45] : memref<8x256x128xbf16, #tpu.memory_space<vmem>>, vector<1x256x128xbf16>
    %36 = vector.shape_cast %35 : vector<1x256x128xbf16> to vector<256x128xbf16>
    %cst_46 = arith.constant dense<0.000000e+00> : vector<32x128xf32>
    %37 = tpu.matmul %34, %36, %cst_46 {dimension_numbers = #tpu.dot_dimension_numbers<[1], [0], [0], [1], [0, 0, 1, 1], [], []>} : vector<32x256xbf16>, vector<256x128xbf16>, vector<32x128xf32> -> vector<32x128xf32>
    %38 = arith.addf %29, %37 : vector<32x128xf32>
    %c0_47 = arith.constant 0 : index
    %c1_48 = arith.constant 1 : index
    %c0_49 = arith.constant 0 : index
    %c0_50 = arith.constant 0 : index
    %39 = vector.load %arg1[%c0_47, %c1_48, %c0_49, %c0_50] : memref<1x3x24x256xbf16, #tpu.memory_space<vmem>>, vector<1x1x16x256xbf16>
    %40 = vector.shape_cast %39 : vector<1x1x16x256xbf16> to vector<16x256xbf16>
    %c0_51 = arith.constant 0 : index
    %c2_52 = arith.constant 2 : index
    %c0_53 = arith.constant 0 : index
    %c0_54 = arith.constant 0 : index
    %41 = vector.load %arg1[%c0_51, %c2_52, %c0_53, %c0_54] : memref<1x3x24x256xbf16, #tpu.memory_space<vmem>>, vector<1x1x16x256xbf16>
    %42 = vector.shape_cast %41 : vector<1x1x16x256xbf16> to vector<16x256xbf16>
    %43 = tpu.concatenate %40, %42 in 0 : vector<16x256xbf16>, vector<16x256xbf16> -> vector<32x256xbf16>
    %c4_55 = arith.constant 4 : index
    %c0_56 = arith.constant 0 : index
    %c0_57 = arith.constant 0 : index
    %44 = vector.load %arg2[%c4_55, %c0_56, %c0_57] : memref<8x256x128xbf16, #tpu.memory_space<vmem>>, vector<1x256x128xbf16>
    %45 = vector.shape_cast %44 : vector<1x256x128xbf16> to vector<256x128xbf16>
    %cst_58 = arith.constant dense<0.000000e+00> : vector<32x128xf32>
    %46 = tpu.matmul %43, %45, %cst_58 {dimension_numbers = #tpu.dot_dimension_numbers<[1], [0], [0], [1], [0, 0, 1, 1], [], []>} : vector<32x256xbf16>, vector<256x128xbf16>, vector<32x128xf32> -> vector<32x128xf32>
    %47 = arith.addf %38, %46 : vector<32x128xf32>
    %c0_59 = arith.constant 0 : index
    %c1_60 = arith.constant 1 : index
    %c1_61 = arith.constant 1 : index
    %c0_62 = arith.constant 0 : index
    %48 = vector.load %arg1[%c0_59, %c1_60, %c1_61, %c0_62] : memref<1x3x24x256xbf16, #tpu.memory_space<vmem>>, vector<1x1x16x256xbf16>
    %49 = vector.shape_cast %48 : vector<1x1x16x256xbf16> to vector<16x256xbf16>
    %c0_63 = arith.constant 0 : index
    %c2_64 = arith.constant 2 : index
    %c1_65 = arith.constant 1 : index
    %c0_66 = arith.constant 0 : index
    %50 = vector.load %arg1[%c0_63, %c2_64, %c1_65, %c0_66] : memref<1x3x24x256xbf16, #tpu.memory_space<vmem>>, vector<1x1x16x256xbf16>
    %51 = vector.shape_cast %50 : vector<1x1x16x256xbf16> to vector<16x256xbf16>
    %52 = tpu.concatenate %49, %51 in 0 : vector<16x256xbf16>, vector<16x256xbf16> -> vector<32x256xbf16>
    %c5 = arith.constant 5 : index
    %c0_67 = arith.constant 0 : index
    %c0_68 = arith.constant 0 : index
    %53 = vector.load %arg2[%c5, %c0_67, %c0_68] : memref<8x256x128xbf16, #tpu.memory_space<vmem>>, vector<1x256x128xbf16>
    %54 = vector.shape_cast %53 : vector<1x256x128xbf16> to vector<256x128xbf16>
    %cst_69 = arith.constant dense<0.000000e+00> : vector<32x128xf32>
    %55 = tpu.matmul %52, %54, %cst_69 {dimension_numbers = #tpu.dot_dimension_numbers<[1], [0], [0], [1], [0, 0, 1, 1], [], []>} : vector<32x256xbf16>, vector<256x128xbf16>, vector<32x128xf32> -> vector<32x128xf32>
    %56 = arith.addf %47, %55 : vector<32x128xf32>
    %c0_70 = arith.constant 0 : index
    %c1_71 = arith.constant 1 : index
    %c3_72 = arith.constant 3 : index
    %c0_73 = arith.constant 0 : index
    %57 = vector.load %arg1[%c0_70, %c1_71, %c3_72, %c0_73] : memref<1x3x24x256xbf16, #tpu.memory_space<vmem>>, vector<1x1x16x256xbf16>
    %58 = vector.shape_cast %57 : vector<1x1x16x256xbf16> to vector<16x256xbf16>
    %c0_74 = arith.constant 0 : index
    %c2_75 = arith.constant 2 : index
    %c3_76 = arith.constant 3 : index
    %c0_77 = arith.constant 0 : index
    %59 = vector.load %arg1[%c0_74, %c2_75, %c3_76, %c0_77] : memref<1x3x24x256xbf16, #tpu.memory_space<vmem>>, vector<1x1x16x256xbf16>
    %60 = vector.shape_cast %59 : vector<1x1x16x256xbf16> to vector<16x256xbf16>
    %61 = tpu.concatenate %58, %60 in 0 : vector<16x256xbf16>, vector<16x256xbf16> -> vector<32x256xbf16>
    %c6 = arith.constant 6 : index
    %c0_78 = arith.constant 0 : index
    %c0_79 = arith.constant 0 : index
    %62 = vector.load %arg2[%c6, %c0_78, %c0_79] : memref<8x256x128xbf16, #tpu.memory_space<vmem>>, vector<1x256x128xbf16>
    %63 = vector.shape_cast %62 : vector<1x256x128xbf16> to vector<256x128xbf16>
    %cst_80 = arith.constant dense<0.000000e+00> : vector<32x128xf32>
    %64 = tpu.matmul %61, %63, %cst_80 {dimension_numbers = #tpu.dot_dimension_numbers<[1], [0], [0], [1], [0, 0, 1, 1], [], []>} : vector<32x256xbf16>, vector<256x128xbf16>, vector<32x128xf32> -> vector<32x128xf32>
    %65 = arith.addf %56, %64 : vector<32x128xf32>
    %c0_81 = arith.constant 0 : index
    %c1_82 = arith.constant 1 : index
    %c4_83 = arith.constant 4 : index
    %c0_84 = arith.constant 0 : index
    %66 = vector.load %arg1[%c0_81, %c1_82, %c4_83, %c0_84] : memref<1x3x24x256xbf16, #tpu.memory_space<vmem>>, vector<1x1x16x256xbf16>
    %67 = vector.shape_cast %66 : vector<1x1x16x256xbf16> to vector<16x256xbf16>
    %c0_85 = arith.constant 0 : index
    %c2_86 = arith.constant 2 : index
    %c4_87 = arith.constant 4 : index
    %c0_88 = arith.constant 0 : index
    %68 = vector.load %arg1[%c0_85, %c2_86, %c4_87, %c0_88] : memref<1x3x24x256xbf16, #tpu.memory_space<vmem>>, vector<1x1x16x256xbf16>
    %69 = vector.shape_cast %68 : vector<1x1x16x256xbf16> to vector<16x256xbf16>
    %70 = tpu.concatenate %67, %69 in 0 : vector<16x256xbf16>, vector<16x256xbf16> -> vector<32x256xbf16>
    %c7 = arith.constant 7 : index
    %c0_89 = arith.constant 0 : index
    %c0_90 = arith.constant 0 : index
    %71 = vector.load %arg2[%c7, %c0_89, %c0_90] : memref<8x256x128xbf16, #tpu.memory_space<vmem>>, vector<1x256x128xbf16>
    %72 = vector.shape_cast %71 : vector<1x256x128xbf16> to vector<256x128xbf16>
    %cst_91 = arith.constant dense<0.000000e+00> : vector<32x128xf32>
    %73 = tpu.matmul %70, %72, %cst_91 {dimension_numbers = #tpu.dot_dimension_numbers<[1], [0], [0], [1], [0, 0, 1, 1], [], []>} : vector<32x256xbf16>, vector<256x128xbf16>, vector<32x128xf32> -> vector<32x128xf32>
    %74 = arith.addf %65, %73 : vector<32x128xf32>
    %75 = vector.broadcast %0 : vector<1x128xf32> to vector<32x128xf32>
    %76 = arith.mulf %74, %75 : vector<32x128xf32>
    %77 = vector.broadcast %1 : vector<1x128xf32> to vector<32x128xf32>
    %78 = arith.addf %76, %77 : vector<32x128xf32>
    %cst_92 = arith.constant 0.000000e+00 : f32
    %79 = vector.broadcast %cst_92 : f32 to vector<32x128xf32>
    %80 = arith.maximumf %78, %79 : vector<32x128xf32>
    %81 = arith.truncf %80 : vector<32x128xf32> to vector<32x128xbf16>
    %c0_93 = arith.constant 0 : index
    %c0_94 = arith.constant 0 : index
    %c0_95 = arith.constant 0 : index
    %82 = vector.load %arg5[%c0_93, %c0_94, %c0_95] : memref<1x32x128xbf16, #tpu.memory_space<vmem>>, vector<1x32x128xbf16>
    %83 = vector.shape_cast %82 : vector<1x32x128xbf16> to vector<32x128xbf16>
    %84 = vector.shape_cast %81 : vector<32x128xbf16> to vector<1x32x128xbf16>
    tpu.vector_store %arg5[%c0_93, %c0_94, %c0_95], %84 {strides = array<i32>} : memref<1x32x128xbf16, #tpu.memory_space<vmem>>, vector<1x32x128xbf16>,
    return
  }
  func.func @transform_0(%arg0: i32) -> (i32, i32, i32, i32) {
    %c0_i32 = arith.constant 0 : i32
    %c0_i32_0 = arith.constant 0 : i32
    %c0_i32_1 = arith.constant 0 : i32
    %c0_i32_2 = arith.constant 0 : i32
    return %arg0, %c0_i32, %c0_i32_0, %c0_i32_1 : i32, i32, i32, i32
  }
  func.func @transform_1(%arg0: i32) -> (i32, i32, i32) {
    %c0_i32 = arith.constant 0 : i32
    %c0_i32_0 = arith.constant 0 : i32
    %c0_i32_1 = arith.constant 0 : i32
    %c0_i32_2 = arith.constant 0 : i32
    return %c0_i32, %c0_i32_0, %c0_i32_1 : i32, i32, i32
  }
  func.func @transform_2(%arg0: i32) -> (i32, i32) {
    %c0_i32 = arith.constant 0 : i32
    %c0_i32_0 = arith.constant 0 : i32
    %c0_i32_1 = arith.constant 0 : i32
    return %c0_i32, %c0_i32_0 : i32, i32
  }
  func.func @transform_3(%arg0: i32) -> (i32, i32) {
    %c0_i32 = arith.constant 0 : i32
    %c0_i32_0 = arith.constant 0 : i32
    %c0_i32_1 = arith.constant 0 : i32
    return %c0_i32, %c0_i32_0 : i32, i32
  }
  func.func @transform_4(%arg0: i32) -> (i32, i32, i32) {
    %c0_i32 = arith.constant 0 : i32
    %c0_i32_0 = arith.constant 0 : i32
    %c0_i32_1 = arith.constant 0 : i32
    return %arg0, %c0_i32, %c0_i32_0 : i32, i32, i32
  }
}

module attributes {stable_mosaic.version = 11 : i64} {
  func.func @_linear_kernel(%arg0: memref<8x512xbf16, #tpu.memory_space<vmem>>, %arg1: memref<512x256xbf16, #tpu.memory_space<vmem>>, %arg2: memref<1x256xf32, #tpu.memory_space<vmem>>, %arg3: memref<8x256xf32, #tpu.memory_space<vmem>>) attributes {dimension_semantics = [], scalar_prefetch = 0 : i64, scratch_operands = 0 : i64, tpu.core_type = #tpu.core_type<tc>} {
    %c0 = arith.constant 0 : index
    %c0_0 = arith.constant 0 : index
    %0 = vector.load %arg0[%c0, %c0_0] : memref<8x512xbf16, #tpu.memory_space<vmem>>, vector<8x512xbf16>
    %c0_1 = arith.constant 0 : index
    %c0_2 = arith.constant 0 : index
    %1 = vector.load %arg1[%c0_1, %c0_2] : memref<512x256xbf16, #tpu.memory_space<vmem>>, vector<512x256xbf16>
    %cst = arith.constant dense<0.000000e+00> : vector<8x256xf32>
    %2 = tpu.matmul %0, %1, %cst {dimension_numbers = #tpu.dot_dimension_numbers<[1], [0], [0], [1], [0, 0, 1, 1], [], []>} : vector<8x512xbf16>, vector<512x256xbf16>, vector<8x256xf32> -> vector<8x256xf32>
    %c0_3 = arith.constant 0 : index
    %c0_4 = arith.constant 0 : index
    %3 = vector.load %arg2[%c0_3, %c0_4] : memref<1x256xf32, #tpu.memory_space<vmem>>, vector<1x256xf32>
    %4 = vector.broadcast %3 : vector<1x256xf32> to vector<8x256xf32>
    %5 = arith.addf %2, %4 : vector<8x256xf32>
    %cst_5 = arith.constant 0.000000e+00 : f32
    %6 = vector.broadcast %cst_5 : f32 to vector<8x256xf32>
    %7 = arith.maximumf %5, %6 : vector<8x256xf32>
    %c0_6 = arith.constant 0 : index
    %c0_7 = arith.constant 0 : index
    %8 = vector.load %arg3[%c0_6, %c0_7] : memref<8x256xf32, #tpu.memory_space<vmem>>, vector<8x256xf32>
    tpu.vector_store %arg3[%c0_6, %c0_7], %7 {strides = array<i32>} : memref<8x256xf32, #tpu.memory_space<vmem>>, vector<8x256xf32>,
    return
  }
}

</mosaic_0001>

<bundles_post_ra>
// kernel: pallas_encoder.4
= control target key start
LH: loop header
LB: loop body
LE: loop exit
PB: predicated region body
PF: predicated region fallthrough
CT: control target
= control target key end

     0   :  { %s5347_s15 = smov 0   ;;  %s7988_s0 = inlined_call_operand.vmem [shape: bf16[2,9,96,8], index: 0, kind: input, shape index: {}]   ;;  %s7989_s1 = inlined_call_operand.vmem [shape: bf16[1,64,128], index: 1, kind: input, shape index: {}]   ;;  %s7990_s2 = inlined_call_operand.vmem [shape: f32[1,128], index: 2, kind: input, shape index: {}]   ;;  %s7991_s3 = inlined_call_operand.vmem [shape: f32[1,128], index: 3, kind: input, shape index: {}]   ;;  %s7992_s4 = inlined_call_operand.vmem [shape: bf16[2,640,128], index: 4, kind: output, shape index: {}]  }
   0x1 LB: > { %s4092_s16 = sadd.s32 4294967295, %s5313_s15   ;;  %p4096_p0 = scmp.ge.s32.totalorder %s5313_s15, 1  ;;  %s5313_s15 = sphi %s5347_s15, %s14_s15  }
   0x2   : > { %p162_p1 = scmp.lt.s32.totalorder %s5313_s15, 3 }
   0x4   : > { %p163_p2 = pnand %p4096_p0, %p162_p1 }
   0x6   : > { %166 = sbr.rel (%p163_p2) target bundleno = 1035 (0x40b), region = 36 }
   0xb   : > { %p188_p3 = scmp.lt.s32.totalorder %s4092_s16, 1  ;;  %vm258_vm0 = vsmask.f32 7424  ;;  %s5315_s21 = smov 8   ;;  %vm380_vm1 = vcmask 1046528   ;;  %vm582_vm2 = vcmask 64512  }
   0xc   : > { %s5316_s22 = smov 16   ;;  %s5317_s23 = smov 24   ;;  %vm593_vm3 = vcmask 130048   ;;  %vm604_vm4 = vcmask 195584   ;;  %vm615_vm5 = vcmask 261120   ;;  %vm626_vm6 = vcmask 326656  }
   0xd   : > { %s8077_s16 = smov (!%p188_p3, %s4092_s16), 1  ;;  %s5318_s24 = smov 32   ;;  %vm637_vm7 = vcmask 392192   ;;  %vm986_vm8 = vcmask 523264   ;;  %vm648_vm9 = vcmask 457728  }
   0xe   : > { %s5249_s17 = smul.u32 432, %s8077_s16  ;;  %s5319_s25 = smov 40  }
   0xf   : > { %s5320_s26 = smov 48   ;;  %s5321_s27 = smov 56  }
  0x10   : > { %s5361_s20 = scalar_lea.vmem %s7988_s0, %s5249_s17  ;;  %s5250_s14 = smul.u32 320, %s8077_s16 }
  0x11   : > { %v5364_v0 = vld [vmem:[%s5361_s20 + $0x10] sm:$0xff]   ;;  %v5367_v1 = vld [vmem:[%s5361_s20 + $0x18] sm:$0xff]   ;;  %v5370_v2 = vld [vmem:[%s5361_s20] sm:$0xff]  }
  0x12   : > { %v275_v3 = vshll.u32 %v5364_v0, 16  ;;  %v279_v4 = vshrl.u32 %v5364_v0, 16  ;;  %v283_v5 = vshll.u32 %v5367_v1, 16  ;;  %v5376_v6 = vld [vmem:[%s5361_s20 + $0x8] sm:$0xff]   ;;  %v4818_v7 = vld [vmem:[%s5361_s20 + $0x20] sm:$0xff]   ;;  %v260_v8 = vshrl.u32 %v5370_v2, 16  ;;  %s6203_s28 = scalar_lea.vmem %s7992_s4, %s5250_s14 }
  0x13   : > { %v262_v9 = vshll.u32 %v5370_v2, 16  ;;  %v267_v10 = vshll.u32 %v5376_v6, 16  ;;  %v211_v11 = vld [vmem:[%s5361_s20 + $0x28] sm:$0x1]  ;;  %v291_v12 = vshll.u32 %v4818_v7, 16  ;;  %v295_v16 = vshrl.u32 %v4818_v7, 16 }
  0x14   : > { %v277_v13 = vrot.slane %v275_v3, 1  ;;  %v285_v14 = vrot.slane %v283_v5, 1  ;;  %v256_v15 = vunpack.c.l.b16 %v211_v11  ;;  %v5384_v17 = vld [vmem:[%s5361_s20 + $0x1c] sm:$0xff]   ;;  %v287_v21 = vshrl.u32 %v5367_v1, 16  ;;  %v5388_v24 = vld [vmem:[%s5361_s20 + $0x24] sm:$0xff]  ;;  %v5392_v26 = vld [vmem:[%s5361_s20 + $0x14] sm:$0xff]  }
  0x15   : > { %v264_v18 = vrot.slane %v262_v9, 1  ;;  %v269_v19 = vrot.slane %v267_v10, 1  ;;  %v293_v20 = vrot.slane %v291_v12, 1  ;;  %v347_v25 = vshll.u32 %v5384_v17, 16  ;;  %v5396_v29 = vld [vmem:[%s5361_s20 + $0xc] sm:$0xff]  }
  0x16   : > { %v281_v22 = vor.u32 %v279_v4, %v277_v13  ;;  %v257_v23 = vpack.c.b16 %v256_v15, %v256_v15  ;;  %v271_v28 = vshrl.u32 %v5376_v6, 16  ;;  %v289_v34 = vor.u32 %v287_v21, %v285_v14  ;;  %v213_v45 = vld [vmem:[%s5361_s20 + $0x2c] sm:$0x1]  ;;  %v214_v52 = vld [vmem:[%s5361_s20 + $0x4] sm:$0xe] }
  0x17   : > { %v265_v27 = vor.u32 %v264_v18, %v260_v8  ;;  %v297_v31 = vor.u32 %v295_v16, %v293_v20  ;;  %v349_v35 = vrot.slane %v347_v25, 1  ;;  %v351_v36 = vshrl.u32 %v5384_v17, 16 }
  0x18   : > { %v286_v30 = vsel %vm258_vm0, %v281_v22, %v285_v14  ;;  %v299_v32 = vshll.u32 %v257_v23, 16  ;;  %v355_v38 = vshll.u32 %v5388_v24, 16  ;;  %v339_v39 = vshll.u32 %v5392_v26, 16 }
  0x19   : > { %307 = vrot.lane.b32.xlu1 %v286_v30, %s5315_s21  ;;  %v270_v33 = vsel %vm258_vm0, %v265_v27, %v269_v19  ;;  %v273_v40 = vor.u32 %v271_v28, %v269_v19  ;;  %v331_v41 = vshll.u32 %v5396_v29, 16  ;;  %v4378_v42 = vunpack.c.h.b16 %v5370_v2 }
  0x1a   : > { %303 = vrot.lane.b32.xlu0 %v270_v33, %s5315_s21  ;;  %v301_v37 = vrot.slane %v299_v32, 1  ;;  %v4381_v44 = vunpack.c.l.b16 %v5376_v6  ;;  %v294_v46 = vsel %vm258_vm0, %v289_v34, %v293_v20  ;;  %v353_v47 = vor.u32 %v351_v36, %v349_v35  ;;  %v4109_v36 = vld [vmem:[%s5361_s20 + $0x58] sm:$0x1] }
  0x1b   : > { %v357_v48 = vrot.slane %v355_v38, 1  ;;  %v341_v49 = vrot.slane %v339_v39, 1  ;;  %v343_v50 = vshrl.u32 %v5392_v26, 16  ;;  %v278_v53 = vsel %vm258_vm0, %v273_v40, %v277_v13  ;;  %v4822_v38 = vld [vmem:[%s5361_s20 + $0x48] sm:$0xff]  }
  0x1c   : > { %v302_v43 = vsel %vm258_vm0, %v297_v31, %v301_v37  ;;  %v317_v51 = vpack.c.b16 %v4381_v44, %v4378_v42  ;;  %v333_v54 = vrot.slane %v331_v41, 1  ;;  %v335_v55 = vshrl.u32 %v5396_v29, 16  ;;  %v4821_v31 = vld [vmem:[%s5361_s20 + $0x40] sm:$0xff]   ;;  %v4823_v41 = vld [vmem:[%s5361_s20 + $0x50] sm:$0xff]  }
  0x1d   : > { %311 = vrot.lane.b32.xlu2 %v302_v43, %s5315_s21  ;;  %v316_v56 = vunpack.c.l.b16 %v213_v45  ;;  %v378_v58 = vunpack.c.l.b16 %v214_v52  ;;  %v358_v59 = vsel %vm258_vm0, %v353_v47, %v357_v48  ;;  %v345_v60 = vor.u32 %v343_v50, %v341_v49 }
  0x1e   : > { %v326_v57 = vshll.u32 %v317_v51, 16  ;;  %v324_v61 = vshrl.u32 %v317_v51, 16  ;;  %v337_v63 = vor.u32 %v335_v55, %v333_v54  ;;  %v359_v9 = vshrl.u32 %v5388_v24, 16 }
  0x1f   : > { %v322_v3 = vpack.c.b16 %v316_v56, %v316_v56  ;;  %v350_v4 = vsel %vm258_vm0, %v345_v60, %v349_v35  ;;  %v379_v7 = vpack.c.b16 %v4381_v44, %v378_v58  ;;  %v382_v13 = vrot.slane %v5396_v29, 1 }
  0x20   : > { %v328_v62 = vrot.slane %v326_v57, 1  ;;  %v342_v8 = vsel %vm258_vm0, %v337_v63, %v341_v49  ;;  %v361_v14 = vor.u32 %v359_v9, %v357_v48  ;;  %v384_v18 = vrot.slane %v5392_v26, 1  ;;  %v5462_v48 = vld [vmem:[%s5361_s20 + $0x3c] sm:$0xff]   ;;  %v5478_v63 = vld [vmem:[%s5361_s20 + $0x4c] sm:$0xff]  }
  0x21   : > { %309 = vrot.lane.b32.xlu1 %v294_v46, %s5315_s21  ;;  %v363_v10 = vshll.u32 %v322_v3, 16  ;;  %v381_v12 = vrot.slane %v379_v7, 1  ;;  %v386_v21 = vrot.slane %v5384_v17, 1  ;;  %v388_v22 = vrot.slane %v5388_v24, 1  ;;  %v4819_v17 = vld [vmem:[%s5361_s20 + $0x30] sm:$0xff]   ;;  %v5445_v24 = vld [vmem:[%s5361_s20 + $0x38] sm:$0xff]  }
  0x22   : > { %305 = vrot.lane.b32.xlu0 %v278_v53, %s5315_s21  ;;  %v329_v5 = vor.u32 %v328_v62, %v324_v61  ;;  %v385_v20 = vsel %vm380_vm1, %v382_v13, %v384_v18  ;;  %v390_v25 = vrot.slane %v322_v3, 1  ;;  %v443_v28 = vshll.u32 %v4819_v17, 16  ;;  %v4111_v7 = vld [vmem:[%s5361_s20 + $0x5c] sm:$0x1] }
  0x23   : > { %v365_v15 = vrot.slane %v363_v10, 1  ;;  %v383_v16 = vsel %vm380_vm1, %v381_v12, %v382_v13  ;;  %v389_v23 = vsel %vm380_vm1, %v386_v21, %v388_v22  ;;  %v387_v26 = vsel %vm380_vm1, %v384_v18, %v386_v21  ;;  %v5168_v13 = vld [vmem:[%s5361_s20 + $0x54] sm:$0xff] }
  0x24   : > { %v334_v11 = vsel %vm258_vm0, %v329_v5, %v333_v54  ;;  %v391_v27 = vsel %vm380_vm1, %v388_v22, %v390_v25  ;;  %v4401_v29 = vunpack.c.l.b16 %v5445_v24  ;;  %v4398_v30 = vunpack.c.h.b16 %v4819_v17 }
  0x25   : > { %373 = vrot.lane.b32.xlu2 %v358_v59, %s5316_s22  ;;  %v366_v19 = vsel %vm258_vm0, %v361_v14, %v365_v15  ;;  %v456_v32 = vshll.u32 %v4821_v31, 16  ;;  %v441_v33 = vshrl.u32 %v4819_v17, 16  ;;  %v445_v34 = vrot.slane %v443_v28, 1  ;;  %v5472_v59 = vld [vmem:[%s5361_s20 + $0x44] sm:$0xff]   ;;  %v4112_v28 = vld [vmem:[%s5361_s20 + $0x34] sm:$0xe] }
  0x26   : > { %v448_v35 = vshll.u32 %v5445_v24, 16  ;;  %v460_v37 = vshrl.u32 %v4821_v31, 16  ;;  %v498_v39 = vpack.c.b16 %v4401_v29, %v4398_v30  ;;  %v464_v44 = vshll.u32 %v4822_v38, 16 }
  0x27   : > { %v458_v40 = vrot.slane %v456_v32, 1  ;;  %v446_v42 = vor.u32 %v445_v34, %v441_v33  ;;  %v452_v45 = vshrl.u32 %v5445_v24, 16  ;;  %v438_v46 = vunpack.c.l.b16 %v4109_v36 }
  0x28   : > { %v450_v43 = vrot.slane %v448_v35, 1  ;;  %v468_v47 = vshrl.u32 %v4822_v38, 16  ;;  %v507_v49 = vshll.u32 %v498_v39, 16  ;;  %v466_v52 = vrot.slane %v464_v44, 1 }
  0x29   : > { %371 = vrot.lane.b32.xlu1 %v350_v4, %s5316_s22  ;;  %v462_v51 = vor.u32 %v460_v37, %v458_v40  ;;  %v472_v53 = vshll.u32 %v4823_v41, 16  ;;  %v439_v55 = vpack.c.b16 %v438_v46, %v438_v46  ;;  %v505_v56 = vshrl.u32 %v498_v39, 16 }
  0x2a   : > { %369 = vrot.lane.b32.xlu0 %v342_v8, %s5316_s22  ;;  %v5466_v50 = vsel %vm258_vm0, %v446_v42, %v450_v43  ;;  %v454_v54 = vor.u32 %v452_v45, %v450_v43  ;;  %v509_v57 = vrot.slane %v507_v49, 1  ;;  %v512_v58 = vshll.u32 %v5462_v48, 16 }
  0x2b   : > { %v5475_v60 = vsel %vm258_vm0, %v462_v51, %v466_v52  ;;  %v470_v61 = vor.u32 %v468_v47, %v466_v52  ;;  %v474_v62 = vrot.slane %v472_v53, 1  ;;  %v476_v3 = vshrl.u32 %v4823_v41, 16 }
  0x2c   : > { %v5481_v4 = vsel %vm258_vm0, %v454_v54, %v458_v40  ;;  %v480_v5 = vshll.u32 %v439_v55, 16  ;;  %v510_v8 = vor.u32 %v509_v57, %v505_v56  ;;  %v514_v9 = vrot.slane %v512_v58, 1 }
  0x2d   : > { %367 = vrot.lane.b32.xlu2 %v334_v11, %s5316_s22  ;;  %v516_v10 = vshrl.u32 %v5462_v48, 16  ;;  %v520_v11 = vshll.u32 %v5472_v59, 16  ;;  %v475_v12 = vsel %vm258_vm0, %v470_v61, %v474_v62  ;;  %v528_v14 = vshll.u32 %v5478_v63, 16  ;;  %v4864_v61 = vld [vmem:[%s5361_s20 + $0x60] sm:$0xff]  }
  0x2e   : > { %v497_v15 = vunpack.c.l.b16 %v4111_v7  ;;  %v482_v18 = vrot.slane %v480_v5, 1  ;;  %v536_v25 = vshll.u32 %v5168_v13, 16  ;;  %v540_v33 = vshrl.u32 %v5168_v13, 16 }
  0x2f   : > { %v522_v21 = vrot.slane %v520_v11, 1  ;;  %v530_v22 = vrot.slane %v528_v14, 1  ;;  %v559_v36 = vunpack.c.l.b16 %v4112_v28  ;;  %v562_v43 = vrot.slane %v5462_v48, 1  ;;  %v4123_v11 = vld [vmem:[%s5361_s20 + $0x88] sm:$0x1]  ;;  %v5583_v28 = vld [vmem:[%s5361_s20 + $0x6c] sm:$0xff]  }
  0x30   : > { %v538_v32 = vrot.slane %v536_v25, 1  ;;  %v564_v44 = vrot.slane %v5472_v59, 1  ;;  %v566_v47 = vrot.slane %v5478_v63, 1  ;;  %v568_v49 = vrot.slane %v5168_v13, 1 }
  0x31   : > { %392 = vrot.lane.b32.xlu1 %v383_v16, %s5317_s23  ;;  %v478_v16 = vor.u32 %v476_v3, %v474_v62  ;;  %v745_v62 = vshll.u32 %v4864_v61, 16  ;;  %v743_v5 = vshrl.u32 %v4864_v61, 16 }
  0x32   : > { %375 = vrot.lane.b32.xlu0 %v366_v19, %s5316_s22  ;;  %v515_v19 = vsel %vm258_vm0, %v510_v8, %v514_v9  ;;  %v565_v46 = vsel %vm380_vm1, %v562_v43, %v564_v44  ;;  %v569_v52 = vsel %vm380_vm1, %v566_v47, %v568_v49  ;;  %v4866_v8 = vld [vmem:[%s5361_s20 + $0x70] sm:$0xff]  }
  0x33   : > { %v747_v7 = vrot.slane %v745_v62, 1  ;;  %v758_v13 = vshll.u32 %v4866_v8, 16 }
  0x35   : > { %394 = vrot.lane.b32.xlu2 %v385_v20, %s5317_s23  ;;  %v518_v20 = vor.u32 %v516_v10, %v514_v9  ;;  %v760_v25 = vrot.slane %v758_v13, 1 }
  0x37   : > { %v523_v30 = vsel %vm258_vm0, %v518_v20, %v522_v21  ;;  %v4418_v20 = vunpack.c.h.b16 %v4864_v61 }
  0x39   : > { %398 = vrot.lane.b32.xlu1 %v389_v23, %s5317_s23  ;;  %v532_v23 = vshrl.u32 %v5478_v63, 16 }
  0x3a   : > { %396 = vrot.lane.b32.xlu0 %v387_v26, %s5317_s23  ;;  %v503_v26 = vpack.c.b16 %v497_v15, %v497_v15 }
  0x3c   : > { %v544_v34 = vshll.u32 %v503_v26, 16  ;;  %v570_v48 = vrot.slane %v503_v26, 1 }
  0x3d   : > { %400 = vrot.lane.b32.xlu2 %v391_v27, %s5317_s23  ;;  %v483_v27 = vsel %vm258_vm0, %v478_v16, %v482_v18  ;;  %v748_v16 = vor.u32 %v747_v7, %v743_v5  ;;  %v4362_v7 = vld [vmem:[%s7989_s1 + $0x18] sm:$0xff] }
  0x3e   : > { %v546_v39 = vrot.slane %v544_v34, 1  ;;  %v571_v51 = vsel %vm380_vm1, %v568_v49, %v570_v48  ;;  %v762_v34 = vshrl.u32 %v4866_v8, 16  ;;  %v818_v49 = vshrl.u32 %v5583_v28, 16  ;;  %1011 = vmatpush.bf16.msra.mxu0 %v4362_v7 }
  0x41   : > { %429 = vrot.lane.b32.xlu1 %v5445_v24, %s5318_s24 }
  0x42   : > { %427 = vrot.lane.b32.xlu0 %v4819_v17, %s5318_s24  ;;  %v524_v17 = vshrl.u32 %v5472_v59, 16 }
  0x44   : > { %v526_v35 = vor.u32 %v524_v17, %v522_v21  ;;  %v4868_v17 = vld [vmem:[%s5361_s20 + $0x80] sm:$0xff]  }
  0x45   : > { %431 = vrot.lane.b32.xlu2 %v4821_v31, %s5318_s24  ;;  %v534_v31 = vor.u32 %v532_v23, %v530_v22 }
  0x46   : > { %v531_v40 = vsel %vm258_vm0, %v526_v35, %v530_v22 }
  0x47   : > { %v539_v37 = vsel %vm258_vm0, %v534_v31, %v538_v32  ;;  %v774_v31 = vshll.u32 %v4868_v17, 16 }
  0x49   : > { %435 = vrot.lane.b32.xlu1 %v4823_v41, %s5318_s24  ;;  %v560_v41 = vpack.c.b16 %v4401_v29, %v559_v36  ;;  %v567_v29 = vsel %vm380_vm1, %v564_v44, %v566_v47  ;;  %v764_v44 = vor.u32 %v762_v34, %v760_v25  ;;  %v4125_v47 = vld [vmem:[%s5361_s20 + $0x8c] sm:$0x1] }
  0x4a   : > { %433 = vrot.lane.b32.xlu0 %v4822_v38, %s5318_s24  ;;  %v542_v38 = vor.u32 %v540_v33, %v538_v32  ;;  %v799_v5 = vunpack.c.l.b16 %v4125_v47 }
  0x4b   : > { %v561_v45 = vrot.slane %v560_v41, 1  ;;  %v778_v41 = vshrl.u32 %v4868_v17, 16 }
  0x4c   : > { %v547_v42 = vsel %vm258_vm0, %v542_v38, %v546_v39  ;;  %v5594_v38 = vld [vmem:[%s5361_s20 + $0x74] sm:$0xff]   ;;  %v814_v39 = vshll.u32 %v5583_v28, 16 }
  0x4d   : > { %484 = vrot.lane.b32.xlu2 %v5466_v50, %s5319_s25  ;;  %v563_v24 = vsel %vm380_vm1, %v561_v45, %v562_v43  ;;  %v822_v48 = vshll.u32 %v5594_v38, 16 }
  0x51   : > { %488 = vrot.lane.b32.xlu1 %v5475_v60, %s5319_s25 }
  0x52   : > { %486 = vrot.lane.b32.xlu0 %v5481_v4, %s5319_s25 }
  0x55   : > { %490 = vrot.lane.b32.xlu2 %v475_v12, %s5319_s25 }
  0x59   : > { %548 = vrot.lane.b32.xlu1 %v515_v19, %s5320_s26 }
  0x5a   : > { %492 = vrot.lane.b32.xlu0 %v483_v27, %s5319_s25 }
  0x5d   : > { %550 = vrot.lane.b32.xlu2 %v523_v30, %s5320_s26 }
  0x61   : > { %554 = vrot.lane.b32.xlu1 %v539_v37, %s5320_s26 }
  0x62   : > { %552 = vrot.lane.b32.xlu0 %v531_v40, %s5320_s26 }
  0x65   : > { %556 = vrot.lane.b32.xlu2 %v547_v42, %s5320_s26 }
  0x69   : > { %574 = vrot.lane.b32.xlu1 %v565_v46, %s5321_s27 }
  0x6a   : > { %572 = vrot.lane.b32.xlu0 %v563_v24, %s5321_s27 }
  0x6d   : > { %576 = vrot.lane.b32.xlu2 %v567_v29, %s5321_s27 }
  0x71   : > { %580 = vrot.lane.b32.xlu1 %v571_v51, %s5321_s27 }
  0x72   : > { %578 = vrot.lane.b32.xlu0 %v569_v52, %s5321_s27 }
  0x75   : > { %674 = vrot.lane.b32.xlu2 %v5466_v50, %s5315_s21 }
  0x77   : > { %v5526_v53 = vpop.permute.xlu2 %311 }
  0x79   : > { %678 = vrot.lane.b32.xlu1 %v5475_v60, %s5315_s21 }
  0x7a   : > { %676 = vrot.lane.b32.xlu0 %v5481_v4, %s5315_s21  ;;  %v4865_v4 = vld [vmem:[%s5361_s20 + $0x68] sm:$0xff]  }
  0x7b   : > { %v750_v9 = vshll.u32 %v4865_v4, 16  ;;  %v754_v15 = vshrl.u32 %v4865_v4, 16  ;;  %v5574_v21 = vunpack.c.l.b16 %v4865_v4 }
  0x7d   : > { %680 = vrot.lane.b32.xlu2 %v475_v12, %s5315_s21  ;;  %v4867_v12 = vld [vmem:[%s5361_s20 + $0x78] sm:$0xff]   ;;  %v752_v18 = vrot.slane %v750_v9, 1  ;;  %v800_v35 = vpack.c.b16 %v5574_v21, %v4418_v20 }
  0x7e   : > { %v766_v14 = vshll.u32 %v4867_v12, 16 }
  0x7f   : > { %v5533_v54 = vpop.permute.xlu2 %373  ;;  %v756_v32 = vor.u32 %v754_v15, %v752_v18  ;;  %v826_v15 = vshrl.u32 %v5594_v38, 16 }
  0x80   : > { %v768_v26 = vrot.slane %v766_v14, 1  ;;  %v824_v14 = vrot.slane %v822_v48, 1 }
  0x81   : > { %684 = vrot.lane.b32.xlu1 %v515_v19, %s5316_s22  ;;  %v740_v19 = vunpack.c.l.b16 %v4123_v11  ;;  %v807_v11 = vshrl.u32 %v800_v35, 16 }
  0x82   : > { %682 = vrot.lane.b32.xlu0 %v483_v27, %s5315_s21  ;;  %v770_v27 = vshrl.u32 %v4867_v12, 16  ;;  %v5627_v9 = vsel %vm258_vm0, %v764_v44, %v768_v26 }
  0x83   : > { %v741_v33 = vpack.c.b16 %v740_v19, %v740_v19  ;;  %v5637_v19 = vpack.c.b16 %v799_v5, %v799_v5  ;;  %v4359_v5 = vld [vmem:[%s7989_s1] sm:$0xff] }
  0x85   : > { %686 = vrot.lane.b32.xlu2 %v523_v30, %s5316_s22  ;;  %v5586_v30 = vsel %vm258_vm0, %v748_v16, %v752_v18  ;;  %v782_v43 = vshll.u32 %v741_v33, 16  ;;  %v828_v33 = vor.u32 %v826_v15, %v824_v14 }
  0x87   : > { %v5538_v50 = vpop.permute.xlu2 %367  ;;  %v784_v62 = vrot.slane %v782_v43, 1 }
  0x89   : > { %690 = vrot.lane.b32.xlu1 %v539_v37, %s5316_s22  ;;  %v772_v37 = vor.u32 %v770_v27, %v768_v26 }
  0x8a   : > { %688 = vrot.lane.b32.xlu0 %v531_v40, %s5316_s22  ;;  %v776_v40 = vrot.slane %v774_v31, 1 }
  0x8b   : > { %v5542_v55 = vpop.permute.xlu1 %307 }
  0x8c   : > { %v5544_v56 = vpop.permute.xlu0 %303 }
  0x8d   : > { %692 = vrot.lane.b32.xlu2 %v547_v42, %s5316_s22  ;;  %v5599_v42 = vsel %vm258_vm0, %v756_v32, %v760_v25  ;;  %v4361_v25 = vld [vmem:[%s7989_s1 + $0x10] sm:$0xff] }
  0x8e   : > { %1012 = vmatpush.bf16.msra.mxu0 %v4361_v25 }
  0x8f   : > { %v5547_v57 = vpop.permute.xlu2 %394 }
  0x91   : > { %696 = vrot.lane.b32.xlu1 %v565_v46, %s5317_s23  ;;  %v809_v46 = vshll.u32 %v800_v35, 16 }
  0x92   : > { %694 = vrot.lane.b32.xlu0 %v563_v24, %s5317_s23 }
  0x93   : > { %v5551_v58 = vpop.permute.xlu1 %309 }
  0x94   : > { %v5553_v59 = vpop.permute.xlu0 %305 }
  0x95   : > { %698 = vrot.lane.b32.xlu2 %v567_v29, %s5317_s23  ;;  %v816_v29 = vrot.slane %v814_v39, 1  ;;  %v846_v39 = vshll.u32 %v5637_v19, 16 }
  0x97   : > { %v5556_v60 = vpop.permute.xlu2 %400  ;;  %v820_v13 = vor.u32 %v818_v49, %v816_v29  ;;  %v848_v48 = vrot.slane %v846_v39, 1 }
  0x99   : > { %702 = vrot.lane.b32.xlu1 %v571_v51, %s5317_s23  ;;  %v5611_v51 = vld [vmem:[%s5361_s20 + $0x7c] sm:$0xff]   ;;  %v825_v32 = vsel %vm258_vm0, %v820_v13, %v824_v14  ;;  %v864_v14 = vrot.slane %v5583_v28, 1 }
  0x9a   : > { %700 = vrot.lane.b32.xlu0 %v569_v52, %s5317_s23  ;;  %v5613_v52 = vor.u32 %v778_v41, %v776_v40  ;;  %v830_v16 = vshll.u32 %v5611_v51, 16  ;;  %v4360_v41 = vld [vmem:[%s7989_s1 + $0x8] sm:$0xff]  ;;  %v868_v25 = vrot.slane %v5611_v51, 1 }
  0x9b   : > { %v5561_v63 = vpop.permute.xlu1 %371  ;;  %1013 = vmatpush.bf16.msra.mxu0 %v4360_v41 }
  0x9c   : > { %v5563_v3 = vpop.permute.xlu0 %369  ;;  %v785_v18 = vsel %vm258_vm0, %v5613_v52, %v784_v62  ;;  %v832_v34 = vrot.slane %v830_v16, 1 }
  0x9d   : > { %729 = vrot.lane.b32.xlu2 %v4864_v61, %s5318_s24  ;;  %v5616_v61 = vsel %vm258_vm0, %v772_v37, %v776_v40 }
  0x9e   : > { %v833_v47 = vsel %vm258_vm0, %v828_v33, %v832_v34 }
  0x9f   : > { %v5568_v10 = vpop.permute.xlu2 %431  ;;  %1014 = vmatpush.bf16.msra.mxu0 %v4359_v5 }
  0xa1   : > { %733 = vrot.lane.b32.xlu1 %v4866_v8, %s5318_s24 }
  0xa2   : > { %731 = vrot.lane.b32.xlu0 %v4865_v4, %s5318_s24  ;;  %v5619_v4 = vld [vmem:[%s5361_s20 + $0x84] sm:$0xff] }
  0xa3   : > { %v5576_v22 = vpop.permute.xlu1 %392  ;;  %v838_v20 = vshll.u32 %v5619_v4, 16  ;;  %v842_v37 = vshrl.u32 %v5619_v4, 16  ;;  %v870_v33 = vrot.slane %v5619_v4, 1  ;;  %v5703_v4 = vld [vmem:[%s5361_s20 + $0x6c] sm:$0xff]  }
  0xa4   : > { %v5578_v23 = vpop.permute.xlu0 %375 }
  0xa5   : > { %735 = vrot.lane.b32.xlu2 %v4867_v12, %s5318_s24  ;;  %v811_v12 = vrot.slane %v809_v46, 1  ;;  %v840_v35 = vrot.slane %v838_v20, 1  ;;  %v834_v46 = vshrl.u32 %v5611_v51, 16  ;;  %v866_v20 = vrot.slane %v5594_v38, 1 }
  0xa6   : > { %v871_v38 = vsel %vm380_vm1, %v868_v25, %v870_v33 }
  0xa7   : > { %v5589_v36 = vpop.permute.xlu2 %484  ;;  %v5645_v27 = vor.u32 %v811_v12, %v807_v11  ;;  %v844_v49 = vor.u32 %v842_v37, %v840_v35  ;;  %v869_v28 = vsel %vm380_vm1, %v866_v20, %v868_v25  ;;  %v4163_v37 = vld [vmem:[%s5361_s20 + $0x88] sm:$0x1] }
  0xa8   : > { %v1227_v51 = vunpack.c.l.b16 %v4163_v37 }
  0xa9   : > { %786 = vrot.lane.b32.xlu1 %v5586_v30, %s5319_s25  ;;  %v817_v44 = vsel %vm258_vm0, %v5645_v27, %v816_v29  ;;  %v836_v29 = vor.u32 %v834_v46, %v832_v34  ;;  %v849_v12 = vsel %vm258_vm0, %v844_v49, %v848_v48  ;;  %v5711_v49 = vld [vmem:[%s5361_s20 + $0x74] sm:$0xff]  }
  0xaa   : > { %737 = vrot.lane.b32.xlu0 %v4868_v17, %s5318_s24  ;;  %v4126_v17 = vld [vmem:[%s5361_s20 + $0x64] sm:$0xe] }
  0xab   : > { %v5601_v45 = vpop.permute.xlu1 %398  ;;  %v861_v40 = vunpack.c.l.b16 %v4126_v17  ;;  %v841_v16 = vsel %vm258_vm0, %v836_v29, %v840_v35  ;;  %v867_v35 = vsel %vm380_vm1, %v864_v14, %v866_v20  ;;  %v4165_v29 = vld [vmem:[%s5361_s20 + $0x8c] sm:$0x1] }
  0xac   : > { %v5604_v24 = vpop.permute.xlu0 %396  ;;  %v1286_v20 = vunpack.c.l.b16 %v4165_v29 }
  0xad   : > { %788 = vrot.lane.b32.xlu2 %v5599_v42, %s5319_s25  ;;  %v862_v62 = vpack.c.b16 %v5574_v21, %v861_v40  ;;  %v872_v40 = vrot.slane %v5637_v19, 1  ;;  %v1301_v19 = vshll.u32 %v5703_v4, 16 }
  0xaf   : > { %v5624_v8 = vpop.permute.xlu2 %490  ;;  %v863_v13 = vrot.slane %v862_v62, 1  ;;  %v584_v62 = vsel %vm582_vm2, %v5370_v2, %v5544_v56 }
  0xb0   : > { %v595_v2 = vsel %vm593_vm3, %v584_v62, %v5538_v50 }
  0xb1   : > { %792 = vrot.lane.b32.xlu1 %v5616_v61, %s5319_s25  ;;  %v606_v25 = vsel %vm604_vm4, %v595_v2, %v5576_v22 }
  0xb2   : > { %790 = vrot.lane.b32.xlu0 %v5627_v9, %s5319_s25 }
  0xb3   : > { %v5643_v26 = vpop.permute.xlu1 %429 }
  0xb4   : > { %v5648_v31 = vpop.permute.xlu0 %427 }
  0xb5   : > { %794 = vrot.lane.b32.xlu2 %v785_v18, %s5319_s25  ;;  %v865_v18 = vsel %vm380_vm1, %v863_v13, %v864_v14  ;;  %v1305_v13 = vshrl.u32 %v5703_v4, 16  ;;  %v1309_v14 = vshll.u32 %v5711_v49, 16 }
  0xb7   : > { %v5657_v43 = vpop.permute.xlu2 %550  ;;  %v1311_v50 = vrot.slane %v1309_v14, 1 }
  0xb9   : > { %852 = vrot.lane.b32.xlu1 %v825_v32, %s5320_s26 }
  0xba   : > { %850 = vrot.lane.b32.xlu0 %v817_v44, %s5320_s26  ;;  %v1228_v44 = vpack.c.b16 %v1227_v51, %v1227_v51 }
  0xbb   : > { %v5669_v7 = vpop.permute.xlu1 %435 }
  0xbc   : > { %v5671_v11 = vpop.permute.xlu0 %433  ;;  %v1269_v48 = vshll.u32 %v1228_v44, 16 }
  0xbd   : > { %854 = vrot.lane.b32.xlu2 %v833_v47, %s5320_s26  ;;  %v873_v47 = vsel %vm380_vm1, %v870_v33, %v872_v40  ;;  %v4166_v40 = vld [vmem:[%s5361_s20 + $0x64] sm:$0xe] }
  0xbe   : > { %v1271_v56 = vrot.slane %v1269_v48, 1 }
  0xbf   : > { %v5676_v15 = vpop.permute.xlu2 %556 }
  0xc0   : > { %v1272_v22 = vsel %vm258_vm0, %v5613_v52, %v1271_v56 }
  0xc1   : > { %858 = vrot.lane.b32.xlu1 %v849_v12, %s5320_s26 }
  0xc2   : > { %856 = vrot.lane.b32.xlu0 %v841_v16, %s5320_s26  ;;  %v5728_v16 = vld [vmem:[%s5361_s20 + $0x7c] sm:$0xff]  }
  0xc3   : > { %v5684_v17 = vpop.permute.xlu1 %488  ;;  %v1317_v37 = vshll.u32 %v5728_v16, 16  ;;  %v1321_v2 = vshrl.u32 %v5728_v16, 16 }
  0xc4   : > { %v5686_v32 = vpop.permute.xlu0 %486 }
  0xc5   : > { %874 = vrot.lane.b32.xlu2 %v865_v18, %s5321_s27  ;;  %v5733_v18 = vld [vmem:[%s5361_s20 + $0x84] sm:$0xff]  ;;  %v1319_v48 = vrot.slane %v1317_v37, 1 }
  0xc7   : > { %v5691_v34 = vpop.permute.xlu2 %576 }
  0xc9   : > { %878 = vrot.lane.b32.xlu1 %v869_v28, %s5321_s27  ;;  %v617_v28 = vsel %vm615_vm5, %v606_v25, %v5648_v31  ;;  %v1325_v31 = vshll.u32 %v5733_v18, 16 }
  0xca   : > { %876 = vrot.lane.b32.xlu0 %v867_v35, %s5321_s27  ;;  %v1313_v35 = vshrl.u32 %v5711_v49, 16 }
  0xcb   : > { %v549_v39 = vpop.permute.xlu1 %548  ;;  %v1327_v62 = vrot.slane %v1325_v31, 1  ;;  %v1351_v31 = vrot.slane %v5703_v4, 1  ;;  %v1353_v4 = vrot.slane %v5711_v49, 1  ;;  %v1357_v49 = vrot.slane %v5733_v18, 1 }
  0xcc   : > { %v5699_v41 = vpop.permute.xlu0 %492 }
  0xcd   : > { %880 = vrot.lane.b32.xlu2 %v871_v38, %s5321_s27  ;;  %v5749_v38 = vpack.c.b16 %v1286_v20, %v1286_v20 }
  0xcf   : > { %v5705_v46 = vpop.permute.xlu2 %674  ;;  %v1333_v29 = vshll.u32 %v5749_v38, 16 }
  0xd1   : > { %1273 = vrot.lane.b32.xlu1 %v5586_v30, %s5315_s21  ;;  %v1303_v30 = vrot.slane %v1301_v19, 1  ;;  %v1315_v19 = vor.u32 %v1313_v35, %v1311_v50  ;;  %v1335_v25 = vrot.slane %v1333_v29, 1  ;;  %v1323_v35 = vor.u32 %v1321_v2, %v1319_v48  ;;  %v4903_v29 = vld [vmem:[%s5361_s20 + $0x90] sm:$0xff]  }
  0xd2   : > { %882 = vrot.lane.b32.xlu0 %v873_v47, %s5321_s27 }
  0xd3   : > { %v5718_v5 = vpop.permute.xlu1 %554  ;;  %v1307_v33 = vor.u32 %v1305_v13, %v1303_v30  ;;  %v1348_v13 = vunpack.c.l.b16 %v4166_v40  ;;  %v1320_v56 = vsel %vm258_vm0, %v1315_v19, %v1319_v48  ;;  %v1359_v48 = vrot.slane %v5749_v38, 1  ;;  %v5837_v38 = vld [vmem:[%s5361_s20 + $0x98] sm:$0xff]  }
  0xd4   : > { %v5721_v12 = vpop.permute.xlu0 %552 }
  0xd5   : > { %1275 = vrot.lane.b32.xlu2 %v5599_v42, %s5315_s21  ;;  %v1312_v52 = vsel %vm258_vm0, %v1307_v33, %v1311_v50  ;;  %v586_v33 = vsel %vm582_vm2, %v5376_v6, %v5553_v59  ;;  %v1328_v6 = vsel %vm258_vm0, %v1323_v35, %v1327_v62 }
  0xd7   : > { %v5737_v42 = vpop.permute.xlu2 %680 }
  0xd9   : > { %1279 = vrot.lane.b32.xlu1 %v5616_v61, %s5315_s21  ;;  %v628_v61 = vsel %vm626_vm6, %v617_v28, %v5589_v36  ;;  %v1329_v36 = vshrl.u32 %v5733_v18, 16  ;;  %v1349_v28 = vpack.c.b16 %v5574_v21, %v1348_v13 }
  0xda   : > { %1277 = vrot.lane.b32.xlu0 %v5627_v9, %s5315_s21  ;;  %v639_v44 = vsel %vm637_vm7, %v628_v61, %v549_v39  ;;  %v1304_v39 = vsel %vm258_vm0, %v5645_v27, %v1303_v30  ;;  %v597_v27 = vsel %vm593_vm3, %v586_v33, %v5563_v3  ;;  %v4906_v33 = vld [vmem:[%s5361_s20 + $0xa8] sm:$0xff]  }
  0xdb   : > { %v575_v51 = vpop.permute.xlu1 %574  ;;  %v1331_v20 = vor.u32 %v1329_v36, %v1327_v62  ;;  %v608_v21 = vsel %vm604_vm4, %v597_v27, %v5547_v57  ;;  %v1355_v57 = vrot.slane %v5728_v16, 1  ;;  %v1354_v16 = vsel %vm380_vm1, %v1351_v31, %v1353_v4 }
  0xdc   : > { %v573_v47 = vpop.permute.xlu0 %572  ;;  %v619_v59 = vsel %vm615_vm5, %v608_v21, %v5643_v26  ;;  %v1421_v27 = vshrl.u32 %v5837_v38, 16  ;;  %v1410_v21 = vshrl.u32 %v4903_v29, 16 }
  0xdd   : > { %1281 = vrot.lane.b32.xlu2 %v1272_v22, %s5315_s21  ;;  %v650_v9 = vsel %vm648_vm9, %v639_v44, %v573_v47  ;;  %v1336_v37 = vsel %vm258_vm0, %v1331_v20, %v1335_v25  ;;  %v1350_v22 = vrot.slane %v1349_v28, 1  ;;  %v630_v3 = vsel %vm626_vm6, %v619_v59, %v5686_v32  ;;  %v4177_v20 = vld [vmem:[%s5361_s20 + $0xb8] sm:$0x1]  ;;  %v4905_v28 = vld [vmem:[%s5361_s20 + $0xa0] sm:$0xff]   ;;  %v4907_v59 = vld [vmem:[%s5361_s20 + $0xb0] sm:$0xff]  }
  0xde   : > { %4143 = vmatmul.msk.bf16.vlgmr.msra.gmra.mxu0 %vm986_vm8, %v650_v9  ;;  %v641_v26 = vsel %vm637_vm7, %v630_v3, %v5657_v43  ;;  %v1356_v9 = vsel %vm380_vm1, %v1353_v4, %v1355_v57  ;;  %v1358_v43 = vsel %vm380_vm1, %v1355_v57, %v1357_v49  ;;  %v4511_v25 = vunpack.c.l.b16 %v5837_v38 }
  0xdf   : > { %v5762_v14 = vpop.permute.xlu2 %686  ;;  %v1352_v40 = vsel %vm380_vm1, %v1350_v22, %v1351_v31  ;;  %v652_v32 = vsel %vm648_vm9, %v641_v26, %v575_v51  ;;  %v588_v51 = vsel %vm582_vm2, %v5364_v0, %v5542_v55  ;;  %v1360_v0 = vsel %vm380_vm1, %v1357_v49, %v1359_v48 }
  0xe0   : > { %v599_v18 = vsel %vm593_vm3, %v588_v51, %v5561_v63  ;;  %v1407_v22 = vunpack.c.l.b16 %v4177_v20  ;;  %v590_v3 = vsel %vm582_vm2, %v5367_v1, %v5551_v58  ;;  %v1445_v48 = vshrl.u32 %v4907_v59, 16 }
  0xe1   : > { %1339 = vrot.lane.b32.xlu1 %v1312_v52, %s5316_s22  ;;  %v610_v36 = vsel %vm604_vm4, %v599_v18, %v5604_v24  ;;  %v601_v1 = vsel %vm593_vm3, %v590_v3, %v5533_v54  ;;  %v5877_v18 = vld [vmem:[%s5361_s20 + $0x9c] sm:$0xff]  }
  0xe2   : > { %1337 = vrot.lane.b32.xlu0 %v1304_v39, %s5316_s22  ;;  %v621_v55 = vsel %vm615_vm5, %v610_v36, %v5568_v10  ;;  %v1417_v39 = vshll.u32 %v5837_v38, 16  ;;  %v4179_v3 = vld [vmem:[%s5361_s20 + $0xbc] sm:$0x1] }
  0xe3   : > { %v5774_v50 = vpop.permute.xlu1 %580  ;;  %v632_v63 = vsel %vm626_vm6, %v621_v55, %v5684_v17  ;;  %v4508_v17 = vunpack.c.h.b16 %v4903_v29 }
  0xe4   : > { %v5778_v30 = vpop.permute.xlu0 %578  ;;  %v643_v24 = vsel %vm637_vm7, %v632_v63, %v5721_v12  ;;  %v1419_v35 = vrot.slane %v1417_v39, 1 }
  0xe5   : > { %1341 = vrot.lane.b32.xlu2 %v1320_v56, %s5316_s22  ;;  %v1412_v56 = vshll.u32 %v4903_v29, 16  ;;  %v654_v12 = vsel %vm648_vm9, %v643_v24, %v5691_v34  ;;  %v1429_v34 = vshrl.u32 %v4905_v28, 16  ;;  %v1467_v4 = vpack.c.b16 %v4511_v25, %v4508_v17 }
  0xe6   : > { %v1423_v57 = vor.u32 %v1421_v27, %v1419_v35 }
  0xe7   : > { %v5785_v61 = vpop.permute.xlu2 %692  ;;  %v1476_v36 = vshll.u32 %v1467_v4, 16  ;;  %v1474_v20 = vshrl.u32 %v1467_v4, 16 }
  0xe9   : > { %1345 = vrot.lane.b32.xlu1 %v1336_v37, %s5316_s22  ;;  %v1425_v37 = vshll.u32 %v4905_v28, 16  ;;  %v1478_v17 = vrot.slane %v1476_v36, 1 }
  0xea   : > { %1343 = vrot.lane.b32.xlu0 %v1328_v6, %s5316_s22  ;;  %v1414_v6 = vrot.slane %v1412_v56, 1 }
  0xeb   : > { %v5797_v44 = vpop.permute.xlu1 %678  ;;  %v1427_v26 = vrot.slane %v1425_v37, 1  ;;  %v5904_v37 = vld [vmem:[%s5361_s20 + $0xac] sm:$0xff]  }
  0xec   : > { %v5799_v47 = vpop.permute.xlu0 %676 }
  0xed   : > { %1361 = vrot.lane.b32.xlu2 %v1352_v40, %s5317_s23  ;;  %v1441_v40 = vshll.u32 %v4907_v59, 16  ;;  %v1431_v55 = vor.u32 %v1429_v34, %v1427_v26  ;;  %v1479_v34 = vor.u32 %v1478_v17, %v1474_v20 }
  0xee   : > { %4144 = vmatmul.msk.bf16.gmra.mxu0 %vm986_vm8, %v652_v32  ;;  %v1433_v32 = vshll.u32 %v4906_v33, 16 }
  0xef   : > { %v5808_v52 = vpop.permute.xlu2 %698  ;;  %v1443_v51 = vrot.slane %v1441_v40, 1 }
  0xf0   : > { %v1435_v63 = vrot.slane %v1433_v32, 1  ;;  %v5924_v32 = vld [vmem:[%s5361_s20 + $0xb4] sm:$0xff] }
  0xf1   : > { %1365 = vrot.lane.b32.xlu1 %v1356_v9, %s5317_s23  ;;  %v1408_v9 = vpack.c.b16 %v1407_v22, %v1407_v22 }
  0xf2   : > { %1363 = vrot.lane.b32.xlu0 %v1354_v16, %s5317_s23  ;;  %v1415_v16 = vor.u32 %v1414_v6, %v1410_v21 }
  0xf3   : > { %v5817_v19 = vpop.permute.xlu1 %684  ;;  %v1449_v54 = vshll.u32 %v1408_v9, 16 }
  0xf4   : > { %v5822_v62 = vpop.permute.xlu0 %682  ;;  %v5890_v56 = vsel %vm258_vm0, %v1415_v16, %v1419_v35  ;;  %v1485_v16 = vshrl.u32 %v5877_v18, 16 }
  0xf5   : > { %1367 = vrot.lane.b32.xlu2 %v1358_v43, %s5317_s23  ;;  %v612_v43 = vsel %vm604_vm4, %v601_v1, %v5601_v45  ;;  %v1437_v45 = vshrl.u32 %v4906_v33, 16  ;;  %v1451_v35 = vrot.slane %v1449_v54, 1  ;;  %v4180_v1 = vld [vmem:[%s5361_s20 + $0x94] sm:$0xe] }
  0xf6   : > { %v623_v24 = vsel %vm615_vm5, %v612_v43, %v5671_v11  ;;  %v5901_v11 = vsel %vm258_vm0, %v1431_v55, %v1435_v63  ;;  %v1466_v43 = vunpack.c.l.b16 %v4179_v3  ;;  %v1528_v54 = vunpack.c.l.b16 %v4180_v1 }
  0xf7   : > { %v5828_v13 = vpop.permute.xlu2 %729  ;;  %v634_v27 = vsel %vm626_vm6, %v623_v24, %v5624_v8  ;;  %v1439_v6 = vor.u32 %v1437_v45, %v1435_v63  ;;  %v1501_v63 = vshrl.u32 %v5904_v37, 16  ;;  %v5268_v24 = vld [vmem:[%s5361_s20 + $0x20] sm:$0xff]   ;;  %v1509_v3 = vshrl.u32 %v5924_v32, 16 }
  0xf8   : > { %v645_v22 = vsel %vm637_vm7, %v634_v27, %v5718_v5  ;;  %v592_v45 = vsel %vm582_vm2, %v5268_v24, %v5526_v53  ;;  %v1529_v53 = vpack.c.b16 %v4511_v25, %v1528_v54  ;;  %v1531_v25 = vrot.slane %v5877_v18, 1 }
  0xf9   : > { %1396 = vrot.lane.b32.xlu1 %v4903_v29, %s5318_s24  ;;  %v5880_v29 = vld [vmem:[%s5361_s20 + $0xa4] sm:$0xff]   ;;  %v656_v8 = vsel %vm648_vm9, %v645_v22, %v5778_v30  ;;  %v5929_v9 = vsel %vm258_vm0, %v1439_v6, %v1443_v51 }
  0xfa   : > { %1369 = vrot.lane.b32.xlu0 %v1360_v0, %s5317_s23  ;;  %v5883_v0 = vsel %vm258_vm0, %v1423_v57, %v1427_v26  ;;  %v1493_v57 = vshrl.u32 %v5880_v29, 16  ;;  %v1497_v26 = vshll.u32 %v5904_v37, 16 }
  0xfb   : > { %v5843_v2 = vpop.permute.xlu1 %690 }
  0xfc   : > { %v5846_v10 = vpop.permute.xlu0 %688  ;;  %v1499_v55 = vrot.slane %v1497_v26, 1 }
  0xfd   : > { %1398 = vrot.lane.b32.xlu2 %v5837_v38, %s5318_s24  ;;  %v1530_v38 = vrot.slane %v1529_v53, 1 }
  0xfe   : > { %4145 = vmatmul.msk.bf16.gmra.mxu0 %vm986_vm8, %v654_v12  ;;  %v1481_v12 = vshll.u32 %v5877_v18, 16  ;;  %v1533_v18 = vrot.slane %v5880_v29, 1 }
  0xff   : > { %v5857_v31 = vpop.permute.xlu2 %735 }
 0x100   : > { %v1483_v40 = vrot.slane %v1481_v12, 1  ;;  %v1472_v12 = vpack.c.b16 %v1466_v43, %v1466_v43  ;;  %v5988_v43 = vsel %vm380_vm1, %v1530_v38, %v1531_v25 }
 0x101   : > { %1402 = vrot.lane.b32.xlu1 %v4906_v33, %s5318_s24  ;;  %v1447_v33 = vor.u32 %v1445_v48, %v1443_v51  ;;  %v1505_v51 = vshll.u32 %v5924_v32, 16 }
 0x102   : > { %1400 = vrot.lane.b32.xlu0 %v4905_v28, %s5318_s24  ;;  %v1489_v28 = vshll.u32 %v5880_v29, 16  ;;  %v5936_v48 = vsel %vm258_vm0, %v1479_v34, %v1483_v40  ;;  %v1487_v17 = vor.u32 %v1485_v16, %v1483_v40  ;;  %v1513_v34 = vshll.u32 %v1472_v12, 16  ;;  %v5269_v29 = vld [vmem:[%s5361_s20 + $0x30] sm:$0xff]  }
 0x103   : > { %v5867_v49 = vpop.permute.xlu1 %696  ;;  %v5920_v5 = vsel %vm258_vm0, %v1447_v33, %v1451_v35  ;;  %v1503_v35 = vor.u32 %v1501_v63, %v1499_v55  ;;  %v1507_v22 = vrot.slane %v1505_v51, 1  ;;  %v1537_v63 = vrot.slane %v5924_v32, 1 }
 0x104   : > { %v5871_v58 = vpop.permute.xlu0 %694  ;;  %v1491_v4 = vrot.slane %v1489_v28, 1  ;;  %v603_v28 = vsel %vm593_vm3, %v592_v45, %v5578_v23  ;;  %v1515_v16 = vrot.slane %v1513_v34, 1  ;;  %v885_v24 = vsel %vm582_vm2, %v5269_v29, %v5705_v46 }
 0x105   : > { %1404 = vrot.lane.b32.xlu2 %v4907_v59, %s5318_s24  ;;  %v614_v6 = vsel %vm604_vm4, %v603_v28, %v5556_v60  ;;  %v5975_v60 = vsel %vm258_vm0, %v1503_v35, %v1507_v22  ;;  %v1511_v26 = vor.u32 %v1509_v3, %v1507_v22  ;;  %v895_v28 = vsel %vm593_vm3, %v885_v24, %v5817_v19 }
 0x106   : > { %v1495_v36 = vor.u32 %v1493_v57, %v1491_v4  ;;  %v5963_v23 = vsel %vm258_vm0, %v1487_v17, %v1491_v4  ;;  %v625_v40 = vsel %vm615_vm5, %v614_v6, %v5669_v7  ;;  %v1539_v17 = vrot.slane %v1472_v12, 1 }
 0x107   : > { %v5887_v39 = vpop.permute.xlu2 %788  ;;  %v636_v57 = vsel %vm626_vm6, %v625_v40, %v5699_v41  ;;  %v905_v32 = vsel %vm604_vm4, %v895_v28, %v5871_v58 }
 0x108   : > { %v5954_v33 = vsel %vm258_vm0, %v1495_v36, %v1499_v55  ;;  %v647_v7 = vsel %vm637_vm7, %v636_v57, %v5676_v15  ;;  %v5992_v55 = vsel %vm258_vm0, %v1511_v26, %v1515_v16  ;;  %v1534_v15 = vsel %vm380_vm1, %v1531_v25, %v1533_v18 }
 0x109   : > { %1455 = vrot.lane.b32.xlu1 %v5883_v0, %s5319_s25  ;;  %v658_v41 = vsel %vm648_vm9, %v647_v7, %v5774_v50  ;;  %v1535_v50 = vrot.slane %v5904_v37, 1  ;;  %v1540_v46 = vsel %vm380_vm1, %v1537_v63, %v1539_v17  ;;  %v915_v12 = vsel %vm615_vm5, %v905_v32, %v5828_v13  ;;  %v5270_v13 = vld [vmem:[%s5361_s20 + $0x38] sm:$0xff]  }
 0x10a   : > { %1453 = vrot.lane.b32.xlu0 %v5890_v56, %s5319_s25  ;;  %v887_v34 = vsel %vm582_vm2, %v5270_v13, %v5799_v47 }
 0x10b   : > { %v5908_v21 = vpop.permute.xlu1 %702  ;;  %v1538_v45 = vsel %vm380_vm1, %v1535_v50, %v1537_v63  ;;  %v1536_v37 = vsel %vm380_vm1, %v1533_v18, %v1535_v50  ;;  %v897_v38 = vsel %vm593_vm3, %v887_v34, %v5762_v14  ;;  %v4949_v50 = vld [vmem:[%s5361_s20 + $0xc8] sm:$0xff]   ;;  %v6140_v34 = vld [vmem:[%s5361_s20 + $0xe0] sm:$0xff]  }
 0x10c   : > { %v5910_v59 = vpop.permute.xlu0 %700  ;;  %v907_v25 = vsel %vm604_vm4, %v897_v38, %v5867_v49  ;;  %v6119_v24 = vunpack.c.l.b16 %v4949_v50 }
 0x10d   : > { %1457 = vrot.lane.b32.xlu2 %v5901_v11, %s5319_s25 }
 0x10e   : > { %4146 = vmatmul.msk.bf16.gmra.mxu0 %vm986_vm8, %v656_v8 }
 0x10f   : > { %v5926_v30 = vpop.permute.xlu2 %794 }
 0x111   : > { %1461 = vrot.lane.b32.xlu1 %v5920_v5, %s5319_s25 }
 0x112   : > { %1459 = vrot.lane.b32.xlu0 %v5929_v9, %s5319_s25 }
 0x113   : > { %v5945_v20 = vpop.permute.xlu1 %733 }
 0x114   : > { %v5949_v27 = vpop.permute.xlu0 %731 }
 0x115   : > { %1517 = vrot.lane.b32.xlu2 %v5936_v48, %s5320_s26 }
 0x117   : > { %v5960_v8 = vpop.permute.xlu2 %854 }
 0x119   : > { %1521 = vrot.lane.b32.xlu1 %v5954_v33, %s5320_s26 }
 0x11a   : > { %1519 = vrot.lane.b32.xlu0 %v5963_v23, %s5320_s26 }
 0x11b   : > { %v787_v4 = vpop.permute.xlu1 %786 }
 0x11c   : > { %v5978_v1 = vpop.permute.xlu0 %737  ;;  %v925_v19 = vsel %vm626_vm6, %v915_v12, %v787_v4 }
 0x11d   : > { %1523 = vrot.lane.b32.xlu2 %v5975_v60, %s5320_s26 }
 0x11e   : > { %4147 = vmatmul.msk.bf16.gmra.mxu0 %vm986_vm8, %v658_v41  ;;  %v5272_v41 = vld [vmem:[%s5361_s20 + $0x48] sm:$0xff]  }
 0x11f   : > { %v875_v36 = vpop.permute.xlu2 %874 }
 0x121   : > { %1541 = vrot.lane.b32.xlu1 %v5988_v43, %s5321_s27 }
 0x122   : > { %1525 = vrot.lane.b32.xlu0 %v5992_v55, %s5320_s26 }
 0x123   : > { %v6001_v51 = vpop.permute.xlu1 %792 }
 0x124   : > { %v791_v54 = vpop.permute.xlu0 %790 }
 0x125   : > { %1543 = vrot.lane.b32.xlu2 %v1534_v15, %s5321_s27 }
 0x127   : > { %v6010_v35 = vpop.permute.xlu2 %880 }
 0x129   : > { %1547 = vrot.lane.b32.xlu1 %v1538_v45, %s5321_s27 }
 0x12a   : > { %1545 = vrot.lane.b32.xlu0 %v1536_v37, %s5321_s27 }
 0x12b   : > { %v853_v22 = vpop.permute.xlu1 %852 }
 0x12c   : > { %v851_v53 = vpop.permute.xlu0 %850 }
 0x12d   : > { %v935_v6 = vsel %vm637_vm7, %v925_v19, %v851_v53  ;;  %1549 = vrot.lane.b32.xlu2 %v1540_v46, %s5321_s27 }
 0x12e   : > { %v945_v3 = vsel %vm648_vm9, %v935_v6, %v875_v36 }
 0x12f   : > { %v6024_v58 = vpop.permute.xlu2 %1275  ;;  %4148 = vmatmul.msk.bf16.gmra.mxu0 %vm986_vm8, %v945_v3  ;;  %v4951_v3 = vld [vmem:[%s5361_s20 + $0xd8] sm:$0xff]  }
 0x131   : > { %1638 = vrot.lane.b32.xlu1 %v5883_v0, %s5315_s21 }
 0x132   : > { %1636 = vrot.lane.b32.xlu0 %v5890_v56, %s5315_s21  ;;  %v917_v56 = vsel %vm615_vm5, %v907_v25, %v5949_v27 }
 0x133   : > { %v6034_v40 = vpop.permute.xlu1 %858  ;;  %v927_v47 = vsel %vm626_vm6, %v917_v56, %v5887_v39  ;;  %v1716_v56 = vshrl.u32 %v4949_v50, 16 }
 0x134   : > { %v857_v57 = vpop.permute.xlu0 %856  ;;  %v937_v14 = vsel %vm637_vm7, %v927_v47, %v853_v22  ;;  %v4191_v22 = vld [vmem:[%s5361_s20 + $0xe8] sm:$0x1] }
 0x135   : > { %1640 = vrot.lane.b32.xlu2 %v5901_v11, %s5315_s21 }
 0x137   : > { %v6042_v0 = vpop.permute.xlu2 %1281 }
 0x139   : > { %1644 = vrot.lane.b32.xlu1 %v5920_v5, %s5315_s21  ;;  %v5271_v5 = vld [vmem:[%s5361_s20 + $0x40] sm:$0xff]  }
 0x13a   : > { %1642 = vrot.lane.b32.xlu0 %v5929_v9, %s5315_s21  ;;  %v889_v9 = vsel %vm582_vm2, %v5271_v5, %v5797_v44  ;;  %v1736_v5 = vshll.u32 %v6140_v34, 16 }
 0x13b   : > { %v879_v11 = vpop.permute.xlu1 %878 }
 0x13c   : > { %v877_v4 = vpop.permute.xlu0 %876 }
 0x13d   : > { %1646 = vrot.lane.b32.xlu2 %v5936_v48, %s5316_s22  ;;  %v947_v49 = vsel %vm648_vm9, %v937_v14, %v877_v4  ;;  %v899_v48 = vsel %vm593_vm3, %v889_v9, %v5846_v10  ;;  %v5273_v4 = vld [vmem:[%s5361_s20 + $0x50] sm:$0xff]  }
 0x13e   : > { %v6158_v9 = vld [vmem:[%s5361_s20 + $0xcc] sm:$0xff]  }
 0x13f   : > { %v6056_v26 = vpop.permute.xlu2 %1341  ;;  %4149 = vmatmul.msk.bf16.gmra.mxu0 %vm986_vm8, %v947_v49  ;;  %v893_v49 = vsel %vm582_vm2, %v5273_v4, %v5822_v62 }
 0x141   : > { %1650 = vrot.lane.b32.xlu1 %v5954_v33, %s5316_s22  ;;  %v909_v33 = vsel %vm604_vm4, %v899_v48, %v5808_v52 }
 0x142   : > { %1648 = vrot.lane.b32.xlu0 %v5963_v23, %s5316_s22  ;;  %v919_v23 = vsel %vm615_vm5, %v909_v33, %v5945_v20 }
 0x143   : > { %v6063_v39 = vpop.permute.xlu1 %1273  ;;  %v929_v44 = vsel %vm626_vm6, %v919_v23, %v791_v54 }
 0x144   : > { %v6068_v27 = vpop.permute.xlu0 %882  ;;  %v939_v52 = vsel %vm637_vm7, %v929_v44, %v5960_v8  ;;  %v1732_v44 = vshrl.u32 %v4951_v3, 16 }
 0x145   : > { %1652 = vrot.lane.b32.xlu2 %v5975_v60, %s5316_s22  ;;  %v949_v20 = vsel %vm648_vm9, %v939_v52, %v879_v11  ;;  %v1702_v11 = vunpack.c.l.b16 %v4191_v22 }
 0x147   : > { %v6074_v16 = vpop.permute.xlu2 %1361 }
 0x149   : > { %1656 = vrot.lane.b32.xlu1 %v5988_v43, %s5317_s23  ;;  %v891_v43 = vsel %vm582_vm2, %v5272_v41, %v5737_v42 }
 0x14a   : > { %1654 = vrot.lane.b32.xlu0 %v5992_v55, %s5316_s22  ;;  %v901_v18 = vsel %vm593_vm3, %v891_v43, %v5843_v2  ;;  %v1703_v43 = vpack.c.b16 %v1702_v11, %v1702_v11  ;;  %v6217_v11 = vld [vmem:[%s5361_s20 + $0xe4] sm:$0xff] }
 0x14b   : > { %v6085_v10 = vpop.permute.xlu1 %1279  ;;  %v911_v8 = vsel %vm604_vm4, %v901_v18, %v5910_v59 }
 0x14c   : > { %v6087_v60 = vpop.permute.xlu0 %1277  ;;  %v921_v42 = vsel %vm615_vm5, %v911_v8, %v5857_v31 }
 0x14d   : > { %1658 = vrot.lane.b32.xlu2 %v1534_v15, %s5317_s23  ;;  %v4948_v15 = vld [vmem:[%s5361_s20 + $0xc0] sm:$0xff]   ;;  %v931_v2 = vsel %vm626_vm6, %v921_v42, %v6001_v51 }
 0x14e   : > { %v1707_v63 = vshll.u32 %v4948_v15, 16  ;;  %v941_v29 = vsel %vm637_vm7, %v931_v2, %v857_v57  ;;  %v4528_v59 = vunpack.c.h.b16 %v4948_v15  ;;  %v1705_v17 = vshrl.u32 %v4948_v15, 16  ;;  %v6129_v51 = vld [vmem:[%s7990_s2] ss:$0 sm:$0xff] }
 0x14f   : > { %v6093_v7 = vpop.permute.xlu2 %1367  ;;  %4150 = vmatmul.msk.bf16.gmra.mxu0 %vm986_vm8, %v949_v20  ;;  %v951_v6 = vsel %vm648_vm9, %v941_v29, %v6010_v35  ;;  %v1728_v57 = vshll.u32 %v4951_v3, 16  ;;  %v6149_v35 = vld [vmem:[%s7991_s3] ss:$0 sm:$0xff]  ;;  %v1776_v2 = vshll.u32 %v6158_v9, 16  ;;  %v6177_v29 = vld [vmem:[%s5361_s20 + $0xd4] sm:$0xff]  }
 0x150   : > { %v1709_v28 = vrot.slane %v1707_v63, 1  ;;  %v1762_v19 = vpack.c.b16 %v6119_v24, %v4528_v59  ;;  %v1738_v59 = vrot.slane %v1736_v5, 1 }
 0x151   : > { %1662 = vrot.lane.b32.xlu1 %v1538_v45, %s5317_s23  ;;  %v4950_v45 = vld [vmem:[%s5361_s20 + $0xd0] sm:$0xff]   ;;  %v1730_v23 = vrot.slane %v1728_v57, 1 }
 0x152   : > { %1660 = vrot.lane.b32.xlu0 %v1536_v37, %s5317_s23  ;;  %v1720_v31 = vshll.u32 %v4950_v45, 16  ;;  %v1712_v37 = vshll.u32 %v4949_v50, 16  ;;  %v1724_v53 = vshrl.u32 %v4950_v45, 16  ;;  %v1710_v38 = vor.u32 %v1709_v28, %v1705_v17 }
 0x153   : > { %v6103_v36 = vpop.permute.xlu1 %1339  ;;  %v1771_v48 = vshll.u32 %v1762_v19, 16  ;;  %v1769_v63 = vshrl.u32 %v1762_v19, 16 }
 0x154   : > { %v6107_v55 = vpop.permute.xlu0 %1337  ;;  %v1722_v13 = vrot.slane %v1720_v31, 1  ;;  %v1714_v25 = vrot.slane %v1712_v37, 1  ;;  %v6184_v31 = vld [vmem:[%s5361_s20 + $0xdc] sm:$0xff]  }
 0x155   : > { %1664 = vrot.lane.b32.xlu2 %v1540_v46, %s5317_s23  ;;  %v1773_v42 = vrot.slane %v1771_v48, 1 }
 0x156   : > { %v1726_v33 = vor.u32 %v1724_v53, %v1722_v13  ;;  %v6162_v52 = vsel %vm258_vm0, %v1710_v38, %v1714_v25  ;;  %v1718_v41 = vor.u32 %v1716_v56, %v1714_v25  ;;  %v1744_v53 = vshll.u32 %v1703_v43, 16 }
 0x157   : > { %v6114_v54 = vpop.permute.xlu2 %1398  ;;  %v1784_v25 = vshll.u32 %v6177_v29, 16 }
 0x158   : > { %v6181_v28 = vsel %vm258_vm0, %v1726_v33, %v1730_v23  ;;  %v6195_v19 = vsel %vm258_vm0, %v1718_v41, %v1722_v13  ;;  %v1778_v13 = vrot.slane %v1776_v2, 1  ;;  %v4364_v2 = vld [vmem:[%s7989_s1 + $0x8] sm:$0xff] }
 0x159   : > { %1693 = vrot.lane.b32.xlu1 %v4949_v50, %s5318_s24  ;;  %v903_v50 = vsel %vm593_vm3, %v893_v49, %v5785_v61  ;;  %v4366_v61 = vld [vmem:[%s7989_s1 + $0x18] sm:$0xff]  ;;  %v4365_v49 = vld [vmem:[%s7989_s1 + $0x10] sm:$0xff] }
 0x15a   : > { %1691 = vrot.lane.b32.xlu0 %v4948_v15, %s5318_s24  ;;  %v913_v37 = vsel %vm604_vm4, %v903_v50, %v5908_v21  ;;  %1972 = vmatpush.bf16.msra.mxu1 %v4366_v61  ;;  %v6207_v21 = vor.u32 %v1773_v42, %v1769_v63  ;;  %v1796_v63 = vshrl.u32 %v6184_v31, 16  ;;  %v4194_v61 = vld [vmem:[%s5361_s20 + $0xc4] sm:$0xe] }
 0x15b   : > { %v1016_v32 = vpop.f32.mrf.mxu0  ;;  %v6124_v46 = vpop.permute.xlu1 %1345 }
 0x15c   : > { %v6131_v12 = vpop.permute.xlu0 %1343  ;;  %v1069_v14 = vmul.f32 %v6129_v51, %v1016_v32  ;;  %v1740_v32 = vshrl.u32 %v6140_v34, 16  ;;  %v1779_v43 = vsel %vm258_vm0, %v6207_v21, %v1778_v13 }
 0x15d   : > { %1695 = vrot.lane.b32.xlu2 %v4950_v45, %s5318_s24  ;;  %v1734_v45 = vor.u32 %v1732_v44, %v1730_v23  ;;  %v1746_v44 = vrot.slane %v1744_v53, 1 }
 0x15e   : > { %v1092_v18 = vadd.f32 %v6149_v35, %v1069_v14  ;;  %v1792_v14 = vshll.u32 %v6184_v31, 16  ;;  %v6225_v48 = vor.u32 %v1740_v32, %v1738_v59  ;;  %1973 = vmatpush.bf16.msra.mxu1 %v4365_v49 }
 0x15f   : > { %v6142_v47 = vpop.permute.xlu2 %1404  ;;  %4151 = vmatmul.msk.bf16.gmra.mxu0 %vm986_vm8, %v951_v6  ;;  %v4193_v6 = vld [vmem:[%s5361_s20 + $0xec] sm:$0x1]  ;;  %v6214_v56 = vsel %vm258_vm0, %v1734_v45, %v1738_v59  ;;  %v1788_v45 = vshrl.u32 %v6177_v29, 16 }
 0x160   : > { %v1112_v57 = vmax.f32 %v1092_v18, 0.0  ;;  %v1761_v4 = vunpack.c.l.b16 %v4193_v6  ;;  %v1794_v50 = vrot.slane %v1792_v14, 1  ;;  %v1804_v6 = vshrl.u32 %v6217_v11, 16 }
 0x161   : > { %1699 = vrot.lane.b32.xlu1 %v6140_v34, %s5318_s24  ;;  %v1780_v34 = vshrl.u32 %v6158_v9, 16 }
 0x162   : > { %1697 = vrot.lane.b32.xlu0 %v4951_v3, %s5318_s24  ;;  %v923_v3 = vsel %vm615_vm5, %v913_v37, %v5978_v1  ;;  %v6242_v42 = vpack.c.b16 %v1761_v4, %v1761_v4  ;;  %1974 = vmatpush.bf16.msra.mxu1 %v4364_v2  ;;  %v1798_v32 = vor.u32 %v1796_v63, %v1794_v50  ;;  %v1826_v2 = vrot.slane %v6158_v9, 1 }
 0x163   : > { %v1018_v20 = vpop.f32.mrf.mxu0  ;;  %v6164_v62 = vpop.permute.xlu1 %1365  ;;  %v933_v5 = vsel %vm626_vm6, %v923_v3, %v5926_v30  ;;  %v1782_v18 = vor.u32 %v1780_v34, %v1778_v13 }
 0x164   : > { %v1070_v8 = vmul.f32 %v6129_v51, %v1018_v20  ;;  %v6168_v15 = vpop.permute.xlu0 %1363  ;;  %v943_v20 = vsel %vm637_vm7, %v933_v5, %v6034_v40  ;;  %v1800_v40 = vshll.u32 %v6217_v11, 16  ;;  %v1808_v3 = vshll.u32 %v6242_v42, 16 }
 0x165   : > { %1748 = vrot.lane.b32.xlu2 %v6162_v52, %s5319_s25  ;;  %v953_v30 = vsel %vm648_vm9, %v943_v20, %v6068_v27  ;;  %v1747_v27 = vsel %vm258_vm0, %v6225_v48, %v1746_v44 }
 0x166   : > { %v1093_v17 = vadd.f32 %v6149_v35, %v1070_v8  ;;  %v1786_v8 = vrot.slane %v1784_v25, 1  ;;  %v1802_v53 = vrot.slane %v1800_v40, 1  ;;  %v1823_v25 = vunpack.c.l.b16 %v4194_v61 }
 0x167   : > { %v6192_v22 = vpop.permute.xlu2 %1457  ;;  %v1810_v44 = vrot.slane %v1808_v3, 1  ;;  %v1832_v3 = vrot.slane %v6217_v11, 1 }
 0x168   : > { %v1113_v38 = vmax.f32 %v1093_v17, 0.0  ;;  %v1787_v37 = vsel %vm258_vm0, %v1782_v18, %v1786_v8  ;;  %v1790_v34 = vor.u32 %v1788_v45, %v1786_v8  ;;  %v1803_v5 = vsel %vm258_vm0, %v1798_v32, %v1802_v53 }
 0x169   : > { %1752 = vrot.lane.b32.xlu1 %v6181_v28, %s5319_s25  ;;  %v1830_v32 = vrot.slane %v6184_v31, 1 }
 0x16a   : > { %v4438_v1 = vpack.c.bf16 %v1113_v38, %v1112_v57  ;;  %1750 = vrot.lane.b32.xlu0 %v6195_v19, %s5319_s25  ;;  %v4363_v57 = vld [vmem:[%s7989_s1] sm:$0xff] }
 0x16b   : > { %v1021_v33 = vpop.f32.mrf.mxu0  ;;  %v6227_v23 = vpop.permute.xlu1 %1396  ;;  %1975 = vmatpush.bf16.msra.mxu1 %v4363_v57  ;;  %v1834_v57 = vrot.slane %v6242_v42, 1 }
 0x16c   : > { %4439 = vst [vmem:[%s6203_s28] sm:$0xff] %v4438_v1   ;;  %v6232_v41 = vpop.permute.xlu0 %1369  ;;  %v1071_v17 = vmul.f32 %v6129_v51, %v1021_v33  ;;  %v1806_v33 = vor.u32 %v1804_v6, %v1802_v53 }
 0x16d   : > { %1754 = vrot.lane.b32.xlu2 %v6214_v56, %s5319_s25  ;;  %v1835_v11 = vsel %vm380_vm1, %v1832_v3, %v1834_v57 }
 0x16e   : > { %v1094_v1 = vadd.f32 %v6149_v35, %v1071_v17  ;;  %v1811_v40 = vsel %vm258_vm0, %v1806_v33, %v1810_v44 }
 0x16f   : > { %v6247_v59 = vpop.permute.xlu2 %1517  ;;  %4152 = vmatmul.msk.bf16.gmra.mxu0 %vm986_vm8, %v953_v30  ;;  %v1795_v30 = vsel %vm258_vm0, %v1790_v34, %v1794_v50 }
 0x170   : > { %v1114_v18 = vmax.f32 %v1094_v1, 0.0 }
 0x171   : > { %1812 = vrot.lane.b32.xlu1 %v1779_v43, %s5320_s26  ;;  %v1824_v43 = vpack.c.b16 %v6119_v24, %v1823_v25 }
 0x172   : > { %1756 = vrot.lane.b32.xlu0 %v1747_v27, %s5319_s25  ;;  %v1828_v27 = vrot.slane %v6177_v29, 1 }
 0x173   : > { %v1023_v38 = vpop.f32.mrf.mxu0  ;;  %v6263_v13 = vpop.permute.xlu1 %1402  ;;  %v1825_v61 = vrot.slane %v1824_v43, 1  ;;  %v6311_v43 = vld [vmem:[%s5361_s20 + $0xcc] sm:$0xff]  }
 0x174   : > { %v1072_v14 = vmul.f32 %v6129_v51, %v1023_v38  ;;  %v6267_v4 = vpop.permute.xlu0 %1400  ;;  %v1831_v29 = vsel %vm380_vm1, %v1828_v27, %v1830_v32 }
 0x175   : > { %1814 = vrot.lane.b32.xlu2 %v1787_v37, %s5320_s26  ;;  %v1829_v37 = vsel %vm380_vm1, %v1826_v2, %v1828_v27  ;;  %v1827_v6 = vsel %vm380_vm1, %v1825_v61, %v1826_v2 }
 0x176   : > { %v1095_v49 = vadd.f32 %v6149_v35, %v1072_v14  ;;  %v4231_v14 = vld [vmem:[%s5361_s20 + $0xe8] sm:$0x1] }
 0x177   : > { %v6272_v20 = vpop.permute.xlu2 %1523  ;;  %v2182_v33 = vunpack.c.l.b16 %v4231_v14 }
 0x178   : > { %v1115_v8 = vmax.f32 %v1095_v49, 0.0 }
 0x179   : > { %1818 = vrot.lane.b32.xlu1 %v1803_v5, %s5320_s26  ;;  %v1833_v5 = vsel %vm380_vm1, %v1830_v32, %v1832_v3  ;;  %v6331_v32 = vld [vmem:[%s5361_s20 + $0xdc] sm:$0xff]   ;;  %v4233_v3 = vld [vmem:[%s5361_s20 + $0xec] sm:$0x1] }
 0x17a   : > { %v4443_v63 = vpack.c.bf16 %v1115_v8, %v1114_v18  ;;  %1816 = vrot.lane.b32.xlu0 %v1795_v30, %s5320_s26  ;;  %v5274_v18 = vld [vmem:[%s5361_s20 + $0x60] sm:$0xff]   ;;  %v2241_v14 = vunpack.c.l.b16 %v4233_v3 }
 0x17b   : > { %v1026_v45 = vpop.f32.mrf.mxu0  ;;  %v6281_v17 = vpop.permute.xlu1 %1455  ;;  %v1552_v8 = vsel %vm582_vm2, %v5274_v18, %v6063_v39  ;;  %v6328_v39 = vld [vmem:[%s5361_s20 + $0xd4] sm:$0xff]   ;;  %v4234_v3 = vld [vmem:[%s5361_s20 + $0xc4] sm:$0xe] }
 0x17c   : > { %4889 = vst [vmem:[%s6203_s28 + $0x8] sm:$0xff] %v4443_v63   ;;  %v1454_v50 = vpop.permute.xlu0 %1453  ;;  %v1073_v9 = vmul.f32 %v6129_v51, %v1026_v45  ;;  %v2183_v45 = vpack.c.b16 %v2182_v33, %v2182_v33 }
 0x17d   : > { %1820 = vrot.lane.b32.xlu2 %v1811_v40, %s5320_s26  ;;  %v1562_v40 = vsel %vm593_vm3, %v1552_v8, %v6107_v55 }
 0x17e   : > { %v1096_v34 = vadd.f32 %v6149_v35, %v1073_v9  ;;  %v1572_v55 = vsel %vm604_vm4, %v1562_v40, %v6074_v16  ;;  %v2272_v16 = vshll.u32 %v6331_v32, 16 }
 0x17f   : > { %v6287_v53 = vpop.permute.xlu2 %1543 }
 0x180   : > { %v1116_v44 = vmax.f32 %v1096_v34, 0.0  ;;  %v2260_v34 = vshrl.u32 %v6311_v43, 16  ;;  %v2274_v8 = vrot.slane %v2272_v16, 1 }
 0x181   : > { %1838 = vrot.lane.b32.xlu1 %v1829_v37, %s5321_s27  ;;  %v2256_v37 = vshll.u32 %v6311_v43, 16 }
 0x182   : > { %1836 = vrot.lane.b32.xlu0 %v1827_v6, %s5321_s27  ;;  %v1582_v6 = vsel %vm615_vm5, %v1572_v55, %v6227_v23  ;;  %v6350_v23 = vld [vmem:[%s5361_s20 + $0xe4] sm:$0xff]  ;;  %v2268_v55 = vshrl.u32 %v6328_v39, 16 }
 0x183   : > { %v1028_v38 = vpop.f32.mrf.mxu0  ;;  %v6296_v31 = vpop.permute.xlu1 %1461  ;;  %v1592_v57 = vsel %vm626_vm6, %v1582_v6, %v1454_v50 }
 0x184   : > { %v1074_v25 = vmul.f32 %v6129_v51, %v1028_v38  ;;  %v6300_v1 = vpop.permute.xlu0 %1459  ;;  %v2258_v38 = vrot.slane %v2256_v37, 1 }
 0x185   : > { %1840 = vrot.lane.b32.xlu2 %v1831_v29, %s5321_s27  ;;  %v2224_v29 = vshll.u32 %v2183_v45, 16  ;;  %v6367_v45 = vpack.c.b16 %v2241_v14, %v2241_v14 }
 0x186   : > { %v1097_v49 = vadd.f32 %v6149_v35, %v1074_v25  ;;  %v2264_v25 = vshll.u32 %v6328_v39, 16  ;;  %v2259_v40 = vsel %vm258_vm0, %v6207_v21, %v2258_v38 }
 0x187   : > { %v6306_v42 = vpop.permute.xlu2 %1549  ;;  %v2288_v16 = vshll.u32 %v6367_v45, 16 }
 0x188   : > { %v1117_v30 = vmax.f32 %v1097_v49, 0.0  ;;  %v2266_v18 = vrot.slane %v2264_v25, 1 }
 0x189   : > { %1844 = vrot.lane.b32.xlu1 %v1835_v11, %s5321_s27  ;;  %v1602_v11 = vsel %vm637_vm7, %v1592_v57, %v6247_v59  ;;  %v2276_v59 = vshrl.u32 %v6331_v32, 16  ;;  %v5275_v57 = vld [vmem:[%s5361_s20 + $0x68] sm:$0xff]  }
 0x18a   : > { %v4448_v63 = vpack.c.bf16 %v1117_v30, %v1116_v44  ;;  %1842 = vrot.lane.b32.xlu0 %v1833_v5, %s5321_s27  ;;  %v2226_v5 = vrot.slane %v2224_v29, 1 }
 0x18b   : > { %v1031_v2 = vpop.f32.mrf.mxu0  ;;  %v6319_v27 = vpop.permute.xlu1 %1521 }
 0x18c   : > { %4890 = vst [vmem:[%s6203_s28 + $0x10] sm:$0xff] %v4448_v63   ;;  %v6322_v61 = vpop.permute.xlu0 %1519 }
 0x18d   : > { %2228 = vrot.lane.b32.xlu2 %v6162_v52, %s5315_s21  ;;  %v1075_v52 = vmul.f32 %v6129_v51, %v1031_v2  ;;  %v2280_v2 = vshll.u32 %v6350_v23, 16 }
 0x18f   : > { %v6337_v9 = vpop.permute.xlu2 %1640  ;;  %v2282_v25 = vrot.slane %v2280_v2, 1 }
 0x191   : > { %2232 = vrot.lane.b32.xlu1 %v6181_v28, %s5315_s21  ;;  %v1098_v28 = vadd.f32 %v6149_v35, %v1075_v52  ;;  %v1554_v52 = vsel %vm582_vm2, %v5275_v57, %v6024_v58  ;;  %v2270_v58 = vor.u32 %v2268_v55, %v2266_v18  ;;  %v2310_v57 = vrot.slane %v6331_v32, 1 }
 0x192   : > { %2230 = vrot.lane.b32.xlu0 %v6195_v19, %s5315_s21  ;;  %v2262_v19 = vor.u32 %v2260_v34, %v2258_v38  ;;  %v2278_v38 = vor.u32 %v2276_v59, %v2274_v8  ;;  %v1564_v14 = vsel %vm593_vm3, %v1554_v52, %v6103_v36  ;;  %v2312_v32 = vrot.slane %v6350_v23, 1 }
 0x193   : > { %v1033_v49 = vpop.f32.mrf.mxu0  ;;  %v1542_v50 = vpop.permute.xlu1 %1541  ;;  %v1118_v6 = vmax.f32 %v1098_v28, 0.0 }
 0x194   : > { %v1076_v33 = vmul.f32 %v6129_v51, %v1033_v49  ;;  %v6356_v44 = vpop.permute.xlu0 %1525  ;;  %v1612_v30 = vsel %vm648_vm9, %v1602_v11, %v1542_v50  ;;  %v2267_v21 = vsel %vm258_vm0, %v2262_v19, %v2266_v18  ;;  %v2303_v11 = vunpack.c.l.b16 %v4234_v3 }
 0x195   : > { %2234 = vrot.lane.b32.xlu2 %v6214_v56, %s5315_s21  ;;  %4211 = vmatmul.msk.bf16.vlgmr.msra.gmra.mxu1 %vm986_vm8, %v1612_v30  ;;  %v2227_v56 = vsel %vm258_vm0, %v6225_v48, %v2226_v5  ;;  %v2284_v48 = vshrl.u32 %v6350_v23, 16  ;;  %v1574_v5 = vsel %vm604_vm4, %v1564_v14, %v6168_v15  ;;  %v2290_v19 = vrot.slane %v2288_v16, 1 }
 0x196   : > { %v1099_v63 = vadd.f32 %v6149_v35, %v1076_v33  ;;  %v2283_v33 = vsel %vm258_vm0, %v2278_v38, %v2282_v25  ;;  %v1584_v36 = vsel %vm615_vm5, %v1574_v5, %v6114_v54  ;;  %v2275_v18 = vsel %vm258_vm0, %v2270_v58, %v2274_v8 }
 0x197   : > { %v6369_v37 = vpop.permute.xlu2 %1646  ;;  %v2286_v30 = vor.u32 %v2284_v48, %v2282_v25  ;;  %v1594_v15 = vsel %vm626_vm6, %v1584_v36, %v6281_v17  ;;  %v2308_v8 = vrot.slane %v6328_v39, 1  ;;  %v5276_v25 = vld [vmem:[%s5361_s20 + $0x70] sm:$0xff]   ;;  %v2314_v14 = vrot.slane %v6367_v45, 1 }
 0x198   : > { %v1119_v29 = vmax.f32 %v1099_v63, 0.0  ;;  %v2304_v63 = vpack.c.b16 %v6119_v24, %v2303_v11  ;;  %v1604_v2 = vsel %vm637_vm7, %v1594_v15, %v6322_v61 }
 0x199   : > { %2292 = vrot.lane.b32.xlu1 %v2259_v40, %s5316_s22  ;;  %v2291_v54 = vsel %vm258_vm0, %v2286_v30, %v2290_v19  ;;  %v1614_v3 = vsel %vm648_vm9, %v1604_v2, %v6287_v53  ;;  %v1556_v53 = vsel %vm582_vm2, %v5276_v25, %v6087_v60  ;;  %v2311_v16 = vsel %vm380_vm1, %v2308_v8, %v2310_v57 }
 0x19a   : > { %v4453_v34 = vpack.c.bf16 %v1119_v29, %v1118_v6  ;;  %2236 = vrot.lane.b32.xlu0 %v2227_v56, %s5315_s21  ;;  %v2306_v56 = vrot.slane %v6311_v43, 1  ;;  %v2305_v17 = vrot.slane %v2304_v63, 1  ;;  %v1566_v60 = vsel %vm593_vm3, %v1556_v53, %v6056_v26  ;;  %v4988_v26 = vld [vmem:[%s5361_s20 + $0xf0] sm:$0xff]  }
 0x19b   : > { %v1036_v49 = vpop.f32.mrf.mxu0  ;;  %v6385_v50 = vpop.permute.xlu1 %1547  ;;  %v1576_v5 = vsel %vm604_vm4, %v1566_v60, %v6164_v62  ;;  %v2313_v30 = vsel %vm380_vm1, %v2310_v57, %v2312_v32  ;;  %v2367_v62 = vshll.u32 %v4988_v26, 16 }
 0x19c   : > { %4891 = vst [vmem:[%s6203_s28 + $0x18] sm:$0xff] %v4453_v34   ;;  %v6390_v28 = vpop.permute.xlu0 %1545  ;;  %v1077_v40 = vmul.f32 %v6129_v51, %v1036_v49  ;;  %v2309_v39 = vsel %vm380_vm1, %v2306_v56, %v2308_v8  ;;  %v1586_v23 = vsel %vm615_vm5, %v1576_v5, %v6267_v4 }
 0x19d   : > { %2294 = vrot.lane.b32.xlu2 %v2267_v21, %s5316_s22  ;;  %v2307_v21 = vsel %vm380_vm1, %v2305_v17, %v2306_v56  ;;  %v1596_v36 = vsel %vm626_vm6, %v1586_v23, %v6192_v22  ;;  %v2365_v56 = vshrl.u32 %v4988_v26, 16  ;;  %v2369_v8 = vrot.slane %v2367_v62, 1  ;;  %v4245_v17 = vld [vmem:[%s5361_s20 + $0x118] sm:$0x1] }
 0x19e   : > { %v1100_v6 = vadd.f32 %v6149_v35, %v1077_v40  ;;  %v1606_v4 = vsel %vm637_vm7, %v1596_v36, %v6319_v27  ;;  %v6472_v27 = vld [vmem:[%s5361_s20 + $0x100] sm:$0xff]  }
 0x19f   : > { %v6396_v59 = vpop.permute.xlu2 %1652  ;;  %v1616_v40 = vsel %vm648_vm9, %v1606_v4, %v6390_v28  ;;  %v2370_v25 = vor.u32 %v2369_v8, %v2365_v56 }
 0x1a0   : > { %v1120_v38 = vmax.f32 %v1100_v6, 0.0  ;;  %v5277_v6 = vld [vmem:[%s5361_s20 + $0x78] sm:$0xff]  }
 0x1a1   : > { %2298 = vrot.lane.b32.xlu1 %v2283_v33, %s5316_s22  ;;  %v2315_v33 = vsel %vm380_vm1, %v2312_v32, %v2314_v14  ;;  %v1558_v28 = vsel %vm582_vm2, %v5277_v6, %v6085_v10 }
 0x1a2   : > { %2296 = vrot.lane.b32.xlu0 %v2275_v18, %s5316_s22 }
 0x1a3   : > { %v1038_v55 = vpop.f32.mrf.mxu0  ;;  %v6410_v24 = vpop.permute.xlu1 %1638 }
 0x1a4   : > { %v1078_v29 = vmul.f32 %v6129_v51, %v1038_v55  ;;  %v6414_v61 = vpop.permute.xlu0 %1636 }
 0x1a5   : > { %2300 = vrot.lane.b32.xlu2 %v2291_v54, %s5316_s22  ;;  %4212 = vmatmul.msk.bf16.gmra.mxu1 %vm986_vm8, %v1614_v3  ;;  %v6469_v54 = vld [vmem:[%s5361_s20 + $0xf8] sm:$0xff]  }
 0x1a6   : > { %v1101_v43 = vadd.f32 %v6149_v35, %v1078_v29  ;;  %v2372_v55 = vshll.u32 %v6469_v54, 16  ;;  %v7993_v32 = vunpack.c.l.b16 %v6469_v54 }
 0x1a7   : > { %v6423_v52 = vpop.permute.xlu2 %1658 }
 0x1a8   : > { %v1121_v34 = vmax.f32 %v1101_v43, 0.0  ;;  %v1568_v43 = vsel %vm593_vm3, %v1558_v28, %v6131_v12  ;;  %v2374_v53 = vrot.slane %v2372_v55, 1  ;;  %v4618_v12 = vunpack.c.h.b16 %v4988_v26 }
 0x1a9   : > { %2318 = vrot.lane.b32.xlu1 %v2309_v39, %s5317_s23  ;;  %v1578_v23 = vsel %vm604_vm4, %v1568_v43, %v6093_v7 }
 0x1aa   : > { %v4458_v48 = vpack.c.bf16 %v1121_v34, %v1120_v38  ;;  %2316 = vrot.lane.b32.xlu0 %v2307_v21, %s5317_s23  ;;  %v2380_v21 = vshll.u32 %v6472_v27, 16  ;;  %v4991_v38 = vld [vmem:[%s5361_s20 + $0x108] sm:$0xff]   ;;  %v2362_v34 = vunpack.c.l.b16 %v4245_v17  ;;  %v6502_v36 = vsel %vm258_vm0, %v2370_v25, %v2374_v53 }
 0x1ab   : > { %v6434_v49 = vpop.permute.xlu1 %1644  ;;  %v2388_v10 = vshll.u32 %v4991_v38, 16  ;;  %v1588_v7 = vsel %vm615_vm5, %v1578_v23, %v6263_v13  ;;  %v2422_v8 = vpack.c.b16 %v7993_v32, %v4618_v12 }
 0x1ac   : > { %4892 = vst [vmem:[%s6203_s28 + $0x20] sm:$0xff] %v4458_v48   ;;  %v6437_v58 = vpop.permute.xlu0 %1642  ;;  %v1041_v11 = vpop.f32.mrf.mxu0  ;;  %v2376_v48 = vshrl.u32 %v6469_v54, 16  ;;  %v2382_v4 = vrot.slane %v2380_v21, 1  ;;  %v1598_v55 = vsel %vm626_vm6, %v1588_v7, %v6300_v1  ;;  %v6534_v1 = vld [vmem:[%s5361_s20 + $0x104] sm:$0xff]  }
 0x1ad   : > { %2320 = vrot.lane.b32.xlu2 %v2311_v16, %s5317_s23  ;;  %v1079_v19 = vmul.f32 %v6129_v51, %v1041_v11  ;;  %v4992_v11 = vld [vmem:[%s5361_s20 + $0x110] sm:$0xff]   ;;  %v5278_v21 = vld [vmem:[%s5361_s20 + $0x80] sm:$0xff]  }
 0x1ae   : > { %v2378_v62 = vor.u32 %v2376_v48, %v2374_v53  ;;  %v2400_v17 = vshrl.u32 %v4992_v11, 16  ;;  %v2431_v53 = vshll.u32 %v2422_v8, 16 }
 0x1af   : > { %v6447_v45 = vpop.permute.xlu2 %1664  ;;  %v1102_v2 = vadd.f32 %v6149_v35, %v1079_v19  ;;  %v2363_v19 = vpack.c.b16 %v2362_v34, %v2362_v34 }
 0x1b0   : > { %v6531_v43 = vsel %vm258_vm0, %v2378_v62, %v2382_v4  ;;  %v6562_v62 = vld [vmem:[%s5361_s20 + $0x10c] sm:$0xff]  }
 0x1b1   : > { %2324 = vrot.lane.b32.xlu1 %v2315_v33, %s5317_s23  ;;  %v1122_v39 = vmax.f32 %v1102_v2, 0.0  ;;  %v2396_v33 = vshll.u32 %v4992_v11, 16  ;;  %v6511_v2 = vld [vmem:[%s5361_s20 + $0x128] sm:$0xff]   ;;  %8027 = vst [vmem:[#allocation5_spill] sm:$0xff] %v6531_v43 }
 0x1b2   : > { %2322 = vrot.lane.b32.xlu0 %v2313_v30, %s5317_s23  ;;  %v2392_v30 = vshrl.u32 %v4991_v38, 16  ;;  %8025 = vst [vmem:[#allocation3_spill] sm:$0xff] %v6511_v2 }
 0x1b3   : > { %v6458_v18 = vpop.permute.xlu1 %1650  ;;  %v2398_v6 = vrot.slane %v2396_v33, 1 }
 0x1b4   : > { %v6460_v63 = vpop.permute.xlu0 %1648  ;;  %v1043_v15 = vpop.f32.mrf.mxu0 }
 0x1b5   : > { %2351 = vrot.lane.b32.xlu2 %v4988_v26, %s5318_s24  ;;  %v1080_v22 = vmul.f32 %v6129_v51, %v1043_v15  ;;  %4213 = vmatmul.msk.bf16.gmra.mxu1 %vm986_vm8, %v1616_v40  ;;  %v2390_v26 = vrot.slane %v2388_v10, 1  ;;  %v6505_v15 = vld [vmem:[%s5361_s20 + $0xfc] sm:$0xff]   ;;  %v1608_v10 = vsel %vm637_vm7, %v1598_v55, %v6272_v20  ;;  %v2429_v55 = vshrl.u32 %v2422_v8, 16 }
 0x1b6   : > { %v6508_v40 = vld [vmem:[%s5361_s20 + $0x120] sm:$0xff]  }
 0x1b7   : > { %v1103_v29 = vadd.f32 %v6149_v35, %v1080_v22  ;;  %v6480_v3 = vpop.permute.xlu2 %1695  ;;  %8024 = vst [vmem:[#allocation2_spill] sm:$0xff] %v6508_v40  ;;  %v2384_v22 = vshrl.u32 %v6472_v27, 16  ;;  %v4708_v13 = vunpack.c.h.b16 %v6508_v40 }
 0x1b9   : > { %v1123_v57 = vmax.f32 %v1103_v29, 0.0  ;;  %2355 = vrot.lane.b32.xlu1 %v6472_v27, %s5318_s24  ;;  %v2404_v29 = vshll.u32 %v2363_v19, 16  ;;  %v6527_v27 = vunpack.c.l.b16 %v6511_v2  ;;  %v2386_v25 = vor.u32 %v2384_v22, %v2382_v4 }
 0x1ba   : > { %2353 = vrot.lane.b32.xlu0 %v6469_v54, %s5318_s24  ;;  %v2444_v19 = vshll.u32 %v6534_v1, 16 }
 0x1bb   : > { %v4463_v16 = vpack.c.bf16 %v1123_v57, %v1122_v39  ;;  %v6492_v14 = vpop.permute.xlu1 %1656  ;;  %8026 = vst [vmem:[#allocation4_spill] sm:$0xff] %v6527_v27  ;;  %v2394_v39 = vor.u32 %v2392_v30, %v2390_v26  ;;  %v2436_v57 = vshll.u32 %v6505_v15, 16  ;;  %v2406_v33 = vrot.slane %v2404_v29, 1 }
 0x1bc   : > { %v6495_v60 = vpop.permute.xlu0 %1654  ;;  %v1046_v5 = vpop.f32.mrf.mxu0  ;;  %v3197_v23 = vpack.c.b16 %v6527_v27, %v4708_v13  ;;  %v6568_v22 = vsel %vm258_vm0, %v2386_v25, %v2390_v26  ;;  %v2446_v8 = vrot.slane %v2444_v19, 1 }
 0x1bd   : > { %4893 = vst [vmem:[%s6203_s28 + $0x28] sm:$0xff] %v4463_v16   ;;  %2357 = vrot.lane.b32.xlu2 %v4991_v38, %s5318_s24  ;;  %v1081_v28 = vmul.f32 %v6129_v51, %v1046_v5  ;;  %v1560_v38 = vsel %vm582_vm2, %v5278_v21, %v6042_v0  ;;  %v2402_v5 = vor.u32 %v2400_v17, %v2398_v6  ;;  %v2438_v30 = vrot.slane %v2436_v57, 1 }
 0x1be   : > { %v1570_v48 = vsel %vm593_vm3, %v1560_v38, %v6124_v46  ;;  %v6557_v46 = vsel %vm258_vm0, %v2394_v39, %v2398_v6  ;;  %8029 = vst [vmem:[#allocation7_spill] sm:$0xff] %v6568_v22  ;;  %v2433_v17 = vrot.slane %v2431_v53, 1  ;;  %v6578_v39 = vld [vmem:[%s5361_s20 + $0x12c] sm:$0xff]   ;;  %v3206_v57 = vshll.u32 %v3197_v23, 16 }
 0x1bf   : > { %v6516_v56 = vpop.permute.xlu2 %1748  ;;  %v1104_v0 = vadd.f32 %v6149_v35, %v1081_v28  ;;  %8028 = vst [vmem:[#allocation6_spill] sm:$0xff] %v6557_v46  ;;  %v1580_v6 = vsel %vm604_vm4, %v1570_v48, %v6232_v41  ;;  %v6575_v13 = vsel %vm258_vm0, %v2402_v5, %v2406_v33  ;;  %v2448_v41 = vshrl.u32 %v6534_v1, 16  ;;  %v6585_v38 = vld [vmem:[%s5361_s20 + $0x150] sm:$0xff]   ;;  %v4302_v5 = vld [vmem:[%s5361_s20 + $0x124] sm:$0xe] }
 0x1c0   : > { %8030 = vst [vmem:[#allocation8_spill] sm:$0xff] %v6575_v13  ;;  %v2452_v21 = vshll.u32 %v6562_v62, 16  ;;  %v1590_v25 = vsel %vm615_vm5, %v1580_v6, %v6142_v47  ;;  %v3208_v19 = vrot.slane %v3206_v57, 1  ;;  %v3211_v47 = vshll.u32 %v6578_v39, 16 }
 0x1c1   : > { %2408 = vrot.lane.b32.xlu1 %v6502_v36, %s5319_s25  ;;  %v1124_v28 = vmax.f32 %v1104_v0, 0.0  ;;  %v1600_v0 = vsel %vm626_vm6, %v1590_v25, %v6296_v31  ;;  %v2450_v6 = vor.u32 %v2448_v41, %v2446_v8  ;;  %v3140_v57 = vshrl.u32 %v6508_v40, 16 }
 0x1c2   : > { %2359 = vrot.lane.b32.xlu0 %v4992_v11, %s5318_s24  ;;  %v1618_v11 = vsel %vm648_vm9, %v1608_v10, %v6385_v50  ;;  %v2440_v50 = vshrl.u32 %v6505_v15, 16  ;;  %v6588_v10 = vld [vmem:[%s5361_s20 + $0x158] sm:$0xff]   ;;  %v6609_v31 = vrot.slane %v2452_v21, 1  ;;  %v1610_v32 = vsel %vm637_vm7, %v1600_v0, %v6356_v44 }
 0x1c3   : > { %v6540_v34 = vpop.permute.xlu1 %1662  ;;  %v6625_v41 = vrot.slane %v3211_v47, 1 }
 0x1c4   : > { %v6546_v12 = vpop.permute.xlu0 %1660  ;;  %v1048_v16 = vpop.f32.mrf.mxu0  ;;  %v2442_v26 = vor.u32 %v2440_v50, %v2438_v30  ;;  %v3204_v50 = vshrl.u32 %v3197_v23, 16  ;;  %v6633_v21 = vsel %vm258_vm0, %v2450_v6, %v6609_v31 }
 0x1c5   : > { %2410 = vrot.lane.b32.xlu2 %v6531_v43, %s5319_s25  ;;  %v1082_v20 = vmul.f32 %v6129_v51, %v1048_v16  ;;  %4214 = vmatmul.msk.bf16.gmra.mxu1 %vm986_vm8, %v1618_v11  ;;  %v2434_v16 = vor.u32 %v2433_v17, %v2429_v55  ;;  %v3142_v11 = vshll.u32 %v6508_v40, 16  ;;  %v7994_v55 = vunpack.c.l.b16 %v6588_v10  ;;  %8033 = vst [vmem:[#allocation11_spill] sm:$0xff] %v6633_v21 }
 0x1c6   : > { %v6607_v17 = vsel %vm258_vm0, %v2442_v26, %v2446_v8  ;;  %v6623_v8 = vor.u32 %v3208_v19, %v3204_v50  ;;  %v1620_v19 = vsel %vm648_vm9, %v1610_v32, %v6306_v42 }
 0x1c7   : > { %v1105_v4 = vadd.f32 %v6149_v35, %v1082_v20  ;;  %v6565_v7 = vpop.permute.xlu2 %1754  ;;  %8031 = vst [vmem:[#allocation9_spill] sm:$0xff] %v6607_v17  ;;  %v6614_v23 = vsel %vm258_vm0, %v2434_v16, %v2438_v30  ;;  %v3144_v25 = vrot.slane %v3142_v11, 1  ;;  %v3322_v16 = vshll.u32 %v6585_v38, 16 }
 0x1c8   : > { %8032 = vst [vmem:[#allocation10_spill] sm:$0xff] %v6623_v8 }
 0x1c9   : > { %v1125_v29 = vmax.f32 %v1105_v4, 0.0  ;;  %2414 = vrot.lane.b32.xlu1 %v6557_v46, %s5319_s25  ;;  %v4728_v4 = vunpack.c.h.b16 %v6585_v38  ;;  %v4248_v46 = vld [vmem:[%s5361_s20 + $0xf4] sm:$0xe] }
 0x1ca   : > { %2412 = vrot.lane.b32.xlu0 %v6568_v22, %s5319_s25 }
 0x1cb   : > { %v4468_v53 = vpack.c.bf16 %v1125_v29, %v1124_v28  ;;  %v6592_v48 = vpop.permute.xlu1 %1693  ;;  %v3258_v28 = vunpack.c.l.b16 %v4302_v5  ;;  %v3377_v30 = vpack.c.b16 %v7994_v55, %v4728_v4  ;;  %v6639_v5 = vor.u32 %v3144_v25, %v3140_v57  ;;  %v6657_v57 = vld [vmem:[%s5361_s20 + $0x15c] sm:$0xff]  }
 0x1cc   : > { %v6598_v20 = vpop.permute.xlu0 %1691  ;;  %v1051_v33 = vpop.f32.mrf.mxu0  ;;  %v3320_v25 = vshrl.u32 %v6585_v38, 16 }
 0x1cd   : > { %4894 = vst [vmem:[%s6203_s28 + $0x30] sm:$0xff] %v4468_v53   ;;  %2416 = vrot.lane.b32.xlu2 %v6575_v13, %s5319_s25  ;;  %v3147_v53 = vshll.u32 %v6511_v2, 16  ;;  %v1083_v26 = vmul.f32 %v6129_v51, %v1051_v33  ;;  %v3259_v44 = vpack.c.b16 %v6527_v27, %v3258_v28  ;;  %v3214_v28 = vsel %vm258_vm0, %v6623_v8, %v6625_v41 }
 0x1ce   : > { %8034 = vst [vmem:[#allocation12_spill] sm:$0xff] %v6639_v5  ;;  %v3386_v42 = vshll.u32 %v3377_v30, 16  ;;  %v3384_v13 = vshrl.u32 %v3377_v30, 16 }
 0x1cf   : > { %v6611_v29 = vpop.permute.xlu2 %1814  ;;  %v6641_v0 = vrot.slane %v3147_v53, 1  ;;  %v1106_v4 = vadd.f32 %v6149_v35, %v1083_v26  ;;  %v3260_v32 = vrot.slane %v3259_v44, 1  ;;  %v3324_v53 = vrot.slane %v3322_v16, 1 }
 0x1d0   : > { %v3327_v26 = vshll.u32 %v6588_v10, 16  ;;  %v3388_v44 = vrot.slane %v3386_v42, 1  ;;  %v3391_v16 = vshll.u32 %v6657_v57, 16 }
 0x1d1   : > { %2474 = vrot.lane.b32.xlu1 %v6607_v17, %s5320_s26  ;;  %v3325_v43 = vor.u32 %v3324_v53, %v3320_v25  ;;  %v8036_v25 = vunpack.c.l.b16 %v6588_v10 }
 0x1d2   : > { %2472 = vrot.lane.b32.xlu0 %v6614_v23, %s5320_s26  ;;  %v6675_v27 = vrot.slane %v3327_v26, 1  ;;  %v3389_v42 = vor.u32 %v3388_v44, %v3384_v13  ;;  %v6696_v26 = vld [vmem:[%s5361_s20 + $0x130] sm:$0xff]  }
 0x1d3   : > { %v6637_v11 = vpop.permute.xlu1 %1699  ;;  %8038 = vst [vmem:[#allocation13_spill] sm:$0xff] %v6696_v26 }
 0x1d4   : > { %v6643_v33 = vpop.permute.xlu0 %1697  ;;  %v1053_v50 = vpop.f32.mrf.mxu0 }
 0x1d5   : > { %2476 = vrot.lane.b32.xlu2 %v6633_v21, %s5320_s26  ;;  %v1084_v6 = vmul.f32 %v6129_v51, %v1053_v50  ;;  %4215 = vmatmul.msk.bf16.gmra.mxu1 %vm986_vm8, %v1620_v19  ;;  %v3150_v50 = vsel %vm258_vm0, %v6639_v5, %v6641_v0  ;;  %v4316_v19 = vld [vmem:[%s5361_s20 + $0x154] sm:$0xe]  ;;  %v1126_v21 = vmax.f32 %v1106_v4, 0.0 }
 0x1d6   : > { %v3438_v30 = vunpack.c.l.b16 %v4316_v19  ;;  %v3155_v19 = vshll.u32 %v6696_v26, 16 }
 0x1d7   : > { %v1107_v55 = vadd.f32 %v6149_v35, %v1084_v6  ;;  %v6662_v47 = vpop.permute.xlu2 %1820  ;;  %v8035_v6 = vrot.slane %v6578_v39, 1 }
 0x1d9   : > { %v1127_v22 = vmax.f32 %v1107_v55, 0.0  ;;  %3247 = vrot.lane.b32.xlu1 %v3214_v28, %s5316_s22  ;;  %v3262_v17 = vsel %vm380_vm1, %v3260_v32, %v8035_v6  ;;  %v2483_v55 = vunpack.c.l.b16 %v4248_v46  ;;  %v6687_v32 = vsel %vm258_vm0, %v3325_v43, %v6675_v27 }
 0x1da   : > { %3183 = vrot.lane.b32.xlu0 %v3150_v50, %s5315_s21  ;;  %v6683_v50 = vrot.slane %v3391_v16, 1  ;;  %v8037_v46 = vunpack.c.l.b16 %v6469_v54  ;;  %v8006_v54 = vshrl.u32 %v6511_v2, 16  ;;  %v8007_v6 = vrot.slane %v6505_v15, 1 }
 0x1db   : > { %v4473_v8 = vpack.c.bf16 %v1127_v22, %v1126_v21  ;;  %v6677_v5 = vpop.permute.xlu1 %1752  ;;  %v3439_v22 = vpack.c.b16 %v8036_v25, %v3438_v30  ;;  %v6712_v30 = vld [vmem:[%s5361_s20 + $0x134] sm:$0xff]  }
 0x1dc   : > { %v6679_v4 = vpop.permute.xlu0 %1750  ;;  %v1056_v28 = vpop.f32.mrf.mxu0  ;;  %v2484_v53 = vpack.c.b16 %v8037_v46, %v2483_v55  ;;  %v6703_v43 = vsel %vm258_vm0, %v3389_v42, %v6683_v50  ;;  %v6728_v46 = vrot.slane %v3155_v19, 1  ;;  %v6748_v19 = vld [vmem:[%s5361_s20 + $0x164] sm:$0xff]  }
 0x1dd   : > { %4895 = vst [vmem:[%s6203_s28 + $0x38] sm:$0xff] %v4473_v8   ;;  %3271 = vrot.lane.b32.xlu2 %v3262_v17, %s5317_s23  ;;  %v1085_v17 = vmul.f32 %v6129_v51, %v1056_v28  ;;  %v3440_v13 = vrot.slane %v3439_v22, 1  ;;  %v8004_v8 = vrot.slane %v6657_v57, 1  ;;  %v3153_v22 = vor.u32 %v8006_v54, %v6641_v0 }
 0x1de   : > { %8039 = vst [vmem:[#allocation14_spill] sm:$0xff] %v6703_v43  ;;  %v2485_v16 = vrot.slane %v2484_v53, 1  ;;  %v8011_v0 = vrot.slane %v6712_v30, 1 }
 0x1df   : > { %v6691_v21 = vpop.permute.xlu2 %1840  ;;  %v1108_v42 = vadd.f32 %v6149_v35, %v1085_v17  ;;  %v6723_v25 = vsel %vm380_vm1, %v3440_v13, %v8004_v8  ;;  %8041 = vst [vmem:[#allocation16_spill] sm:$0xff] %v6728_v46  ;;  %v3219_v13 = vshll.u32 %v6712_v30, 16 }
 0x1e0   : > { %8040 = vst [vmem:[#allocation15_spill] sm:$0xff] %v6723_v25 }
 0x1e1   : > { %3363 = vrot.lane.b32.xlu1 %v6687_v32, %s5319_s25  ;;  %v1128_v8 = vmax.f32 %v1108_v42, 0.0 }
 0x1e2   : > { %3306 = vrot.lane.b32.xlu0 %v6585_v38, %s5318_s24 }
 0x1e3   : > { %v1813_v44 = vpop.permute.xlu1 %1812 }
 0x1e4   : > { %v6714_v55 = vpop.permute.xlu0 %1756  ;;  %v1058_v28 = vpop.f32.mrf.mxu0 }
 0x1e5   : > { %3427 = vrot.lane.b32.xlu2 %v6703_v43, %s5320_s26  ;;  %v1086_v38 = vmul.f32 %v6129_v51, %v1058_v28  ;;  %v6736_v51 = vsel %vm380_vm1, %v2485_v16, %v8007_v6  ;;  %v3215_v28 = vshrl.u32 %v6578_v39, 16  ;;  %v5279_v16 = vld [vmem:[%s5361_s20 + $0x90] sm:$0xff]   ;;  %v6756_v6 = vrot.slane %v3219_v13, 1 }
 0x1e6   : > { %8042 = vst [vmem:[#allocation17_spill] sm:$0xff] %v6736_v51 }
 0x1e7   : > { %v1109_v53 = vadd.f32 %v6149_v35, %v1086_v38  ;;  %v6731_v17 = vpop.permute.xlu2 %2228  ;;  %v3158_v35 = vsel %vm258_vm0, %v3153_v22, %v6728_v46  ;;  %v1847_v38 = vsel %vm582_vm2, %v5279_v16, %v6414_v61  ;;  %v8043_v61 = vrot.slane %v6578_v39, 1 }
 0x1e8   : > { %v1857_v22 = vsel %vm593_vm3, %v1847_v38, %v6369_v37  ;;  %v3331_v37 = vshrl.u32 %v6588_v10, 16  ;;  %v6787_v38 = vld [vmem:[%s7990_s2] ss:$0 sm:$0xff] }
 0x1e9   : > { %v1129_v2 = vmax.f32 %v1109_v53, 0.0  ;;  %3451 = vrot.lane.b32.xlu1 %v6723_v25, %s5321_s27  ;;  %v3217_v53 = vor.u32 %v3215_v28, %v6625_v41  ;;  %v3395_v41 = vshrl.u32 %v6657_v57, 16  ;;  %v1867_v28 = vsel %vm604_vm4, %v1857_v22, %v6492_v14 }
 0x1ea   : > { %2496 = vrot.lane.b32.xlu0 %v6736_v51, %s5321_s27  ;;  %v6761_v51 = vld [vmem:[%s5361_s20 + $0x160] sm:$0xff]   ;;  %v1877_v39 = vsel %vm615_vm5, %v1867_v28, %v6598_v20  ;;  %v3333_v20 = vor.u32 %v3331_v37, %v6675_v27 }
 0x1eb   : > { %v4478_v42 = vpack.c.bf16 %v1129_v2, %v1128_v8  ;;  %v6753_v54 = vpop.permute.xlu1 %1818  ;;  %v3264_v2 = vsel %vm380_vm1, %v8043_v61, %v8011_v0  ;;  %v3399_v8 = vshll.u32 %v6748_v19, 16  ;;  %v3335_v16 = vshll.u32 %v6761_v51, 16  ;;  %v6799_v0 = vld [vmem:[%s5361_s20 + $0x138] sm:$0xff]  }
 0x1ec   : > { %v6758_v25 = vpop.permute.xlu0 %1816  ;;  %v1061_v43 = vpop.f32.mrf.mxu0  ;;  %v1887_v22 = vsel %vm626_vm6, %v1877_v39, %v6516_v56  ;;  %v3163_v37 = vshll.u32 %v6799_v0, 16 }
 0x1ed   : > { %4896 = vst [vmem:[%s6203_s28 + $0x40] sm:$0xff] %v4478_v42   ;;  %3185 = vrot.lane.b32.xlu2 %v3158_v35, %s5315_s21  ;;  %v3222_v35 = vsel %vm258_vm0, %v3217_v53, %v6756_v6  ;;  %v1087_v14 = vmul.f32 %v6787_v38, %v1061_v43  ;;  %v3397_v42 = vor.u32 %v3395_v41, %v6683_v50  ;;  %v6793_v53 = vrot.slane %v3399_v8, 1  ;;  %v6805_v50 = vld [vmem:[%s7991_s3] ss:$0 sm:$0xff] }
 0x1ee   : > { %v3337_v28 = vrot.slane %v3335_v16, 1  ;;  %v1897_v43 = vsel %vm637_vm7, %v1887_v22, %v1813_v44  ;;  %v8014_v8 = vrot.slane %v6534_v1, 1  ;;  %v6821_v16 = vld [vmem:[%s5361_s20 + $0x13c] sm:$0xff]  }
 0x1ef   : > { %v6776_v13 = vpop.permute.xlu2 %2234  ;;  %v1110_v41 = vadd.f32 %v6805_v50, %v1087_v14  ;;  %v6816_v44 = vsel %vm258_vm0, %v3397_v42, %v6793_v53  ;;  %v8044_v42 = vrot.slane %v6505_v15, 1 }
 0x1f1   : > { %3273 = vrot.lane.b32.xlu1 %v3264_v2, %s5317_s23  ;;  %v1130_v14 = vmax.f32 %v1110_v41, 0.0  ;;  %v3223_v41 = vshrl.u32 %v6712_v30, 16 }
 0x1f2   : > { %3249 = vrot.lane.b32.xlu0 %v3222_v35, %s5316_s22  ;;  %v3159_v35 = vshrl.u32 %v6696_v26, 16 }
 0x1f3   : > { %v1839_v61 = vpop.permute.xlu1 %1838 }
 0x1f4   : > { %v1837_v40 = vpop.permute.xlu0 %1836  ;;  %v1063_v2 = vpop.f32.mrf.mxu0 }
 0x1f5   : > { %3308 = vrot.lane.b32.xlu2 %v6588_v10, %s5318_s24  ;;  %v1088_v56 = vmul.f32 %v6787_v38, %v1063_v2  ;;  %v1907_v27 = vsel %vm648_vm9, %v1897_v43, %v1837_v40  ;;  %v6825_v40 = vsel %vm258_vm0, %v3333_v20, %v3337_v28  ;;  %v6834_v43 = vsel %vm380_vm1, %v8044_v42, %v8014_v8 }
 0x1f6   : > { %4216 = vmatmul.msk.bf16.gmra.mxu1 %vm986_vm8, %v1907_v27  ;;  %v3161_v2 = vor.u32 %v3159_v35, %v6728_v46  ;;  %v6839_v20 = vrot.slane %v3163_v37, 1  ;;  %v5282_v27 = vld [vmem:[%s5361_s20 + $0x98] sm:$0xff]   ;;  %v8015_v42 = vrot.slane %v6748_v19, 1 }
 0x1f7   : > { %v1111_v10 = vadd.f32 %v6805_v50, %v1088_v56  ;;  %v2295_v39 = vpop.permute.xlu2 %2294  ;;  %v3227_v56 = vshll.u32 %v6821_v16, 16 }
 0x1f8   : > { %v3166_v37 = vsel %vm258_vm0, %v3161_v2, %v6839_v20 }
 0x1f9   : > { %v1131_v22 = vmax.f32 %v1111_v10, 0.0  ;;  %3429 = vrot.lane.b32.xlu1 %v6816_v44, %s5320_s26  ;;  %v1849_v10 = vsel %vm582_vm2, %v5282_v27, %v6410_v24  ;;  %v3225_v24 = vor.u32 %v3223_v41, %v6756_v6 }
 0x1fa   : > { %3365 = vrot.lane.b32.xlu0 %v6825_v40, %s5319_s25  ;;  %v1859_v8 = vsel %vm593_vm3, %v1849_v10, %v6460_v63  ;;  %v8045_v63 = vrot.slane %v6657_v57, 1  ;;  %v3339_v57 = vshrl.u32 %v6761_v51, 16 }
 0x1fb   : > { %v4483_v15 = vpack.c.bf16 %v1131_v22, %v1130_v14  ;;  %v6846_v26 = vpop.permute.xlu1 %1844  ;;  %v6859_v14 = vrot.slane %v3227_v56, 1  ;;  %v1869_v22 = vsel %vm604_vm4, %v1859_v8, %v6423_v52 }
 0x1fc   : > { %v6851_v35 = vpop.permute.xlu0 %1842  ;;  %v6868_v10 = vsel %vm380_vm1, %v8045_v63, %v8015_v42  ;;  %v1879_v2 = vsel %vm615_vm5, %v1869_v22, %v6592_v48  ;;  %v6888_v48 = vld [vmem:[%s5361_s20 + $0x16c] sm:$0xff]  }
 0x1fd   : > { %4897 = vst [vmem:[%s6203_s28 + $0x48] sm:$0xff] %v4483_v15   ;;  %2498 = vrot.lane.b32.xlu2 %v6834_v43, %s5321_s27  ;;  %v6871_v15 = vld [vmem:[%s5361_s20 + $0x168] sm:$0xff]   ;;  %v1889_v6 = vsel %vm626_vm6, %v1879_v2, %v6679_v4  ;;  %v3230_v52 = vsel %vm258_vm0, %v3225_v24, %v6859_v14  ;;  %v3341_v2 = vor.u32 %v3339_v57, %v3337_v28  ;;  %v8018_v28 = vrot.slane %v6562_v62, 1  ;;  %v5284_v57 = vld [vmem:[%s5361_s20 + $0xa0] sm:$0xff]  }
 0x1fe   : > { %v3343_v8 = vshll.u32 %v6871_v15, 16  ;;  %v1899_v4 = vsel %vm637_vm7, %v1889_v6, %v6611_v29  ;;  %v8046_v29 = vrot.slane %v6821_v16, 1  ;;  %v8047_v6 = vrot.slane %v6712_v30, 1  ;;  %v6918_v30 = vld [vmem:[%s5361_s20 + $0x144] sm:$0xff] }
 0x1ff   : > { %v2301_v27 = vpop.permute.xlu2 %2300  ;;  %v1909_v24 = vsel %vm648_vm9, %v1899_v4, %v1839_v61  ;;  %v3407_v61 = vshll.u32 %v6888_v48, 16  ;;  %v5285_v4 = vld [vmem:[%s5361_s20 + $0xc0] sm:$0xff]  }
 0x200   : > { %v6897_v42 = vrot.slane %v3343_v8, 1  ;;  %v1851_v8 = vsel %vm582_vm2, %v5284_v57, %v6337_v9  ;;  %v5286_v57 = vld [vmem:[%s5361_s20 + $0xe0] sm:$0xff]  }
 0x201   : > { %3187 = vrot.lane.b32.xlu1 %v3166_v37, %s5315_s21  ;;  %v5283_v37 = vld [vmem:[%s5361_s20 + $0xc8] sm:$0xff]  }
 0x202   : > { %3453 = vrot.lane.b32.xlu0 %v6868_v10, %s5321_s27 }
 0x203   : > { %v6884_v41 = vpop.permute.xlu1 %2232 }
 0x204   : > { %v2231_v22 = vpop.permute.xlu0 %2230 }
 0x205   : > { %v2509_v63 = vsel %vm582_vm2, %v5283_v37, %v2231_v22  ;;  %3251 = vrot.lane.b32.xlu2 %v3230_v52, %s5316_s22  ;;  %v3266_v22 = vsel %vm380_vm1, %v8047_v6, %v8046_v29  ;;  %v3403_v52 = vshrl.u32 %v6748_v19, 16  ;;  %v2507_v37 = vsel %vm582_vm2, %v5285_v4, %v6731_v17 }
 0x206   : > { %4217 = vmatmul.msk.bf16.gmra.mxu1 %vm986_vm8, %v1909_v24  ;;  %v6900_v56 = vsel %vm593_vm3, %v2509_v63, %v2295_v39  ;;  %v6915_v39 = vsel %vm258_vm0, %v3341_v2, %v6897_v42  ;;  %v6927_v24 = vrot.slane %v3407_v61, 1  ;;  %v1861_v29 = vsel %vm593_vm3, %v1851_v8, %v6458_v18 }
 0x207   : > { %v2321_v46 = vpop.permute.xlu2 %2320  ;;  %v3405_v63 = vor.u32 %v3403_v52, %v6793_v53  ;;  %v1871_v9 = vsel %vm604_vm4, %v1861_v29, %v6546_v12  ;;  %v8048_v53 = vrot.slane %v6534_v1, 1  ;;  %v8020_v52 = vrot.slane %v6888_v48, 1 }
 0x208   : > { %v3231_v61 = vshrl.u32 %v6821_v16, 16  ;;  %v3235_v12 = vshll.u32 %v6918_v30, 16  ;;  %v3167_v1 = vshrl.u32 %v6799_v0, 16  ;;  %v1881_v29 = vsel %vm615_vm5, %v1871_v9, %v6480_v3  ;;  %v6985_v9 = vld [vmem:[%s5361_s20 + $0x170] sm:$0xff]  }
 0x209   : > { %3310 = vrot.lane.b32.xlu1 %v6761_v51, %s5318_s24  ;;  %v6948_v18 = vsel %vm380_vm1, %v8048_v53, %v8018_v28  ;;  %v5287_v53 = vld [vmem:[%s5361_s20 + $0xd8] sm:$0xff]  }
 0x20a   : > { %3275 = vrot.lane.b32.xlu0 %v3266_v22, %s5317_s23  ;;  %v6935_v22 = vld [vmem:[%s5361_s20 + $0x140] sm:$0xff]   ;;  %8049 = vst [vmem:[#allocation18_spill] sm:$0xff] %v6948_v18  ;;  %v3233_v3 = vor.u32 %v3231_v61, %v6859_v14 }
 0x20b   : > { %v2293_v51 = vpop.permute.xlu1 %2292 }
 0x20c   : > { %v6932_v2 = vsel %vm593_vm3, %v2507_v37, %v2293_v51  ;;  %v2237_v6 = vpop.permute.xlu0 %2236  ;;  %v6960_v37 = vsel %vm258_vm0, %v3405_v63, %v6927_v24  ;;  %v3171_v51 = vshll.u32 %v6935_v22, 16 }
 0x20d   : > { %v2515_v17 = vsel %vm582_vm2, %v5286_v57, %v2237_v6  ;;  %3367 = vrot.lane.b32.xlu2 %v6915_v39, %s5319_s25  ;;  %v1891_v6 = vsel %vm626_vm6, %v1881_v29, %v6677_v5  ;;  %v8050_v57 = vrot.slane %v6748_v19, 1  ;;  %v6982_v5 = vrot.slane %v3235_v12, 1  ;;  %v5288_v19 = vld [vmem:[%s5361_s20 + $0xd0] sm:$0xff]  }
 0x20e   : > { %v6954_v8 = vsel %vm593_vm3, %v2515_v17, %v2301_v27  ;;  %v1901_v27 = vsel %vm637_vm7, %v1891_v6, %v6758_v25  ;;  %v2513_v25 = vsel %vm582_vm2, %v5287_v53, %v6776_v13  ;;  %v3169_v6 = vor.u32 %v3167_v1, %v6839_v20  ;;  %v7011_v53 = vld [vmem:[%s5361_s20 + $0x114] sm:$0xff] }
 0x20f   : > { %v6956_v4 = vpop.permute.xlu2 %2351  ;;  %v6979_v17 = vsel %vm380_vm1, %v8050_v57, %v8020_v52  ;;  %v6991_v28 = vrot.slane %v3171_v51, 1  ;;  %v2511_v57 = vsel %vm582_vm2, %v5288_v19, %v6884_v41  ;;  %v1911_v13 = vsel %vm648_vm9, %v1901_v27, %v6691_v21  ;;  %v5289_v19 = vld [vmem:[%s5361_s20 + $0xa8] sm:$0xff]  }
 0x210   : > { %8051 = vst [vmem:[#allocation19_spill] sm:$0xff] %v6979_v17  ;;  %v3347_v20 = vshrl.u32 %v6871_v15, 16  ;;  %v3351_v1 = vshll.u32 %v6985_v9, 16  ;;  %v3238_v41 = vsel %vm258_vm0, %v3233_v3, %v6982_v5  ;;  %v8019_v51 = vrot.slane %v6918_v30, 1 }
 0x211   : > { %2500 = vrot.lane.b32.xlu1 %v6948_v18, %s5321_s27  ;;  %v3174_v27 = vsel %vm258_vm0, %v3169_v6, %v6991_v28 }
 0x212   : > { %3431 = vrot.lane.b32.xlu0 %v6960_v37, %s5320_s26  ;;  %v1977_v63 = vpop.f32.mrf.mxu1  ;;  %v3349_v3 = vor.u32 %v3347_v20, %v6897_v42  ;;  %v7037_v20 = vld [vmem:[%s5361_s20 + $0x174] sm:$0xff] }
 0x213   : > { %v2299_v29 = vpop.permute.xlu1 %2298 }
 0x214   : > { %v6997_v14 = vsel %vm593_vm3, %v2513_v25, %v2299_v29  ;;  %v2297_v61 = vpop.permute.xlu0 %2296  ;;  %v2027_v29 = vmul.f32 %v6787_v38, %v1977_v63  ;;  %v8052_v63 = vrot.slane %v6821_v16, 1 }
 0x215   : > { %v2521_v12 = vsel %vm593_vm3, %v2511_v57, %v2297_v61  ;;  %3455 = vrot.lane.b32.xlu2 %v6979_v17, %s5321_s27  ;;  %v1853_v57 = vsel %vm582_vm2, %v5289_v19, %v6437_v58  ;;  %v7024_v61 = vrot.slane %v3351_v1, 1  ;;  %v2460_v58 = vshll.u32 %v7011_v53, 16  ;;  %v4301_v1 = vld [vmem:[%s5361_s20 + $0x14c] sm:$0x1] }
 0x216   : > { %4218 = vmatmul.msk.bf16.gmra.mxu1 %vm986_vm8, %v1911_v13  ;;  %v7014_v25 = vsel %vm604_vm4, %v2521_v12, %v2321_v46  ;;  %v3268_v6 = vsel %vm380_vm1, %v8052_v63, %v8019_v51  ;;  %v2456_v12 = vshrl.u32 %v6562_v62, 16  ;;  %v2047_v13 = vadd.f32 %v6805_v50, %v2027_v29  ;;  %v4299_v63 = vld [vmem:[%s5361_s20 + $0x148] sm:$0x1] }
 0x217   : > { %v2358_v21 = vpop.permute.xlu2 %2357 }
 0x218   : > { %v2067_v52 = vmax.f32 %v2047_v13, 0.0 }
 0x219   : > { %3253 = vrot.lane.b32.xlu1 %v3238_v41, %s5316_s22 }
 0x21a   : > { %3189 = vrot.lane.b32.xlu0 %v3174_v27, %s5315_s21  ;;  %v1979_v46 = vpop.f32.mrf.mxu1  ;;  %v1863_v27 = vsel %vm593_vm3, %v1853_v57, %v6396_v59  ;;  %v2458_v59 = vor.u32 %v2456_v12, %v6609_v31  ;;  %v7058_v57 = vrot.slane %v2460_v58, 1  ;;  %v2492_v31 = vrot.slane %v7011_v53, 1 }
 0x21b   : > { %v2028_v41 = vmul.f32 %v6787_v38, %v1979_v46  ;;  %v2319_v42 = vpop.permute.xlu1 %2318  ;;  %v1873_v51 = vsel %vm604_vm4, %v1863_v27, %v6540_v34  ;;  %v7055_v46 = vsel %vm258_vm0, %v3349_v3, %v7024_v61  ;;  %v3415_v34 = vshll.u32 %v7037_v20, 16  ;;  %v4313_v27 = vld [vmem:[%s5361_s20 + $0x178] sm:$0x1] }
 0x21c   : > { %v7044_v16 = vsel %vm604_vm4, %v6900_v56, %v2319_v42  ;;  %v7046_v19 = vpop.permute.xlu0 %2316  ;;  %v3411_v56 = vshrl.u32 %v6888_v48, 16  ;;  %v3196_v42 = vunpack.c.l.b16 %v4301_v1  ;;  %v1883_v3 = vsel %vm615_vm5, %v1873_v51, %v6643_v33 }
 0x21d   : > { %v2048_v29 = vadd.f32 %v6805_v50, %v2028_v41  ;;  %3277 = vrot.lane.b32.xlu2 %v3268_v6, %s5317_s23  ;;  %v3137_v6 = vunpack.c.l.b16 %v4299_v63  ;;  %v7073_v58 = vsel %vm258_vm0, %v2458_v59, %v7058_v57  ;;  %v1893_v1 = vsel %vm626_vm6, %v1883_v3, %v6565_v7 }
 0x21e   : > { %v7075_v13 = vpack.c.b16 %v3196_v42, %v3196_v42  ;;  %v3317_v42 = vunpack.c.l.b16 %v4313_v27  ;;  %v3175_v3 = vshrl.u32 %v6935_v22, 16 }
 0x21f   : > { %v2068_v17 = vmax.f32 %v2048_v29, 0.0  ;;  %v7061_v18 = vpop.permute.xlu2 %2410  ;;  %v3138_v51 = vpack.c.b16 %v3137_v6, %v3137_v6 }
 0x221   : > { %v4548_v41 = vpack.c.bf16 %v2068_v17, %v2067_v52  ;;  %3369 = vrot.lane.b32.xlu1 %v7055_v46, %s5319_s25  ;;  %v3413_v52 = vor.u32 %v3411_v56, %v6927_v24  ;;  %v7081_v17 = vrot.slane %v3415_v34, 1  ;;  %v3243_v56 = vshll.u32 %v7075_v13, 16 }
 0x222   : > { %3312 = vrot.lane.b32.xlu0 %v6871_v15, %s5318_s24  ;;  %v1982_v12 = vpop.f32.mrf.mxu1  ;;  %v1903_v15 = vsel %vm637_vm7, %v1893_v1, %v6753_v54  ;;  %v8053_v54 = vrot.slane %v6562_v62, 1  ;;  %v4247_v1 = vld [vmem:[%s5361_s20 + $0x11c] sm:$0x1] }
 0x223   : > { %4973 = vst [vmem:[%s6203_s28 + $0x50] sm:$0xff] %v4548_v41   ;;  %v2325_v33 = vpop.permute.xlu1 %2324  ;;  %v1913_v24 = vsel %vm648_vm9, %v1903_v15, %v6851_v35  ;;  %v2029_v35 = vmul.f32 %v6787_v38, %v1982_v12  ;;  %v7115_v62 = vsel %vm258_vm0, %v3413_v52, %v7081_v17  ;;  %v3179_v41 = vshll.u32 %v3138_v51, 16 }
 0x224   : > { %v7088_v63 = vsel %vm604_vm4, %v6954_v8, %v2325_v33  ;;  %v2323_v29 = vpop.permute.xlu0 %2322  ;;  %v7101_v59 = vsel %vm380_vm1, %v8053_v54, %v2492_v31  ;;  %v8023_v8 = vrot.slane %v7037_v20, 1  ;;  %v5290_v33 = vld [vmem:[%s5361_s20 + $0xb0] sm:$0xff]   ;;  %v8054_v12 = vrot.slane %v6888_v48, 1 }
 0x225   : > { %v2533_v7 = vsel %vm604_vm4, %v6997_v14, %v2323_v29  ;;  %2478 = vrot.lane.b32.xlu2 %v7073_v58, %s5320_s26  ;;  %v3239_v14 = vshrl.u32 %v6918_v30, 16  ;;  %v1855_v15 = vsel %vm582_vm2, %v5290_v33, %v6434_v49  ;;  %v3245_v27 = vrot.slane %v3243_v56, 1 }
 0x226   : > { %4219 = vmatmul.msk.bf16.gmra.mxu1 %vm986_vm8, %v1913_v24  ;;  %v7108_v34 = vsel %vm615_vm5, %v2533_v7, %v2358_v21  ;;  %v1865_v21 = vsel %vm593_vm3, %v1855_v15, %v6495_v60  ;;  %v7131_v52 = vsel %vm380_vm1, %v8054_v12, %v8023_v8  ;;  %v3318_v29 = vpack.c.b16 %v3317_v42, %v3317_v42  ;;  %v4315_v8 = vld [vmem:[%s5361_s20 + $0x17c] sm:$0x1] }
 0x227   : > { %v7111_v6 = vpop.permute.xlu2 %2416  ;;  %v3241_v49 = vor.u32 %v3239_v14, %v6982_v5  ;;  %v2421_v60 = vunpack.c.l.b16 %v4247_v1  ;;  %v2049_v7 = vadd.f32 %v6805_v50, %v2029_v35  ;;  %v3177_v33 = vor.u32 %v3175_v3, %v6991_v28  ;;  %v4370_v3 = vld [vmem:[%s7989_s1 + $0x18] sm:$0xff] }
 0x228   : > { %v3181_v48 = vrot.slane %v3179_v41, 1  ;;  %v1875_v5 = vsel %vm604_vm4, %v1865_v21, %v6447_v45  ;;  %v3269_v56 = vrot.slane %v7075_v13, 1  ;;  %v3355_v42 = vshrl.u32 %v6985_v9, 16  ;;  %v4374_v45 = vld [vmem:[%s7989_s1 + $0x18] sm:$0xff]  ;;  %2927 = vmatpush.bf16.msra.mxu2 %v4370_v3 }
 0x229   : > { %2502 = vrot.lane.b32.xlu1 %v7101_v59, %s5321_s27  ;;  %v3246_v28 = vsel %vm258_vm0, %v3241_v49, %v3245_v27  ;;  %v3359_v35 = vshll.u32 %v3318_v29, 16  ;;  %v2069_v41 = vmax.f32 %v2049_v7, 0.0  ;;  %v1885_v49 = vsel %vm615_vm5, %v1875_v5, %v6637_v11  ;;  %3882 = vmatpush.bf16.msra.mxu3 %v4374_v45 }
 0x22a   : > { %3433 = vrot.lane.b32.xlu0 %v7115_v62, %s5320_s26  ;;  %v1984_v51 = vpop.f32.mrf.mxu1  ;;  %v3182_v13 = vsel %vm258_vm0, %v3177_v33, %v3181_v48  ;;  %v1895_v27 = vsel %vm626_vm6, %v1885_v49, %v6714_v55  ;;  %v2464_v11 = vshrl.u32 %v7011_v53, 16  ;;  %v4369_v55 = vld [vmem:[%s7989_s1 + $0x10] sm:$0xff]  ;;  %v4367_v49 = vld [vmem:[%s7989_s1] sm:$0xff]  ;;  %v8056_v53 = vrot.slane %v7037_v20, 1 }
 0x22b   : > { %v2030_v24 = vmul.f32 %v6787_v38, %v1984_v51  ;;  %v2356_v54 = vpop.permute.xlu1 %2355  ;;  %v3376_v51 = vunpack.c.l.b16 %v4315_v8  ;;  %v3357_v8 = vor.u32 %v3355_v42, %v7024_v61  ;;  %v1905_v61 = vsel %vm637_vm7, %v1895_v27, %v6662_v47  ;;  %v4368_v47 = vld [vmem:[%s7989_s1 + $0x8] sm:$0xff]  ;;  %v4371_v27 = vld [vmem:[%s7989_s1] sm:$0xff] }
 0x22c   : > { %v7141_v15 = vsel %vm615_vm5, %v7014_v25, %v2356_v54  ;;  %v7143_v12 = vpop.permute.xlu0 %2353  ;;  %v7154_v25 = vpack.c.b16 %v2421_v60, %v2421_v60  ;;  %v8055_v60 = vrot.slane %v6918_v30, 1  ;;  %v3361_v54 = vrot.slane %v3359_v35, 1  ;;  %v4373_v30 = vld [vmem:[%s7989_s1 + $0x10] sm:$0xff]  ;;  %2928 = vmatpush.bf16.msra.mxu2 %v4369_v55 }
 0x22d   : > { %v2050_v14 = vadd.f32 %v6805_v50, %v2030_v24  ;;  %3457 = vrot.lane.b32.xlu2 %v7131_v52, %s5321_s27  ;;  %v3382_v5 = vpack.c.b16 %v3376_v51, %v3376_v51  ;;  %3883 = vmatpush.bf16.msra.mxu3 %v4373_v30  ;;  %v2466_v35 = vor.u32 %v2464_v11, %v7058_v57 }
 0x22e   : > { %v3270_v7 = vsel %vm380_vm1, %v8055_v60, %v3269_v56  ;;  %v2468_v33 = vshll.u32 %v7154_v25, 16  ;;  %v7195_v42 = vsel %vm258_vm0, %v3357_v8, %v3361_v54 }
 0x22f   : > { %v2070_v1 = vmax.f32 %v2050_v14, 0.0  ;;  %v7162_v21 = vpop.permute.xlu2 %2476  ;;  %v3423_v57 = vshll.u32 %v3382_v5, 16 }
 0x230   : > { %v2470_v3 = vrot.slane %v2468_v33, 1  ;;  %2929 = vmatpush.bf16.msra.mxu2 %v4368_v47 }
 0x231   : > { %v4553_v29 = vpack.c.bf16 %v2070_v1, %v2069_v41  ;;  %3255 = vrot.lane.b32.xlu1 %v3246_v28, %s5316_s22  ;;  %v1915_v28 = vsel %vm648_vm9, %v1905_v61, %v6846_v26  ;;  %v3419_v1 = vshrl.u32 %v7037_v20, 16 }
 0x232   : > { %3191 = vrot.lane.b32.xlu0 %v3182_v13, %s5315_s21  ;;  %v1987_v24 = vpop.f32.mrf.mxu1  ;;  %v7217_v51 = vsel %vm258_vm0, %v2466_v35, %v2470_v3 }
 0x233   : > { %4974 = vst [vmem:[%s6203_s28 + $0x58] sm:$0xff] %v4553_v29   ;;  %v7184_v48 = vpop.permute.xlu1 %2408  ;;  %v2031_v26 = vmul.f32 %v6787_v38, %v1987_v24  ;;  %v3425_v24 = vrot.slane %v3423_v57, 1  ;;  %v5118_v57 = vld [vmem:[%s5361_s20 + $0x180] sm:$0xff]  }
 0x234   : > { %v2360_v14 = vpop.permute.xlu0 %2359  ;;  %2930 = vmatpush.bf16.msra.mxu2 %v4367_v49 }
 0x235   : > { %v2545_v56 = vsel %vm615_vm5, %v7088_v63, %v2360_v14  ;;  %3279 = vrot.lane.b32.xlu2 %v3270_v7, %s5317_s23  ;;  %v4372_v63 = vld [vmem:[%s7989_s1 + $0x8] sm:$0xff]  ;;  %v2051_v29 = vadd.f32 %v6805_v50, %v2031_v26 }
 0x236   : > { %4220 = vmatmul.msk.bf16.gmra.mxu1 %vm986_vm8, %v1915_v28  ;;  %v7206_v45 = vsel %vm626_vm6, %v2545_v56, %v7111_v6  ;;  %3884 = vmatpush.bf16.msra.mxu3 %v4372_v63  ;;  %v2494_v6 = vrot.slane %v7154_v25, 1 }
 0x237   : > { %v7209_v41 = vpop.permute.xlu2 %3271  ;;  %v2071_v33 = vmax.f32 %v2051_v29, 0.0  ;;  %v7284_v29 = vld [vmem:[%s5361_s20 + $0x188] sm:$0xff]  }
 0x239   : > { %3371 = vrot.lane.b32.xlu1 %v7195_v42, %s5319_s25 }
 0x23a   : > { %3314 = vrot.lane.b32.xlu0 %v6985_v9, %s5318_s24  ;;  %v1989_v13 = vpop.f32.mrf.mxu1  ;;  %v3421_v9 = vor.u32 %v3419_v1, %v7081_v17  ;;  %3885 = vmatpush.bf16.msra.mxu3 %v4371_v27  ;;  %v7243_v17 = vsel %vm380_vm1, %v2492_v31, %v2494_v6  ;;  %v4748_v6 = vunpack.c.h.b16 %v5118_v57 }
 0x23b   : > { %v2032_v60 = vmul.f32 %v6787_v38, %v1989_v13  ;;  %v2415_v7 = vpop.permute.xlu1 %2414  ;;  %v8057_v13 = vld [vmem:[#allocation2_spill] sm:$0xff] }
 0x23c   : > { %v7231_v8 = vsel %vm626_vm6, %v7108_v34, %v2415_v7  ;;  %v2413_v25 = vpop.permute.xlu0 %2412  ;;  %v3449_v34 = vrot.slane %v3382_v5, 1  ;;  %v7248_v14 = vsel %vm258_vm0, %v3421_v9, %v3425_v24  ;;  %v8058_v24 = vld [vmem:[#allocation17_spill] sm:$0xff] }
 0x23d   : > { %v2052_v54 = vadd.f32 %v6805_v50, %v2032_v60  ;;  %v7236_v11 = vsel %vm626_vm6, %v7141_v15, %v2413_v25  ;;  %2480 = vrot.lane.b32.xlu2 %v7217_v51, %s5320_s26  ;;  %v4751_v60 = vunpack.c.l.b16 %v7284_v29  ;;  %v7291_v25 = vld [vmem:[%s5361_s20 + $0x12c] sm:$0xff]  }
 0x23e   : > { %v7257_v31 = vsel %vm380_vm1, %v8056_v53, %v3449_v34  ;;  %v2527_v53 = vsel %vm604_vm4, %v6932_v2, %v7046_v19 }
 0x23f   : > { %v2072_v55 = vmax.f32 %v2052_v54, 0.0  ;;  %v7245_v30 = vpop.permute.xlu2 %3427  ;;  %v8059_v54 = vld [vmem:[#allocation14_spill] sm:$0xff] }
 0x241   : > { %v4558_v61 = vpack.c.bf16 %v2072_v55, %v2071_v33  ;;  %2504 = vrot.lane.b32.xlu1 %v7243_v17, %s5321_s27  ;;  %v3672_v33 = vpack.c.b16 %v4751_v60, %v4748_v6  ;;  %v7296_v55 = vld [vmem:[%s5361_s20 + $0x128] sm:$0xff]  }
 0x242   : > { %3435 = vrot.lane.b32.xlu0 %v7248_v14, %s5320_s26  ;;  %v1992_v15 = vpop.f32.mrf.mxu1 }
 0x243   : > { %4975 = vst [vmem:[%s6203_s28 + $0x60] sm:$0xff] %v4558_v61   ;;  %v7260_v5 = vpop.permute.xlu1 %2474  ;;  %v2033_v28 = vmul.f32 %v6787_v38, %v1992_v15  ;;  %v2667_v61 = vshll.u32 %v7296_v55, 16  ;;  %v3681_v19 = vshll.u32 %v3672_v33, 16 }
 0x244   : > { %v7262_v56 = vpop.permute.xlu0 %2472 }
 0x245   : > { %3459 = vrot.lane.b32.xlu2 %v7257_v31, %s5321_s27  ;;  %v2053_v3 = vadd.f32 %v6805_v50, %v2033_v28  ;;  %v7311_v2 = vrot.slane %v2667_v61, 1 }
 0x247   : > { %v7267_v35 = vpop.permute.xlu2 %3185 }
 0x249   : > { %3546 = vrot.lane.b32.xlu1 %v6687_v32, %s5315_s21 }
 0x24a   : > { %2591 = vrot.lane.b32.xlu0 %v6502_v36, %s5315_s21  ;;  %v1994_v20 = vpop.f32.mrf.mxu1  ;;  %v2073_v36 = vmax.f32 %v2053_v3, 0.0  ;;  %v3615_v3 = vshrl.u32 %v5118_v57, 16 }
 0x24b   : > { %v2034_v47 = vmul.f32 %v6787_v38, %v1994_v20  ;;  %v3248_v63 = vpop.permute.xlu1 %3247 }
 0x24c   : > { %v3184_v26 = vpop.permute.xlu0 %3183 }
 0x24d   : > { %v2054_v1 = vadd.f32 %v6805_v50, %v2034_v47  ;;  %2601 = vrot.lane.b32.xlu2 %v6614_v23, %s5316_s22  ;;  %v3462_v32 = vsel %vm582_vm2, %v8057_v13, %v3184_v26  ;;  %v3617_v23 = vshll.u32 %v5118_v57, 16  ;;  %v2731_v26 = vshll.u32 %v7291_v25, 16  ;;  %v8060_v13 = vld [vmem:[#allocation15_spill] sm:$0xff] }
 0x24e   : > { %v3472_v9 = vsel %vm593_vm3, %v3462_v32, %v3248_v63  ;;  %v4330_v32 = vld [vmem:[%s5361_s20 + $0x184] sm:$0xe] }
 0x24f   : > { %v2074_v49 = vmax.f32 %v2054_v1, 0.0  ;;  %v7281_v27 = vpop.permute.xlu2 %3308  ;;  %v3482_v20 = vsel %vm604_vm4, %v3472_v9, %v7209_v41  ;;  %v3619_v63 = vrot.slane %v3617_v23, 1  ;;  %v3622_v1 = vshll.u32 %v7284_v29, 16  ;;  %v7322_v9 = vld [vmem:[%s5361_s20 + $0x18c] sm:$0xff]  }
 0x250   : > { %v2537_v41 = vsel %vm615_vm5, %v2527_v53, %v6956_v4  ;;  %v7326_v23 = vrot.slane %v2731_v26, 1  ;;  %v3733_v4 = vunpack.c.l.b16 %v4330_v32  ;;  %v5292_v53 = vld [vmem:[%s5361_s20 + $0x120] sm:$0xff]  }
 0x251   : > { %v4563_v7 = vpack.c.bf16 %v2074_v49, %v2073_v36  ;;  %2611 = vrot.lane.b32.xlu1 %v8058_v24, %s5317_s23  ;;  %v2547_v49 = vsel %vm626_vm6, %v2537_v41, %v7184_v48  ;;  %v4262_v24 = vld [vmem:[%s5361_s20 + $0x124] sm:$0xe]  ;;  %v7328_v61 = vrot.slane %v3622_v1, 1 }
 0x252   : > { %3556 = vrot.lane.b32.xlu0 %v8059_v54, %s5316_s22  ;;  %v1997_v34 = vpop.f32.mrf.mxu1  ;;  %v3620_v54 = vor.u32 %v3619_v63, %v3615_v3  ;;  %v2778_v1 = vunpack.c.l.b16 %v4262_v24 }
 0x253   : > { %4976 = vst [vmem:[%s6203_s28 + $0x68] sm:$0xff] %v4563_v7   ;;  %v3364_v15 = vpop.permute.xlu1 %3363  ;;  %v2035_v6 = vmul.f32 %v6787_v38, %v1997_v34 }
 0x254   : > { %v3307_v28 = vpop.permute.xlu0 %3306 }
 0x255   : > { %v3492_v47 = vsel %vm615_vm5, %v3482_v20, %v3307_v28  ;;  %3566 = vrot.lane.b32.xlu2 %v8060_v13, %s5317_s23  ;;  %v8061_v28 = vld [vmem:[#allocation12_spill] sm:$0xff]  ;;  %v3683_v20 = vrot.slane %v3681_v19, 1  ;;  %v2557_v13 = vsel %vm637_vm7, %v2547_v49, %v7262_v56 }
 0x256   : > { %v3502_v7 = vsel %vm626_vm6, %v3492_v47, %v3364_v15  ;;  %v2670_v48 = vsel %vm258_vm0, %v8061_v28, %v7311_v2  ;;  %v3679_v15 = vshrl.u32 %v3672_v33, 16  ;;  %v3686_v47 = vshll.u32 %v7322_v9, 16 }
 0x257   : > { %v7316_v36 = vpop.permute.xlu2 %2498  ;;  %v3512_v63 = vsel %vm637_vm7, %v3502_v7, %v7245_v30  ;;  %v3734_v7 = vpack.c.b16 %v4751_v60, %v3733_v4  ;;  %v3625_v28 = vsel %vm258_vm0, %v3620_v54, %v7328_v61 }
 0x258   : > { %v3684_v56 = vor.u32 %v3683_v20, %v3679_v15  ;;  %v7351_v49 = vrot.slane %v3686_v47, 1  ;;  %v2781_v20 = vrot.slane %v7291_v25, 1 }
 0x259   : > { %3601 = vrot.lane.b32.xlu1 %v5118_v57, %s5318_s24  ;;  %v2055_v57 = vadd.f32 %v6805_v50, %v2035_v6  ;;  %v8062_v6 = vld [vmem:[#allocation10_spill] sm:$0xff] }
 0x25a   : > { %2646 = vrot.lane.b32.xlu0 %v5292_v53, %s5318_s24  ;;  %v1999_v34 = vpop.f32.mrf.mxu1  ;;  %v2734_v30 = vsel %vm258_vm0, %v8062_v6, %v7326_v23  ;;  %v3689_v60 = vsel %vm258_vm0, %v3684_v56, %v7351_v49 }
 0x25b   : > { %v2036_v26 = vmul.f32 %v6787_v38, %v1999_v34  ;;  %v3452_v3 = vpop.permute.xlu1 %3451  ;;  %v2075_v24 = vmax.f32 %v2055_v57, 0.0  ;;  %v3464_v57 = vsel %vm582_vm2, %v7296_v55, %v7267_v35 }
 0x25c   : > { %v2497_v32 = vpop.permute.xlu0 %2496  ;;  %v3522_v41 = vsel %vm648_vm9, %v3512_v63, %v3452_v3  ;;  %v3735_v63 = vrot.slane %v3734_v7, 1 }
 0x25d   : > { %v2056_v33 = vadd.f32 %v6805_v50, %v2036_v26  ;;  %v2567_v19 = vsel %vm648_vm9, %v2557_v13, %v2497_v32  ;;  %4347 = vmatmul.msk.bf16.vlgmr.msra.gmra.mxu3 %vm986_vm8, %v3522_v41  ;;  %2703 = vrot.lane.b32.xlu2 %v2670_v48, %s5319_s25  ;;  %v8063_v26 = vld [vmem:[#allocation4_spill] sm:$0xff]  ;;  %v3736_v13 = vrot.slane %v7322_v9, 1  ;;  %v2539_v41 = vsel %vm615_vm5, %v7044_v16, %v7143_v12  ;;  %v8064_v16 = vld [vmem:[#allocation5_spill] sm:$0xff] }
 0x25e   : > { %4279 = vmatmul.msk.bf16.vlgmr.msra.gmra.mxu2 %vm986_vm8, %v2567_v19  ;;  %v2779_v3 = vpack.c.b16 %v8063_v26, %v2778_v1  ;;  %v2549_v19 = vsel %vm626_vm6, %v2539_v41, %v7061_v18 }
 0x25f   : > { %v2076_v53 = vmax.f32 %v2056_v33, 0.0  ;;  %v3252_v34 = vpop.permute.xlu2 %3251  ;;  %v3737_v54 = vsel %vm380_vm1, %v3735_v63, %v3736_v13  ;;  %v2559_v6 = vsel %vm637_vm7, %v2549_v19, %v7260_v5  ;;  %v8065_v5 = vld [vmem:[#allocation9_spill] sm:$0xff] }
 0x260   : > { %v2780_v15 = vrot.slane %v2779_v3, 1  ;;  %v2569_v56 = vsel %vm648_vm9, %v2559_v6, %v7316_v36  ;;  %v7425_v19 = vld [vmem:[%s5361_s20 + $0x134] sm:$0xff]  }
 0x261   : > { %v4568_v48 = vpack.c.bf16 %v2076_v53, %v2075_v24  ;;  %2767 = vrot.lane.b32.xlu1 %v2734_v30, %s5320_s26  ;;  %v8069_v6 = vld [vmem:[#allocation16_spill] sm:$0xff] }
 0x262   : > { %3658 = vrot.lane.b32.xlu0 %v3625_v28, %s5319_s25  ;;  %v2782_v32 = vsel %vm380_vm1, %v2780_v15, %v2781_v20 }
 0x263   : > { %4977 = vst [vmem:[%s6203_s28 + $0x70] sm:$0xff] %v4568_v48   ;;  %v3274_v4 = vpop.permute.xlu1 %3273  ;;  %v7406_v48 = vld [vmem:[%s5361_s20 + $0x190] sm:$0xff]  }
 0x264   : > { %v3250_v47 = vpop.permute.xlu0 %3249 }
 0x265   : > { %3722 = vrot.lane.b32.xlu2 %v3689_v60, %s5320_s26  ;;  %v3474_v33 = vsel %vm593_vm3, %v3464_v57, %v3250_v47  ;;  %v3630_v57 = vshll.u32 %v7406_v48, 16 }
 0x266   : > { %v3484_v7 = vsel %vm604_vm4, %v3474_v33, %v3274_v4  ;;  %v8067_v4 = vld [vmem:[#allocation3_spill] sm:$0xff] }
 0x267   : > { %v7370_v1 = vpop.permute.xlu2 %3367  ;;  %v3494_v18 = vsel %vm615_vm5, %v3484_v7, %v7281_v27  ;;  %v8068_v15 = vshrl.u32 %v8067_v4, 16  ;;  %v2561_v4 = vsel %vm637_vm7, %v7236_v11, %v7162_v21  ;;  %v2783_v11 = vrot.slane %v7425_v19, 1 }
 0x269   : > { %3746 = vrot.lane.b32.xlu1 %v3737_v54, %s5321_s27  ;;  %v2673_v47 = vor.u32 %v8068_v15, %v7311_v2  ;;  %v7417_v54 = vld [vmem:[%s5361_s20 + $0x194] sm:$0xff]  }
 0x26a   : > { %2791 = vrot.lane.b32.xlu0 %v2782_v32, %s5321_s27  ;;  %v3694_v7 = vshll.u32 %v7417_v54, 16 }
 0x26b   : > { %v3430_v35 = vpop.permute.xlu1 %3429 }
 0x26c   : > { %v3366_v30 = vpop.permute.xlu0 %3365 }
 0x26d   : > { %2593 = vrot.lane.b32.xlu2 %v8064_v16, %s5315_s21  ;;  %v3504_v24 = vsel %vm626_vm6, %v3494_v18, %v3366_v30  ;;  %v2678_v30 = vsel %vm258_vm0, %v2673_v47, %v8069_v6  ;;  %v7438_v18 = vrot.slane %v3630_v57, 1 }
 0x26e   : > { %4280 = vmatmul.msk.bf16.gmra.mxu2 %vm986_vm8, %v2569_v56  ;;  %v3514_v26 = vsel %vm637_vm7, %v3504_v24, %v3430_v35 }
 0x26f   : > { %v3456_v12 = vpop.permute.xlu2 %3455 }
 0x271   : > { %2603 = vrot.lane.b32.xlu1 %v8065_v5, %s5316_s22  ;;  %v2735_v5 = vshrl.u32 %v7291_v25, 16 }
 0x272   : > { %3548 = vrot.lane.b32.xlu0 %v6825_v40, %s5315_s21  ;;  %v8066_v40 = vld [vmem:[#allocation13_spill] sm:$0xff] }
 0x273   : > { %v2002_v36 = vpop.f32.mrf.mxu1  ;;  %v3188_v53 = vpop.permute.xlu1 %3187  ;;  %v2737_v15 = vor.u32 %v2735_v5, %v7326_v23 }
 0x274   : > { %v3454_v28 = vpop.permute.xlu0 %3453  ;;  %v2037_v63 = vmul.f32 %v6787_v38, %v2002_v36  ;;  %v3466_v60 = vsel %vm582_vm2, %v8066_v40, %v3188_v53  ;;  %v2739_v36 = vshll.u32 %v7425_v19, 16 }
 0x275   : > { %v3524_v3 = vsel %vm648_vm9, %v3514_v26, %v3454_v28  ;;  %3558 = vrot.lane.b32.xlu2 %v6816_v44, %s5316_s22  ;;  %v3626_v44 = vshrl.u32 %v7284_v29, 16  ;;  %v3476_v33 = vsel %vm593_vm3, %v3466_v60, %v3252_v34 }
 0x276   : > { %4348 = vmatmul.msk.bf16.gmra.mxu3 %vm986_vm8, %v3524_v3  ;;  %v7449_v3 = vrot.slane %v3694_v7, 1  ;;  %v7457_v47 = vrot.slane %v2739_v36, 1 }
 0x277   : > { %v7403_v27 = vpop.permute.xlu2 %3277  ;;  %v3628_v16 = vor.u32 %v3626_v44, %v7328_v61 }
 0x279   : > { %3568 = vrot.lane.b32.xlu1 %v6868_v10, %s5317_s23  ;;  %v2057_v10 = vadd.f32 %v6805_v50, %v2037_v63  ;;  %v3633_v63 = vsel %vm258_vm0, %v3628_v16, %v7438_v18  ;;  %v8070_v16 = vld [vmem:[#allocation7_spill] sm:$0xff] }
 0x27a   : > { %2613 = vrot.lane.b32.xlu0 %v6834_v43, %s5317_s23  ;;  %v3690_v43 = vshrl.u32 %v7322_v9, 16 }
 0x27b   : > { %v2004_v32 = vpop.f32.mrf.mxu1  ;;  %v3311_v41 = vpop.permute.xlu1 %3310  ;;  %v2077_v53 = vmax.f32 %v2057_v10, 0.0 }
 0x27c   : > { %v2038_v35 = vmul.f32 %v6787_v38, %v2004_v32  ;;  %v3276_v2 = vpop.permute.xlu0 %3275  ;;  %v3692_v61 = vor.u32 %v3690_v43, %v7351_v49 }
 0x27d   : > { %2648 = vrot.lane.b32.xlu2 %v7296_v55, %s5318_s24  ;;  %v3486_v34 = vsel %vm604_vm4, %v3476_v33, %v3276_v2 }
 0x27e   : > { %v2058_v56 = vadd.f32 %v6805_v50, %v2038_v35  ;;  %v3496_v26 = vsel %vm615_vm5, %v3486_v34, %v3311_v41  ;;  %v3697_v21 = vsel %vm258_vm0, %v3692_v61, %v7449_v3  ;;  %v3738_v35 = vrot.slane %v7417_v54, 1 }
 0x27f   : > { %v7440_v24 = vpop.permute.xlu2 %2478 }
 0x280   : > { %v2078_v28 = vmax.f32 %v2058_v56, 0.0  ;;  %v3739_v25 = vsel %vm380_vm1, %v3736_v13, %v3738_v35 }
 0x281   : > { %2705 = vrot.lane.b32.xlu1 %v2678_v30, %s5319_s25 }
 0x282   : > { %v4573_v55 = vpack.c.bf16 %v2078_v28, %v2077_v53  ;;  %3603 = vrot.lane.b32.xlu0 %v7284_v29, %s5318_s24  ;;  %v3506_v29 = vsel %vm626_vm6, %v3496_v26, %v7370_v1  ;;  %v2742_v1 = vsel %vm258_vm0, %v2737_v15, %v7457_v47 }
 0x283   : > { %v2007_v40 = vpop.f32.mrf.mxu1  ;;  %v2501_v60 = vpop.permute.xlu1 %2500 }
 0x284   : > { %4978 = vst [vmem:[%s6203_s28 + $0x78] sm:$0xff] %v4573_v55   ;;  %v3432_v44 = vpop.permute.xlu0 %3431  ;;  %v2571_v49 = vsel %vm648_vm9, %v2561_v4, %v2501_v60  ;;  %v2039_v41 = vmul.f32 %v6787_v38, %v2007_v40  ;;  %v7516_v4 = vld [vmem:[%s5361_s20 + $0x198] sm:$0xff]  }
 0x285   : > { %v3516_v57 = vsel %vm637_vm7, %v3506_v29, %v3432_v44  ;;  %4281 = vmatmul.msk.bf16.gmra.mxu2 %vm986_vm8, %v2571_v49  ;;  %3660 = vrot.lane.b32.xlu2 %v3633_v63, %s5319_s25  ;;  %v8071_v63 = vld [vmem:[#allocation11_spill] sm:$0xff]  ;;  %v3634_v49 = vshrl.u32 %v7406_v48, 16 }
 0x286   : > { %v3526_v32 = vsel %vm648_vm9, %v3516_v57, %v3456_v12  ;;  %v2784_v12 = vsel %vm380_vm1, %v2781_v20, %v2783_v11  ;;  %v2059_v2 = vadd.f32 %v6805_v50, %v2039_v41  ;;  %v8072_v57 = vld [vmem:[#allocation18_spill] sm:$0xff]  ;;  %v5294_v41 = vld [vmem:[%s5361_s20 + $0x130] sm:$0xff]  }
 0x287   : > { %v3458_v23 = vpop.permute.xlu2 %3457  ;;  %4349 = vmatmul.msk.bf16.gmra.mxu3 %vm986_vm8, %v3526_v32 }
 0x288   : > { %v2079_v20 = vmax.f32 %v2059_v2, 0.0 }
 0x289   : > { %3724 = vrot.lane.b32.xlu1 %v3697_v21, %s5320_s26 }
 0x28a   : > { %2769 = vrot.lane.b32.xlu0 %v2742_v1, %s5320_s26  ;;  %v3638_v1 = vshll.u32 %v7516_v4, 16 }
 0x28b   : > { %v2009_v33 = vpop.f32.mrf.mxu1  ;;  %v3254_v10 = vpop.permute.xlu1 %3253 }
 0x28c   : > { %v2040_v30 = vmul.f32 %v6787_v38, %v2009_v33  ;;  %v3190_v43 = vpop.permute.xlu0 %3189 }
 0x28d   : > { %2793 = vrot.lane.b32.xlu2 %v2784_v12, %s5321_s27  ;;  %v3468_v36 = vsel %vm582_vm2, %v6799_v0, %v3190_v43  ;;  %v2679_v12 = vshrl.u32 %v5294_v41, 16  ;;  %v7544_v43 = vld [vmem:[%s5361_s20 + $0x13c] sm:$0xff]  }
 0x28e   : > { %v2060_v7 = vadd.f32 %v6805_v50, %v2040_v30  ;;  %v3478_v9 = vsel %vm593_vm3, %v3468_v36, %v3254_v10 }
 0x28f   : > { %v7486_v56 = vpop.permute.xlu2 %3279  ;;  %v3488_v0 = vsel %vm604_vm4, %v3478_v9, %v7403_v27  ;;  %v7522_v27 = vld [vmem:[%s7990_s2] ss:$0 sm:$0xff]  ;;  %v2681_v36 = vor.u32 %v8069_v6, %v2679_v12  ;;  %v3698_v6 = vshrl.u32 %v7417_v54, 16 }
 0x290   : > { %v2080_v34 = vmax.f32 %v2060_v7, 0.0  ;;  %v8073_v7 = vld [vmem:[#allocation19_spill] sm:$0xff] }
 0x291   : > { %2595 = vrot.lane.b32.xlu1 %v8070_v16, %s5315_s21 }
 0x292   : > { %v4578_v5 = vpack.c.bf16 %v2080_v34, %v2079_v20  ;;  %3748 = vrot.lane.b32.xlu0 %v3739_v25, %s5321_s27  ;;  %v7550_v25 = vrot.slane %v3638_v1, 1  ;;  %v2743_v20 = vshrl.u32 %v7425_v19, 16  ;;  %v2747_v34 = vshll.u32 %v7544_v43, 16 }
 0x293   : > { %v2012_v53 = vpop.f32.mrf.mxu1  ;;  %v3370_v28 = vpop.permute.xlu1 %3369 }
 0x294   : > { %4979 = vst [vmem:[%s6203_s28 + $0x80] sm:$0xff] %v4578_v5   ;;  %v3313_v26 = vpop.permute.xlu0 %3312  ;;  %v2041_v55 = vmul.f32 %v6787_v38, %v2012_v53  ;;  %v2745_v9 = vor.u32 %v2743_v20, %v7457_v47  ;;  %v2785_v47 = vrot.slane %v7544_v43, 1 }
 0x295   : > { %3550 = vrot.lane.b32.xlu2 %v6915_v39, %s5315_s21  ;;  %v3498_v61 = vsel %vm615_vm5, %v3488_v0, %v3313_v26  ;;  %v2563_v39 = vsel %vm637_vm7, %v7231_v8, %v7440_v24  ;;  %v7528_v8 = vld [vmem:[%s5361_s20 + $0x138] sm:$0xff]  }
 0x296   : > { %v2061_v38 = vadd.f32 %v6805_v50, %v2041_v55  ;;  %v3508_v44 = vsel %vm626_vm6, %v3498_v61, %v3370_v28  ;;  %v2683_v33 = vshll.u32 %v7528_v8, 16  ;;  %v7558_v28 = vld [vmem:[%s5361_s20 + $0x19c] sm:$0xff]   ;;  %v7566_v55 = vrot.slane %v2747_v34, 1 }
 0x297   : > { %v7502_v13 = vpop.permute.xlu2 %2480  ;;  %v3702_v61 = vshll.u32 %v7558_v28, 16 }
 0x298   : > { %v2081_v2 = vmax.f32 %v2061_v38, 0.0  ;;  %v7555_v53 = vrot.slane %v2683_v33, 1 }
 0x299   : > { %3560 = vrot.lane.b32.xlu1 %v6960_v37, %s5316_s22 }
 0x29a   : > { %2605 = vrot.lane.b32.xlu0 %v8071_v63, %s5316_s22  ;;  %v2686_v0 = vsel %vm258_vm0, %v2681_v36, %v7555_v53 }
 0x29b   : > { %v2014_v40 = vpop.f32.mrf.mxu1  ;;  %v2503_v60 = vpop.permute.xlu1 %2502 }
 0x29c   : > { %v2042_v37 = vmul.f32 %v7522_v27, %v2014_v40  ;;  %v3434_v15 = vpop.permute.xlu0 %3433  ;;  %v2573_v29 = vsel %vm648_vm9, %v2563_v39, %v2503_v60  ;;  %v2750_v40 = vsel %vm258_vm0, %v2745_v9, %v7566_v55 }
 0x29d   : > { %v3518_v24 = vsel %vm637_vm7, %v3508_v44, %v3434_v15  ;;  %4282 = vmatmul.msk.bf16.gmra.mxu2 %vm986_vm8, %v2573_v29  ;;  %2615 = vrot.lane.b32.xlu2 %v8072_v57, %s5317_s23  ;;  %v7583_v15 = vrot.slane %v3702_v61, 1  ;;  %v7588_v44 = vld [vmem:[%s7991_s3] ss:$0 sm:$0xff] }
 0x29e   : > { %v2062_v32 = vadd.f32 %v6805_v50, %v2042_v37  ;;  %v3528_v21 = vsel %vm648_vm9, %v3518_v24, %v3458_v23  ;;  %v3636_v50 = vor.u32 %v3634_v49, %v7438_v18  ;;  %v3700_v37 = vor.u32 %v3698_v6, %v7449_v3 }
 0x29f   : > { %4350 = vmatmul.msk.bf16.gmra.mxu3 %vm986_vm8, %v3528_v21  ;;  %v7541_v10 = vpop.permute.xlu2 %3459  ;;  %v2786_v3 = vsel %vm380_vm1, %v2783_v11, %v2785_v47 }
 0x2a0   : > { %v2082_v30 = vmax.f32 %v2062_v32, 0.0  ;;  %v3641_v26 = vsel %vm258_vm0, %v3636_v50, %v7550_v25  ;;  %v3740_v32 = vrot.slane %v7558_v28, 1  ;;  %v3705_v21 = vsel %vm258_vm0, %v3700_v37, %v7583_v15 }
 0x2a1   : > { %2650 = vrot.lane.b32.xlu1 %v5294_v41, %s5318_s24  ;;  %v2751_v37 = vshrl.u32 %v7544_v43, 16 }
 0x2a2   : > { %v4583_v23 = vpack.c.bf16 %v2082_v30, %v2081_v2  ;;  %3570 = vrot.lane.b32.xlu0 %v8073_v7, %s5317_s23  ;;  %v3741_v11 = vsel %vm380_vm1, %v3738_v35, %v3740_v32  ;;  %v2565_v30 = vsel %vm637_vm7, %v7206_v45, %v7502_v13  ;;  %v8074_v13 = vld [vmem:[#allocation6_spill] sm:$0xff] }
 0x2a3   : > { %v2017_v16 = vpop.f32.mrf.mxu1  ;;  %v3256_v5 = vpop.permute.xlu1 %3255 }
 0x2a4   : > { %4980 = vst [vmem:[%s6203_s28 + $0x88] sm:$0xff] %v4583_v23   ;;  %v3192_v18 = vpop.permute.xlu0 %3191  ;;  %v2043_v39 = vmul.f32 %v7522_v27, %v2017_v16 }
 0x2a5   : > { %3605 = vrot.lane.b32.xlu2 %v7406_v48, %s5318_s24  ;;  %v3470_v48 = vsel %vm582_vm2, %v6935_v22, %v3192_v18 }
 0x2a6   : > { %v2063_v22 = vadd.f32 %v7588_v44, %v2043_v39  ;;  %v3480_v49 = vsel %vm593_vm3, %v3470_v48, %v3256_v5  ;;  %v7649_v39 = vld [vmem:[%s5361_s20 + $0x144] sm:$0xff] }
 0x2a7   : > { %v7572_v63 = vpop.permute.xlu2 %2601  ;;  %v3490_v33 = vsel %vm604_vm4, %v3480_v49, %v7486_v56 }
 0x2a8   : > { %v2083_v41 = vmax.f32 %v2063_v22, 0.0 }
 0x2a9   : > { %3662 = vrot.lane.b32.xlu1 %v3641_v26, %s5319_s25 }
 0x2aa   : > { %2707 = vrot.lane.b32.xlu0 %v2686_v0, %s5319_s25 }
 0x2ab   : > { %v2019_v60 = vpop.f32.mrf.mxu1  ;;  %v3372_v38 = vpop.permute.xlu1 %3371 }
 0x2ac   : > { %v2044_v29 = vmul.f32 %v7522_v27, %v2019_v60  ;;  %v3315_v24 = vpop.permute.xlu0 %3314 }
 0x2ad   : > { %2771 = vrot.lane.b32.xlu2 %v2750_v40, %s5320_s26  ;;  %v3500_v2 = vsel %vm615_vm5, %v3490_v33, %v3315_v24 }
 0x2ae   : > { %v2064_v57 = vadd.f32 %v7588_v44, %v2044_v29  ;;  %v3510_v7 = vsel %vm626_vm6, %v3500_v2, %v3372_v38  ;;  %v7655_v38 = vld [vmem:[%s5361_s20 + $0x1a0] sm:$0xff]   ;;  %v3642_v29 = vshrl.u32 %v7516_v4, 16 }
 0x2af   : > { %v7603_v1 = vpop.permute.xlu2 %3566  ;;  %v3646_v24 = vshll.u32 %v7655_v38, 16 }
 0x2b0   : > { %v2084_v12 = vmax.f32 %v2064_v57, 0.0  ;;  %v7669_v57 = vld [vmem:[%s5361_s20 + $0x1a4] sm:$0xff]  ;;  %v3644_v33 = vor.u32 %v3642_v29, %v7550_v25 }
 0x2b1   : > { %2795 = vrot.lane.b32.xlu1 %v2786_v3, %s5321_s27  ;;  %v2753_v3 = vor.u32 %v2751_v37, %v7566_v55 }
 0x2b2   : > { %v4588_v19 = vpack.c.bf16 %v2084_v12, %v2083_v41  ;;  %3726 = vrot.lane.b32.xlu0 %v3705_v21, %s5320_s26  ;;  %v3706_v21 = vshrl.u32 %v7558_v28, 16  ;;  %v3710_v41 = vshll.u32 %v7669_v57, 16  ;;  %v4259_v28 = vld [vmem:[%s5361_s20 + $0x148] sm:$0x1] }
 0x2b3   : > { %v2022_v50 = vpop.f32.mrf.mxu1  ;;  %v2505_v23 = vpop.permute.xlu1 %2504 }
 0x2b4   : > { %4981 = vst [vmem:[%s6203_s28 + $0x90] sm:$0xff] %v4588_v19   ;;  %v3436_v56 = vpop.permute.xlu0 %3435  ;;  %v2575_v20 = vsel %vm648_vm9, %v2565_v30, %v2505_v23  ;;  %v2045_v35 = vmul.f32 %v7522_v27, %v2022_v50  ;;  %v3708_v2 = vor.u32 %v3706_v21, %v7583_v15  ;;  %v7689_v19 = vrot.slane %v3710_v41, 1  ;;  %v5296_v50 = vld [vmem:[%s5361_s20 + $0x150] sm:$0xff]   ;;  %v4261_v41 = vld [vmem:[%s5361_s20 + $0x14c] sm:$0x1] }
 0x2b5   : > { %v3520_v34 = vsel %vm637_vm7, %v3510_v7, %v3436_v56  ;;  %4283 = vmatmul.msk.bf16.gmra.mxu2 %vm986_vm8, %v2575_v20  ;;  %3750 = vrot.lane.b32.xlu2 %v3741_v11, %s5321_s27  ;;  %v3742_v23 = vrot.slane %v7669_v57, 1  ;;  %v5297_v15 = vld [vmem:[%s5361_s20 + $0xf0] sm:$0xff]  }
 0x2b6   : > { %v3530_v54 = vsel %vm648_vm9, %v3520_v34, %v7541_v10  ;;  %v2065_v36 = vadd.f32 %v7588_v44, %v2045_v35  ;;  %v3713_v56 = vsel %vm258_vm0, %v3708_v2, %v7689_v19 }
 0x2b7   : > { %4351 = vmatmul.msk.bf16.gmra.mxu3 %vm986_vm8, %v3530_v54  ;;  %v7627_v45 = vpop.permute.xlu2 %2703  ;;  %v2787_v54 = vrot.slane %v7649_v39, 1 }
 0x2b8   : > { %v2085_v0 = vmax.f32 %v2065_v36, 0.0 }
 0x2b9   : > { %3552 = vrot.lane.b32.xlu1 %v7055_v46, %s5315_s21  ;;  %v7642_v46 = vld [vmem:[%s5361_s20 + $0x140] sm:$0xff]  }
 0x2ba   : > { %2597 = vrot.lane.b32.xlu0 %v8074_v13, %s5315_s21  ;;  %v2691_v48 = vshll.u32 %v7642_v46, 16 }
 0x2bb   : > { %v2024_v16 = vpop.f32.mrf.mxu1  ;;  %v3547_v5 = vpop.permute.xlu1 %3546 }
 0x2bc   : > { %v2046_v10 = vmul.f32 %v7522_v27, %v2024_v16  ;;  %v2592_v18 = vpop.permute.xlu0 %2591  ;;  %v7662_v22 = vrot.slane %v2691_v48, 1  ;;  %v3757_v25 = vsel %vm582_vm2, %v5296_v50, %v3547_v5  ;;  %v3743_v5 = vsel %vm380_vm1, %v3740_v32, %v3742_v23 }
 0x2bd   : > { %2607 = vrot.lane.b32.xlu2 %v7073_v58, %s5316_s22  ;;  %v2687_v58 = vshrl.u32 %v7528_v8, 16  ;;  %v2802_v7 = vsel %vm582_vm2, %v5297_v15, %v2592_v18  ;;  %v2788_v18 = vsel %vm380_vm1, %v2785_v47, %v2787_v54 }
 0x2be   : > { %v2066_v26 = vadd.f32 %v7588_v44, %v2046_v10  ;;  %v2812_v13 = vsel %vm593_vm3, %v2802_v7, %v7572_v63 }
 0x2bf   : > { %v7639_v9 = vpop.permute.xlu2 %3722 }
 0x2c0   : > { %v2086_v6 = vmax.f32 %v2066_v26, 0.0 }
 0x2c1   : > { %2617 = vrot.lane.b32.xlu1 %v7101_v59, %s5317_s23  ;;  %v2755_v59 = vshll.u32 %v7649_v39, 16 }
 0x2c2   : > { %v4593_v61 = vpack.c.bf16 %v2086_v6, %v2085_v0  ;;  %3562 = vrot.lane.b32.xlu0 %v7115_v62, %s5316_s22  ;;  %v2689_v62 = vor.u32 %v2687_v58, %v7555_v53  ;;  %v2657_v58 = vunpack.c.l.b16 %v4259_v28 }
 0x2c3   : > { %v2612_v40 = vpop.permute.xlu1 %2611 }
 0x2c4   : > { %4982 = vst [vmem:[%s6203_s28 + $0x98] sm:$0xff] %v4593_v61   ;;  %v3557_v60 = vpop.permute.xlu0 %3556  ;;  %v2694_v53 = vsel %vm258_vm0, %v2689_v62, %v7662_v22  ;;  %v2822_v36 = vsel %vm604_vm4, %v2812_v13, %v2612_v40  ;;  %v8075_v40 = vld [vmem:[#allocation8_spill] sm:$0xff]  ;;  %v4327_v62 = vld [vmem:[%s5361_s20 + $0x1a8] sm:$0x1] }
 0x2c5   : > { %3572 = vrot.lane.b32.xlu2 %v7131_v52, %s5317_s23  ;;  %v7676_v52 = vrot.slane %v2755_v59, 1  ;;  %v3767_v20 = vsel %vm593_vm3, %v3757_v25, %v3557_v60  ;;  %v2658_v60 = vpack.c.b16 %v2657_v58, %v2657_v58  ;;  %v4329_v59 = vld [vmem:[%s5361_s20 + $0x1ac] sm:$0x1] }
 0x2c6   : > { %v3777_v16 = vsel %vm604_vm4, %v3767_v20, %v7603_v1 }
 0x2c7   : > { %v7666_v49 = vpop.permute.xlu2 %2593  ;;  %v2699_v21 = vshll.u32 %v2658_v60, 16 }
 0x2c9   : > { %3607 = vrot.lane.b32.xlu1 %v7516_v4, %s5318_s24  ;;  %v7683_v4 = vrot.slane %v3646_v24, 1  ;;  %v3612_v24 = vunpack.c.l.b16 %v4327_v62  ;;  %v2701_v50 = vrot.slane %v2699_v21, 1 }
 0x2ca   : > { %2652 = vrot.lane.b32.xlu0 %v7528_v8, %s5318_s24  ;;  %v2758_v8 = vsel %vm258_vm0, %v2753_v3, %v7676_v52 }
 0x2cb   : > { %v3602_v12 = vpop.permute.xlu1 %3601  ;;  %v3649_v11 = vsel %vm258_vm0, %v3644_v33, %v7683_v4  ;;  %v3671_v33 = vunpack.c.l.b16 %v4329_v59  ;;  %v5298_v59 = vld [vmem:[%s5361_s20 + $0xf8] sm:$0xff]  }
 0x2cc   : > { %v2647_v55 = vpop.permute.xlu0 %2646  ;;  %v3787_v10 = vsel %vm615_vm5, %v3777_v16, %v3602_v12  ;;  %v2804_v62 = vsel %vm582_vm2, %v5298_v59, %v7666_v49  ;;  %v5299_v49 = vld [vmem:[%s5361_s20 + $0x158] sm:$0xff]  }
 0x2cd   : > { %2709 = vrot.lane.b32.xlu2 %v2694_v53, %s5319_s25  ;;  %v2832_v1 = vsel %vm615_vm5, %v2822_v36, %v2647_v55  ;;  %v2695_v53 = vshrl.u32 %v7642_v46, 16  ;;  %v2716_v55 = vunpack.c.l.b16 %v4261_v41  ;;  %v7766_v7 = vpack.c.b16 %v3671_v33, %v3671_v33 }
 0x2ce   : > { %v2842_v32 = vsel %vm626_vm6, %v2832_v1, %v7627_v45  ;;  %v3714_v1 = vshrl.u32 %v7669_v57, 16 }
 0x2cf   : > { %v7693_v30 = vpop.permute.xlu2 %3558  ;;  %v2722_v16 = vpack.c.b16 %v2716_v55, %v2716_v55 }
 0x2d1   : > { %2773 = vrot.lane.b32.xlu1 %v2758_v8, %s5320_s26 }
 0x2d2   : > { %3664 = vrot.lane.b32.xlu0 %v3649_v11, %s5319_s25  ;;  %v2697_v11 = vor.u32 %v2695_v53, %v7662_v22  ;;  %v3650_v22 = vshrl.u32 %v7655_v38, 16 }
 0x2d3   : > { %v2768_v34 = vpop.permute.xlu1 %2767 }
 0x2d4   : > { %v3659_v35 = vpop.permute.xlu0 %3658  ;;  %v2852_v47 = vsel %vm637_vm7, %v2842_v32, %v2768_v34  ;;  %v2702_v36 = vsel %vm258_vm0, %v2697_v11, %v2701_v50  ;;  %v3652_v32 = vor.u32 %v3650_v22, %v7683_v4 }
 0x2d5   : > { %3728 = vrot.lane.b32.xlu2 %v3713_v56, %s5320_s26  ;;  %v3797_v26 = vsel %vm626_vm6, %v3787_v10, %v3659_v35 }
 0x2d6   : > { %v3807_v0 = vsel %vm637_vm7, %v3797_v26, %v7639_v9 }
 0x2d7   : > { %v7723_v63 = vpop.permute.xlu2 %2648 }
 0x2d9   : > { %3752 = vrot.lane.b32.xlu1 %v3743_v5, %s5321_s27 }
 0x2da   : > { %2797 = vrot.lane.b32.xlu0 %v2788_v18, %s5321_s27 }
 0x2db   : > { %v3747_v43 = vpop.permute.xlu1 %3746 }
 0x2dc   : > { %v2792_v6 = vpop.permute.xlu0 %2791  ;;  %v3817_v61 = vsel %vm648_vm9, %v3807_v0, %v3747_v43 }
 0x2dd   : > { %v2862_v48 = vsel %vm648_vm9, %v2852_v47, %v2792_v6  ;;  %4352 = vmatmul.msk.bf16.gmra.mxu3 %vm986_vm8, %v3817_v61  ;;  %2599 = vrot.lane.b32.xlu2 %v8075_v40, %s5315_s21  ;;  %v2759_v47 = vshrl.u32 %v7649_v39, 16  ;;  %v2763_v6 = vshll.u32 %v2722_v16, 16 }
 0x2de   : > { %4284 = vmatmul.msk.bf16.gmra.mxu2 %vm986_vm8, %v2862_v48 }
 0x2df   : > { %v7741_v45 = vpop.permute.xlu2 %3660  ;;  %v2761_v60 = vor.u32 %v2759_v47, %v7676_v52 }
 0x2e0   : > { %v3887_v9 = vpop.f32.mrf.mxu3 }
 0x2e1   : > { %v2932_v37 = vpop.f32.mrf.mxu2  ;;  %2609 = vrot.lane.b32.xlu1 %v7217_v51, %s5316_s22  ;;  %v3937_v12 = vmul.f32 %v7522_v27, %v3887_v9 }
 0x2e2   : > { %3554 = vrot.lane.b32.xlu0 %v7195_v42, %s5315_s21  ;;  %v2982_v51 = vmul.f32 %v7522_v27, %v2932_v37  ;;  %v3613_v42 = vpack.c.b16 %v3612_v24, %v3612_v24  ;;  %v2765_v37 = vrot.slane %v2763_v6, 1 }
 0x2e3   : > { %v7749_v29 = vpop.permute.xlu1 %2603  ;;  %v3957_v25 = vadd.f32 %v7588_v44, %v3937_v12 }
 0x2e4   : > { %v7751_v3 = vpop.permute.xlu0 %3548  ;;  %v3654_v34 = vshll.u32 %v3613_v42, 16  ;;  %v2814_v21 = vsel %vm593_vm3, %v2804_v62, %v7749_v29  ;;  %v2766_v41 = vsel %vm258_vm0, %v2761_v60, %v2765_v37 }
 0x2e5   : > { %3564 = vrot.lane.b32.xlu2 %v7248_v14, %s5316_s22  ;;  %v3002_v14 = vadd.f32 %v7588_v44, %v2982_v51  ;;  %v3977_v10 = vmax.f32 %v3957_v25, 0.0  ;;  %v3759_v42 = vsel %vm582_vm2, %v5299_v49, %v7751_v3  ;;  %v3744_v25 = vrot.slane %v7766_v7, 1 }
 0x2e6   : > { %v3656_v0 = vrot.slane %v3654_v34, 1 }
 0x2e7   : > { %v7759_v8 = vpop.permute.xlu2 %2793  ;;  %v3022_v26 = vmax.f32 %v3002_v14, 0.0  ;;  %v3769_v14 = vsel %vm593_vm3, %v3759_v42, %v7693_v30  ;;  %v3745_v30 = vsel %vm380_vm1, %v3742_v23, %v3744_v25 }
 0x2e8   : > { %v3889_v2 = vpop.f32.mrf.mxu3  ;;  %v3657_v40 = vsel %vm258_vm0, %v3652_v32, %v3656_v0 }
 0x2e9   : > { %v2934_v56 = vpop.f32.mrf.mxu2  ;;  %v3938_v15 = vmul.f32 %v7522_v27, %v3889_v2  ;;  %3574 = vrot.lane.b32.xlu1 %v7257_v31, %s5317_s23 }
 0x2ea   : > { %v2983_v20 = vmul.f32 %v7522_v27, %v2934_v56  ;;  %2619 = vrot.lane.b32.xlu0 %v7243_v17, %s5317_s23  ;;  %v3718_v17 = vshll.u32 %v7766_v7, 16 }
 0x2eb   : > { %v3958_v35 = vadd.f32 %v7588_v44, %v3938_v15  ;;  %v7774_v13 = vpop.permute.xlu1 %3568 }
 0x2ec   : > { %v3003_v5 = vadd.f32 %v7588_v44, %v2983_v20  ;;  %v2614_v31 = vpop.permute.xlu0 %2613  ;;  %v3720_v4 = vrot.slane %v3718_v17, 1  ;;  %v3779_v22 = vsel %vm604_vm4, %v3769_v14, %v7774_v13 }
 0x2ed   : > { %v3978_v18 = vmax.f32 %v3958_v35, 0.0  ;;  %2654 = vrot.lane.b32.xlu2 %v7642_v46, %s5318_s24  ;;  %v3716_v46 = vor.u32 %v3714_v1, %v7689_v19  ;;  %v2789_v19 = vrot.slane %v2722_v16, 1  ;;  %v2824_v12 = vsel %vm604_vm4, %v2814_v21, %v2614_v31 }
 0x2ee   : > { %v3023_v28 = vmax.f32 %v3003_v5, 0.0  ;;  %v2834_v11 = vsel %vm615_vm5, %v2824_v12, %v7723_v63  ;;  %v5300_v12 = vld [vmem:[%s5361_s20 + $0x100] sm:$0xff]  }
 0x2ef   : > { %v4768_v43 = vpack.c.bf16 %v3978_v18, %v3977_v10  ;;  %v7784_v61 = vpop.permute.xlu2 %3550  ;;  %v2790_v29 = vsel %vm380_vm1, %v2787_v54, %v2789_v19 }
 0x2f0   : > { %v4658_v58 = vpack.c.bf16 %v3023_v28, %v3022_v26 }
 0x2f1   : > { %5143 = vst [vmem:[%s6203_s28 + $0xf0] sm:$0xff] %v4768_v43   ;;  %v2937_v48 = vpop.f32.mrf.mxu2  ;;  %2711 = vrot.lane.b32.xlu1 %v2702_v36, %s5319_s25 }
 0x2f2   : > { %5058 = vst [vmem:[%s6203_s28 + $0xa0] sm:$0xff] %v4658_v58   ;;  %3609 = vrot.lane.b32.xlu0 %v7655_v38, %s5318_s24  ;;  %v2984_v53 = vmul.f32 %v7522_v27, %v2937_v48  ;;  %v3721_v38 = vsel %vm258_vm0, %v3716_v46, %v3720_v4 }
 0x2f3   : > { %v2706_v9 = vpop.permute.xlu1 %2705 }
 0x2f4   : > { %v3604_v24 = vpop.permute.xlu0 %3603  ;;  %v3004_v55 = vadd.f32 %v7588_v44, %v2984_v53  ;;  %v2844_v56 = vsel %vm626_vm6, %v2834_v11, %v2706_v9 }
 0x2f5   : > { %3666 = vrot.lane.b32.xlu2 %v3657_v40, %s5319_s25  ;;  %v3789_v35 = vsel %vm615_vm5, %v3779_v22, %v3604_v24 }
 0x2f6   : > { %v3024_v39 = vmax.f32 %v3004_v55, 0.0  ;;  %v3799_v13 = vsel %vm626_vm6, %v3789_v35, %v7741_v45 }
 0x2f7   : > { %v7803_v52 = vpop.permute.xlu2 %2615 }
 0x2f9   : > { %v2939_v33 = vpop.f32.mrf.mxu2  ;;  %v3892_v51 = vpop.f32.mrf.mxu3  ;;  %3730 = vrot.lane.b32.xlu1 %v3721_v38, %s5320_s26 }
 0x2fa   : > { %v2985_v2 = vmul.f32 %v7522_v27, %v2939_v33  ;;  %2775 = vrot.lane.b32.xlu0 %v2766_v41, %s5320_s26  ;;  %v3939_v63 = vmul.f32 %v7522_v27, %v3892_v51 }
 0x2fb   : > { %v3725_v50 = vpop.permute.xlu1 %3724 }
 0x2fc   : > { %v3005_v3 = vadd.f32 %v7588_v44, %v2985_v2  ;;  %v2770_v15 = vpop.permute.xlu0 %2769  ;;  %v3959_v31 = vadd.f32 %v7588_v44, %v3939_v63  ;;  %v3809_v57 = vsel %vm637_vm7, %v3799_v13, %v3725_v50  ;;  %v5301_v2 = vld [vmem:[%s5361_s20 + $0x160] sm:$0xff]  }
 0x2fd   : > { %v2854_v20 = vsel %vm637_vm7, %v2844_v56, %v2770_v15  ;;  %2799 = vrot.lane.b32.xlu2 %v2790_v29, %s5321_s27  ;;  %v3761_v29 = vsel %vm582_vm2, %v5301_v2, %v7784_v61 }
 0x2fe   : > { %v3025_v54 = vmax.f32 %v3005_v3, 0.0  ;;  %v2864_v7 = vsel %vm648_vm9, %v2854_v20, %v7759_v8  ;;  %v3979_v1 = vmax.f32 %v3959_v31, 0.0 }
 0x2ff   : > { %4285 = vmatmul.msk.bf16.gmra.mxu2 %vm986_vm8, %v2864_v7  ;;  %v3606_v34 = vpop.permute.xlu2 %3605 }
 0x300   : > { %v4663_v16 = vpack.c.bf16 %v3025_v54, %v3024_v39 }
 0x301   : > { %v3894_v5 = vpop.f32.mrf.mxu3 }
 0x302   : > { %5059 = vst [vmem:[%s6203_s28 + $0xa8] sm:$0xff] %v4663_v16   ;;  %v3940_v8 = vmul.f32 %v7522_v27, %v3894_v5  ;;  %3754 = vrot.lane.b32.xlu0 %v3745_v30, %s5321_s27 }
 0x303   : > { %v2596_v36 = vpop.permute.xlu1 %2595 }
 0x304   : > { %v3960_v23 = vadd.f32 %v7588_v44, %v3940_v8  ;;  %v3749_v10 = vpop.permute.xlu0 %3748  ;;  %v2806_v33 = vsel %vm582_vm2, %v5300_v12, %v2596_v36 }
 0x305   : > { %v3819_v18 = vsel %vm648_vm9, %v3809_v57, %v3749_v10 }
 0x306   : > { %v3980_v17 = vmax.f32 %v3960_v23, 0.0  ;;  %4353 = vmatmul.msk.bf16.gmra.mxu3 %vm986_vm8, %v3819_v18 }
 0x307   : > { %v2772_v26 = vpop.permute.xlu2 %2771 }
 0x308   : > { %v4773_v28 = vpack.c.bf16 %v3980_v17, %v3979_v1  ;;  %v2942_v32 = vpop.f32.mrf.mxu2 }
 0x309   : > { %v2986_v45 = vmul.f32 %v7522_v27, %v2942_v32 }
 0x30a   : > { %5144 = vst [vmem:[%s6203_s28 + $0xf8] sm:$0xff] %v4773_v28   ;;  %v3897_v0 = vpop.f32.mrf.mxu3 }
 0x30b   : > { %v3561_v43 = vpop.permute.xlu1 %3560  ;;  %v3941_v6 = vmul.f32 %v7522_v27, %v3897_v0  ;;  %v3006_v48 = vadd.f32 %v7588_v44, %v2986_v45 }
 0x30c   : > { %v2606_v47 = vpop.permute.xlu0 %2605  ;;  %v3771_v25 = vsel %vm593_vm3, %v3761_v29, %v3561_v43 }
 0x30d   : > { %v3961_v9 = vadd.f32 %v7588_v44, %v3941_v6  ;;  %v3026_v24 = vmax.f32 %v3006_v48, 0.0  ;;  %v2816_v49 = vsel %vm593_vm3, %v2806_v33, %v2606_v47 }
 0x30e   : > { %v2826_v50 = vsel %vm604_vm4, %v2816_v49, %v7803_v52 }
 0x30f   : > { %v3751_v4 = vpop.permute.xlu2 %3750  ;;  %v3981_v19 = vmax.f32 %v3961_v9, 0.0 }
 0x310   : > { %v2944_v58 = vpop.f32.mrf.mxu2 }
 0x311   : > { %v2987_v46 = vmul.f32 %v7522_v27, %v2944_v58 }
 0x312   : > { %v3899_v40 = vpop.f32.mrf.mxu3 }
 0x313   : > { %v3007_v60 = vadd.f32 %v7588_v44, %v2987_v46  ;;  %v3942_v37 = vmul.f32 %v7522_v27, %v3899_v40  ;;  %v2651_v59 = vpop.permute.xlu1 %2650 }
 0x314   : > { %v3571_v62 = vpop.permute.xlu0 %3570  ;;  %v2836_v56 = vsel %vm615_vm5, %v2826_v50, %v2651_v59 }
 0x315   : > { %v3027_v53 = vmax.f32 %v3007_v60, 0.0  ;;  %v3962_v38 = vadd.f32 %v7588_v44, %v3942_v37  ;;  %v3781_v3 = vsel %vm604_vm4, %v3771_v25, %v3571_v62  ;;  %v5302_v37 = vld [vmem:[%s5361_s20 + $0x168] sm:$0xff]  }
 0x316   : > { %v3791_v39 = vsel %vm615_vm5, %v3781_v3, %v3606_v34 }
 0x317   : > { %v4668_v21 = vpack.c.bf16 %v3027_v53, %v3026_v24  ;;  %v3982_v41 = vmax.f32 %v3962_v38, 0.0  ;;  %v7859_v55 = vpop.permute.xlu2 %2607  ;;  %v5303_v38 = vld [vmem:[%s5361_s20 + $0x108] sm:$0xff]  }
 0x319   : > { %5060 = vst [vmem:[%s6203_s28 + $0xb0] sm:$0xff] %v4668_v21   ;;  %v4778_v51 = vpack.c.bf16 %v3982_v41, %v3981_v19 }
 0x31b   : > { %5145 = vst [vmem:[%s6203_s28 + $0x100] sm:$0xff] %v4778_v51   ;;  %v3663_v42 = vpop.permute.xlu1 %3662 }
 0x31c   : > { %v2708_v11 = vpop.permute.xlu0 %2707  ;;  %v3801_v61 = vsel %vm626_vm6, %v3791_v39, %v3663_v42 }
 0x31d   : > { %v2846_v15 = vsel %vm626_vm6, %v2836_v56, %v2708_v11 }
 0x31e   : > { %v2856_v54 = vsel %vm637_vm7, %v2846_v15, %v2772_v26 }
 0x31f   : > { %v3573_v35 = vpop.permute.xlu2 %3572 }
 0x320   : > { %v2947_v14 = vpop.f32.mrf.mxu2 }
 0x321   : > { %v2988_v22 = vmul.f32 %v7522_v27, %v2947_v14 }
 0x322   : > { %v3902_v20 = vpop.f32.mrf.mxu3 }
 0x323   : > { %v2796_v63 = vpop.permute.xlu1 %2795  ;;  %v3943_v5 = vmul.f32 %v7522_v27, %v3902_v20  ;;  %v3008_v31 = vadd.f32 %v7588_v44, %v2988_v22 }
 0x324   : > { %v3727_v7 = vpop.permute.xlu0 %3726  ;;  %v2866_v52 = vsel %vm648_vm9, %v2856_v54, %v2796_v63 }
 0x325   : > { %v3811_v30 = vsel %vm637_vm7, %v3801_v61, %v3727_v7  ;;  %4286 = vmatmul.msk.bf16.gmra.mxu2 %vm986_vm8, %v2866_v52  ;;  %v3963_v36 = vadd.f32 %v7588_v44, %v3943_v5  ;;  %v3028_v1 = vmax.f32 %v3008_v31, 0.0 }
 0x326   : > { %v3821_v16 = vsel %vm648_vm9, %v3811_v30, %v3751_v4 }
 0x327   : > { %4354 = vmatmul.msk.bf16.gmra.mxu3 %vm986_vm8, %v3821_v16  ;;  %v3983_v28 = vmax.f32 %v3963_v36, 0.0  ;;  %v2710_v43 = vpop.permute.xlu2 %2709 }
 0x328   : > { %v2949_v34 = vpop.f32.mrf.mxu2 }
 0x329   : > { %v2989_v8 = vmul.f32 %v7522_v27, %v2949_v34 }
 0x32a   : > { %v3904_v13 = vpop.f32.mrf.mxu3 }
 0x32b   : > { %v3009_v57 = vadd.f32 %v7588_v44, %v2989_v8  ;;  %v3944_v23 = vmul.f32 %v7522_v27, %v3904_v13  ;;  %v3553_v10 = vpop.permute.xlu1 %3552 }
 0x32c   : > { %v2598_v18 = vpop.permute.xlu0 %2597  ;;  %v3763_v59 = vsel %vm582_vm2, %v5302_v37, %v3553_v10 }
 0x32d   : > { %v3029_v17 = vmax.f32 %v3009_v57, 0.0  ;;  %v3964_v26 = vadd.f32 %v7588_v44, %v3944_v23  ;;  %v2808_v19 = vsel %vm582_vm2, %v5303_v38, %v2598_v18  ;;  %v5304_v18 = vld [vmem:[%s5361_s20 + $0x110] sm:$0xff]  }
 0x32e   : > { %v2818_v29 = vsel %vm593_vm3, %v2808_v19, %v7859_v55 }
 0x32f   : > { %v4673_v32 = vpack.c.bf16 %v3029_v17, %v3028_v1  ;;  %v3984_v0 = vmax.f32 %v3964_v26, 0.0  ;;  %v3729_v48 = vpop.permute.xlu2 %3728 }
 0x331   : > { %5061 = vst [vmem:[%s6203_s28 + $0xb8] sm:$0xff] %v4673_v32   ;;  %v4783_v47 = vpack.c.bf16 %v3984_v0, %v3983_v28 }
 0x333   : > { %5146 = vst [vmem:[%s6203_s28 + $0x108] sm:$0xff] %v4783_v47   ;;  %v2618_v45 = vpop.permute.xlu1 %2617 }
 0x334   : > { %v3563_v6 = vpop.permute.xlu0 %3562  ;;  %v2828_v56 = vsel %vm604_vm4, %v2818_v29, %v2618_v45 }
 0x335   : > { %v3773_v41 = vsel %vm593_vm3, %v3763_v59, %v3563_v6 }
 0x336   : > { %v3783_v3 = vsel %vm604_vm4, %v3773_v41, %v3573_v35 }
 0x337   : > { %v2600_v42 = vpop.permute.xlu2 %2599 }
 0x338   : > { %v2952_v58 = vpop.f32.mrf.mxu2  ;;  %v2810_v1 = vsel %vm582_vm2, %v5304_v18, %v2600_v42 }
 0x339   : > { %v2990_v9 = vmul.f32 %v7522_v27, %v2952_v58 }
 0x33a   : > { %v3907_v46 = vpop.f32.mrf.mxu3 }
 0x33b   : > { %v3608_v4 = vpop.permute.xlu1 %3607  ;;  %v3945_v60 = vmul.f32 %v7522_v27, %v3907_v46  ;;  %v3010_v24 = vadd.f32 %v7588_v44, %v2990_v9 }
 0x33c   : > { %v2653_v40 = vpop.permute.xlu0 %2652  ;;  %v3793_v14 = vsel %vm615_vm5, %v3783_v3, %v3608_v4  ;;  %v5305_v4 = vld [vmem:[%s5361_s20 + $0x170] sm:$0xff]  }
 0x33d   : > { %v3965_v12 = vadd.f32 %v7588_v44, %v3945_v60  ;;  %v3030_v11 = vmax.f32 %v3010_v24, 0.0  ;;  %v2838_v54 = vsel %vm615_vm5, %v2828_v56, %v2653_v40 }
 0x33e   : > { %v2848_v55 = vsel %vm626_vm6, %v2838_v54, %v2710_v43 }
 0x33f   : > { %v3985_v15 = vmax.f32 %v3965_v12, 0.0  ;;  %v3565_v5 = vpop.permute.xlu2 %3564 }
 0x340   : > { %v2954_v62 = vpop.f32.mrf.mxu2 }
 0x341   : > { %v2991_v53 = vmul.f32 %v7522_v27, %v2954_v62 }
 0x342   : > { %v3909_v21 = vpop.f32.mrf.mxu3 }
 0x343   : > { %v3011_v33 = vadd.f32 %v7588_v44, %v2991_v53  ;;  %v3946_v51 = vmul.f32 %v7522_v27, %v3909_v21  ;;  %v2774_v49 = vpop.permute.xlu1 %2773 }
 0x344   : > { %v3665_v2 = vpop.permute.xlu0 %3664  ;;  %v2858_v22 = vsel %vm637_vm7, %v2848_v55, %v2774_v49 }
 0x345   : > { %v3031_v50 = vmax.f32 %v3011_v33, 0.0  ;;  %v3966_v25 = vadd.f32 %v7588_v44, %v3946_v51  ;;  %v3803_v63 = vsel %vm626_vm6, %v3793_v14, %v3665_v2 }
 0x346   : > { %v3813_v7 = vsel %vm637_vm7, %v3803_v63, %v3729_v48 }
 0x347   : > { %v4678_v20 = vpack.c.bf16 %v3031_v50, %v3030_v11  ;;  %v3986_v39 = vmax.f32 %v3966_v25, 0.0  ;;  %v2655_v8 = vpop.permute.xlu2 %2654 }
 0x349   : > { %5062 = vst [vmem:[%s6203_s28 + $0xc0] sm:$0xff] %v4678_v20   ;;  %v4788_v61 = vpack.c.bf16 %v3986_v39, %v3985_v15 }
 0x34b   : > { %5147 = vst [vmem:[%s6203_s28 + $0x110] sm:$0xff] %v4788_v61   ;;  %v3753_v52 = vpop.permute.xlu1 %3752 }
 0x34c   : > { %v2798_v30 = vpop.permute.xlu0 %2797  ;;  %v3823_v35 = vsel %vm648_vm9, %v3813_v7, %v3753_v52 }
 0x34d   : > { %v2868_v16 = vsel %vm648_vm9, %v2858_v22, %v2798_v30  ;;  %4355 = vmatmul.msk.bf16.gmra.mxu3 %vm986_vm8, %v3823_v35 }
 0x34e   : > { %4287 = vmatmul.msk.bf16.gmra.mxu2 %vm986_vm8, %v2868_v16 }
 0x34f   : > { %v3667_v10 = vpop.permute.xlu2 %3666 }
 0x353   : > { %v2610_v34 = vpop.permute.xlu1 %2609 }
 0x354   : > { %v3555_v31 = vpop.permute.xlu0 %3554  ;;  %v2820_v32 = vsel %vm593_vm3, %v2810_v1, %v2610_v34 }
 0x355   : > { %v3765_v40 = vsel %vm582_vm2, %v5305_v4, %v3555_v31 }
 0x356   : > { %v3775_v21 = vsel %vm593_vm3, %v3765_v40, %v3565_v5 }
 0x357   : > { %v2800_v37 = vpop.permute.xlu2 %2799 }
 0x35b   : > { %v3575_v36 = vpop.permute.xlu1 %3574 }
 0x35c   : > { %v2620_v13 = vpop.permute.xlu0 %2619  ;;  %v3785_v51 = vsel %vm604_vm4, %v3775_v21, %v3575_v36 }
 0x35d   : > { %v2830_v43 = vsel %vm604_vm4, %v2820_v32, %v2620_v13 }
 0x35e   : > { %v2840_v9 = vsel %vm615_vm5, %v2830_v43, %v2655_v8 }
 0x360   : > { %v3912_v57 = vpop.f32.mrf.mxu3 }
 0x361   : > { %v2957_v23 = vpop.f32.mrf.mxu2  ;;  %v3947_v26 = vmul.f32 %v7522_v27, %v3912_v57 }
 0x362   : > { %v2992_v28 = vmul.f32 %v7522_v27, %v2957_v23 }
 0x363   : > { %v2712_v0 = vpop.permute.xlu1 %2711  ;;  %v3967_v45 = vadd.f32 %v7588_v44, %v3947_v26 }
 0x364   : > { %v3610_v17 = vpop.permute.xlu0 %3609  ;;  %v3012_v48 = vadd.f32 %v7588_v44, %v2992_v28  ;;  %v2850_v59 = vsel %vm626_vm6, %v2840_v9, %v2712_v0 }
 0x365   : > { %v3987_v53 = vmax.f32 %v3967_v45, 0.0  ;;  %v3795_v42 = vsel %vm615_vm5, %v3785_v51, %v3610_v17 }
 0x366   : > { %v3032_v41 = vmax.f32 %v3012_v48, 0.0  ;;  %v3805_v11 = vsel %vm626_vm6, %v3795_v42, %v3667_v10 }
 0x368   : > { %v3914_v47 = vpop.f32.mrf.mxu3 }
 0x369   : > { %v2959_v6 = vpop.f32.mrf.mxu2  ;;  %v3948_v58 = vmul.f32 %v7522_v27, %v3914_v47 }
 0x36a   : > { %v2993_v46 = vmul.f32 %v7522_v27, %v2959_v6 }
 0x36b   : > { %v3968_v60 = vadd.f32 %v7588_v44, %v3948_v58  ;;  %v3731_v29 = vpop.permute.xlu1 %3730 }
 0x36c   : > { %v3013_v62 = vadd.f32 %v7588_v44, %v2993_v46  ;;  %v2776_v24 = vpop.permute.xlu0 %2775  ;;  %v3815_v50 = vsel %vm637_vm7, %v3805_v11, %v3731_v29 }
 0x36d   : > { %v3988_v38 = vmax.f32 %v3968_v60, 0.0  ;;  %v2860_v19 = vsel %vm637_vm7, %v2850_v59, %v2776_v24 }
 0x36e   : > { %v3033_v12 = vmax.f32 %v3013_v62, 0.0  ;;  %v2870_v33 = vsel %vm648_vm9, %v2860_v19, %v2800_v37 }
 0x36f   : > { %v4793_v49 = vpack.c.bf16 %v3988_v38, %v3987_v53  ;;  %4288 = vmatmul.msk.bf16.gmra.mxu2 %vm986_vm8, %v2870_v33 }
 0x370   : > { %v4683_v2 = vpack.c.bf16 %v3033_v12, %v3032_v41 }
 0x371   : > { %5148 = vst [vmem:[%s6203_s28 + $0x118] sm:$0xff] %v4793_v49  }
 0x372   : > { %5063 = vst [vmem:[%s6203_s28 + $0xc8] sm:$0xff] %v4683_v2  }
 0x374   : > { %v3755_v25 = vpop.permute.xlu0 %3754 }
 0x375   : > { %v3825_v56 = vsel %vm648_vm9, %v3815_v50, %v3755_v25  ;;  %v5306_v50 = vld [vmem:[%s7990_s2] ss:$0 sm:$0xff] }
 0x376   : > { %4356 = vmatmul.msk.bf16.gmra.mxu3 %vm986_vm8, %v3825_v56 }
 0x382   : > { %v2962_v3 = vpop.f32.mrf.mxu2 }
 0x383   : > { %v2994_v15 = vmul.f32 %v7522_v27, %v2962_v3 }
 0x385   : > { %v3014_v39 = vadd.f32 %v7588_v44, %v2994_v15 }
 0x387   : > { %v3034_v55 = vmax.f32 %v3014_v39, 0.0 }
 0x389   : > { %v3917_v14 = vpop.f32.mrf.mxu3 }
 0x38a   : > { %v2964_v20 = vpop.f32.mrf.mxu2  ;;  %v3949_v61 = vmul.f32 %v7522_v27, %v3917_v14 }
 0x38b   : > { %v2995_v54 = vmul.f32 %v7522_v27, %v2964_v20 }
 0x38c   : > { %v3969_v30 = vadd.f32 %v7588_v44, %v3949_v61 }
 0x38d   : > { %v3015_v63 = vadd.f32 %v7588_v44, %v2995_v54 }
 0x38e   : > { %v3989_v5 = vmax.f32 %v3969_v30, 0.0 }
 0x38f   : > { %v3035_v7 = vmax.f32 %v3015_v63, 0.0 }
 0x391   : > { %v4688_v52 = vpack.c.bf16 %v3035_v7, %v3034_v55  ;;  %v3919_v22 = vpop.f32.mrf.mxu3 }
 0x392   : > { %v3950_v35 = vmul.f32 %v7522_v27, %v3919_v22 }
 0x393   : > { %5064 = vst [vmem:[%s6203_s28 + $0xd0] sm:$0xff] %v4688_v52  }
 0x394   : > { %v3970_v16 = vadd.f32 %v7588_v44, %v3950_v35 }
 0x396   : > { %v3990_v34 = vmax.f32 %v3970_v16, 0.0 }
 0x398   : > { %v4798_v31 = vpack.c.bf16 %v3990_v34, %v3989_v5 }
 0x39a   : > { %5149 = vst [vmem:[%s6203_s28 + $0x120] sm:$0xff] %v4798_v31  }
 0x3a8   : > { %v2967_v8 = vpop.f32.mrf.mxu2 }
 0x3a9   : > { %v2996_v36 = vmul.f32 %v7522_v27, %v2967_v8 }
 0x3aa   : > { %v3922_v13 = vpop.f32.mrf.mxu3 }
 0x3ab   : > { %v3951_v57 = vmul.f32 %v7522_v27, %v3922_v13  ;;  %v3016_v10 = vadd.f32 %v7588_v44, %v2996_v36 }
 0x3ad   : > { %v3971_v17 = vadd.f32 %v7588_v44, %v3951_v57  ;;  %v3036_v32 = vmax.f32 %v3016_v10, 0.0 }
 0x3af   : > { %v3991_v47 = vmax.f32 %v3971_v17, 0.0 }
 0x3b0   : > { %v2969_v23 = vpop.f32.mrf.mxu2 }
 0x3b1   : > { %v2997_v18 = vmul.f32 %v7522_v27, %v2969_v23 }
 0x3b2   : > { %v3924_v1 = vpop.f32.mrf.mxu3 }
 0x3b3   : > { %v3017_v26 = vadd.f32 %v7588_v44, %v2997_v18  ;;  %v3952_v28 = vmul.f32 %v7522_v27, %v3924_v1 }
 0x3b5   : > { %v3037_v0 = vmax.f32 %v3017_v26, 0.0  ;;  %v3972_v43 = vadd.f32 %v7588_v44, %v3952_v28 }
 0x3b7   : > { %v4693_v45 = vpack.c.bf16 %v3037_v0, %v3036_v32  ;;  %v3992_v6 = vmax.f32 %v3972_v43, 0.0 }
 0x3b9   : > { %5065 = vst [vmem:[%s6203_s28 + $0xd8] sm:$0xff] %v4693_v45   ;;  %v4803_v58 = vpack.c.bf16 %v3992_v6, %v3991_v47 }
 0x3bb   : > { %5150 = vst [vmem:[%s6203_s28 + $0x128] sm:$0xff] %v4803_v58  }
 0x3d0   : > { %v3927_v48 = vpop.f32.mrf.mxu3 }
 0x3d1   : > { %v2972_v46 = vpop.f32.mrf.mxu2  ;;  %v3953_v4 = vmul.f32 %v7522_v27, %v3927_v48 }
 0x3d2   : > { %v2998_v40 = vmul.f32 %v7522_v27, %v2972_v46 }
 0x3d3   : > { %v3973_v60 = vadd.f32 %v7588_v44, %v3953_v4 }
 0x3d4   : > { %v3018_v62 = vadd.f32 %v7588_v44, %v2998_v40 }
 0x3d5   : > { %v3993_v19 = vmax.f32 %v3973_v60, 0.0 }
 0x3d6   : > { %v3038_v41 = vmax.f32 %v3018_v62, 0.0 }
 0x3d8   : > { %v3929_v9 = vpop.f32.mrf.mxu3 }
 0x3d9   : > { %v2974_v37 = vpop.f32.mrf.mxu2  ;;  %v3954_v59 = vmul.f32 %v7522_v27, %v3929_v9 }
 0x3da   : > { %v2999_v24 = vmul.f32 %v7522_v27, %v2974_v37 }
 0x3db   : > { %v3974_v53 = vadd.f32 %v7588_v44, %v3954_v59 }
 0x3dc   : > { %v3019_v38 = vadd.f32 %v7588_v44, %v2999_v24 }
 0x3dd   : > { %v3994_v21 = vmax.f32 %v3974_v53, 0.0 }
 0x3de   : > { %v3039_v12 = vmax.f32 %v3019_v38, 0.0 }
 0x3df   : > { %v4808_v33 = vpack.c.bf16 %v3994_v21, %v3993_v19 }
 0x3e0   : > { %v4698_v51 = vpack.c.bf16 %v3039_v12, %v3038_v41 }
 0x3e1   : > { %5151 = vst [vmem:[%s6203_s28 + $0x130] sm:$0xff] %v4808_v33  }
 0x3e2   : > { %5066 = vst [vmem:[%s6203_s28 + $0xe0] sm:$0xff] %v4698_v51  }
 0x3f2   : > { %v2977_v49 = vpop.f32.mrf.mxu2 }
 0x3f3   : > { %v3000_v42 = vmul.f32 %v7522_v27, %v2977_v49 }
 0x3f5   : > { %v3020_v11 = vadd.f32 %v7588_v44, %v3000_v42 }
 0x3f7   : > { %v3040_v15 = vmax.f32 %v3020_v11, 0.0 }
 0x3f9   : > { %v3932_v2 = vpop.f32.mrf.mxu3 }
 0x3fa   : > { %v2979_v29 = vpop.f32.mrf.mxu2  ;;  %v3955_v3 = vmul.f32 %v5306_v50, %v3932_v2 }
 0x3fb   : > { %v3001_v25 = vmul.f32 %v5306_v50, %v2979_v29 }
 0x3fc   : > { %v3975_v54 = vadd.f32 %v7588_v44, %v3955_v3 }
 0x3fd   : > { %v3021_v56 = vadd.f32 %v7588_v44, %v3001_v25 }
 0x3fe   : > { %v3995_v61 = vmax.f32 %v3975_v54, 0.0 }
 0x3ff   : > { %v3041_v14 = vmax.f32 %v3021_v56, 0.0 }
 0x401   : > { %v4703_v20 = vpack.c.bf16 %v3041_v14, %v3040_v15  ;;  %v3934_v39 = vpop.f32.mrf.mxu3 }
 0x402   : > { %v3956_v27 = vmul.f32 %v5306_v50, %v3934_v39 }
 0x403   : > { %5067 = vst [vmem:[%s6203_s28 + $0xe8] sm:$0xff] %v4703_v20  }
 0x404   : > { %v3976_v63 = vadd.f32 %v7588_v44, %v3956_v27 }
 0x406   : > { %v3996_v55 = vmax.f32 %v3976_v63, 0.0 }
 0x408   : > { %v4813_v7 = vpack.c.bf16 %v3996_v55, %v3995_v61 }
 0x40a   : > { %5152 = vst [vmem:[%s6203_s28 + $0x138] sm:$0xff] %v4813_v7  }
 0x40b PF: > { %s14_s15 = sadd.s32 1, %s5313_s15  }
 0x40c   : > { %p11_p4 = scmp.ge.s32.totalorder %s14_s15, 4  }
 0x40e   :  { %13 = sbr.rel (!%p11_p4) target bundleno = 1 (0x1), region = 74 }

// kernel: pallas_encoder.5
= control target key start
LH: loop header
LB: loop body
LE: loop exit
PB: predicated region body
PF: predicated region fallthrough
CT: control target
= control target key end

     0   :  { %s2455_s15 = smov 0   ;;  %s3055_s0 = inlined_call_operand.vmem [shape: bf16[2,5,40,128], index: 0, kind: input, shape index: {}]   ;;  %s3056_s1 = inlined_call_operand.vmem [shape: bf16[4,256,128], index: 1, kind: input, shape index: {}]   ;;  %s3057_s2 = inlined_call_operand.vmem [shape: f32[1,128], index: 2, kind: input, shape index: {}]   ;;  %s3058_s3 = inlined_call_operand.vmem [shape: f32[1,128], index: 3, kind: input, shape index: {}]   ;;  %s3059_s4 = inlined_call_operand.vmem [shape: bf16[2,128,128], index: 4, kind: output, shape index: {}]  }
   0x1 LB: > { %s1866_s16 = sadd.s32 4294967295, %s2428_s15   ;;  %p1870_p0 = scmp.ge.s32.totalorder %s2428_s15, 1  ;;  %s2428_s15 = sphi %s2455_s15, %s14_s15  }
   0x2   : > { %p162_p1 = scmp.lt.s32.totalorder %s2428_s15, 3 }
   0x4   : > { %p163_p2 = pnand %p1870_p0, %p162_p1 }
   0x5   : > { %p188_p3 = scmp.lt.s32.totalorder (!%p163_p2), %s1866_s16, 1 }
   0x6   : > { %166 = sbr.rel (%p163_p2) target bundleno = 439 (0x1b7), region = 36 }
   0xb   : > { %v2308_v0 = vld [vmem:[%s3056_s1 + $0xb8] sm:$0xff]  ;;  %v2307_v4 = vld [vmem:[%s3056_s1 + $0xb0] sm:$0xff]  ;;  %s3061_s16 = smov (!%p188_p3, %s1866_s16), 1  ;;  %v2306_v8 = vld [vmem:[%s3056_s1 + $0xa8] sm:$0xff]  ;;  %vm220_vm0 = vsmask.f32 7424 }
   0xc   : > { %v2316_v1 = vld [vmem:[%s3056_s1 + $0xf8] sm:$0xff]  ;;  %830 = vmatpush.bf16.msra.mxu0 %v2308_v0  ;;  %v2315_v5 = vld [vmem:[%s3056_s1 + $0xf0] sm:$0xff]  ;;  %s2411_s7 = smul.u32 100, %s3061_s16  ;;  %v2314_v9 = vld [vmem:[%s3056_s1 + $0xe8] sm:$0xff]  ;;  %vm516_vm1 = vsmask.f32 5376 }
   0xd   : > { %v2292_v2 = vld [vmem:[%s3056_s1 + $0x38] sm:$0xff]  ;;  %879 = vmatpush.bf16.msra.mxu1 %v2316_v1  ;;  %v2291_v6 = vld [vmem:[%s3056_s1 + $0x30] sm:$0xff]  ;;  %v2290_v10 = vld [vmem:[%s3056_s1 + $0x28] sm:$0xff]  ;;  %s2280_s10 = sshll.u32 %s3061_s16, 6 }
   0xe   : > { %v2300_v3 = vld [vmem:[%s3056_s1 + $0x78] sm:$0xff]  ;;  %1024 = vmatpush.bf16.msra.mxu2 %v2292_v2  ;;  %v2299_v7 = vld [vmem:[%s3056_s1 + $0x70] sm:$0xff]  ;;  %v2298_v11 = vld [vmem:[%s3056_s1 + $0x68] sm:$0xff]  ;;  %s2505_s20 = scalar_lea.vmem %s3055_s0, %s2411_s7  ;;  %s3000_s13 = scalar_lea.vmem %s3059_s4, %s2280_s10 }
   0xf   : > { %1073 = vmatpush.bf16.msra.mxu3 %v2300_v3  ;;  %v2305_v12 = vld [vmem:[%s3056_s1 + $0xa0] sm:$0xff]  ;;  %v2524_v18 = vld [vmem:[%s2505_s20 + $0x8] sm:$0xff]  ;;  %v405_v23 = vld [vmem:[%s2505_s20 + $0x10] sm:$0x7] }
  0x10   : > { %831 = vmatpush.bf16.msra.mxu0 %v2307_v4  ;;  %v2313_v13 = vld [vmem:[%s3056_s1 + $0xe0] sm:$0xff]  ;;  %v2304_v24 = vld [vmem:[%s3056_s1 + $0x98] sm:$0xff]  ;;  %v229_v25 = vshll.u32 %v2524_v18, 16  ;;  %v233_v26 = vshrl.u32 %v2524_v18, 16  ;;  %v410_v27 = vunpack.c.l.b16 %v405_v23  ;;  %v2303_v40 = vld [vmem:[%s3056_s1 + $0x90] sm:$0xff] }
  0x11   : > { %880 = vmatpush.bf16.msra.mxu1 %v2315_v5  ;;  %v2289_v14 = vld [vmem:[%s3056_s1 + $0x20] sm:$0xff]  ;;  %v2312_v28 = vld [vmem:[%s3056_s1 + $0xd8] sm:$0xff]  ;;  %v2311_v41 = vld [vmem:[%s3056_s1 + $0xd0] sm:$0xff] }
  0x12   : > { %1025 = vmatpush.bf16.msra.mxu2 %v2291_v6  ;;  %v2297_v15 = vld [vmem:[%s3056_s1 + $0x60] sm:$0xff]  ;;  %v2288_v31 = vld [vmem:[%s3056_s1 + $0x18] sm:$0xff]  ;;  %v2543_v33 = vrot.slane %v229_v25, 1  ;;  %v2545_v34 = vpack.c.b16 %v410_v27, %v410_v27  ;;  %v2287_v44 = vld [vmem:[%s3056_s1 + $0x10] sm:$0xff]  ;;  %v525_v50 = vrot.slane %v233_v26, 2  ;;  %v526_v51 = vrot.slane %v229_v25, 3 }
  0x13   : > { %1074 = vmatpush.bf16.msra.mxu3 %v2299_v7  ;;  %v2520_v16 = vld [vmem:[%s2505_s20] sm:$0xff]   ;;  %v2296_v32 = vld [vmem:[%s3056_s1 + $0x58] sm:$0xff]  ;;  %v2295_v45 = vld [vmem:[%s3056_s1 + $0x50] sm:$0xff] }
  0x14   : > { %832 = vmatpush.bf16.msra.mxu0 %v2306_v8  ;;  %v2353_v17 = vunpack.c.h.b16 %v2520_v16  ;;  %v404_v19 = vld [vmem:[%s2505_s20] sm:$0xc]  ;;  %v2548_v37 = vor.u32 %v233_v26, %v2543_v33  ;;  %v425_v39 = vshll.u32 %v2545_v34, 16  ;;  %v224_v47 = vshll.u32 %v2520_v16, 16  ;;  %v2302_v53 = vld [vmem:[%s3056_s1 + $0x88] sm:$0xff]  ;;  %v2584_v3 = vld [vmem:[%s2505_s20 + $0x14] sm:$0xff]  }
  0x15   : > { %881 = vmatpush.bf16.msra.mxu1 %v2314_v9  ;;  %v406_v20 = vld [vmem:[%s2505_s20] sm:$0x8]  ;;  %v409_v21 = vunpack.c.l.b16 %v404_v19  ;;  %v2310_v54 = vld [vmem:[%s3056_s1 + $0xc8] sm:$0xff]  ;;  %v222_v63 = vshrl.u32 %v2520_v16, 16  ;;  %v429_v6 = vshrl.u32 %v2545_v34, 16  ;;  %v254_v19 = vunpack.c.h.b16 %v2584_v3 }
  0x16   : > { %1026 = vmatpush.bf16.msra.mxu2 %v2290_v10  ;;  %v414_v22 = vunpack.c.l.b16 %v406_v20  ;;  %v427_v46 = vrot.slane %v425_v39, 1  ;;  %v2286_v59 = vld [vmem:[%s3056_s1 + $0x8] sm:$0xff]  ;;  %v226_v0 = vrot.slane %v224_v47, 1  ;;  %v1907_v7 = vld [vmem:[%s2505_s20 + $0x14] sm:$0x8]  ;;  %v2301_v8 = vld [vmem:[%s3056_s1 + $0x80] sm:$0xff] }
  0x17   : > { %1075 = vmatpush.bf16.msra.mxu3 %v2298_v11  ;;  %v411_v29 = vpack.c.b16 %v2353_v17, %v409_v21  ;;  %v2294_v60 = vld [vmem:[%s3056_s1 + $0x48] sm:$0xff]  ;;  %v2309_v9 = vld [vmem:[%s3056_s1 + $0xc0] sm:$0xff]  ;;  %v2594_v11 = vor.u32 %v526_v51, %v525_v50  ;;  %v2341_v21 = vld [vmem:[%s3056_s1 + $0x1b8] sm:$0xff]  ;;  %v547_v50 = vrot.slane %v425_v39, 3 }
  0x18   : > { %833 = vmatpush.bf16.msra.mxu0 %v2305_v12  ;;  %v415_v30 = vpack.c.b16 %v2353_v17, %v414_v22  ;;  %v428_v52 = vsel %vm220_vm0, %v2548_v37, %v427_v46  ;;  %v227_v17 = vor.u32 %v226_v0, %v222_v63  ;;  %v1906_v20 = vld [vmem:[%s2505_s20 + $0x24] sm:$0x7]  ;;  %v2349_v22 = vld [vmem:[%s3056_s1 + $0x1f8] sm:$0xff]  ;;  %v204_v23 = vld [vmem:[%s2505_s20 + $0x10] sm:$0x1]  ;;  %v431_v25 = vor.u32 %v429_v6, %v427_v46 }
  0x19   : > { %882 = vmatpush.bf16.msra.mxu1 %v2313_v13  ;;  %v518_v38 = vshrl.u32 %v411_v29, 16  ;;  %v521_v42 = vshll.u32 %v411_v29, 16  ;;  %v538_v57 = vshrl.u32 %v428_v52, 16  ;;  %v541_v58 = vshll.u32 %v428_v52, 16  ;;  %v2285_v13 = vld [vmem:[%s3056_s1] sm:$0xff]  ;;  %v2332_v46 = vld [vmem:[%s3056_s1 + $0x170] sm:$0xff] }
  0x1a   : > { %1027 = vmatpush.bf16.msra.mxu2 %v2289_v14  ;;  %v417_v35 = vshrl.u32 %v415_v30, 16  ;;  %v419_v36 = vshll.u32 %v415_v30, 16  ;;  %v2293_v14 = vld [vmem:[%s3056_s1 + $0x40] sm:$0xff]  ;;  %v438_v29 = vunpack.c.l.b16 %v1906_v20  ;;  %v232_v30 = vsel %vm220_vm0, %v227_v17, %v2543_v33  ;;  %v2323_v34 = vld [vmem:[%s3056_s1 + $0x128] sm:$0xff] }
  0x1b   : > { %1076 = vmatpush.bf16.msra.mxu3 %v2297_v15  ;;  %v520_v49 = vrot.slane %v518_v38, 2  ;;  %v523_v55 = vrot.slane %v521_v42, 3  ;;  %v540_v1 = vrot.slane %v538_v57, 2  ;;  %v543_v2 = vrot.slane %v541_v58, 3  ;;  %v2340_v38 = vld [vmem:[%s3056_s1 + $0x1b0] sm:$0xff]  ;;  %v2331_v39 = vld [vmem:[%s3056_s1 + $0x168] sm:$0xff] }
  0x1c   : > { %834 = vmatpush.bf16.msra.mxu0 %v2304_v24  ;;  %v421_v43 = vrot.slane %v419_v36, 1  ;;  %v442_v24 = vunpack.c.l.b16 %v1907_v7  ;;  %v2338_v17 = vld [vmem:[%s3056_s1 + $0x1a0] sm:$0xff]  ;;  %v267_v20 = vshll.u32 %v2584_v3, 16 }
  0x1d   : > { %883 = vmatpush.bf16.msra.mxu1 %v2312_v28  ;;  %v524_v10 = vor.u32 %v523_v55, %v520_v49  ;;  %v2596_v12 = vor.u32 %v543_v2, %v540_v1  ;;  %v2618_v28 = vld [vmem:[%s2505_s20 + $0x1c] sm:$0xff]  ;;  %v546_v49 = vrot.slane %v429_v6, 2  ;;  %v1905_v55 = vld [vmem:[%s2505_s20 + $0x14] sm:$0xc] }
  0x1e   : > { %1028 = vmatpush.bf16.msra.mxu2 %v2288_v31  ;;  %v422_v48 = vor.u32 %v421_v43, %v417_v35  ;;  %v2325_v31 = vld [vmem:[%s3056_s1 + $0x138] sm:$0xff]  ;;  %v218_v35 = vunpack.c.l.b16 %v204_v23  ;;  %v443_v36 = vpack.c.b16 %v254_v19, %v442_v24  ;;  %v272_v42 = vshll.u32 %v2618_v28, 16 }
  0x1f   : > { %1077 = vmatpush.bf16.msra.mxu3 %v2296_v32  ;;  %v528_v26 = vsel %vm516_vm1, %v524_v10, %v2594_v11  ;;  %v2333_v32 = vld [vmem:[%s3056_s1 + $0x178] sm:$0xff]  ;;  %v2638_v43 = vpack.c.b16 %v438_v29, %v438_v29 }
  0x20   : > { %835 = vmatpush.bf16.msra.mxu0 %v2303_v40  ;;  %v423_v56 = vsel %vm220_vm0, %v422_v48, %v2543_v33  ;;  %v2348_v33 = vld [vmem:[%s3056_s1 + $0x1f0] sm:$0xff]  ;;  %v551_v40 = vshrl.u32 %v431_v25, 16  ;;  %v447_v47 = vshll.u32 %v443_v36, 16  ;;  %v2347_v48 = vld [vmem:[%s3056_s1 + $0x1e8] sm:$0xff]  ;;  %v445_v58 = vshrl.u32 %v443_v36, 16 }
  0x21   : > { %884 = vmatpush.bf16.msra.mxu1 %v2311_v41  ;;  %v530_v61 = vshrl.u32 %v423_v56, 16  ;;  %v533_v62 = vshll.u32 %v423_v56, 16  ;;  %v554_v41 = vshll.u32 %v431_v25, 16  ;;  %v453_v56 = vshll.u32 %v2638_v43, 16 }
  0x22   : > { %1029 = vmatpush.bf16.msra.mxu2 %v2287_v44  ;;  %v219_v44 = vpack.c.b16 %v218_v35, %v218_v35  ;;  %v553_v51 = vrot.slane %v551_v40, 2  ;;  %v572_v24 = vrot.slane %v272_v42, 3  ;;  %v1910_v35 = vld [vmem:[%s2505_s20 + $0x28] sm:$0x8] }
  0x23   : > { %1078 = vmatpush.bf16.msra.mxu3 %v2295_v45  ;;  %v532_v4 = vrot.slane %v530_v61, 2  ;;  %v535_v5 = vrot.slane %v533_v62, 3  ;;  %v2324_v45 = vld [vmem:[%s3056_s1 + $0x130] sm:$0xff]  ;;  %v556_v52 = vrot.slane %v554_v41, 3  ;;  %v548_v61 = vor.u32 %v547_v50, %v546_v49 }
  0x24   : > { %836 = vmatpush.bf16.msra.mxu0 %v2302_v53  ;;  %v2656_v53 = vrot.slane %v272_v42, 1  ;;  %v237_v57 = vshll.u32 %v219_v44, 16  ;;  %v455_v0 = vrot.slane %v453_v56, 1  ;;  %v470_v44 = vunpack.c.l.b16 %v1910_v35  ;;  %v2320_v35 = vld [vmem:[%s3056_s1 + $0x110] sm:$0xff] }
  0x25   : > { %885 = vmatpush.bf16.msra.mxu1 %v2310_v54  ;;  %v536_v15 = vor.u32 %v535_v5, %v532_v4  ;;  %v276_v54 = vshrl.u32 %v2618_v28, 16  ;;  %v557_v62 = vor.u32 %v556_v52, %v553_v51  ;;  %v549_v5 = vsel %vm516_vm1, %v2594_v11, %v548_v61 }
  0x26   : > { %1030 = vmatpush.bf16.msra.mxu2 %v2286_v59  ;;  %v449_v59 = vrot.slane %v447_v47, 1  ;;  %v239_v1 = vrot.slane %v237_v57, 1  ;;  %v1909_v47 = vld [vmem:[%s2505_s20 + $0x38] sm:$0x7] }
  0x27   : > { %1079 = vmatpush.bf16.msra.mxu3 %v2294_v60  ;;  %v545_v27 = vsel %vm516_vm1, %v536_v15, %v2596_v12  ;;  %v437_v60 = vunpack.c.l.b16 %v1905_v55  ;;  %v2668_v63 = vor.u32 %v276_v54, %v2656_v53  ;;  %v558_v6 = vsel %vm516_vm1, %v2596_v12, %v557_v62 }
  0x28   : > { %837 = vmatpush.bf16.msra.mxu0 %v2301_v8  ;;  %v450_v2 = vor.u32 %v449_v59, %v445_v58  ;;  %v240_v8 = vsel %vm220_vm0, %v2548_v37, %v239_v1  ;;  %v2346_v37 = vld [vmem:[%s3056_s1 + $0x1e0] sm:$0xff]  ;;  %v571_v23 = vrot.slane %v276_v54, 2  ;;  %v2720_v54 = vld [vmem:[%s2505_s20 + $0x30] sm:$0xff]  ;;  %v466_v55 = vunpack.c.l.b16 %v1909_v47 }
  0x29   : > { %886 = vmatpush.bf16.msra.mxu1 %v2309_v9  ;;  %v439_v4 = vpack.c.b16 %v254_v19, %v437_v60  ;;  %v456_v7 = vsel %vm220_vm0, %v2668_v63, %v455_v0  ;;  %v2322_v19 = vld [vmem:[%s3056_s1 + $0x120] sm:$0xff]  ;;  %v315_v61 = vshll.u32 %v2720_v54, 16 }
  0x2a   : > { %1031 = vmatpush.bf16.msra.mxu2 %v2285_v13  ;;  %v451_v9 = vsel %vm220_vm0, %v450_v2, %v2656_v53  ;;  %v587_v12 = vshll.u32 %v456_v7, 16  ;;  %v2736_v62 = vpack.c.b16 %v466_v55, %v466_v55  ;;  %v593_v2 = vrot.slane %v453_v56, 3  ;;  %v1913_v55 = vld [vmem:[%s2505_s20 + $0x3c] sm:$0x8] }
  0x2b   : > { %1080 = vmatpush.bf16.msra.mxu3 %v2293_v14  ;;  %838 = vmatmul.bf16.vlgmr.msra.gmra.mxu0 %v528_v26  ;;  %v564_v10 = vshrl.u32 %v439_v4, 16  ;;  %v567_v13 = vshll.u32 %v439_v4, 16  ;;  %v584_v14 = vshrl.u32 %v456_v7, 16  ;;  %v576_v11 = vshrl.u32 %v451_v9, 16 }
  0x2c   : > { %887 = vmatmul.bf16.vlgmr.msra.gmra.mxu1 %v545_v27  ;;  %1294 = vmatpush.bf16.msrb.mxu0 %v2325_v31  ;;  %v579_v15 = vshll.u32 %v451_v9, 16  ;;  %v589_v29 = vrot.slane %v587_v12, 3  ;;  %v269_v31 = vrot.slane %v267_v20, 1 }
  0x2d   : > { %1032 = vmatmul.bf16.vlgmr.msra.gmra.mxu2 %v2520_v16  ;;  %1343 = vmatpush.bf16.msrb.mxu1 %v2333_v32  ;;  %v2339_v16 = vld [vmem:[%s3056_s1 + $0x1a8] sm:$0xff]  ;;  %v578_v25 = vrot.slane %v576_v11, 2  ;;  %v586_v27 = vrot.slane %v584_v14, 2  ;;  %v481_v14 = vshll.u32 %v2736_v62, 16 }
  0x2e   : > { %1611 = vmatpush.bf16.msrb.mxu2 %v2341_v21  ;;  %1081 = vmatmul.bf16.vlgmr.msra.gmra.mxu3 %v232_v30  ;;  %v566_v21 = vrot.slane %v564_v10, 2  ;;  %v581_v26 = vrot.slane %v579_v15, 3  ;;  %v265_v30 = vshrl.u32 %v2584_v3, 16  ;;  %v2702_v32 = vld [vmem:[%s2505_s20 + $0x28] sm:$0xff]   ;;  %v317_v10 = vrot.slane %v315_v61, 1 }
  0x2f   : > { %1660 = vmatpush.bf16.msrb.mxu3 %v2349_v22  ;;  %v569_v22 = vrot.slane %v567_v13, 3  ;;  %v590_v41 = vor.u32 %v589_v29, %v586_v27  ;;  %v2357_v42 = vunpack.c.h.b16 %v2702_v32  ;;  %v319_v13 = vshrl.u32 %v2720_v54, 16 }
  0x30   : > { %1295 = vmatpush.bf16.msrb.mxu0 %v2324_v45  ;;  %v582_v40 = vor.u32 %v581_v26, %v578_v25  ;;  %v270_v45 = vor.u32 %v269_v31, %v265_v30  ;;  %v483_v56 = vrot.slane %v481_v14, 1  ;;  %v2344_v31 = vld [vmem:[%s3056_s1 + $0x1d0] sm:$0xff] }
  0x31   : > { %1344 = vmatpush.bf16.msrb.mxu1 %v2332_v46  ;;  %v570_v36 = vor.u32 %v569_v22, %v566_v21  ;;  %v1882_v46 = vld [vmem:[%s2505_s20 + $0x24] sm:$0x1]  ;;  %v471_v50 = vpack.c.b16 %v2357_v42, %v470_v44 }
  0x32   : > { %1612 = vmatpush.bf16.msrb.mxu2 %v2340_v38  ;;  %v573_v38 = vor.u32 %v572_v24, %v571_v23  ;;  %v2717_v51 = vsel %vm220_vm0, %v270_v45, %v2656_v53  ;;  %v262_v52 = vunpack.c.l.b16 %v1882_v46  ;;  %v2337_v53 = vld [vmem:[%s3056_s1 + $0x198] sm:$0xff] }
  0x33   : > { %1661 = vmatpush.bf16.msrb.mxu3 %v2348_v33  ;;  %v457_v33 = vshrl.u32 %v2638_v43, 16  ;;  %v475_v59 = vshll.u32 %v471_v50, 16  ;;  %v473_v7 = vshrl.u32 %v471_v50, 16  ;;  %v2746_v43 = vor.u32 %v319_v13, %v317_v10 }
  0x34   : > { %1296 = vmatpush.bf16.msrb.mxu0 %v2323_v34  ;;  %v2345_v34 = vld [vmem:[%s3056_s1 + $0x1d8] sm:$0xff]  ;;  %v263_v60 = vpack.c.b16 %v262_v52, %v262_v52 }
  0x35   : > { %1345 = vmatpush.bf16.msrb.mxu1 %v2331_v39  ;;  %v459_v49 = vor.u32 %v457_v33, %v455_v0  ;;  %v2321_v39 = vld [vmem:[%s3056_s1 + $0x118] sm:$0xff]  ;;  %v592_v1 = vrot.slane %v457_v33, 2  ;;  %v484_v23 = vsel %vm220_vm0, %v2746_v43, %v483_v56  ;;  %v617_v33 = vrot.slane %v319_v13, 2 }
  0x36   : > { %1613 = vmatpush.bf16.msrb.mxu2 %v2339_v16  ;;  %v2710_v16 = vsel %vm516_vm1, %v570_v36, %v573_v38  ;;  %v2329_v0 = vld [vmem:[%s3056_s1 + $0x158] sm:$0xff]  ;;  %v280_v9 = vshll.u32 %v263_v60, 16  ;;  %v630_v29 = vshrl.u32 %v484_v23, 16  ;;  %v633_v30 = vshll.u32 %v484_v23, 16  ;;  %v2327_v23 = vld [vmem:[%s3056_s1 + $0x148] sm:$0xff] }
  0x37   : > { %1662 = vmatpush.bf16.msrb.mxu3 %v2347_v48  ;;  %v2713_v48 = vsel %vm516_vm1, %v582_v40, %v590_v41  ;;  %v597_v57 = vshrl.u32 %v459_v49, 16  ;;  %v600_v58 = vshll.u32 %v459_v49, 16  ;;  %v594_v15 = vor.u32 %v593_v2, %v592_v1  ;;  %v2782_v52 = vld [vmem:[%s2505_s20 + $0x3c] sm:$0xff]   ;;  %v1912_v1 = vld [vmem:[%s2505_s20 + $0x4c] sm:$0x7] }
  0x38   : > { %1297 = vmatpush.bf16.msrb.mxu0 %v2322_v19  ;;  %v310_v36 = vshll.u32 %v2702_v32, 16  ;;  %v618_v40 = vrot.slane %v315_v61, 3  ;;  %v632_v46 = vrot.slane %v630_v29, 2  ;;  %v635_v47 = vrot.slane %v633_v30, 3  ;;  %v1911_v29 = vld [vmem:[%s2505_s20 + $0x3c] sm:$0xc] }
  0x39   : > { %v599_v4 = vrot.slane %v597_v57, 2  ;;  %v2751_v20 = vsel %vm516_vm1, %v573_v38, %v594_v15  ;;  %v2328_v38 = vld [vmem:[%s3056_s1 + $0x150] sm:$0xff]  ;;  %v308_v49 = vshrl.u32 %v2702_v32, 16  ;;  %v498_v60 = vunpack.c.l.b16 %v1913_v55 }
  0x3a   : > { %1614 = vmatpush.bf16.msrb.mxu2 %v2338_v17  ;;  %v312_v50 = vrot.slane %v310_v36, 1  ;;  %v494_v13 = vunpack.c.l.b16 %v1912_v1  ;;  %v2326_v1 = vld [vmem:[%s3056_s1 + $0x140] sm:$0xff] }
  0x3b   : > { %843 = vmatmul.bf16.gmra.mxu0 %v549_v5  ;;  %1663 = vmatpush.bf16.msrb.mxu3 %v2346_v37  ;;  %v602_v5 = vrot.slane %v600_v58, 3  ;;  %v282_v37 = vrot.slane %v280_v9, 1  ;;  %v619_v58 = vor.u32 %v618_v40, %v617_v33  ;;  %v2799_v9 = vld [vmem:[%s2505_s20 + $0x44] sm:$0xff]  ;;  %v493_v33 = vunpack.c.l.b16 %v1911_v29  ;;  %v1900_v29 = vld [vmem:[%s2505_s20 + $0x4c] sm:$0x1] }
  0x3c   : > { %892 = vmatmul.bf16.gmra.mxu1 %v558_v6  ;;  %1298 = vmatpush.bf16.msrb.mxu0 %v2321_v39  ;;  %v1908_v6 = vld [vmem:[%s2505_s20 + $0x28] sm:$0xc]  ;;  %v340_v39 = vunpack.c.h.b16 %v2782_v52  ;;  %v313_v61 = vor.u32 %v312_v50, %v308_v49  ;;  %v362_v36 = vshrl.u32 %v2799_v9, 16 }
  0x3d   : > { %1037 = vmatmul.bf16.gmra.mxu2 %v2524_v18  ;;  %v2330_v18 = vld [vmem:[%s3056_s1 + $0x160] sm:$0xff]  ;;  %v465_v11 = vunpack.c.l.b16 %v1908_v6  ;;  %v603_v12 = vor.u32 %v602_v5, %v599_v4  ;;  %v2759_v22 = vsel %vm220_vm0, %v2668_v63, %v282_v37  ;;  %v2336_v63 = vld [vmem:[%s3056_s1 + $0x190] sm:$0xff]  ;;  %v2319_v37 = vld [vmem:[%s3056_s1 + $0x108] sm:$0xff] }
  0x3e   : > { %1086 = vmatmul.bf16.gmra.mxu3 %v240_v8  ;;  %1346 = vmatpush.bf16.msrb.mxu1 %v2330_v18  ;;  %v477_v8 = vrot.slane %v475_v59, 1  ;;  %v499_v6 = vpack.c.b16 %v340_v39, %v498_v60  ;;  %v2342_v60 = vld [vmem:[%s3056_s1 + $0x1c0] sm:$0xff] }
  0x3f   : > { %1615 = vmatpush.bf16.msrb.mxu2 %v2337_v53  ;;  %1664 = vmatpush.bf16.msrb.mxu3 %v2345_v34  ;;  %v467_v19 = vpack.c.b16 %v2357_v42, %v465_v11  ;;  %v2754_v18 = vsel %vm516_vm1, %v590_v41, %v603_v12  ;;  %v636_v53 = vor.u32 %v635_v47, %v632_v46  ;;  %v485_v34 = vshrl.u32 %v2736_v62, 16 }
  0x40   : > { %v478_v17 = vor.u32 %v477_v8, %v473_v7  ;;  %1299 = vmatpush.bf16.msrb.mxu0 %v2320_v35  ;;  %v2796_v7 = vsel %vm220_vm0, %v313_v61, %v317_v10  ;;  %v503_v12 = vshll.u32 %v499_v6, 16  ;;  %v501_v30 = vshrl.u32 %v499_v6, 16  ;;  %v2318_v61 = vld [vmem:[%s3056_s1 + $0x100] sm:$0xff] }
  0x41   : > { %v610_v24 = vshrl.u32 %v467_v19, 16  ;;  %v613_v25 = vshll.u32 %v467_v19, 16  ;;  %v487_v5 = vor.u32 %v485_v34, %v483_v56  ;;  %v358_v19 = vshll.u32 %v2799_v9, 16 }
  0x42   : > { %1347 = vmatpush.bf16.msrb.mxu1 %v2329_v0  ;;  %v479_v21 = vsel %vm220_vm0, %v478_v17, %v317_v10  ;;  %v1891_v0 = vld [vmem:[%s2505_s20 + $0x38] sm:$0x1]  ;;  %v2335_v10 = vld [vmem:[%s3056_s1 + $0x188] sm:$0xff] }
  0x43   : > { %v622_v26 = vshrl.u32 %v479_v21, 16  ;;  %v625_v27 = vshll.u32 %v479_v21, 16  ;;  %1616 = vmatpush.bf16.msrb.mxu2 %v2336_v63  ;;  %1665 = vmatpush.bf16.msrb.mxu3 %v2344_v31  ;;  %v612_v41 = vrot.slane %v610_v24, 2  ;;  %v615_v42 = vrot.slane %v613_v25, 3  ;;  %v2343_v17 = vld [vmem:[%s3056_s1 + $0x1c8] sm:$0xff] }
  0x44   : > { %v305_v8 = vunpack.c.l.b16 %v1891_v0  ;;  %v643_v11 = vshrl.u32 %v487_v5, 16  ;;  %v646_v15 = vshll.u32 %v487_v5, 16  ;;  %v2815_v21 = vpack.c.b16 %v494_v13, %v494_v13  ;;  %1300 = vmatpush.bf16.msrb.mxu0 %v2319_v37 }
  0x45   : > { %v624_v44 = vrot.slane %v622_v26, 2  ;;  %v627_v45 = vrot.slane %v625_v27, 3  ;;  %v616_v57 = vor.u32 %v615_v42, %v612_v41  ;;  %v638_v24 = vrot.slane %v485_v34, 2 }
  0x46   : > { %1348 = vmatpush.bf16.msrb.mxu1 %v2328_v38  ;;  %v306_v56 = vpack.c.b16 %v305_v8, %v305_v8  ;;  %v639_v25 = vrot.slane %v481_v14, 3  ;;  %v645_v26 = vrot.slane %v643_v11, 2  ;;  %v648_v27 = vrot.slane %v646_v15, 3 }
  0x47   : > { %v628_v59 = vor.u32 %v627_v45, %v624_v44  ;;  %v2790_v2 = vsel %vm516_vm1, %v616_v57, %v619_v58  ;;  %1617 = vmatpush.bf16.msrb.mxu2 %v2335_v10  ;;  %1666 = vmatpush.bf16.msrb.mxu3 %v2343_v17  ;;  %v505_v63 = vrot.slane %v503_v12, 1  ;;  %v360_v35 = vrot.slane %v358_v19, 1 }
  0x48   : > { %v323_v31 = vshll.u32 %v306_v56, 16  ;;  %v509_v38 = vshll.u32 %v2815_v21, 16  ;;  %v640_v40 = vor.u32 %v639_v25, %v638_v24  ;;  %v649_v41 = vor.u32 %v648_v27, %v645_v26  ;;  %1301 = vmatpush.bf16.msrb.mxu0 %v2318_v61 }
  0x49   : > { %v2793_v4 = vsel %vm516_vm1, %v628_v59, %v636_v53  ;;  %v506_v42 = vor.u32 %v505_v63, %v501_v30  ;;  %v2825_v62 = vor.u32 %v362_v36, %v360_v35  ;;  %v495_v45 = vpack.c.b16 %v340_v39, %v493_v33 }
  0x4a   : > { %1349 = vmatpush.bf16.msrb.mxu1 %v2327_v23  ;;  %v325_v44 = vrot.slane %v323_v31, 1  ;;  %v511_v14 = vrot.slane %v509_v38, 1  ;;  %v2828_v46 = vsel %vm516_vm1, %v619_v58, %v640_v40  ;;  %v2831_v47 = vsel %vm516_vm1, %v636_v53, %v649_v41 }
  0x4b   : > { %848 = vmatmul.bf16.gmra.mxu0 %v2710_v16  ;;  %v507_v49 = vsel %vm220_vm0, %v506_v42, %v360_v35  ;;  %v656_v57 = vshrl.u32 %v495_v45, 16  ;;  %v659_v59 = vshll.u32 %v495_v45, 16  ;;  %v353_v0 = vshll.u32 %v2782_v52, 16  ;;  %1667 = vmatpush.bf16.msrb.mxu3 %v2342_v60 }
  0x4c   : > { %897 = vmatmul.bf16.gmra.mxu1 %v2713_v48  ;;  %v2836_v50 = vsel %vm220_vm0, %v2746_v43, %v325_v44  ;;  %v512_v55 = vsel %vm220_vm0, %v2825_v62, %v511_v14  ;;  %v668_v58 = vshrl.u32 %v507_v49, 16  ;;  %v671_v53 = vshll.u32 %v507_v49, 16  ;;  %v2334_v43 = vld [vmem:[%s3056_s1 + $0x180] sm:$0xff] }
  0x4d   : > { %1042 = vmatmul.bf16.gmra.mxu2 %v2584_v3  ;;  %v676_v34 = vshrl.u32 %v512_v55, 16  ;;  %v679_v39 = vshll.u32 %v512_v55, 16  ;;  %v658_v5 = vrot.slane %v656_v57, 2  ;;  %v661_v6 = vrot.slane %v659_v59, 3 }
  0x4e   : > { %1091 = vmatmul.bf16.gmra.mxu3 %v2717_v51  ;;  %1618 = vmatpush.bf16.msrb.mxu2 %v2334_v43  ;;  %v663_v8 = vrot.slane %v362_v36, 2  ;;  %v664_v13 = vrot.slane %v358_v19, 3  ;;  %v670_v11 = vrot.slane %v668_v58, 2  ;;  %v673_v15 = vrot.slane %v671_v53, 3 }
  0x4f   : > { %1350 = vmatpush.bf16.msrb.mxu1 %v2326_v1  ;;  %v678_v12 = vrot.slane %v676_v34, 2  ;;  %v681_v10 = vrot.slane %v679_v39, 3  ;;  %v351_v17 = vshrl.u32 %v2782_v52, 16  ;;  %v355_v37 = vrot.slane %v353_v0, 1 }
  0x50   : > { %v665_v56 = vor.u32 %v664_v13, %v663_v8  ;;  %v662_v23 = vor.u32 %v661_v6, %v658_v5  ;;  %v674_v24 = vor.u32 %v673_v15, %v670_v11  ;;  %v513_v26 = vshrl.u32 %v2815_v21, 16 }
  0x51   : > { %v682_v25 = vor.u32 %v681_v10, %v678_v12  ;;  %v356_v27 = vor.u32 %v355_v37, %v351_v17  ;;  %v348_v36 = vunpack.c.l.b16 %v1900_v29  ;;  %v685_v42 = vrot.slane %v509_v38, 3 }
  0x52   : > { %v2861_v30 = vsel %vm516_vm1, %v662_v23, %v665_v56  ;;  %v515_v63 = vor.u32 %v513_v26, %v511_v14  ;;  %v684_v41 = vrot.slane %v513_v26, 2 }
  0x53   : > { %v2864_v19 = vsel %vm516_vm1, %v674_v24, %v682_v25  ;;  %v2867_v31 = vsel %vm220_vm0, %v356_v27, %v360_v35  ;;  %v349_v40 = vpack.c.b16 %v348_v36, %v348_v36 }
  0x54   : > { %v689_v21 = vshrl.u32 %v515_v63, 16  ;;  %v692_v33 = vshll.u32 %v515_v63, 16  ;;  %v686_v49 = vor.u32 %v685_v42, %v684_v41 }
  0x55   : > { %v366_v14 = vshll.u32 %v349_v40, 16 }
  0x56   : > { %v691_v44 = vrot.slane %v689_v21, 2  ;;  %v694_v45 = vrot.slane %v692_v33, 3  ;;  %v2874_v57 = vsel %vm516_vm1, %v665_v56, %v686_v49 }
  0x57   : > { %v368_v55 = vrot.slane %v366_v14, 1 }
  0x58   : > { %v695_v35 = vor.u32 %v694_v45, %v691_v44 }
  0x59   : > { %v2881_v58 = vsel %vm220_vm0, %v2825_v62, %v368_v55 }
  0x5a   : > { %v2877_v59 = vsel %vm516_vm1, %v682_v25, %v695_v35 }
  0x5b   : > { %853 = vmatmul.bf16.gmra.mxu0 %v2751_v20 }
  0x5c   : > { %902 = vmatmul.bf16.gmra.mxu1 %v2754_v18 }
  0x5d   : > { %1047 = vmatmul.bf16.gmra.mxu2 %v2618_v28 }
  0x5e   : > { %1096 = vmatmul.bf16.gmra.mxu3 %v2759_v22 }
  0x6b   : > { %858 = vmatmul.bf16.gmra.mxu0 %v2790_v2 }
  0x6c   : > { %907 = vmatmul.bf16.gmra.mxu1 %v2793_v4 }
  0x6d   : > { %1052 = vmatmul.bf16.gmra.mxu2 %v2702_v32 }
  0x6e   : > { %1101 = vmatmul.bf16.gmra.mxu3 %v2796_v7 }
  0x7b   : > { %863 = vmatmul.bf16.gmra.mxu0 %v2828_v46 }
  0x7c   : > { %912 = vmatmul.bf16.gmra.mxu1 %v2831_v47 }
  0x7d   : > { %1057 = vmatmul.bf16.gmra.mxu2 %v2720_v54 }
  0x7e   : > { %1106 = vmatmul.bf16.gmra.mxu3 %v2836_v50 }
  0x8b   : > { %868 = vmatmul.bf16.gmra.mxu0 %v2861_v30 }
  0x8c   : > { %917 = vmatmul.bf16.gmra.mxu1 %v2864_v19 }
  0x8d   : > { %1062 = vmatmul.bf16.gmra.mxu2 %v2782_v52 }
  0x8e   : > { %1111 = vmatmul.bf16.gmra.mxu3 %v2867_v31 }
  0x9b   : > { %873 = vmatmul.bf16.gmra.mxu0 %v2874_v57 }
  0x9c   : > { %922 = vmatmul.bf16.gmra.mxu1 %v2877_v59 }
  0x9d   : > { %1067 = vmatmul.bf16.gmra.mxu2 %v2799_v9 }
  0x9e   : > { %1116 = vmatmul.bf16.gmra.mxu3 %v2881_v58 }
  0xa8   : > { %v839_v38 = vpop.f32.mrf.mxu0 }
  0xa9   : > { %v888_v53 = vpop.f32.mrf.mxu1 }
  0xaa   : > { %v889_v34 = vadd.f32 %v888_v53, %v839_v38  ;;  %v2918_v38 = vld [vmem:[%s2505_s20 + $0x50] sm:$0xff]  }
  0xab   : > { %1302 = vmatmul.bf16.vlgmr.msrb.gmra.mxu0 %v2584_v3  ;;  %v2181_v53 = vld [vmem:[%s2505_s20 + $0x50] sm:$0x8] }
  0xac   : > { %1351 = vmatmul.bf16.vlgmr.msrb.gmra.mxu1 %v2717_v51 }
  0xad   : > { %1619 = vmatmul.bf16.vlgmr.msrb.gmra.mxu2 %v2710_v16 }
  0xae   : > { %1668 = vmatmul.bf16.vlgmr.msrb.gmra.mxu3 %v2713_v48 }
  0xb0   : > { %v1033_v62 = vpop.f32.mrf.mxu2  ;;  %v841_v60 = vpop.f32.mrf.mxu0 }
  0xb1   : > { %v1082_v39 = vpop.f32.mrf.mxu3  ;;  %v1034_v43 = vadd.f32 %v1033_v62, %v889_v34  ;;  %v890_v61 = vpop.f32.mrf.mxu1 }
  0xb2   : > { %v891_v0 = vadd.f32 %v890_v61, %v841_v60 }
  0xb3   : > { %v2891_v1 = vadd.f32 %v1082_v39, %v1034_v43 }
  0xb8   : > { %v1035_v5 = vpop.f32.mrf.mxu2  ;;  %v844_v13 = vpop.f32.mrf.mxu0 }
  0xb9   : > { %v1084_v6 = vpop.f32.mrf.mxu3  ;;  %v1036_v8 = vadd.f32 %v1035_v5, %v891_v0  ;;  %v893_v11 = vpop.f32.mrf.mxu1  ;;  %v2926_v5 = vld [vmem:[%s2505_s20 + $0x58] sm:$0xff] }
  0xba   : > { %v894_v3 = vadd.f32 %v893_v11, %v844_v13  ;;  %v1151_v13 = vshll.u32 %v2926_v5, 16 }
  0xbb   : > { %v2893_v15 = vadd.f32 %v1084_v6, %v1036_v8  ;;  %1307 = vmatmul.bf16.gmra.mxu0 %v2618_v28 }
  0xbc   : > { %1356 = vmatmul.bf16.gmra.mxu1 %v2759_v22 }
  0xbd   : > { %1624 = vmatmul.bf16.gmra.mxu2 %v2751_v20 }
  0xbe   : > { %1673 = vmatmul.bf16.gmra.mxu3 %v2754_v18 }
  0xc0   : > { %v1038_v16 = vpop.f32.mrf.mxu2  ;;  %v846_v12 = vpop.f32.mrf.mxu0 }
  0xc1   : > { %v1087_v48 = vpop.f32.mrf.mxu3  ;;  %v1039_v51 = vadd.f32 %v1038_v16, %v894_v3  ;;  %v895_v10 = vpop.f32.mrf.mxu1 }
  0xc2   : > { %v896_v17 = vadd.f32 %v895_v10, %v846_v12  ;;  %v2179_v10 = vld [vmem:[%s2505_s20 + $0x50] sm:$0xc] }
  0xc3   : > { %v2899_v37 = vadd.f32 %v1087_v48, %v1039_v51 }
  0xc8   : > { %v1040_v56 = vpop.f32.mrf.mxu2  ;;  %v849_v25 = vpop.f32.mrf.mxu0 }
  0xc9   : > { %v1089_v23 = vpop.f32.mrf.mxu3  ;;  %v1041_v24 = vadd.f32 %v1040_v56, %v896_v17  ;;  %v898_v26 = vpop.f32.mrf.mxu1 }
  0xca   : > { %v899_v28 = vadd.f32 %v898_v26, %v849_v25 }
  0xcb   : > { %v2901_v27 = vadd.f32 %v1089_v23, %v1041_v24  ;;  %1312 = vmatmul.bf16.gmra.mxu0 %v2702_v32  ;;  %v1413_v24 = vunpack.c.l.b16 %v2179_v10 }
  0xcc   : > { %1361 = vmatmul.bf16.gmra.mxu1 %v2796_v7 }
  0xcd   : > { %1629 = vmatmul.bf16.gmra.mxu2 %v2790_v2 }
  0xce   : > { %1678 = vmatmul.bf16.gmra.mxu3 %v2793_v4 }
  0xd0   : > { %v1043_v20 = vpop.f32.mrf.mxu2  ;;  %v851_v29 = vpop.f32.mrf.mxu0 }
  0xd1   : > { %v1092_v18 = vpop.f32.mrf.mxu3  ;;  %v1044_v22 = vadd.f32 %v1043_v20, %v899_v28  ;;  %v900_v63 = vpop.f32.mrf.mxu1 }
  0xd2   : > { %v901_v36 = vadd.f32 %v900_v63, %v851_v29 }
  0xd3   : > { %v2907_v21 = vadd.f32 %v1092_v18, %v1044_v22 }
  0xd8   : > { %v1045_v33 = vpop.f32.mrf.mxu2  ;;  %v854_v42 = vpop.f32.mrf.mxu0 }
  0xd9   : > { %v1094_v40 = vpop.f32.mrf.mxu3  ;;  %v1046_v41 = vadd.f32 %v1045_v33, %v901_v36  ;;  %v903_v32 = vpop.f32.mrf.mxu1 }
  0xda   : > { %v904_v7 = vadd.f32 %v903_v32, %v854_v42  ;;  %v1146_v32 = vshll.u32 %v2918_v38, 16 }
  0xdb   : > { %v2909_v44 = vadd.f32 %v1094_v40, %v1046_v41  ;;  %1317 = vmatmul.bf16.gmra.mxu0 %v2720_v54  ;;  %v2361_v54 = vunpack.c.h.b16 %v2918_v38 }
  0xdc   : > { %1366 = vmatmul.bf16.gmra.mxu1 %v2836_v50  ;;  %v1418_v50 = vunpack.c.l.b16 %v2181_v53 }
  0xdd   : > { %1634 = vmatmul.bf16.gmra.mxu2 %v2828_v46  ;;  %v2180_v46 = vld [vmem:[%s2505_s20 + $0x60] sm:$0x7]  ;;  %v1415_v22 = vpack.c.b16 %v2361_v54, %v1413_v24 }
  0xde   : > { %1683 = vmatmul.bf16.gmra.mxu3 %v2831_v47  ;;  %v1419_v61 = vpack.c.b16 %v2361_v54, %v1418_v50  ;;  %v1414_v6 = vunpack.c.l.b16 %v2180_v46  ;;  %v1144_v54 = vshrl.u32 %v2918_v38, 16  ;;  %v1148_v50 = vrot.slane %v1146_v32, 1 }
  0xe0   : > { %v1048_v2 = vpop.f32.mrf.mxu2  ;;  %v856_v14 = vpop.f32.mrf.mxu0  ;;  %v1423_v8 = vshll.u32 %v1419_v61, 16  ;;  %v2933_v11 = vpack.c.b16 %v1414_v6, %v1414_v6  ;;  %v1421_v56 = vshrl.u32 %v1419_v61, 16 }
  0xe1   : > { %v1097_v4 = vpop.f32.mrf.mxu3  ;;  %v1049_v45 = vadd.f32 %v1048_v2, %v904_v7  ;;  %v905_v49 = vpop.f32.mrf.mxu1  ;;  %v1437_v7 = vshrl.u32 %v1415_v22, 16  ;;  %v1440_v2 = vshll.u32 %v1415_v22, 16 }
  0xe2   : > { %v906_v35 = vadd.f32 %v905_v49, %v856_v14  ;;  %v1433_v10 = vshrl.u32 %v2933_v11, 16 }
  0xe3   : > { %v2915_v55 = vadd.f32 %v1097_v4, %v1049_v45 }
  0xe8   : > { %v1050_v34 = vpop.f32.mrf.mxu2  ;;  %v859_v47 = vpop.f32.mrf.mxu0 }
  0xe9   : > { %v1099_v62 = vpop.f32.mrf.mxu3  ;;  %v1051_v39 = vadd.f32 %v1050_v34, %v906_v35  ;;  %v908_v43 = vpop.f32.mrf.mxu1  ;;  %v1442_v34 = vrot.slane %v1440_v2, 3 }
  0xea   : > { %v909_v60 = vadd.f32 %v908_v43, %v859_v47  ;;  %v1445_v47 = vrot.slane %v1151_v13, 3 }
  0xeb   : > { %v2923_v0 = vadd.f32 %v1099_v62, %v1051_v39  ;;  %1322 = vmatmul.bf16.gmra.mxu0 %v2782_v52  ;;  %v1425_v52 = vrot.slane %v1423_v8, 1  ;;  %v1149_v8 = vor.u32 %v1148_v50, %v1144_v54 }
  0xec   : > { %1371 = vmatmul.bf16.gmra.mxu1 %v2867_v31  ;;  %v1153_v31 = vrot.slane %v1151_v13, 1 }
  0xed   : > { %1639 = vmatmul.bf16.gmra.mxu2 %v2861_v30  ;;  %v1155_v30 = vshrl.u32 %v2926_v5, 16  ;;  %v1426_v25 = vor.u32 %v1425_v52, %v1421_v56 }
  0xee   : > { %1688 = vmatmul.bf16.gmra.mxu3 %v2864_v19  ;;  %v1429_v19 = vshll.u32 %v2933_v11, 16  ;;  %v1154_v24 = vsel %vm220_vm0, %v1149_v8, %v1153_v31 }
  0xef   : > { %v2940_v26 = vor.u32 %v1155_v30, %v1153_v31  ;;  %v1427_v40 = vsel %vm220_vm0, %v1426_v25, %v1153_v31  ;;  %v1444_v39 = vrot.slane %v1155_v30, 2 }
  0xf0   : > { %v1053_v3 = vpop.f32.mrf.mxu2  ;;  %v861_v51 = vpop.f32.mrf.mxu0  ;;  %v1431_v28 = vrot.slane %v1429_v19, 1  ;;  %v1449_v4 = vshrl.u32 %v1427_v40, 16  ;;  %v1452_v45 = vshll.u32 %v1427_v40, 16 }
  0xf1   : > { %v1102_v16 = vpop.f32.mrf.mxu3  ;;  %v1054_v48 = vadd.f32 %v1053_v3, %v909_v60  ;;  %v910_v12 = vpop.f32.mrf.mxu1 }
  0xf2   : > { %v911_v17 = vadd.f32 %v910_v12, %v861_v51  ;;  %v1432_v42 = vsel %vm220_vm0, %v2940_v26, %v1431_v28  ;;  %v2078_v12 = vld [vmem:[%s2505_s20 + $0x60] sm:$0x1] }
  0xf3   : > { %v2936_v23 = vadd.f32 %v1102_v16, %v1054_v48  ;;  %v1457_v14 = vshrl.u32 %v1432_v42, 16  ;;  %v1460_v49 = vshll.u32 %v1432_v42, 16  ;;  %v1446_v16 = vor.u32 %v1445_v47, %v1444_v39 }
  0xf4   : > { %v1141_v25 = vunpack.c.l.b16 %v2078_v12 }
  0xf5   : > { %v1459_v60 = vrot.slane %v1457_v14, 2  ;;  %v1462_v61 = vrot.slane %v1460_v49, 3 }
  0xf7   : > { %v1463_v51 = vor.u32 %v1462_v61, %v1459_v60 }
  0xf8   : > { %v1055_v20 = vpop.f32.mrf.mxu2  ;;  %v864_v63 = vpop.f32.mrf.mxu0 }
  0xf9   : > { %v1104_v18 = vpop.f32.mrf.mxu3  ;;  %v1056_v29 = vadd.f32 %v1055_v20, %v911_v17  ;;  %v913_v36 = vpop.f32.mrf.mxu1 }
  0xfa   : > { %v914_v33 = vadd.f32 %v913_v36, %v864_v63  ;;  %v1142_v36 = vpack.c.b16 %v1141_v25, %v1141_v25 }
  0xfb   : > { %v2945_v41 = vadd.f32 %v1104_v18, %v1056_v29  ;;  %1327 = vmatmul.bf16.gmra.mxu0 %v2799_v9  ;;  %v1439_v9 = vrot.slane %v1437_v7, 2  ;;  %v1435_v29 = vor.u32 %v1433_v10, %v1431_v28  ;;  %v1466_v28 = vrot.slane %v1429_v19, 3 }
  0xfc   : > { %1376 = vmatmul.bf16.gmra.mxu1 %v2881_v58 }
  0xfd   : > { %1644 = vmatmul.bf16.gmra.mxu2 %v2874_v57  ;;  %v1451_v57 = vrot.slane %v1449_v4, 2  ;;  %v1443_v3 = vor.u32 %v1442_v34, %v1439_v9  ;;  %v1473_v40 = vshll.u32 %v1435_v29, 16  ;;  %v1159_v4 = vshll.u32 %v1142_v36, 16 }
  0xfe   : > { %1693 = vmatmul.bf16.gmra.mxu3 %v2877_v59  ;;  %v1454_v59 = vrot.slane %v1452_v45, 3  ;;  %v1465_v45 = vrot.slane %v1433_v10, 2 }
  0xff   : > { %v1447_v18 = vsel %vm516_vm1, %v1443_v3, %v1446_v16 }
 0x100   : > { %v1058_v35 = vpop.f32.mrf.mxu2  ;;  %v866_v62 = vpop.f32.mrf.mxu0  ;;  %v1455_v48 = vor.u32 %v1454_v59, %v1451_v57  ;;  %v1467_v54 = vor.u32 %v1466_v28, %v1465_v45 }
 0x101   : > { %v1107_v53 = vpop.f32.mrf.mxu3  ;;  %v1059_v58 = vadd.f32 %v1058_v35, %v914_v33  ;;  %v915_v46 = vpop.f32.mrf.mxu1  ;;  %v1470_v33 = vshrl.u32 %v1435_v29, 16  ;;  %v1475_v35 = vrot.slane %v1473_v40, 3  ;;  %v2990_v40 = vld [vmem:[%s3058_s3] ss:$0 sm:$0xff] }
 0x102   : > { %v916_v43 = vadd.f32 %v915_v46, %v866_v62  ;;  %v1464_v22 = vsel %vm516_vm1, %v1455_v48, %v1463_v51  ;;  %v1468_v57 = vsel %vm516_vm1, %v1446_v16, %v1467_v54 }
 0x103   : > { %v2955_v6 = vadd.f32 %v1107_v53, %v1059_v58  ;;  %v1472_v49 = vrot.slane %v1470_v33, 2  ;;  %v1161_v53 = vrot.slane %v1159_v4, 1 }
 0x105   : > { %v1476_v50 = vor.u32 %v1475_v35, %v1472_v49  ;;  %v1162_v39 = vsel %vm220_vm0, %v2940_v26, %v1161_v53 }
 0x107   : > { %v1477_v11 = vsel %vm516_vm1, %v1463_v51, %v1476_v50 }
 0x108   : > { %v1060_v17 = vpop.f32.mrf.mxu2  ;;  %v869_v30 = vpop.f32.mrf.mxu0 }
 0x109   : > { %v1109_v56 = vpop.f32.mrf.mxu3  ;;  %v1061_v52 = vadd.f32 %v1060_v17, %v916_v43  ;;  %v918_v13 = vpop.f32.mrf.mxu1 }
 0x10a   : > { %v919_v20 = vadd.f32 %v918_v13, %v869_v30 }
 0x10b   : > { %v2962_v63 = vadd.f32 %v1109_v56, %v1061_v52  ;;  %1332 = vmatmul.bf16.gmra.mxu0 %v2918_v38 }
 0x10c   : > { %1381 = vmatmul.bf16.gmra.mxu1 %v1154_v24 }
 0x10d   : > { %1649 = vmatmul.bf16.gmra.mxu2 %v1447_v18  ;;  %v2984_v18 = vld [vmem:[%s3057_s2] ss:$0 sm:$0xff] }
 0x10e   : > { %1698 = vmatmul.bf16.gmra.mxu3 %v1464_v22 }
 0x110   : > { %v1063_v42 = vpop.f32.mrf.mxu2  ;;  %v871_v7 = vpop.f32.mrf.mxu0 }
 0x111   : > { %v1112_v32 = vpop.f32.mrf.mxu3  ;;  %v1064_v31 = vadd.f32 %v1063_v42, %v919_v20  ;;  %v920_v2 = vpop.f32.mrf.mxu1 }
 0x112   : > { %v921_v14 = vadd.f32 %v920_v2, %v871_v7 }
 0x113   : > { %v2967_v38 = vadd.f32 %v1112_v32, %v1064_v31 }
 0x118   : > { %v1065_v9 = vpop.f32.mrf.mxu2  ;;  %v874_v62 = vpop.f32.mrf.mxu0 }
 0x119   : > { %v1114_v34 = vpop.f32.mrf.mxu3  ;;  %v1066_v58 = vadd.f32 %v1065_v9, %v921_v14  ;;  %v923_v46 = vpop.f32.mrf.mxu1 }
 0x11a   : > { %v924_v47 = vadd.f32 %v923_v46, %v874_v62 }
 0x11b   : > { %v2973_v19 = vadd.f32 %v1114_v34, %v1066_v58  ;;  %1337 = vmatmul.bf16.gmra.mxu0 %v2926_v5 }
 0x11c   : > { %1386 = vmatmul.bf16.gmra.mxu1 %v1162_v39 }
 0x11d   : > { %1654 = vmatmul.bf16.gmra.mxu2 %v1468_v57 }
 0x11e   : > { %1703 = vmatmul.bf16.gmra.mxu3 %v1477_v11 }
 0x120   : > { %v1068_v43 = vpop.f32.mrf.mxu2  ;;  %v876_v61 = vpop.f32.mrf.mxu0 }
 0x121   : > { %v1117_v59 = vpop.f32.mrf.mxu3  ;;  %v1069_v60 = vadd.f32 %v1068_v43, %v924_v47  ;;  %v925_v8 = vpop.f32.mrf.mxu1 }
 0x122   : > { %v926_v3 = vadd.f32 %v925_v8, %v876_v61 }
 0x123   : > { %v2976_v48 = vadd.f32 %v1117_v59, %v1069_v60 }
 0x128   : > { %v1070_v26 = vpop.f32.mrf.mxu2  ;;  %v1303_v10 = vpop.f32.mrf.mxu0 }
 0x129   : > { %v1119_v12 = vpop.f32.mrf.mxu3  ;;  %v1071_v16 = vadd.f32 %v1070_v26, %v926_v3  ;;  %v1352_v51 = vpop.f32.mrf.mxu1 }
 0x12a   : > { %v1353_v56 = vadd.f32 %v1352_v51, %v1303_v10 }
 0x12b   : > { %v2978_v17 = vadd.f32 %v1119_v12, %v1071_v16 }
 0x12c   : > { %v1392_v25 = vadd.f32 %v1353_v56, %v2891_v1 }
 0x130   : > { %v1620_v5 = vpop.f32.mrf.mxu2  ;;  %v1305_v13 = vpop.f32.mrf.mxu0 }
 0x131   : > { %v1669_v52 = vpop.f32.mrf.mxu3  ;;  %v1354_v24 = vpop.f32.mrf.mxu1 }
 0x132   : > { %v1670_v30 = vadd.f32 %v1669_v52, %v1620_v5  ;;  %v1355_v22 = vadd.f32 %v1354_v24, %v1305_v13 }
 0x134   : > { %v1709_v20 = vadd.f32 %v1670_v30, %v1392_v25  ;;  %v1393_v42 = vadd.f32 %v1355_v22, %v2893_v15 }
 0x136   : > { %v1728_v33 = vmul.f32 %v2984_v18, %v1709_v20 }
 0x138   : > { %v1622_v29 = vpop.f32.mrf.mxu2  ;;  %v1308_v1 = vpop.f32.mrf.mxu0  ;;  %v1747_v2 = vadd.f32 %v2990_v40, %v1728_v33 }
 0x139   : > { %v1671_v36 = vpop.f32.mrf.mxu3  ;;  %v1357_v31 = vpop.f32.mrf.mxu1 }
 0x13a   : > { %v1672_v32 = vadd.f32 %v1671_v36, %v1622_v29  ;;  %v1358_v14 = vadd.f32 %v1357_v31, %v1308_v1  ;;  %v1763_v35 = vmax.f32 %v1747_v2, 0.0 }
 0x13c   : > { %v1710_v7 = vadd.f32 %v1672_v32, %v1393_v42  ;;  %v1394_v34 = vadd.f32 %v1358_v14, %v2899_v37 }
 0x13e   : > { %v1729_v4 = vmul.f32 %v2984_v18, %v1710_v7 }
 0x140   : > { %v1748_v45 = vadd.f32 %v2990_v40, %v1729_v4  ;;  %v1625_v28 = vpop.f32.mrf.mxu2  ;;  %v1310_v50 = vpop.f32.mrf.mxu0 }
 0x141   : > { %v1674_v49 = vpop.f32.mrf.mxu3  ;;  %v1359_v9 = vpop.f32.mrf.mxu1 }
 0x142   : > { %v1764_v53 = vmax.f32 %v1748_v45, 0.0  ;;  %v1675_v54 = vadd.f32 %v1674_v49, %v1625_v28  ;;  %v1360_v62 = vadd.f32 %v1359_v9, %v1310_v50 }
 0x144   : > { %v2365_v15 = vpack.c.bf16 %v1764_v53, %v1763_v35  ;;  %v1711_v58 = vadd.f32 %v1675_v54, %v1394_v34  ;;  %v1395_v57 = vadd.f32 %v1360_v62, %v2901_v27 }
 0x146   : > { %2366 = vst [vmem:[%s3000_s13] sm:$0xff] %v2365_v15   ;;  %v1730_v47 = vmul.f32 %v2984_v18, %v1711_v58 }
 0x148   : > { %v1627_v46 = vpop.f32.mrf.mxu2  ;;  %v1313_v43 = vpop.f32.mrf.mxu0  ;;  %v1749_v61 = vadd.f32 %v2990_v40, %v1730_v47 }
 0x149   : > { %v1676_v39 = vpop.f32.mrf.mxu3  ;;  %v1362_v59 = vpop.f32.mrf.mxu1 }
 0x14a   : > { %v1677_v11 = vadd.f32 %v1676_v39, %v1627_v46  ;;  %v1363_v3 = vadd.f32 %v1362_v59, %v1313_v43  ;;  %v1765_v16 = vmax.f32 %v1749_v61, 0.0 }
 0x14c   : > { %v1712_v60 = vadd.f32 %v1677_v11, %v1395_v57  ;;  %v1396_v52 = vadd.f32 %v1363_v3, %v2907_v21 }
 0x14e   : > { %v1731_v8 = vmul.f32 %v2984_v18, %v1712_v60 }
 0x150   : > { %v1750_v37 = vadd.f32 %v2990_v40, %v1731_v8  ;;  %v1630_v26 = vpop.f32.mrf.mxu2  ;;  %v1315_v56 = vpop.f32.mrf.mxu0 }
 0x151   : > { %v1679_v12 = vpop.f32.mrf.mxu3  ;;  %v1364_v5 = vpop.f32.mrf.mxu1 }
 0x152   : > { %v1766_v10 = vmax.f32 %v1750_v37, 0.0  ;;  %v1680_v51 = vadd.f32 %v1679_v12, %v1630_v26  ;;  %v1365_v13 = vadd.f32 %v1364_v5, %v1315_v56 }
 0x154   : > { %v2370_v27 = vpack.c.bf16 %v1766_v10, %v1765_v16  ;;  %v1713_v30 = vadd.f32 %v1680_v51, %v1396_v52  ;;  %v1397_v22 = vadd.f32 %v1365_v13, %v2909_v44 }
 0x156   : > { %2404 = vst [vmem:[%s3000_s13 + $0x8] sm:$0xff] %v2370_v27   ;;  %v1732_v20 = vmul.f32 %v2984_v18, %v1713_v30 }
 0x158   : > { %v1632_v24 = vpop.f32.mrf.mxu2  ;;  %v1318_v36 = vpop.f32.mrf.mxu0  ;;  %v1751_v32 = vadd.f32 %v2990_v40, %v1732_v20 }
 0x159   : > { %v1681_v25 = vpop.f32.mrf.mxu3  ;;  %v1367_v33 = vpop.f32.mrf.mxu1 }
 0x15a   : > { %v1682_v29 = vadd.f32 %v1681_v25, %v1632_v24  ;;  %v1368_v31 = vadd.f32 %v1367_v33, %v1318_v36  ;;  %v1767_v4 = vmax.f32 %v1751_v32, 0.0 }
 0x15c   : > { %v1714_v42 = vadd.f32 %v1682_v29, %v1397_v22  ;;  %v1398_v35 = vadd.f32 %v1368_v31, %v2915_v55 }
 0x15e   : > { %v1733_v1 = vmul.f32 %v2984_v18, %v1714_v42 }
 0x160   : > { %v1752_v21 = vadd.f32 %v2990_v40, %v1733_v1  ;;  %v1635_v7 = vpop.f32.mrf.mxu2  ;;  %v1320_v28 = vpop.f32.mrf.mxu0 }
 0x161   : > { %v1684_v2 = vpop.f32.mrf.mxu3  ;;  %v1369_v49 = vpop.f32.mrf.mxu1 }
 0x162   : > { %v1768_v45 = vmax.f32 %v1752_v21, 0.0  ;;  %v1685_v14 = vadd.f32 %v1684_v2, %v1635_v7  ;;  %v1370_v54 = vadd.f32 %v1369_v49, %v1320_v28 }
 0x164   : > { %v2375_v44 = vpack.c.bf16 %v1768_v45, %v1767_v4  ;;  %v1715_v53 = vadd.f32 %v1685_v14, %v1398_v35  ;;  %v1399_v34 = vadd.f32 %v1370_v54, %v2923_v0 }
 0x166   : > { %2405 = vst [vmem:[%s3000_s13 + $0x10] sm:$0xff] %v2375_v44   ;;  %v1734_v15 = vmul.f32 %v2984_v18, %v1715_v53 }
 0x168   : > { %v1637_v50 = vpop.f32.mrf.mxu2  ;;  %v1323_v62 = vpop.f32.mrf.mxu0  ;;  %v1753_v47 = vadd.f32 %v2990_v40, %v1734_v15 }
 0x169   : > { %v1686_v9 = vpop.f32.mrf.mxu3  ;;  %v1372_v46 = vpop.f32.mrf.mxu1 }
 0x16a   : > { %v1687_v58 = vadd.f32 %v1686_v9, %v1637_v50  ;;  %v1373_v11 = vadd.f32 %v1372_v46, %v1323_v62  ;;  %v1769_v60 = vmax.f32 %v1753_v47, 0.0 }
 0x16c   : > { %v1716_v39 = vadd.f32 %v1687_v58, %v1399_v34  ;;  %v1400_v26 = vadd.f32 %v1373_v11, %v2936_v23 }
 0x16e   : > { %v1735_v57 = vmul.f32 %v2984_v18, %v1716_v39 }
 0x170   : > { %v1754_v55 = vadd.f32 %v2990_v40, %v1735_v57  ;;  %v1640_v43 = vpop.f32.mrf.mxu2  ;;  %v1325_v37 = vpop.f32.mrf.mxu0 }
 0x171   : > { %v1689_v59 = vpop.f32.mrf.mxu3  ;;  %v1374_v3 = vpop.f32.mrf.mxu1 }
 0x172   : > { %v1770_v61 = vmax.f32 %v1754_v55, 0.0  ;;  %v1690_v8 = vadd.f32 %v1689_v59, %v1640_v43  ;;  %v1375_v16 = vadd.f32 %v1374_v3, %v1325_v37 }
 0x174   : > { %v2380_v0 = vpack.c.bf16 %v1770_v61, %v1769_v60  ;;  %v1717_v12 = vadd.f32 %v1690_v8, %v1400_v26  ;;  %v1401_v5 = vadd.f32 %v1375_v16, %v2945_v41 }
 0x176   : > { %2406 = vst [vmem:[%s3000_s13 + $0x18] sm:$0xff] %v2380_v0   ;;  %v1736_v56 = vmul.f32 %v2984_v18, %v1717_v12 }
 0x178   : > { %v1642_v10 = vpop.f32.mrf.mxu2  ;;  %v1328_v52 = vpop.f32.mrf.mxu0  ;;  %v1755_v24 = vadd.f32 %v2990_v40, %v1736_v56 }
 0x179   : > { %v1691_v51 = vpop.f32.mrf.mxu3  ;;  %v1377_v30 = vpop.f32.mrf.mxu1 }
 0x17a   : > { %v1692_v27 = vadd.f32 %v1691_v51, %v1642_v10  ;;  %v1378_v20 = vadd.f32 %v1377_v30, %v1328_v52  ;;  %v1771_v36 = vmax.f32 %v1755_v24, 0.0 }
 0x17c   : > { %v1718_v13 = vadd.f32 %v1692_v27, %v1401_v5  ;;  %v1402_v21 = vadd.f32 %v1378_v20, %v2955_v6 }
 0x17e   : > { %v1737_v25 = vmul.f32 %v2984_v18, %v1718_v13 }
 0x180   : > { %v1756_v23 = vadd.f32 %v2990_v40, %v1737_v25  ;;  %v1645_v22 = vpop.f32.mrf.mxu2  ;;  %v1330_v32 = vpop.f32.mrf.mxu0 }
 0x181   : > { %v1694_v29 = vpop.f32.mrf.mxu3  ;;  %v1379_v1 = vpop.f32.mrf.mxu1 }
 0x182   : > { %v1772_v33 = vmax.f32 %v1756_v23, 0.0  ;;  %v1695_v42 = vadd.f32 %v1694_v29, %v1645_v22  ;;  %v1380_v7 = vadd.f32 %v1379_v1, %v1330_v32 }
 0x184   : > { %v2385_v41 = vpack.c.bf16 %v1772_v33, %v1771_v36  ;;  %v1719_v31 = vadd.f32 %v1695_v42, %v1402_v21  ;;  %v1403_v14 = vadd.f32 %v1380_v7, %v2962_v63 }
 0x186   : > { %2407 = vst [vmem:[%s3000_s13 + $0x20] sm:$0xff] %v2385_v41   ;;  %v1738_v45 = vmul.f32 %v2984_v18, %v1719_v31 }
 0x188   : > { %v1647_v2 = vpop.f32.mrf.mxu2  ;;  %v1333_v49 = vpop.f32.mrf.mxu0  ;;  %v1757_v53 = vadd.f32 %v2990_v40, %v1738_v45 }
 0x189   : > { %v1696_v4 = vpop.f32.mrf.mxu3  ;;  %v1382_v44 = vpop.f32.mrf.mxu1 }
 0x18a   : > { %v1697_v28 = vadd.f32 %v1696_v4, %v1647_v2  ;;  %v1383_v50 = vadd.f32 %v1382_v44, %v1333_v49  ;;  %v1773_v34 = vmax.f32 %v1757_v53, 0.0 }
 0x18c   : > { %v1720_v35 = vadd.f32 %v1697_v28, %v1403_v14  ;;  %v1404_v47 = vadd.f32 %v1383_v50, %v2967_v38 }
 0x18e   : > { %v1739_v54 = vmul.f32 %v2984_v18, %v1720_v35 }
 0x190   : > { %v1758_v6 = vadd.f32 %v2990_v40, %v1739_v54  ;;  %v1650_v9 = vpop.f32.mrf.mxu2  ;;  %v1335_v46 = vpop.f32.mrf.mxu0 }
 0x191   : > { %v1699_v15 = vpop.f32.mrf.mxu3  ;;  %v1384_v39 = vpop.f32.mrf.mxu1 }
 0x192   : > { %v1774_v58 = vmax.f32 %v1758_v6, 0.0  ;;  %v1700_v62 = vadd.f32 %v1699_v15, %v1650_v9  ;;  %v1385_v55 = vadd.f32 %v1384_v39, %v1335_v46 }
 0x194   : > { %v2390_v63 = vpack.c.bf16 %v1774_v58, %v1773_v34  ;;  %v1721_v57 = vadd.f32 %v1700_v62, %v1404_v47  ;;  %v1405_v60 = vadd.f32 %v1385_v55, %v2973_v19 }
 0x196   : > { %2408 = vst [vmem:[%s3000_s13 + $0x28] sm:$0xff] %v2390_v63   ;;  %v1740_v59 = vmul.f32 %v2984_v18, %v1721_v57 }
 0x198   : > { %v1652_v11 = vpop.f32.mrf.mxu2  ;;  %v1338_v8 = vpop.f32.mrf.mxu0  ;;  %v1759_v0 = vadd.f32 %v2990_v40, %v1740_v59 }
 0x199   : > { %v1701_v43 = vpop.f32.mrf.mxu3  ;;  %v1387_v37 = vpop.f32.mrf.mxu1 }
 0x19a   : > { %v1702_v61 = vadd.f32 %v1701_v43, %v1652_v11  ;;  %v1388_v12 = vadd.f32 %v1387_v37, %v1338_v8  ;;  %v1775_v51 = vmax.f32 %v1759_v0, 0.0 }
 0x19c   : > { %v1722_v3 = vadd.f32 %v1702_v61, %v1405_v60  ;;  %v1406_v30 = vadd.f32 %v1388_v12, %v2976_v48 }
 0x19e   : > { %v1741_v26 = vmul.f32 %v2984_v18, %v1722_v3 }
 0x1a0   : > { %v1760_v38 = vadd.f32 %v2990_v40, %v1741_v26  ;;  %v1655_v16 = vpop.f32.mrf.mxu2  ;;  %v1340_v27 = vpop.f32.mrf.mxu0 }
 0x1a1   : > { %v1704_v10 = vpop.f32.mrf.mxu3  ;;  %v1389_v52 = vpop.f32.mrf.mxu1 }
 0x1a2   : > { %v1776_v56 = vmax.f32 %v1760_v38, 0.0  ;;  %v1705_v5 = vadd.f32 %v1704_v10, %v1655_v16  ;;  %v1390_v24 = vadd.f32 %v1389_v52, %v1340_v27 }
 0x1a4   : > { %v2395_v19 = vpack.c.bf16 %v1776_v56, %v1775_v51  ;;  %v1723_v13 = vadd.f32 %v1705_v5, %v1406_v30  ;;  %v1407_v22 = vadd.f32 %v1390_v24, %v2978_v17 }
 0x1a6   : > { %2409 = vst [vmem:[%s3000_s13 + $0x30] sm:$0xff] %v2395_v19   ;;  %v1742_v20 = vmul.f32 %v2984_v18, %v1723_v13 }
 0x1a8   : > { %v1657_v25 = vpop.f32.mrf.mxu2  ;;  %v1761_v33 = vadd.f32 %v2990_v40, %v1742_v20 }
 0x1a9   : > { %v1706_v23 = vpop.f32.mrf.mxu3 }
 0x1aa   : > { %v1707_v29 = vadd.f32 %v1706_v23, %v1657_v25  ;;  %v1777_v1 = vmax.f32 %v1761_v33, 0.0 }
 0x1ac   : > { %v1724_v36 = vadd.f32 %v1707_v29, %v1407_v22 }
 0x1ae   : > { %v1743_v42 = vmul.f32 %v2984_v18, %v1724_v36 }
 0x1b0   : > { %v1762_v32 = vadd.f32 %v2990_v40, %v1743_v42 }
 0x1b2   : > { %v1778_v48 = vmax.f32 %v1762_v32, 0.0 }
 0x1b4   : > { %v2400_v41 = vpack.c.bf16 %v1778_v48, %v1777_v1 }
 0x1b6   : > { %2410 = vst [vmem:[%s3000_s13 + $0x38] sm:$0xff] %v2400_v41  }
 0x1b7 PF: > { %s14_s15 = sadd.s32 1, %s2428_s15  }
 0x1b8   : > { %p11_p4 = scmp.ge.s32.totalorder %s14_s15, 4  }
 0x1ba   :  { %13 = sbr.rel (!%p11_p4) target bundleno = 1 (0x1), region = 73 }

// kernel: pallas_encoder.6
= control target key start
LH: loop header
LB: loop body
LE: loop exit
PB: predicated region body
PF: predicated region fallthrough
CT: control target
= control target key end

     0   :  { %s2927_s15 = smov 0   ;;  %s3479_s0 = inlined_call_operand.vmem [shape: bf16[2,3,24,256], index: 0, kind: input, shape index: {}]   ;;  %s3480_s1 = inlined_call_operand.vmem [shape: bf16[8,256,128], index: 1, kind: input, shape index: {}]   ;;  %s3481_s2 = inlined_call_operand.vmem [shape: f32[1,128], index: 2, kind: input, shape index: {}]   ;;  %s3482_s3 = inlined_call_operand.vmem [shape: f32[1,128], index: 3, kind: input, shape index: {}]   ;;  %s3483_s4 = inlined_call_operand.vmem [shape: bf16[2,32,128], index: 4, kind: output, shape index: {}]  }
   0x1 LB: > { %s1973_s16 = sadd.s32 4294967295, %s2900_s15   ;;  %p1977_p0 = scmp.ge.s32.totalorder %s2900_s15, 1  ;;  %s2900_s15 = sphi %s2927_s15, %s14_s15  }
   0x2   : > { %p162_p1 = scmp.lt.s32.totalorder %s2900_s15, 3 }
   0x4   : > { %p163_p2 = pnand %p1977_p0, %p162_p1 }
   0x5   : > { %p188_p3 = scmp.lt.s32.totalorder (!%p163_p2), %s1973_s16, 1 }
   0x6   : > { %166 = sbr.rel (%p163_p2) target bundleno = 311 (0x137), region = 36 }
   0xb   : > { %v2765_v0 = vld [vmem:[%s3480_s1 + $0xb8] sm:$0xff]  ;;  %v2764_v4 = vld [vmem:[%s3480_s1 + $0xb0] sm:$0xff]  ;;  %s3485_s16 = smov (!%p188_p3, %s1973_s16), 1  ;;  %v2763_v8 = vld [vmem:[%s3480_s1 + $0xa8] sm:$0xff]  ;;  %vm264_vm0 = vsmask.f32 7424 }
   0xc   : > { %v2773_v1 = vld [vmem:[%s3480_s1 + $0xf8] sm:$0xff]  ;;  %451 = vmatpush.bf16.msra.mxu0 %v2765_v0  ;;  %v2772_v5 = vld [vmem:[%s3480_s1 + $0xf0] sm:$0xff]  ;;  %s2883_s7 = smul.u32 72, %s3485_s16  ;;  %v2771_v9 = vld [vmem:[%s3480_s1 + $0xe8] sm:$0xff]  ;;  %vm637_vm1 = vsmask.f32 6400 }
   0xd   : > { %v2749_v2 = vld [vmem:[%s3480_s1 + $0x38] sm:$0xff]  ;;  %470 = vmatpush.bf16.msra.mxu1 %v2773_v1  ;;  %v2748_v6 = vld [vmem:[%s3480_s1 + $0x30] sm:$0xff]  ;;  %v2747_v10 = vld [vmem:[%s3480_s1 + $0x28] sm:$0xff]  ;;  %vm898_vm2 = vcmask 1045504   ;;  %s2741_s26 = sshll.u32 %s3485_s16, 4 }
   0xe   : > { %v2757_v3 = vld [vmem:[%s3480_s1 + $0x78] sm:$0xff]  ;;  %585 = vmatpush.bf16.msra.mxu2 %v2749_v2  ;;  %v2756_v7 = vld [vmem:[%s3480_s1 + $0x70] sm:$0xff]  ;;  %v2755_v11 = vld [vmem:[%s3480_s1 + $0x68] sm:$0xff]  ;;  %s2977_s20 = scalar_lea.vmem %s3479_s0, %s2883_s7  ;;  %s197_s29 = scalar_lea.vmem %s3483_s4, %s2741_s26 }
   0xf   : > { %604 = vmatpush.bf16.msra.mxu3 %v2757_v3  ;;  %v2762_v12 = vld [vmem:[%s3480_s1 + $0xa0] sm:$0xff]  ;;  %v201_v17 = vld [vmem:[%s2977_s20 + $0x8] sm:$0xff]  ;;  %v257_v19 = vld [vmem:[%s2977_s20 + $0x10] sm:$0x11] }
  0x10   : > { %452 = vmatpush.bf16.msra.mxu0 %v2764_v4  ;;  %v2770_v13 = vld [vmem:[%s3480_s1 + $0xe0] sm:$0xff]  ;;  %v2994_v21 = vunpack.c.l.b16 %v201_v17  ;;  %v2996_v22 = vunpack.c.h.b16 %v201_v17  ;;  %v260_v23 = vunpack.c.l.b16 %v257_v19  ;;  %v261_v24 = vunpack.c.h.b16 %v257_v19  ;;  %v2761_v25 = vld [vmem:[%s3480_s1 + $0x98] sm:$0xff]  ;;  %v2760_v33 = vld [vmem:[%s3480_s1 + $0x90] sm:$0xff] }
  0x11   : > { %471 = vmatpush.bf16.msra.mxu1 %v2772_v5  ;;  %v2746_v14 = vld [vmem:[%s3480_s1 + $0x20] sm:$0xff]  ;;  %v2769_v26 = vld [vmem:[%s3480_s1 + $0xd8] sm:$0xff]  ;;  %v2768_v34 = vld [vmem:[%s3480_s1 + $0xd0] sm:$0xff] }
  0x12   : > { %586 = vmatpush.bf16.msra.mxu2 %v2748_v6  ;;  %v200_v15 = vld [vmem:[%s2977_s20] sm:$0xff]  ;;  %v2745_v29 = vld [vmem:[%s3480_s1 + $0x18] sm:$0xff]  ;;  %v262_v31 = vpack.c.b16 %v260_v23, %v260_v23  ;;  %v263_v32 = vpack.c.b16 %v261_v24, %v261_v24  ;;  %v2744_v37 = vld [vmem:[%s3480_s1 + $0x10] sm:$0xff] }
  0x13   : > { %605 = vmatpush.bf16.msra.mxu3 %v2756_v7  ;;  %v2754_v16 = vld [vmem:[%s3480_s1 + $0x60] sm:$0xff]  ;;  %v207_v18 = vunpack.c.l.b16 %v200_v15  ;;  %v208_v20 = vunpack.c.h.b16 %v200_v15  ;;  %v2753_v30 = vld [vmem:[%s3480_s1 + $0x58] sm:$0xff]  ;;  %v2752_v38 = vld [vmem:[%s3480_s1 + $0x50] sm:$0xff] }
  0x14   : > { %453 = vmatpush.bf16.msra.mxu0 %v2763_v8  ;;  %v2759_v39 = vld [vmem:[%s3480_s1 + $0x88] sm:$0xff]  ;;  %v273_v41 = vshll.u32 %v262_v31, 16  ;;  %v285_v42 = vshll.u32 %v263_v32, 16  ;;  %v1981_v47 = vld [vmem:[%s2977_s20 + $0x18] sm:$0xff]  ;;  %v1982_v48 = vld [vmem:[%s2977_s20 + $0x20] sm:$0xff] }
  0x15   : > { %472 = vmatpush.bf16.msra.mxu1 %v2771_v9  ;;  %v3005_v27 = vpack.c.b16 %v2994_v21, %v207_v18  ;;  %v3008_v28 = vpack.c.b16 %v2996_v22, %v208_v20  ;;  %v2767_v40 = vld [vmem:[%s3480_s1 + $0xc8] sm:$0xff]  ;;  %v217_v53 = vunpack.c.l.b16 %v1981_v47  ;;  %v3046_v54 = vunpack.c.l.b16 %v1982_v48  ;;  %v2758_v55 = vld [vmem:[%s3480_s1 + $0x80] sm:$0xff]  ;;  %v2797_v0 = vld [vmem:[%s3480_s1 + $0x1b8] sm:$0xff] }
  0x16   : > { %587 = vmatpush.bf16.msra.mxu2 %v2747_v10  ;;  %v2743_v49 = vld [vmem:[%s3480_s1 + $0x8] sm:$0xff]  ;;  %v275_v51 = vrot.slane %v273_v41, 1  ;;  %v287_v52 = vrot.slane %v285_v42, 1  ;;  %v2766_v56 = vld [vmem:[%s3480_s1 + $0xc0] sm:$0xff]  ;;  %v218_v60 = vunpack.c.h.b16 %v1981_v47  ;;  %v3055_v61 = vunpack.c.h.b16 %v1982_v48  ;;  %v2805_v1 = vld [vmem:[%s3480_s1 + $0x1f8] sm:$0xff] }
  0x17   : > { %606 = vmatpush.bf16.msra.mxu3 %v2755_v11  ;;  %v268_v35 = vshll.u32 %v3005_v27, 16  ;;  %v280_v36 = vshll.u32 %v3008_v28, 16  ;;  %v266_v43 = vshrl.u32 %v3005_v27, 16  ;;  %v278_v45 = vshrl.u32 %v3008_v28, 16  ;;  %v2751_v50 = vld [vmem:[%s3480_s1 + $0x48] sm:$0xff]  ;;  %v2742_v62 = vld [vmem:[%s3480_s1] sm:$0xff] }
  0x18   : > { %454 = vmatpush.bf16.msra.mxu0 %v2762_v12  ;;  %v1983_v59 = vld [vmem:[%s2977_s20 + $0x28] sm:$0x11]  ;;  %v2750_v63 = vld [vmem:[%s3480_s1 + $0x40] sm:$0xff]  ;;  %v3070_v2 = vpack.c.b16 %v3046_v54, %v217_v53  ;;  %v3075_v6 = vpack.c.b16 %v3055_v61, %v218_v60  ;;  %v2781_v8 = vld [vmem:[%s3480_s1 + $0x138] sm:$0xff] }
  0x19   : > { %473 = vmatpush.bf16.msra.mxu1 %v2770_v13  ;;  %v270_v44 = vrot.slane %v268_v35, 1  ;;  %v282_v46 = vrot.slane %v280_v36, 1  ;;  %v292_v3 = vunpack.c.l.b16 %v1983_v59  ;;  %v293_v7 = vunpack.c.h.b16 %v1983_v59  ;;  %v2789_v9 = vld [vmem:[%s3480_s1 + $0x178] sm:$0xff]  ;;  %v2796_v10 = vld [vmem:[%s3480_s1 + $0x1b0] sm:$0xff]  ;;  %v2795_v18 = vld [vmem:[%s3480_s1 + $0x1a8] sm:$0xff] }
  0x1a   : > { %588 = vmatpush.bf16.msra.mxu2 %v2746_v14  ;;  %v2804_v11 = vld [vmem:[%s3480_s1 + $0x1f0] sm:$0xff]  ;;  %v299_v13 = vshll.u32 %v3070_v2, 16  ;;  %v311_v15 = vshll.u32 %v3075_v6, 16  ;;  %v2803_v19 = vld [vmem:[%s3480_s1 + $0x1e8] sm:$0xff]  ;;  %v297_v20 = vshrl.u32 %v3070_v2, 16  ;;  %v2794_v32 = vld [vmem:[%s3480_s1 + $0x1a0] sm:$0xff] }
  0x1b   : > { %607 = vmatpush.bf16.msra.mxu3 %v2754_v16  ;;  %v271_v57 = vor.u32 %v270_v44, %v266_v43  ;;  %v283_v58 = vor.u32 %v282_v46, %v278_v45  ;;  %v294_v12 = vpack.c.b16 %v292_v3, %v292_v3  ;;  %v295_v14 = vpack.c.b16 %v293_v7, %v293_v7  ;;  %v2780_v16 = vld [vmem:[%s3480_s1 + $0x130] sm:$0xff]  ;;  %v623_v24 = vld [vmem:[%s2977_s20] sm:$0xee]  ;;  %v2787_v31 = vld [vmem:[%s3480_s1 + $0x168] sm:$0xff] }
  0x1c   : > { %455 = vmatpush.bf16.msra.mxu0 %v2761_v25  ;;  %v2788_v17 = vld [vmem:[%s3480_s1 + $0x170] sm:$0xff]  ;;  %v301_v25 = vrot.slane %v299_v13, 1  ;;  %v629_v35 = vunpack.c.l.b16 %v623_v24  ;;  %v2778_v41 = vld [vmem:[%s3480_s1 + $0x120] sm:$0xff]  ;;  %v2793_v44 = vld [vmem:[%s3480_s1 + $0x198] sm:$0xff] }
  0x1d   : > { %474 = vmatpush.bf16.msra.mxu1 %v2769_v26  ;;  %v276_v4 = vsel %vm264_vm0, %v271_v57, %v275_v51  ;;  %v288_v5 = vsel %vm264_vm0, %v283_v58, %v287_v52  ;;  %v304_v23 = vshll.u32 %v294_v12, 16  ;;  %v309_v26 = vshrl.u32 %v3075_v6, 16  ;;  %v2786_v42 = vld [vmem:[%s3480_s1 + $0x160] sm:$0xff]  ;;  %v2801_v45 = vld [vmem:[%s3480_s1 + $0x1d8] sm:$0xff]  ;;  %v2784_v3 = vld [vmem:[%s3480_s1 + $0x150] sm:$0xff] }
  0x1e   : > { %589 = vmatpush.bf16.msra.mxu2 %v2745_v29  ;;  %v624_v29 = vld [vmem:[%s2977_s20 + $0x10] sm:$0x33]  ;;  %v633_v46 = vpack.c.b16 %v2994_v21, %v629_v35  ;;  %v2777_v51 = vld [vmem:[%s3480_s1 + $0x118] sm:$0xff]  ;;  %v891_v59 = vld [vmem:[%s2977_s20] sm:$0xcc] }
  0x1f   : > { %608 = vmatpush.bf16.msra.mxu3 %v2753_v30  ;;  %v2779_v30 = vld [vmem:[%s3480_s1 + $0x128] sm:$0xff]  ;;  %v631_v36 = vunpack.c.l.b16 %v624_v29  ;;  %v632_v43 = vunpack.c.h.b16 %v624_v29  ;;  %v2785_v52 = vld [vmem:[%s3480_s1 + $0x158] sm:$0xff] }
  0x20   : > { %456 = vmatpush.bf16.msra.mxu0 %v2760_v33  ;;  %v2802_v33 = vld [vmem:[%s3480_s1 + $0x1e0] sm:$0xff]  ;;  %v639_v57 = vshrl.u32 %v633_v46, 16  ;;  %v642_v58 = vshll.u32 %v633_v46, 16  ;;  %v2791_v7 = vld [vmem:[%s3480_s1 + $0x188] sm:$0xff]  ;;  %v2831_v29 = vld [vmem:[%s3480_s1 + $0x2b8] sm:$0xff] }
  0x21   : > { %475 = vmatpush.bf16.msra.mxu1 %v2768_v34  ;;  %v306_v34 = vrot.slane %v304_v23, 1  ;;  %v3149_v53 = vpack.c.b16 %v632_v43, %v632_v43  ;;  %v2775_v13 = vld [vmem:[%s3480_s1 + $0x108] sm:$0xff]  ;;  %v2144_v23 = vld [vmem:[%s2977_s20 + $0x18] sm:$0xee]  ;;  %v2838_v46 = vld [vmem:[%s3480_s1 + $0x2f0] sm:$0xff] }
  0x22   : > { %590 = vmatpush.bf16.msra.mxu2 %v2744_v37  ;;  %v302_v37 = vor.u32 %v301_v25, %v297_v20  ;;  %v644_v12 = vrot.slane %v642_v58, 2  ;;  %v2790_v25 = vld [vmem:[%s3480_s1 + $0x180] sm:$0xff]  ;;  %v2815_v43 = vld [vmem:[%s3480_s1 + $0x238] sm:$0xff]  ;;  %v2814_v58 = vld [vmem:[%s3480_s1 + $0x230] sm:$0xff] }
  0x23   : > { %609 = vmatpush.bf16.msra.mxu3 %v2752_v38 }
  0x24   : > { %457 = vmatpush.bf16.msra.mxu0 %v2759_v39  ;;  %v3135_v47 = vsel %vm264_vm0, %v302_v37, %v306_v34  ;;  %v677_v37 = vunpack.c.h.b16 %v2144_v23 }
  0x25   : > { %476 = vmatpush.bf16.msra.mxu1 %v2767_v40  ;;  %v630_v40 = vunpack.c.h.b16 %v623_v24  ;;  %v2145_v24 = vld [vmem:[%s2977_s20 + $0x28] sm:$0x33] }
  0x26   : > { %591 = vmatpush.bf16.msra.mxu2 %v2743_v49  ;;  %v3140_v49 = vpack.c.b16 %v631_v36, %v631_v36  ;;  %v678_v34 = vunpack.c.l.b16 %v2145_v24 }
  0x27   : > { %610 = vmatpush.bf16.msra.mxu3 %v2751_v50  ;;  %v634_v50 = vpack.c.b16 %v2996_v22, %v630_v40 }
  0x28   : > { %458 = vmatpush.bf16.msra.mxu0 %v2758_v55  ;;  %v2792_v55 = vld [vmem:[%s3480_s1 + $0x190] sm:$0xff]  ;;  %v647_v60 = vshrl.u32 %v3140_v49, 16  ;;  %v900_v40 = vrot.slane %v3140_v49, 2 }
  0x29   : > { %477 = vmatpush.bf16.msra.mxu1 %v2766_v56  ;;  %v2800_v56 = vld [vmem:[%s3480_s1 + $0x1d0] sm:$0xff] }
  0x2a   : > { %592 = vmatpush.bf16.msra.mxu2 %v2742_v62  ;;  %v650_v62 = vshll.u32 %v3140_v49, 16 }
  0x2b   : > { %611 = vmatpush.bf16.msra.mxu3 %v2750_v63  ;;  %459 = vmatmul.bf16.vlgmr.msra.gmra.mxu0 %v276_v4  ;;  %v656_v63 = vshrl.u32 %v634_v50, 16  ;;  %v664_v4 = vshrl.u32 %v3149_v53, 16 }
  0x2c   : > { %478 = vmatmul.bf16.vlgmr.msra.gmra.mxu1 %v288_v5  ;;  %849 = vmatpush.bf16.msrb.mxu0 %v2781_v8  ;;  %v667_v5 = vshll.u32 %v3149_v53, 16  ;;  %v2799_v8 = vld [vmem:[%s3480_s1 + $0x1c8] sm:$0xff] }
  0x2d   : > { %593 = vmatmul.bf16.vlgmr.msra.gmra.mxu2 %v3005_v27  ;;  %868 = vmatpush.bf16.msrb.mxu1 %v2789_v9  ;;  %v313_v27 = vrot.slane %v311_v15, 1  ;;  %v894_v9 = vunpack.c.l.b16 %v891_v59  ;;  %v649_v15 = vrot.slane %v647_v60, 1  ;;  %v2829_v60 = vld [vmem:[%s3480_s1 + $0x2a8] sm:$0xff] }
  0x2e   : > { %1049 = vmatpush.bf16.msrb.mxu2 %v2797_v0  ;;  %612 = vmatmul.bf16.vlgmr.msra.gmra.mxu3 %v3008_v28  ;;  %v316_v28 = vshll.u32 %v295_v14, 16  ;;  %v659_v0 = vshll.u32 %v634_v50, 16  ;;  %v2783_v14 = vld [vmem:[%s3480_s1 + $0x148] sm:$0xff]  ;;  %v669_v20 = vrot.slane %v667_v5, 2 }
  0x2f   : > { %1068 = vmatpush.bf16.msrb.mxu3 %v2805_v1  ;;  %v314_v38 = vor.u32 %v313_v27, %v309_v26  ;;  %v2776_v1 = vld [vmem:[%s3480_s1 + $0x110] sm:$0xff]  ;;  %v2798_v26 = vld [vmem:[%s3480_s1 + $0x1c0] sm:$0xff]  ;;  %v896_v27 = vpack.c.b16 %v2994_v21, %v894_v9 }
  0x30   : > { %850 = vmatpush.bf16.msrb.mxu0 %v2780_v16  ;;  %v318_v39 = vrot.slane %v316_v28, 1  ;;  %v652_v16 = vrot.slane %v650_v62, 2  ;;  %v2774_v21 = vld [vmem:[%s3480_s1 + $0x100] sm:$0xff]  ;;  %v2837_v62 = vld [vmem:[%s3480_s1 + $0x2e8] sm:$0xff] }
  0x31   : > { %869 = vmatpush.bf16.msrb.mxu1 %v2788_v17  ;;  %v658_v17 = vrot.slane %v656_v63, 1  ;;  %v2242_v63 = vld [vmem:[%s2977_s20 + $0x18] sm:$0xcc] }
  0x32   : > { %1050 = vmatpush.bf16.msrb.mxu2 %v2796_v10  ;;  %v3138_v48 = vsel %vm264_vm0, %v314_v38, %v318_v39  ;;  %v895_v10 = vunpack.c.h.b16 %v891_v59  ;;  %v679_v38 = vunpack.c.h.b16 %v2145_v24  ;;  %v899_v39 = vrot.slane %v896_v27, 2  ;;  %v2822_v59 = vld [vmem:[%s3480_s1 + $0x270] sm:$0xff]  ;;  %v2820_v27 = vld [vmem:[%s3480_s1 + $0x260] sm:$0xff] }
  0x33   : > { %1069 = vmatpush.bf16.msrb.mxu3 %v2804_v11  ;;  %v641_v11 = vrot.slane %v639_v57, 1 }
  0x34   : > { %851 = vmatpush.bf16.msrb.mxu0 %v2779_v30  ;;  %v897_v28 = vpack.c.b16 %v2996_v22, %v895_v10  ;;  %v2839_v30 = vld [vmem:[%s3480_s1 + $0x2f8] sm:$0xff]  ;;  %v2782_v22 = vld [vmem:[%s3480_s1 + $0x140] sm:$0xff]  ;;  %v2813_v10 = vld [vmem:[%s3480_s1 + $0x228] sm:$0xff] }
  0x35   : > { %870 = vmatpush.bf16.msrb.mxu1 %v2787_v31  ;;  %v645_v31 = vor.u32 %v644_v12, %v641_v11  ;;  %v2821_v11 = vld [vmem:[%s3480_s1 + $0x268] sm:$0xff]  ;;  %v908_v12 = vunpack.c.l.b16 %v2242_v63 }
  0x36   : > { %1051 = vmatpush.bf16.msrb.mxu2 %v2795_v18  ;;  %v661_v18 = vrot.slane %v659_v0, 2 }
  0x37   : > { %1070 = vmatpush.bf16.msrb.mxu3 %v2803_v19  ;;  %v666_v19 = vrot.slane %v664_v4, 1 }
  0x38   : > { %852 = vmatpush.bf16.msrb.mxu0 %v2778_v41  ;;  %v662_v35 = vor.u32 %v661_v18, %v658_v17  ;;  %v902_v41 = vrot.slane %v897_v28, 2  ;;  %v910_v28 = vpack.c.b16 %v3046_v54, %v908_v12  ;;  %v2861_v12 = vld [vmem:[%s3480_s1 + $0x3a8] sm:$0xff] }
  0x39   : > { %871 = vmatpush.bf16.msrb.mxu1 %v2786_v42  ;;  %v670_v36 = vor.u32 %v669_v20, %v666_v19  ;;  %v903_v42 = vrot.slane %v3149_v53, 2  ;;  %v681_v53 = vpack.c.b16 %v3055_v61, %v677_v37  ;;  %v2819_v37 = vld [vmem:[%s3480_s1 + $0x258] sm:$0xff] }
  0x3a   : > { %1052 = vmatpush.bf16.msrb.mxu2 %v2794_v32  ;;  %v653_v32 = vor.u32 %v652_v16, %v649_v15  ;;  %v2836_v15 = vld [vmem:[%s3480_s1 + $0x2e0] sm:$0xff] }
  0x3b   : > { %1071 = vmatpush.bf16.msrb.mxu3 %v2802_v33  ;;  %464 = vmatmul.bf16.gmra.mxu0 %v3135_v47  ;;  %v676_v33 = vunpack.c.l.b16 %v2144_v23  ;;  %v904_v57 = vsel %vm898_vm2, %v902_v41, %v903_v42  ;;  %v702_v5 = vshrl.u32 %v681_v53, 16 }
  0x3c   : > { %483 = vmatmul.bf16.gmra.mxu1 %v3138_v48  ;;  %853 = vmatpush.bf16.msrb.mxu0 %v2777_v51  ;;  %v654_v49 = vsel %vm637_vm1, %v645_v31, %v653_v32  ;;  %v3222_v51 = vpack.c.b16 %v678_v34, %v678_v34  ;;  %v2835_v31 = vld [vmem:[%s3480_s1 + $0x2d8] sm:$0xff] }
  0x3d   : > { %598 = vmatmul.bf16.gmra.mxu2 %v3070_v2  ;;  %872 = vmatpush.bf16.msrb.mxu1 %v2785_v52  ;;  %v680_v50 = vpack.c.b16 %v3046_v54, %v676_v33  ;;  %v671_v52 = vsel %vm637_vm1, %v662_v35, %v670_v36  ;;  %v704_v20 = vrot.slane %v702_v5, 1  ;;  %v2811_v36 = vld [vmem:[%s3480_s1 + $0x218] sm:$0xff] }
  0x3e   : > { %1053 = vmatpush.bf16.msrb.mxu2 %v2793_v44  ;;  %617 = vmatmul.bf16.gmra.mxu3 %v3075_v6  ;;  %v2823_v44 = vld [vmem:[%s3480_s1 + $0x278] sm:$0xff]  ;;  %v696_v4 = vshll.u32 %v3222_v51, 16  ;;  %v913_v54 = vrot.slane %v3222_v51, 2 }
  0x3f   : > { %1072 = vmatpush.bf16.msrb.mxu3 %v2801_v45  ;;  %v2830_v45 = vld [vmem:[%s3480_s1 + $0x2b0] sm:$0xff]  ;;  %v685_v0 = vshrl.u32 %v680_v50, 16 }
  0x40   : > { %854 = vmatpush.bf16.msrb.mxu0 %v2776_v1  ;;  %v688_v1 = vshll.u32 %v680_v50, 16  ;;  %v698_v19 = vrot.slane %v696_v4, 2  ;;  %v2809_v50 = vld [vmem:[%s3480_s1 + $0x208] sm:$0xff] }
  0x41   : > { %873 = vmatpush.bf16.msrb.mxu1 %v2784_v3  ;;  %v693_v3 = vshrl.u32 %v3222_v51, 16  ;;  %v687_v16 = vrot.slane %v685_v0, 1  ;;  %v2817_v51 = vld [vmem:[%s3480_s1 + $0x248] sm:$0xff]  ;;  %v2862_v0 = vld [vmem:[%s3480_s1 + $0x3b0] sm:$0xff] }
  0x42   : > { %1054 = vmatpush.bf16.msrb.mxu2 %v2792_v55  ;;  %v3226_v55 = vpack.c.b16 %v679_v38, %v679_v38  ;;  %v690_v17 = vrot.slane %v688_v1, 2  ;;  %v2826_v38 = vld [vmem:[%s3480_s1 + $0x290] sm:$0xff] }
  0x43   : > { %1073 = vmatpush.bf16.msrb.mxu3 %v2800_v56  ;;  %v901_v56 = vsel %vm898_vm2, %v899_v39, %v900_v40  ;;  %v695_v18 = vrot.slane %v693_v3, 1  ;;  %v2834_v39 = vld [vmem:[%s3480_s1 + $0x2d0] sm:$0xff] }
  0x44   : > { %855 = vmatpush.bf16.msrb.mxu0 %v2775_v13  ;;  %v713_v9 = vshll.u32 %v3226_v55, 16  ;;  %v909_v13 = vunpack.c.h.b16 %v2242_v63  ;;  %v691_v32 = vor.u32 %v690_v17, %v687_v16  ;;  %v916_v35 = vrot.slane %v3226_v55, 2  ;;  %v2855_v63 = vld [vmem:[%s3480_s1 + $0x378] sm:$0xff]  ;;  %v2870_v1 = vld [vmem:[%s3480_s1 + $0x3f0] sm:$0xff]  ;;  %v2845_v17 = vld [vmem:[%s3480_s1 + $0x328] sm:$0xff] }
  0x45   : > { %874 = vmatpush.bf16.msrb.mxu1 %v2783_v14  ;;  %v2828_v14 = vld [vmem:[%s3480_s1 + $0x2a0] sm:$0xff]  ;;  %v699_v33 = vor.u32 %v698_v19, %v695_v18  ;;  %v2853_v18 = vld [vmem:[%s3480_s1 + $0x368] sm:$0xff] }
  0x46   : > { %1055 = vmatpush.bf16.msrb.mxu2 %v2791_v7  ;;  %v705_v7 = vshll.u32 %v681_v53, 16  ;;  %v2832_v53 = vld [vmem:[%s3480_s1 + $0x2c0] sm:$0xff] }
  0x47   : > { %1074 = vmatpush.bf16.msrb.mxu3 %v2799_v8  ;;  %v710_v8 = vshrl.u32 %v3226_v55, 16  ;;  %v3288_v40 = vsel %vm637_vm1, %v691_v32, %v699_v33  ;;  %v2863_v55 = vld [vmem:[%s3480_s1 + $0x3b8] sm:$0xff] }
  0x48   : > { %856 = vmatpush.bf16.msrb.mxu0 %v2774_v21  ;;  %v707_v23 = vrot.slane %v705_v7, 2  ;;  %v2867_v32 = vld [vmem:[%s3480_s1 + $0x3d8] sm:$0xff] }
  0x49   : > { %875 = vmatpush.bf16.msrb.mxu1 %v2782_v22  ;;  %v712_v24 = vrot.slane %v710_v8, 1  ;;  %v912_v22 = vrot.slane %v910_v28, 2  ;;  %v2846_v8 = vld [vmem:[%s3480_s1 + $0x330] sm:$0xff]  ;;  %v2843_v33 = vld [vmem:[%s3480_s1 + $0x318] sm:$0xff] }
  0x4a   : > { %1056 = vmatpush.bf16.msrb.mxu2 %v2790_v25  ;;  %v715_v25 = vrot.slane %v713_v9, 2  ;;  %v708_v34 = vor.u32 %v707_v23, %v704_v20  ;;  %v2854_v9 = vld [vmem:[%s3480_s1 + $0x370] sm:$0xff]  ;;  %v2860_v20 = vld [vmem:[%s3480_s1 + $0x3a0] sm:$0xff] }
  0x4b   : > { %1075 = vmatpush.bf16.msrb.mxu3 %v2798_v26  ;;  %857 = vmatmul.bf16.vlgmr.msrb.gmra.mxu0 %v654_v49  ;;  %v2812_v26 = vld [vmem:[%s3480_s1 + $0x220] sm:$0xff]  ;;  %v3294_v42 = vsel %vm898_vm2, %v912_v22, %v913_v54  ;;  %v2833_v49 = vld [vmem:[%s3480_s1 + $0x2c8] sm:$0xff]  ;;  %v2807_v22 = vld [vmem:[%s2977_s20 + $0x34] sm:$0xf0] }
  0x4c   : > { %1233 = vmatpush.bf16.msra.mxu0 %v2815_v43  ;;  %876 = vmatmul.bf16.vlgmr.msrb.gmra.mxu1 %v671_v52  ;;  %v716_v21 = vor.u32 %v715_v25, %v712_v24  ;;  %v2824_v52 = vld [vmem:[%s3480_s1 + $0x280] sm:$0xff]  ;;  %v2806_v54 = vld [vmem:[%s2977_s20 + $0x34] sm:$0xf] }
  0x4d   : > { %1252 = vmatpush.bf16.msra.mxu1 %v2823_v44  ;;  %1057 = vmatmul.bf16.vlgmr.msrb.gmra.mxu2 %v901_v56  ;;  %v2810_v44 = vld [vmem:[%s3480_s1 + $0x210] sm:$0xff]  ;;  %v2871_v56 = vld [vmem:[%s3480_s1 + $0x3f8] sm:$0xff]  ;;  %v2868_v23 = vld [vmem:[%s3480_s1 + $0x3e0] sm:$0xff] }
  0x4e   : > { %1446 = vmatpush.bf16.msra.mxu2 %v2831_v29  ;;  %1076 = vmatmul.bf16.vlgmr.msrb.gmra.mxu3 %v904_v57  ;;  %v911_v29 = vpack.c.b16 %v3055_v61, %v909_v13  ;;  %v3291_v41 = vsel %vm637_vm1, %v708_v34, %v716_v21  ;;  %v2808_v57 = vld [vmem:[%s3480_s1 + $0x200] sm:$0xff]  ;;  %v2869_v13 = vld [vmem:[%s3480_s1 + $0x3e8] sm:$0xff]  ;;  %v2851_v34 = vld [vmem:[%s3480_s1 + $0x358] sm:$0xff] }
  0x4f   : > { %1465 = vmatpush.bf16.msra.mxu3 %v2839_v30  ;;  %v2827_v30 = vld [vmem:[%s3480_s1 + $0x298] sm:$0xff]  ;;  %v2343_v21 = vld [vmem:[%s2977_s20 + $0x30] sm:$0xf] }
  0x50   : > { %1234 = vmatpush.bf16.msra.mxu0 %v2814_v58  ;;  %v915_v61 = vrot.slane %v911_v29, 2  ;;  %v2816_v58 = vld [vmem:[%s3480_s1 + $0x240] sm:$0xff] }
  0x51   : > { %1253 = vmatpush.bf16.msra.mxu1 %v2822_v59  ;;  %v2445_v59 = vld [vmem:[%s2977_s20 + $0x30] sm:$0xff] }
  0x52   : > { %1447 = vmatpush.bf16.msra.mxu2 %v2830_v45  ;;  %v3297_v43 = vsel %vm898_vm2, %v915_v61, %v916_v35  ;;  %v2818_v45 = vld [vmem:[%s3480_s1 + $0x250] sm:$0xff]  ;;  %v1281_v3 = vunpack.c.l.b16 %v2445_v59  ;;  %v1282_v5 = vunpack.c.h.b16 %v2445_v59  ;;  %v2345_v61 = vld [vmem:[%s2977_s20 + $0x38] sm:$0xf0]  ;;  %v2864_v59 = vld [vmem:[%s3480_s1 + $0x3c0] sm:$0xff] }
  0x53   : > { %1466 = vmatpush.bf16.msra.mxu3 %v2838_v46  ;;  %v2825_v46 = vld [vmem:[%s3480_s1 + $0x288] sm:$0xff] }
  0x54   : > { %1235 = vmatpush.bf16.msra.mxu0 %v2813_v10  ;;  %v2447_v10 = vld [vmem:[%s2977_s20 + $0x40] sm:$0x11] }
  0x55   : > { %1254 = vmatpush.bf16.msra.mxu1 %v2821_v11 }
  0x56   : > { %1448 = vmatpush.bf16.msra.mxu2 %v2829_v60  ;;  %v2446_v60 = vld [vmem:[%s2977_s20 + $0x38] sm:$0xff] }
  0x57   : > { %1467 = vmatpush.bf16.msra.mxu3 %v2837_v62  ;;  %v2847_v62 = vld [vmem:[%s3480_s1 + $0x338] sm:$0xff]  ;;  %v3353_v4 = vunpack.c.l.b16 %v2446_v60  ;;  %v3355_v7 = vunpack.c.h.b16 %v2446_v60  ;;  %v2840_v60 = vld [vmem:[%s3480_s1 + $0x300] sm:$0xff] }
  0x58   : > { %1236 = vmatpush.bf16.msra.mxu0 %v2812_v26 }
  0x59   : > { %1255 = vmatpush.bf16.msra.mxu1 %v2820_v27  ;;  %v1287_v11 = vpack.c.b16 %v3353_v4, %v1281_v3  ;;  %v1288_v16 = vpack.c.b16 %v3355_v7, %v1282_v5 }
  0x5a   : > { %1449 = vmatpush.bf16.msra.mxu2 %v2828_v14  ;;  %v1285_v14 = vunpack.c.l.b16 %v2447_v10 }
  0x5b   : > { %1468 = vmatpush.bf16.msra.mxu3 %v2836_v15  ;;  %862 = vmatmul.bf16.gmra.mxu0 %v3288_v40  ;;  %v1286_v15 = vunpack.c.h.b16 %v2447_v10  ;;  %v1294_v19 = vshll.u32 %v1287_v11, 16  ;;  %v1304_v28 = vshrl.u32 %v1288_v16, 16 }
  0x5c   : > { %1237 = vmatpush.bf16.msra.mxu0 %v2811_v36  ;;  %881 = vmatmul.bf16.gmra.mxu1 %v3291_v41  ;;  %v1289_v24 = vpack.c.b16 %v1285_v14, %v1285_v14 }
  0x5d   : > { %1256 = vmatpush.bf16.msra.mxu1 %v2819_v37  ;;  %1062 = vmatmul.bf16.gmra.mxu2 %v3294_v42  ;;  %v1290_v25 = vpack.c.b16 %v1286_v15, %v1286_v15  ;;  %v1296_v26 = vrot.slane %v1294_v19, 1 }
  0x5e   : > { %1450 = vmatpush.bf16.msra.mxu2 %v2827_v30  ;;  %1081 = vmatmul.bf16.gmra.mxu3 %v3297_v43  ;;  %v1299_v27 = vshll.u32 %v1289_v24, 16 }
  0x5f   : > { %1469 = vmatpush.bf16.msra.mxu3 %v2835_v31  ;;  %v1311_v30 = vshll.u32 %v1290_v25, 16  ;;  %v2859_v31 = vld [vmem:[%s3480_s1 + $0x398] sm:$0xff] }
  0x60   : > { %1238 = vmatpush.bf16.msra.mxu0 %v2810_v44  ;;  %v1301_v36 = vrot.slane %v1299_v27, 1  ;;  %v2866_v44 = vld [vmem:[%s3480_s1 + $0x3d0] sm:$0xff] }
  0x61   : > { %1257 = vmatpush.bf16.msra.mxu1 %v2818_v45  ;;  %v2842_v45 = vld [vmem:[%s3480_s1 + $0x310] sm:$0xff] }
  0x62   : > { %1451 = vmatpush.bf16.msra.mxu2 %v2826_v38  ;;  %v1313_v38 = vrot.slane %v1311_v30, 1 }
  0x63   : > { %1470 = vmatpush.bf16.msra.mxu3 %v2834_v39  ;;  %v2858_v39 = vld [vmem:[%s3480_s1 + $0x390] sm:$0xff] }
  0x64   : > { %1239 = vmatpush.bf16.msra.mxu0 %v2809_v50  ;;  %v2348_v50 = vor.u32 %v2806_v54, %v2345_v61 }
  0x65   : > { %1258 = vmatpush.bf16.msra.mxu1 %v2817_v51 }
  0x66   : > { %1452 = vmatpush.bf16.msra.mxu2 %v2825_v46  ;;  %v2850_v46 = vld [vmem:[%s3480_s1 + $0x350] sm:$0xff] }
  0x67   : > { %1471 = vmatpush.bf16.msra.mxu3 %v2833_v49  ;;  %v2344_v49 = vor.u32 %v2807_v22, %v2343_v21 }
  0x68   : > { %1240 = vmatpush.bf16.msra.mxu0 %v2808_v57  ;;  %v2849_v57 = vld [vmem:[%s3480_s1 + $0x348] sm:$0xff] }
  0x69   : > { %1259 = vmatpush.bf16.msra.mxu1 %v2816_v58  ;;  %v2856_v58 = vld [vmem:[%s3480_s1 + $0x380] sm:$0xff] }
  0x6a   : > { %1453 = vmatpush.bf16.msra.mxu2 %v2824_v52 }
  0x6b   : > { %1472 = vmatpush.bf16.msra.mxu3 %v2832_v53  ;;  %1241 = vmatmul.bf16.vlgmr.msra.gmra.mxu0 %v3070_v2  ;;  %v1306_v2 = vshll.u32 %v1288_v16, 16  ;;  %v2857_v53 = vld [vmem:[%s3480_s1 + $0x388] sm:$0xff] }
  0x6c   : > { %1665 = vmatpush.bf16.msrb.mxu0 %v2847_v62  ;;  %1260 = vmatmul.bf16.vlgmr.msra.gmra.mxu1 %v3075_v6  ;;  %v2844_v6 = vld [vmem:[%s3480_s1 + $0x320] sm:$0xff] }
  0x6d   : > { %1684 = vmatpush.bf16.msrb.mxu1 %v2855_v63  ;;  %1454 = vmatmul.bf16.vlgmr.msra.gmra.mxu2 %v3135_v47  ;;  %v2852_v47 = vld [vmem:[%s3480_s1 + $0x360] sm:$0xff]  ;;  %v1308_v29 = vrot.slane %v1306_v2, 1  ;;  %v2544_v63 = vld [vmem:[%s2977_s20 + $0x30] sm:$0xee] }
  0x6e   : > { %1850 = vmatpush.bf16.msrb.mxu2 %v2863_v55  ;;  %1473 = vmatmul.bf16.vlgmr.msra.gmra.mxu3 %v3138_v48  ;;  %v1292_v48 = vshrl.u32 %v1287_v11, 16  ;;  %v2865_v55 = vld [vmem:[%s3480_s1 + $0x3c8] sm:$0xff]  ;;  %v2848_v62 = vld [vmem:[%s3480_s1 + $0x340] sm:$0xff]  ;;  %v1493_v5 = vunpack.c.h.b16 %v2544_v63 }
  0x6f   : > { %1869 = vmatpush.bf16.msrb.mxu3 %v2871_v56  ;;  %v1309_v37 = vor.u32 %v1308_v29, %v1304_v28  ;;  %v2841_v56 = vld [vmem:[%s3480_s1 + $0x308] sm:$0xff] }
  0x70   : > { %1666 = vmatpush.bf16.msrb.mxu0 %v2846_v8  ;;  %v1297_v35 = vor.u32 %v1296_v26, %v1292_v48  ;;  %v1497_v11 = vpack.c.b16 %v3355_v7, %v1493_v5 }
  0x71   : > { %1685 = vmatpush.bf16.msrb.mxu1 %v2854_v9  ;;  %v1314_v52 = vsel %vm264_vm0, %v1309_v37, %v1313_v38 }
  0x72   : > { %1851 = vmatpush.bf16.msrb.mxu2 %v2862_v0  ;;  %v1302_v51 = vsel %vm264_vm0, %v1297_v35, %v1301_v36  ;;  %v2545_v0 = vld [vmem:[%s2977_s20 + $0x40] sm:$0x33]  ;;  %v1521_v19 = vshll.u32 %v1497_v11, 16 }
  0x73   : > { %1870 = vmatpush.bf16.msrb.mxu3 %v2870_v1  ;;  %v1492_v1 = vunpack.c.l.b16 %v2544_v63  ;;  %v1494_v3 = vunpack.c.l.b16 %v2545_v0  ;;  %v1495_v8 = vunpack.c.h.b16 %v2545_v0 }
  0x74   : > { %1667 = vmatpush.bf16.msrb.mxu0 %v2845_v17 }
  0x75   : > { %1686 = vmatpush.bf16.msrb.mxu1 %v2853_v18  ;;  %v1496_v9 = vpack.c.b16 %v3353_v4, %v1492_v1  ;;  %v1498_v10 = vpack.c.b16 %v1494_v3, %v1494_v3  ;;  %v1518_v18 = vshrl.u32 %v1497_v11, 16 }
  0x76   : > { %1852 = vmatpush.bf16.msrb.mxu2 %v2861_v12  ;;  %v1499_v12 = vpack.c.b16 %v1495_v8, %v1495_v8 }
  0x77   : > { %1871 = vmatpush.bf16.msrb.mxu3 %v2869_v13  ;;  %v2642_v13 = vld [vmem:[%s2977_s20 + $0x30] sm:$0xcc]  ;;  %v1501_v14 = vshrl.u32 %v1496_v9, 16  ;;  %v1504_v15 = vshll.u32 %v1496_v9, 16  ;;  %v1509_v16 = vshrl.u32 %v1498_v10, 16  ;;  %v1512_v17 = vshll.u32 %v1498_v10, 16 }
  0x78   : > { %1668 = vmatpush.bf16.msrb.mxu0 %v2844_v6  ;;  %v1709_v24 = vunpack.c.l.b16 %v2642_v13  ;;  %v1710_v25 = vunpack.c.h.b16 %v2642_v13  ;;  %v1520_v48 = vrot.slane %v1518_v18, 1  ;;  %v1717_v21 = vrot.slane %v1499_v12, 2 }
  0x79   : > { %1687 = vmatpush.bf16.msrb.mxu1 %v2852_v47  ;;  %v1503_v2 = vrot.slane %v1501_v14, 1  ;;  %v1506_v6 = vrot.slane %v1504_v15, 2  ;;  %v1511_v47 = vrot.slane %v1509_v16, 1 }
  0x7a   : > { %1853 = vmatpush.bf16.msrb.mxu2 %v2860_v20  ;;  %v1526_v20 = vshrl.u32 %v1499_v12, 16  ;;  %v1711_v28 = vpack.c.b16 %v3353_v4, %v1709_v24 }
  0x7b   : > { %1872 = vmatpush.bf16.msrb.mxu3 %v2868_v23  ;;  %1246 = vmatmul.bf16.gmra.mxu0 %v2344_v49  ;;  %v1529_v23 = vshll.u32 %v1499_v12, 16  ;;  %v1507_v29 = vor.u32 %v1506_v6, %v1503_v2 }
  0x7c   : > { %1669 = vmatpush.bf16.msrb.mxu0 %v2843_v33  ;;  %1265 = vmatmul.bf16.gmra.mxu1 %v2348_v50  ;;  %v1528_v26 = vrot.slane %v1526_v20, 1  ;;  %v1714_v33 = vrot.slane %v1498_v10, 2 }
  0x7d   : > { %1688 = vmatpush.bf16.msrb.mxu1 %v2851_v34  ;;  %1459 = vmatmul.bf16.gmra.mxu2 %v1302_v51  ;;  %v1531_v27 = vrot.slane %v1529_v23, 2 }
  0x7e   : > { %1854 = vmatpush.bf16.msrb.mxu2 %v2859_v31  ;;  %1478 = vmatmul.bf16.gmra.mxu3 %v1314_v52 }
  0x7f   : > { %1873 = vmatpush.bf16.msrb.mxu3 %v2867_v32  ;;  %v1532_v31 = vor.u32 %v1531_v27, %v1528_v26  ;;  %v1713_v32 = vrot.slane %v1711_v28, 2 }
  0x80   : > { %1670 = vmatpush.bf16.msrb.mxu0 %v2842_v45 }
  0x81   : > { %1689 = vmatpush.bf16.msrb.mxu1 %v2850_v46  ;;  %v1715_v61 = vsel %vm898_vm2, %v1713_v32, %v1714_v33 }
  0x82   : > { %1855 = vmatpush.bf16.msrb.mxu2 %v2858_v39 }
  0x83   : > { %1874 = vmatpush.bf16.msrb.mxu3 %v2866_v44 }
  0x84   : > { %1671 = vmatpush.bf16.msrb.mxu0 %v2841_v56 }
  0x85   : > { %1690 = vmatpush.bf16.msrb.mxu1 %v2849_v57 }
  0x86   : > { %1856 = vmatpush.bf16.msrb.mxu2 %v2857_v53 }
  0x87   : > { %1875 = vmatpush.bf16.msrb.mxu3 %v2865_v55 }
  0x88   : > { %1672 = vmatpush.bf16.msrb.mxu0 %v2840_v60 }
  0x89   : > { %1691 = vmatpush.bf16.msrb.mxu1 %v2848_v62 }
  0x8a   : > { %1857 = vmatpush.bf16.msrb.mxu2 %v2856_v58 }
  0x8b   : > { %1876 = vmatpush.bf16.msrb.mxu3 %v2864_v59  ;;  %1673 = vmatmul.bf16.vlgmr.msrb.gmra.mxu0 %v3288_v40  ;;  %v1514_v40 = vrot.slane %v1512_v17, 2 }
  0x8c   : > { %1692 = vmatmul.bf16.vlgmr.msrb.gmra.mxu1 %v3291_v41  ;;  %v1523_v41 = vrot.slane %v1521_v19, 2 }
  0x8d   : > { %1858 = vmatmul.bf16.vlgmr.msrb.gmra.mxu2 %v3294_v42  ;;  %v1712_v42 = vpack.c.b16 %v3355_v7, %v1710_v25 }
  0x8e   : > { %1877 = vmatmul.bf16.vlgmr.msrb.gmra.mxu3 %v3297_v43  ;;  %v1515_v43 = vor.u32 %v1514_v40, %v1511_v47  ;;  %v1524_v30 = vor.u32 %v1523_v41, %v1520_v48 }
  0x8f   : > { %v1716_v34 = vrot.slane %v1712_v42, 2 }
  0x90   : > { %v1516_v22 = vsel %vm637_vm1, %v1507_v29, %v1515_v43  ;;  %v1533_v54 = vsel %vm637_vm1, %v1524_v30, %v1532_v31 }
  0x91   : > { %v1718_v35 = vsel %vm898_vm2, %v1716_v34, %v1717_v21 }
  0x9b   : > { %1678 = vmatmul.bf16.gmra.mxu0 %v1516_v22 }
  0x9c   : > { %1697 = vmatmul.bf16.gmra.mxu1 %v1533_v54 }
  0x9d   : > { %1863 = vmatmul.bf16.gmra.mxu2 %v1715_v61 }
  0x9e   : > { %1882 = vmatmul.bf16.gmra.mxu3 %v1718_v35 }
  0xa8   : > { %v460_v4 = vpop.f32.mrf.mxu0 }
  0xa9   : > { %v479_v7 = vpop.f32.mrf.mxu1 }
  0xaa   : > { %v480_v36 = vadd.f32 %v479_v7, %v460_v4 }
  0xb0   : > { %v594_v37 = vpop.f32.mrf.mxu2  ;;  %v462_v44 = vpop.f32.mrf.mxu0 }
  0xb1   : > { %v613_v38 = vpop.f32.mrf.mxu3  ;;  %v595_v39 = vadd.f32 %v594_v37, %v480_v36  ;;  %v481_v45 = vpop.f32.mrf.mxu1 }
  0xb2   : > { %v482_v46 = vadd.f32 %v481_v45, %v462_v44 }
  0xb3   : > { %v614_v49 = vadd.f32 %v613_v38, %v595_v39 }
  0xb8   : > { %v596_v50 = vpop.f32.mrf.mxu2  ;;  %v465_v53 = vpop.f32.mrf.mxu0 }
  0xb9   : > { %v615_v51 = vpop.f32.mrf.mxu3  ;;  %v597_v52 = vadd.f32 %v596_v50, %v482_v46  ;;  %v484_v55 = vpop.f32.mrf.mxu1 }
  0xba   : > { %v485_v56 = vadd.f32 %v484_v55, %v465_v53 }
  0xbb   : > { %v616_v57 = vadd.f32 %v615_v51, %v597_v52 }
  0xc0   : > { %v599_v58 = vpop.f32.mrf.mxu2  ;;  %v467_v62 = vpop.f32.mrf.mxu0 }
  0xc1   : > { %v618_v59 = vpop.f32.mrf.mxu3  ;;  %v600_v60 = vadd.f32 %v599_v58, %v485_v56  ;;  %v486_v63 = vpop.f32.mrf.mxu1 }
  0xc2   : > { %v487_v0 = vadd.f32 %v486_v63, %v467_v62 }
  0xc3   : > { %v619_v1 = vadd.f32 %v618_v59, %v600_v60 }
  0xc8   : > { %v601_v3 = vpop.f32.mrf.mxu2  ;;  %v858_v9 = vpop.f32.mrf.mxu0 }
  0xc9   : > { %v620_v5 = vpop.f32.mrf.mxu3  ;;  %v602_v8 = vadd.f32 %v601_v3, %v487_v0  ;;  %v877_v10 = vpop.f32.mrf.mxu1 }
  0xca   : > { %v878_v12 = vadd.f32 %v877_v10, %v858_v9 }
  0xcb   : > { %v3463_v11 = vadd.f32 %v620_v5, %v602_v8  ;;  %v2892_v8 = vld [vmem:[%s3481_s2] ss:$0 sm:$0xff] }
  0xcc   : > { %v887_v13 = vadd.f32 %v878_v12, %v614_v49 }
  0xd0   : > { %v1058_v14 = vpop.f32.mrf.mxu2  ;;  %v860_v17 = vpop.f32.mrf.mxu0 }
  0xd1   : > { %v1077_v15 = vpop.f32.mrf.mxu3  ;;  %v879_v18 = vpop.f32.mrf.mxu1 }
  0xd2   : > { %v1078_v16 = vadd.f32 %v1077_v15, %v1058_v14  ;;  %v880_v45 = vadd.f32 %v879_v18, %v860_v17  ;;  %v2893_v14 = vld [vmem:[%s3482_s3] ss:$0 sm:$0xff] }
  0xd4   : > { %v1087_v19 = vadd.f32 %v1078_v16, %v887_v13  ;;  %v888_v55 = vadd.f32 %v880_v45, %v616_v57 }
  0xd8   : > { %v1060_v20 = vpop.f32.mrf.mxu2  ;;  %v863_v24 = vpop.f32.mrf.mxu0 }
  0xd9   : > { %v1079_v23 = vpop.f32.mrf.mxu3  ;;  %v882_v25 = vpop.f32.mrf.mxu1 }
  0xda   : > { %v883_v2 = vadd.f32 %v882_v25, %v863_v24  ;;  %v1080_v49 = vadd.f32 %v1079_v23, %v1060_v20 }
  0xdc   : > { %v889_v6 = vadd.f32 %v883_v2, %v619_v1  ;;  %v1088_v63 = vadd.f32 %v1080_v49, %v888_v55 }
  0xe0   : > { %v1063_v47 = vpop.f32.mrf.mxu2  ;;  %v865_v41 = vpop.f32.mrf.mxu0 }
  0xe1   : > { %v1082_v40 = vpop.f32.mrf.mxu3  ;;  %v884_v26 = vpop.f32.mrf.mxu1 }
  0xe2   : > { %v1083_v48 = vadd.f32 %v1082_v40, %v1063_v47  ;;  %v885_v23 = vadd.f32 %v884_v26, %v865_v41 }
  0xe4   : > { %v1089_v27 = vadd.f32 %v1083_v48, %v889_v6 }
  0xe8   : > { %v1065_v28 = vpop.f32.mrf.mxu2  ;;  %v1242_v29 = vpop.f32.mrf.mxu0 }
  0xe9   : > { %v1084_v42 = vpop.f32.mrf.mxu3  ;;  %v1261_v43 = vpop.f32.mrf.mxu1 }
  0xea   : > { %v1262_v44 = vadd.f32 %v1261_v43, %v1242_v29  ;;  %v1085_v6 = vadd.f32 %v1084_v42, %v1065_v28  ;;  %v890_v29 = vadd.f32 %v885_v23, %v3463_v11 }
  0xec   : > { %v1271_v50 = vadd.f32 %v1262_v44, %v1087_v19  ;;  %v1090_v28 = vadd.f32 %v1085_v6, %v890_v29 }
  0xf0   : > { %v1455_v30 = vpop.f32.mrf.mxu2  ;;  %v1244_v32 = vpop.f32.mrf.mxu0 }
  0xf1   : > { %v1474_v31 = vpop.f32.mrf.mxu3  ;;  %v1263_v33 = vpop.f32.mrf.mxu1 }
  0xf2   : > { %v1475_v46 = vadd.f32 %v1474_v31, %v1455_v30  ;;  %v1264_v58 = vadd.f32 %v1263_v33, %v1244_v32 }
  0xf4   : > { %v1484_v56 = vadd.f32 %v1475_v46, %v1271_v50  ;;  %v1272_v3 = vadd.f32 %v1264_v58, %v1088_v63 }
  0xf8   : > { %v1457_v34 = vpop.f32.mrf.mxu2  ;;  %v1247_v22 = vpop.f32.mrf.mxu0 }
  0xf9   : > { %v1476_v21 = vpop.f32.mrf.mxu3  ;;  %v1266_v54 = vpop.f32.mrf.mxu1 }
  0xfa   : > { %v1477_v0 = vadd.f32 %v1476_v21, %v1457_v34  ;;  %v1267_v19 = vadd.f32 %v1266_v54, %v1247_v22 }
  0xfc   : > { %v1485_v10 = vadd.f32 %v1477_v0, %v1272_v3  ;;  %v1273_v47 = vadd.f32 %v1267_v19, %v1089_v27 }
 0x100   : > { %v1460_v61 = vpop.f32.mrf.mxu2  ;;  %v1249_v4 = vpop.f32.mrf.mxu0 }
 0x101   : > { %v1479_v35 = vpop.f32.mrf.mxu3  ;;  %v1268_v7 = vpop.f32.mrf.mxu1 }
 0x102   : > { %v1480_v24 = vadd.f32 %v1479_v35, %v1460_v61  ;;  %v1269_v43 = vadd.f32 %v1268_v7, %v1249_v4 }
 0x104   : > { %v1486_v32 = vadd.f32 %v1480_v24, %v1273_v47  ;;  %v1274_v54 = vadd.f32 %v1269_v43, %v1090_v28 }
 0x108   : > { %v1462_v36 = vpop.f32.mrf.mxu2  ;;  %v1674_v38 = vpop.f32.mrf.mxu0 }
 0x109   : > { %v1481_v37 = vpop.f32.mrf.mxu3  ;;  %v1693_v39 = vpop.f32.mrf.mxu1 }
 0x10a   : > { %v1694_v51 = vadd.f32 %v1693_v39, %v1674_v38  ;;  %v1482_v27 = vadd.f32 %v1481_v37, %v1462_v36 }
 0x10c   : > { %v1703_v1 = vadd.f32 %v1694_v51, %v1484_v56  ;;  %v1487_v35 = vadd.f32 %v1482_v27, %v1274_v54 }
 0x110   : > { %v1859_v52 = vpop.f32.mrf.mxu2  ;;  %v1676_v60 = vpop.f32.mrf.mxu0 }
 0x111   : > { %v1878_v53 = vpop.f32.mrf.mxu3  ;;  %v1695_v62 = vpop.f32.mrf.mxu1 }
 0x112   : > { %v1879_v59 = vadd.f32 %v1878_v53, %v1859_v52  ;;  %v1696_v9 = vadd.f32 %v1695_v62, %v1676_v60 }
 0x114   : > { %v1888_v5 = vadd.f32 %v1879_v59, %v1703_v1  ;;  %v1704_v15 = vadd.f32 %v1696_v9, %v1485_v10 }
 0x116   : > { %v1895_v57 = vmul.f32 %v2892_v8, %v1888_v5 }
 0x118   : > { %v1861_v12 = vpop.f32.mrf.mxu2  ;;  %v1679_v17 = vpop.f32.mrf.mxu0  ;;  %v1902_v25 = vadd.f32 %v2893_v14, %v1895_v57 }
 0x119   : > { %v1880_v13 = vpop.f32.mrf.mxu3  ;;  %v1698_v18 = vpop.f32.mrf.mxu1 }
 0x11a   : > { %v1881_v16 = vadd.f32 %v1880_v13, %v1861_v12  ;;  %v1699_v48 = vadd.f32 %v1698_v18, %v1679_v17  ;;  %v1906_v33 = vmax.f32 %v1902_v25, 0.0 }
 0x11c   : > { %v1889_v20 = vadd.f32 %v1881_v16, %v1704_v15  ;;  %v1705_v22 = vadd.f32 %v1699_v48, %v1486_v32 }
 0x11e   : > { %v1896_v2 = vmul.f32 %v2892_v8, %v1889_v20 }
 0x120   : > { %v1903_v40 = vadd.f32 %v2893_v14, %v1896_v2  ;;  %v1864_v30 = vpop.f32.mrf.mxu2  ;;  %v1681_v41 = vpop.f32.mrf.mxu0 }
 0x121   : > { %v1883_v31 = vpop.f32.mrf.mxu3  ;;  %v1700_v26 = vpop.f32.mrf.mxu1 }
 0x122   : > { %v1907_v34 = vmax.f32 %v1903_v40, 0.0  ;;  %v1884_v21 = vadd.f32 %v1883_v31, %v1864_v30  ;;  %v1701_v61 = vadd.f32 %v1700_v26, %v1681_v41 }
 0x124   : > { %v2875_v42 = vpack.c.bf16 %v1907_v34, %v1906_v33  ;;  %v1890_v11 = vadd.f32 %v1884_v21, %v1705_v22  ;;  %v1706_v39 = vadd.f32 %v1701_v61, %v1487_v35 }
 0x126   : > { %2876 = vst [vmem:[%s197_s29] sm:$0xff] %v2875_v42   ;;  %v1897_v38 = vmul.f32 %v2892_v8, %v1890_v11 }
 0x128   : > { %v1866_v4 = vpop.f32.mrf.mxu2  ;;  %v1904_v46 = vadd.f32 %v2893_v14, %v1897_v38 }
 0x129   : > { %v1885_v7 = vpop.f32.mrf.mxu3 }
 0x12a   : > { %v1886_v44 = vadd.f32 %v1885_v7, %v1866_v4  ;;  %v1908_v51 = vmax.f32 %v1904_v46, 0.0 }
 0x12c   : > { %v1891_v45 = vadd.f32 %v1886_v44, %v1706_v39 }
 0x12e   : > { %v1898_v49 = vmul.f32 %v2892_v8, %v1891_v45 }
 0x130   : > { %v1905_v50 = vadd.f32 %v2893_v14, %v1898_v49 }
 0x132   : > { %v1909_v52 = vmax.f32 %v1905_v50, 0.0 }
 0x134   : > { %v2880_v53 = vpack.c.bf16 %v1909_v52, %v1908_v51 }
 0x136   : > { %2882 = vst [vmem:[%s197_s29 + $0x8] sm:$0xff] %v2880_v53  }
 0x137 PF: > { %s14_s15 = sadd.s32 1, %s2900_s15  }
 0x138   : > { %p11_p4 = scmp.ge.s32.totalorder %s14_s15, 4  }
 0x13a   :  { %13 = sbr.rel (!%p11_p4) target bundleno = 1 (0x1), region = 75 }

// kernel: pallas_encoder.7
= control target key start
LH: loop header
LB: loop body
LE: loop exit
PB: predicated region body
PF: predicated region fallthrough
CT: control target
= control target key end

     0   :  { %s1287_s1 = inlined_call_operand.vmem [shape: bf16[512,256], index: 1, kind: input, shape index: {}]   ;;  %s1288_s0 = inlined_call_operand.vmem [shape: bf16[8,512], index: 0, kind: input, shape index: {}]   ;;  %s1289_s2 = inlined_call_operand.vmem [shape: f32[1,256], index: 2, kind: input, shape index: {}]   ;;  %s1290_s3 = inlined_call_operand.vmem [shape: f32[8,256], index: 3, kind: output, shape index: {}]  }
   0x1   :  { %v590_v0 = vld [vmem:[%s1287_s1 + $0x70] sm:$0xf]  ;;  %v803_v1 = vld [vmem:[%s1287_s1 + $0x74] sm:$0xf0]  ;;  %v582_v11 = vld [vmem:[%s1287_s1 + $0x60] sm:$0xf] }
   0x2   :  { %v654_v2 = vld [vmem:[%s1287_s1 + $0xf0] sm:$0xf]  ;;  %v591_v3 = vor.u32 %v803_v1, %v590_v0  ;;  %v819_v4 = vld [vmem:[%s1287_s1 + $0xf4] sm:$0xf0]  ;;  %v801_v13 = vld [vmem:[%s1287_s1 + $0x64] sm:$0xf0] }
   0x3   :  { %v718_v5 = vld [vmem:[%s1287_s1 + $0x170] sm:$0xf]  ;;  %v835_v6 = vld [vmem:[%s1287_s1 + $0x174] sm:$0xf0]  ;;  %v655_v7 = vor.u32 %v819_v4, %v654_v2  ;;  %v646_v14 = vld [vmem:[%s1287_s1 + $0xe0] sm:$0xf]  ;;  %v583_v16 = vor.u32 %v801_v13, %v582_v11 }
   0x4   :  { %v719_v8 = vor.u32 %v835_v6, %v718_v5  ;;  %v782_v9 = vld [vmem:[%s1287_s1 + $0x1f0] sm:$0xf]  ;;  %v851_v10 = vld [vmem:[%s1287_s1 + $0x1f4] sm:$0xf0]  ;;  %420 = vmatpush.bf16.msra.mxu0 %v591_v3  ;;  %v817_v15 = vld [vmem:[%s1287_s1 + $0xe4] sm:$0xf0] }
   0x5   :  { %v783_v12 = vor.u32 %v851_v10, %v782_v9  ;;  %433 = vmatpush.bf16.msra.mxu1 %v655_v7  ;;  %v647_v17 = vor.u32 %v817_v15, %v646_v14  ;;  %v710_v18 = vld [vmem:[%s1287_s1 + $0x160] sm:$0xf]  ;;  %v833_v19 = vld [vmem:[%s1287_s1 + $0x164] sm:$0xf0]  ;;  %v574_v23 = vld [vmem:[%s1287_s1 + $0x50] sm:$0xf] }
   0x6   :  { %446 = vmatpush.bf16.msra.mxu2 %v719_v8  ;;  %v774_v20 = vld [vmem:[%s1287_s1 + $0x1e0] sm:$0xf]  ;;  %v711_v21 = vor.u32 %v833_v19, %v710_v18  ;;  %v849_v22 = vld [vmem:[%s1287_s1 + $0x1e4] sm:$0xf0]  ;;  %v799_v24 = vld [vmem:[%s1287_s1 + $0x54] sm:$0xf0] }
   0x7   :  { %459 = vmatpush.bf16.msra.mxu3 %v783_v12  ;;  %v775_v25 = vor.u32 %v849_v22, %v774_v20  ;;  %v638_v26 = vld [vmem:[%s1287_s1 + $0xd0] sm:$0xf]  ;;  %v815_v27 = vld [vmem:[%s1287_s1 + $0xd4] sm:$0xf0]  ;;  %v575_v29 = vor.u32 %v799_v24, %v574_v23  ;;  %v566_v35 = vld [vmem:[%s1287_s1 + $0x40] sm:$0xf] }
   0x8   :  { %v702_v28 = vld [vmem:[%s1287_s1 + $0x150] sm:$0xf]  ;;  %421 = vmatpush.bf16.msra.mxu0 %v583_v16  ;;  %v831_v30 = vld [vmem:[%s1287_s1 + $0x154] sm:$0xf0]  ;;  %v639_v33 = vor.u32 %v815_v27, %v638_v26  ;;  %v797_v36 = vld [vmem:[%s1287_s1 + $0x44] sm:$0xf0] }
   0x9   :  { %v766_v31 = vld [vmem:[%s1287_s1 + $0x1d0] sm:$0xf]  ;;  %v847_v32 = vld [vmem:[%s1287_s1 + $0x1d4] sm:$0xf0]  ;;  %434 = vmatpush.bf16.msra.mxu1 %v647_v17  ;;  %v703_v34 = vor.u32 %v831_v30, %v702_v28  ;;  %v630_v37 = vld [vmem:[%s1287_s1 + $0xc0] sm:$0xf]  ;;  %v567_v44 = vor.u32 %v797_v36, %v566_v35 }
   0xa   :  { %447 = vmatpush.bf16.msra.mxu2 %v711_v21  ;;  %v767_v38 = vor.u32 %v847_v32, %v766_v31  ;;  %v813_v39 = vld [vmem:[%s1287_s1 + $0xc4] sm:$0xf0]  ;;  %v694_v40 = vld [vmem:[%s1287_s1 + $0x140] sm:$0xf]  ;;  %v558_v47 = vld [vmem:[%s1287_s1 + $0x30] sm:$0xf] }
   0xb   :  { %460 = vmatpush.bf16.msra.mxu3 %v775_v25  ;;  %v829_v41 = vld [vmem:[%s1287_s1 + $0x144] sm:$0xf0]  ;;  %v758_v42 = vld [vmem:[%s1287_s1 + $0x1c0] sm:$0xf]  ;;  %v631_v45 = vor.u32 %v813_v39, %v630_v37  ;;  %v795_v48 = vld [vmem:[%s1287_s1 + $0x34] sm:$0xf0] }
   0xc   :  { %v845_v43 = vld [vmem:[%s1287_s1 + $0x1c4] sm:$0xf0]  ;;  %422 = vmatpush.bf16.msra.mxu0 %v575_v29  ;;  %v695_v46 = vor.u32 %v829_v41, %v694_v40  ;;  %v622_v49 = vld [vmem:[%s1287_s1 + $0xb0] sm:$0xf]  ;;  %v811_v51 = vld [vmem:[%s1287_s1 + $0xb4] sm:$0xf0]  ;;  %v559_v56 = vor.u32 %v795_v48, %v558_v47 }
   0xd   :  { %435 = vmatpush.bf16.msra.mxu1 %v639_v33  ;;  %v759_v50 = vor.u32 %v845_v43, %v758_v42  ;;  %v686_v52 = vld [vmem:[%s1287_s1 + $0x130] sm:$0xf]  ;;  %v827_v53 = vld [vmem:[%s1287_s1 + $0x134] sm:$0xf0]  ;;  %v623_v57 = vor.u32 %v811_v51, %v622_v49  ;;  %v550_v59 = vld [vmem:[%s1287_s1 + $0x20] sm:$0xf] }
   0xe   :  { %448 = vmatpush.bf16.msra.mxu2 %v703_v34  ;;  %v750_v54 = vld [vmem:[%s1287_s1 + $0x1b0] sm:$0xf]  ;;  %v843_v55 = vld [vmem:[%s1287_s1 + $0x1b4] sm:$0xf0]  ;;  %v687_v58 = vor.u32 %v827_v53, %v686_v52  ;;  %v793_v60 = vld [vmem:[%s1287_s1 + $0x24] sm:$0xf0] }
   0xf   :  { %461 = vmatpush.bf16.msra.mxu3 %v767_v38  ;;  %v614_v61 = vld [vmem:[%s1287_s1 + $0xa0] sm:$0xf]  ;;  %v751_v62 = vor.u32 %v843_v55, %v750_v54  ;;  %v809_v63 = vld [vmem:[%s1287_s1 + $0xa4] sm:$0xf0]  ;;  %v551_v4 = vor.u32 %v793_v60, %v550_v59  ;;  %v542_v7 = vld [vmem:[%s1287_s1 + $0x10] sm:$0xf] }
  0x10   :  { %423 = vmatpush.bf16.msra.mxu0 %v567_v44  ;;  %v678_v0 = vld [vmem:[%s1287_s1 + $0x120] sm:$0xf]  ;;  %v825_v1 = vld [vmem:[%s1287_s1 + $0x124] sm:$0xf0]  ;;  %v615_v5 = vor.u32 %v809_v63, %v614_v61  ;;  %v791_v8 = vld [vmem:[%s1287_s1 + $0x14] sm:$0xf0] }
  0x11   :  { %436 = vmatpush.bf16.msra.mxu1 %v631_v45  ;;  %v742_v2 = vld [vmem:[%s1287_s1 + $0x1a0] sm:$0xf]  ;;  %v841_v3 = vld [vmem:[%s1287_s1 + $0x1a4] sm:$0xf0]  ;;  %v679_v6 = vor.u32 %v825_v1, %v678_v0  ;;  %v606_v9 = vld [vmem:[%s1287_s1 + $0x90] sm:$0xf]  ;;  %v543_v16 = vor.u32 %v791_v8, %v542_v7 }
  0x12   :  { %449 = vmatpush.bf16.msra.mxu2 %v695_v46  ;;  %v743_v10 = vor.u32 %v841_v3, %v742_v2  ;;  %v807_v11 = vld [vmem:[%s1287_s1 + $0x94] sm:$0xf0]  ;;  %v670_v12 = vld [vmem:[%s1287_s1 + $0x110] sm:$0xf]  ;;  %v534_v17 = vld [vmem:[%s1287_s1] sm:$0xf] }
  0x13   :  { %462 = vmatpush.bf16.msra.mxu3 %v759_v50  ;;  %v823_v13 = vld [vmem:[%s1287_s1 + $0x114] sm:$0xf0]  ;;  %v734_v14 = vld [vmem:[%s1287_s1 + $0x190] sm:$0xf]  ;;  %v789_v18 = vld [vmem:[%s1287_s1 + $0x4] sm:$0xf0]  ;;  %v607_v20 = vor.u32 %v807_v11, %v606_v9 }
  0x14   :  { %424 = vmatpush.bf16.msra.mxu0 %v559_v56  ;;  %v839_v15 = vld [vmem:[%s1287_s1 + $0x194] sm:$0xf0]  ;;  %v598_v19 = vld [vmem:[%s1287_s1 + $0x80] sm:$0xf]  ;;  %v671_v21 = vor.u32 %v823_v13, %v670_v12  ;;  %v805_v22 = vld [vmem:[%s1287_s1 + $0x84] sm:$0xf0]  ;;  %v535_v32 = vor.u32 %v789_v18, %v534_v17 }
  0x15   :  { %437 = vmatpush.bf16.msra.mxu1 %v623_v57  ;;  %v662_v23 = vld [vmem:[%s1287_s1 + $0x100] sm:$0xf]  ;;  %v821_v24 = vld [vmem:[%s1287_s1 + $0x104] sm:$0xf0]  ;;  %v735_v25 = vor.u32 %v839_v15, %v734_v14  ;;  %v802_v28 = vld [vmem:[%s1287_s1 + $0x74] sm:$0xf]  ;;  %v599_v37 = vor.u32 %v805_v22, %v598_v19 }
  0x16   :  { %450 = vmatpush.bf16.msra.mxu2 %v687_v58  ;;  %v726_v26 = vld [vmem:[%s1287_s1 + $0x180] sm:$0xf]  ;;  %v837_v27 = vld [vmem:[%s1287_s1 + $0x184] sm:$0xf0]  ;;  %v592_v29 = vld [vmem:[%s1287_s1 + $0x78] sm:$0xf0]  ;;  %v663_v38 = vor.u32 %v821_v24, %v662_v23 }
  0x17   :  { %463 = vmatpush.bf16.msra.mxu3 %v751_v62  ;;  %v818_v30 = vld [vmem:[%s1287_s1 + $0xf4] sm:$0xf]  ;;  %v15_v31 = vld [vmem:[%s1288_s0 + $0x8] sm:$0xff]  ;;  %v656_v33 = vld [vmem:[%s1287_s1 + $0xf8] sm:$0xf0]  ;;  %v727_v42 = vor.u32 %v837_v27, %v726_v26  ;;  %v595_v43 = vor.u32 %v802_v28, %v592_v29 }
  0x18   :  { %425 = vmatpush.bf16.msra.mxu0 %v551_v4  ;;  %v834_v34 = vld [vmem:[%s1287_s1 + $0x174] sm:$0xf]  ;;  %v720_v35 = vld [vmem:[%s1287_s1 + $0x178] sm:$0xf0]  ;;  %v90_v36 = vunpack.c.l.b16 %v15_v31  ;;  %v91_v41 = vunpack.c.h.b16 %v15_v31  ;;  %v14_v44 = vld [vmem:[%s1288_s0] sm:$0xff]  ;;  %v659_v45 = vor.u32 %v818_v30, %v656_v33 }
  0x19   :  { %438 = vmatpush.bf16.msra.mxu1 %v615_v5  ;;  %v850_v39 = vld [vmem:[%s1287_s1 + $0x1f4] sm:$0xf]  ;;  %v784_v40 = vld [vmem:[%s1287_s1 + $0x1f8] sm:$0xf0]  ;;  %v723_v46 = vor.u32 %v834_v34, %v720_v35  ;;  %v800_v47 = vld [vmem:[%s1287_s1 + $0x64] sm:$0xf]  ;;  %v88_v50 = vunpack.c.l.b16 %v14_v44  ;;  %v89_v51 = vunpack.c.h.b16 %v14_v44 }
  0x1a   :  { %451 = vmatpush.bf16.msra.mxu2 %v679_v6  ;;  %v584_v48 = vld [vmem:[%s1287_s1 + $0x68] sm:$0xf0]  ;;  %v816_v49 = vld [vmem:[%s1287_s1 + $0xe4] sm:$0xf]  ;;  %v787_v52 = vor.u32 %v850_v39, %v784_v40  ;;  %v1112_v56 = vpack.c.b16 %v90_v36, %v90_v36  ;;  %v1120_v59 = vpack.c.b16 %v91_v41, %v91_v41  ;;  %v798_v1 = vld [vmem:[%s1287_s1 + $0x54] sm:$0xf] }
  0x1b   :  { %464 = vmatpush.bf16.msra.mxu3 %v743_v10  ;;  %v648_v53 = vld [vmem:[%s1287_s1 + $0xe8] sm:$0xf0]  ;;  %v832_v54 = vld [vmem:[%s1287_s1 + $0x164] sm:$0xf]  ;;  %v1122_v60 = vpack.c.b16 %v88_v50, %v88_v50  ;;  %v587_v61 = vor.u32 %v800_v47, %v584_v48  ;;  %v1124_v62 = vpack.c.b16 %v89_v51, %v89_v51  ;;  %v576_v2 = vld [vmem:[%s1287_s1 + $0x58] sm:$0xf0] }
  0x1c   :  { %426 = vmatpush.bf16.msra.mxu0 %v543_v16  ;;  %v712_v55 = vld [vmem:[%s1287_s1 + $0x168] sm:$0xf0]  ;;  %v848_v57 = vld [vmem:[%s1287_s1 + $0x1e4] sm:$0xf]  ;;  %v651_v63 = vor.u32 %v816_v49, %v648_v53  ;;  %v814_v3 = vld [vmem:[%s1287_s1 + $0xd4] sm:$0xf]  ;;  %v579_v10 = vor.u32 %v798_v1, %v576_v2 }
  0x1d   :  { %439 = vmatpush.bf16.msra.mxu1 %v607_v20  ;;  %v776_v58 = vld [vmem:[%s1287_s1 + $0x1e8] sm:$0xf0]  ;;  %v715_v0 = vor.u32 %v832_v54, %v712_v55  ;;  %v640_v5 = vld [vmem:[%s1287_s1 + $0xd8] sm:$0xf0]  ;;  %v830_v6 = vld [vmem:[%s1287_s1 + $0x154] sm:$0xf] }
  0x1e   :  { %452 = vmatpush.bf16.msra.mxu2 %v671_v21  ;;  %v779_v4 = vor.u32 %v848_v57, %v776_v58  ;;  %v704_v7 = vld [vmem:[%s1287_s1 + $0x158] sm:$0xf0]  ;;  %v846_v8 = vld [vmem:[%s1287_s1 + $0x1d4] sm:$0xf]  ;;  %v643_v11 = vor.u32 %v814_v3, %v640_v5  ;;  %v796_v13 = vld [vmem:[%s1287_s1 + $0x44] sm:$0xf] }
  0x1f   :  { %465 = vmatpush.bf16.msra.mxu3 %v735_v25  ;;  %v768_v9 = vld [vmem:[%s1287_s1 + $0x1d8] sm:$0xf0]  ;;  %v707_v12 = vor.u32 %v830_v6, %v704_v7  ;;  %v568_v14 = vld [vmem:[%s1287_s1 + $0x48] sm:$0xf0]  ;;  %v812_v15 = vld [vmem:[%s1287_s1 + $0xc4] sm:$0xf] }
  0x20   :  { %427 = vmatpush.bf16.msra.mxu0 %v535_v32  ;;  %v771_v16 = vor.u32 %v846_v8, %v768_v9  ;;  %v632_v17 = vld [vmem:[%s1287_s1 + $0xc8] sm:$0xf0]  ;;  %v828_v18 = vld [vmem:[%s1287_s1 + $0x144] sm:$0xf]  ;;  %v571_v22 = vor.u32 %v796_v13, %v568_v14  ;;  %v794_v25 = vld [vmem:[%s1287_s1 + $0x34] sm:$0xf] }
  0x21   :  { %440 = vmatpush.bf16.msra.mxu1 %v599_v37  ;;  %v696_v19 = vld [vmem:[%s1287_s1 + $0x148] sm:$0xf0]  ;;  %v844_v20 = vld [vmem:[%s1287_s1 + $0x1c4] sm:$0xf]  ;;  %v635_v23 = vor.u32 %v812_v15, %v632_v17  ;;  %v560_v26 = vld [vmem:[%s1287_s1 + $0x38] sm:$0xf0] }
  0x22   :  { %453 = vmatpush.bf16.msra.mxu2 %v663_v38  ;;  %v760_v21 = vld [vmem:[%s1287_s1 + $0x1c8] sm:$0xf0]  ;;  %v699_v24 = vor.u32 %v828_v18, %v696_v19  ;;  %v810_v27 = vld [vmem:[%s1287_s1 + $0xb4] sm:$0xf]  ;;  %v624_v29 = vld [vmem:[%s1287_s1 + $0xb8] sm:$0xf0]  ;;  %v563_v34 = vor.u32 %v794_v25, %v560_v26 }
  0x23   :  { %466 = vmatpush.bf16.msra.mxu3 %v727_v42  ;;  %428 = vmatmul.bf16.vlgmr.msra.gmra.mxu0 %v1122_v60  ;;  %v763_v28 = vor.u32 %v844_v20, %v760_v21  ;;  %v826_v30 = vld [vmem:[%s1287_s1 + $0x134] sm:$0xf]  ;;  %v688_v31 = vld [vmem:[%s1287_s1 + $0x138] sm:$0xf0]  ;;  %v627_v35 = vor.u32 %v810_v27, %v624_v29  ;;  %v792_v37 = vld [vmem:[%s1287_s1 + $0x24] sm:$0xf] }
  0x24   :  { %472 = vmatpush.bf16.msrb.mxu0 %v595_v43  ;;  %441 = vmatmul.bf16.vlgmr.msra.gmra.mxu1 %v1124_v62  ;;  %v842_v32 = vld [vmem:[%s1287_s1 + $0x1b4] sm:$0xf]  ;;  %v752_v33 = vld [vmem:[%s1287_s1 + $0x1b8] sm:$0xf0]  ;;  %v691_v36 = vor.u32 %v826_v30, %v688_v31  ;;  %v552_v38 = vld [vmem:[%s1287_s1 + $0x28] sm:$0xf0] }
  0x25   :  { %485 = vmatpush.bf16.msrb.mxu1 %v659_v45  ;;  %454 = vmatmul.bf16.vlgmr.msra.gmra.mxu2 %v1112_v56  ;;  %v808_v39 = vld [vmem:[%s1287_s1 + $0xa4] sm:$0xf]  ;;  %v755_v40 = vor.u32 %v842_v32, %v752_v33  ;;  %v616_v41 = vld [vmem:[%s1287_s1 + $0xa8] sm:$0xf0]  ;;  %v790_v49 = vld [vmem:[%s1287_s1 + $0x14] sm:$0xf] }
  0x26   :  { %498 = vmatpush.bf16.msrb.mxu2 %v723_v46  ;;  %467 = vmatmul.bf16.vlgmr.msra.gmra.mxu3 %v1120_v59  ;;  %v824_v42 = vld [vmem:[%s1287_s1 + $0x124] sm:$0xf]  ;;  %v680_v43 = vld [vmem:[%s1287_s1 + $0x128] sm:$0xf0]  ;;  %v555_v46 = vor.u32 %v792_v37, %v552_v38  ;;  %v619_v47 = vor.u32 %v808_v39, %v616_v41  ;;  %v544_v50 = vld [vmem:[%s1287_s1 + $0x18] sm:$0xf0] }
  0x27   :  { %511 = vmatpush.bf16.msrb.mxu3 %v787_v52  ;;  %v840_v44 = vld [vmem:[%s1287_s1 + $0x1a4] sm:$0xf]  ;;  %v744_v45 = vld [vmem:[%s1287_s1 + $0x1a8] sm:$0xf0]  ;;  %v683_v48 = vor.u32 %v824_v42, %v680_v43  ;;  %v806_v51 = vld [vmem:[%s1287_s1 + $0x94] sm:$0xf] }
  0x28   :  { %473 = vmatpush.bf16.msrb.mxu0 %v587_v61  ;;  %v747_v52 = vor.u32 %v840_v44, %v744_v45  ;;  %v608_v53 = vld [vmem:[%s1287_s1 + $0x98] sm:$0xf0]  ;;  %v822_v54 = vld [vmem:[%s1287_s1 + $0x114] sm:$0xf]  ;;  %v547_v61 = vor.u32 %v790_v49, %v544_v50  ;;  %v788_v1 = vld [vmem:[%s1287_s1 + $0x4] sm:$0xf] }
  0x29   :  { %486 = vmatpush.bf16.msrb.mxu1 %v651_v63  ;;  %v672_v55 = vld [vmem:[%s1287_s1 + $0x118] sm:$0xf0]  ;;  %v838_v57 = vld [vmem:[%s1287_s1 + $0x194] sm:$0xf]  ;;  %v611_v63 = vor.u32 %v806_v51, %v608_v53  ;;  %v536_v2 = vld [vmem:[%s1287_s1 + $0x8] sm:$0xf0] }
  0x2a   :  { %499 = vmatpush.bf16.msrb.mxu2 %v715_v0  ;;  %v736_v58 = vld [vmem:[%s1287_s1 + $0x198] sm:$0xf0]  ;;  %v675_v0 = vor.u32 %v822_v54, %v672_v55  ;;  %v804_v3 = vld [vmem:[%s1287_s1 + $0x84] sm:$0xf]  ;;  %v600_v5 = vld [vmem:[%s1287_s1 + $0x88] sm:$0xf0] }
  0x2b   :  { %512 = vmatpush.bf16.msrb.mxu3 %v779_v4  ;;  %v739_v4 = vor.u32 %v838_v57, %v736_v58  ;;  %v820_v6 = vld [vmem:[%s1287_s1 + $0x104] sm:$0xf]  ;;  %v664_v7 = vld [vmem:[%s1287_s1 + $0x108] sm:$0xf0]  ;;  %v80_v14 = vld [vmem:[%s1289_s2] sm:$0x3] }
  0x2c   :  { %474 = vmatpush.bf16.msrb.mxu0 %v579_v10  ;;  %v836_v8 = vld [vmem:[%s1287_s1 + $0x184] sm:$0xf]  ;;  %v728_v9 = vld [vmem:[%s1287_s1 + $0x188] sm:$0xf0]  ;;  %v539_v10 = vor.u32 %v788_v1, %v536_v2  ;;  %v82_v15 = vperm.slane %v80_v14, 0  ;;  %v83_v25 = vperm.slane %v80_v14, 1 }
  0x2d   :  { %487 = vmatpush.bf16.msrb.mxu1 %v643_v11  ;;  %v603_v11 = vor.u32 %v804_v3, %v600_v5  ;;  %v731_v13 = vor.u32 %v836_v8, %v728_v9 }
  0x2e   :  { %500 = vmatpush.bf16.msrb.mxu2 %v707_v12  ;;  %v667_v12 = vor.u32 %v820_v6, %v664_v7 }
  0x2f   :  { %513 = vmatpush.bf16.msrb.mxu3 %v771_v16 }
  0x30   :  { %475 = vmatpush.bf16.msrb.mxu0 %v571_v22 }
  0x31   :  { %488 = vmatpush.bf16.msrb.mxu1 %v635_v23 }
  0x32   :  { %501 = vmatpush.bf16.msrb.mxu2 %v699_v24 }
  0x33   :  { %514 = vmatpush.bf16.msrb.mxu3 %v763_v28 }
  0x34   :  { %476 = vmatpush.bf16.msrb.mxu0 %v563_v34 }
  0x35   :  { %489 = vmatpush.bf16.msrb.mxu1 %v627_v35 }
  0x36   :  { %502 = vmatpush.bf16.msrb.mxu2 %v691_v36 }
  0x37   :  { %515 = vmatpush.bf16.msrb.mxu3 %v755_v40 }
  0x38   :  { %477 = vmatpush.bf16.msrb.mxu0 %v555_v46 }
  0x39   :  { %490 = vmatpush.bf16.msrb.mxu1 %v619_v47 }
  0x3a   :  { %503 = vmatpush.bf16.msrb.mxu2 %v683_v48 }
  0x3b   :  { %516 = vmatpush.bf16.msrb.mxu3 %v747_v52 }
  0x3c   :  { %478 = vmatpush.bf16.msrb.mxu0 %v547_v61 }
  0x3d   :  { %491 = vmatpush.bf16.msrb.mxu1 %v611_v63 }
  0x3e   :  { %504 = vmatpush.bf16.msrb.mxu2 %v675_v0 }
  0x3f   :  { %517 = vmatpush.bf16.msrb.mxu3 %v739_v4 }
  0x40   :  { %479 = vmatpush.bf16.msrb.mxu0 %v539_v10 }
  0x41   :  { %492 = vmatpush.bf16.msrb.mxu1 %v603_v11 }
  0x42   :  { %505 = vmatpush.bf16.msrb.mxu2 %v667_v12 }
  0x43   :  { %518 = vmatpush.bf16.msrb.mxu3 %v731_v13  ;;  %480 = vmatmul.bf16.vlgmr.msrb.gmra.mxu0 %v1122_v60 }
  0x44   :  { %493 = vmatmul.bf16.vlgmr.msrb.gmra.mxu1 %v1124_v62 }
  0x45   :  { %506 = vmatmul.bf16.vlgmr.msrb.gmra.mxu2 %v1112_v56 }
  0x46   :  { %519 = vmatmul.bf16.vlgmr.msrb.gmra.mxu3 %v1120_v59 }
  0xa0   :  { %v429_v16 = vpop.f32.mrf.mxu0 }
  0xa1   :  { %v430_v17 = vadd.f32 %v429_v16, %v82_v15  ;;  %v442_v18 = vpop.f32.mrf.mxu1 }
  0xa3   :  { %v443_v19 = vadd.f32 %v442_v18, %v430_v17 }
  0xa8   :  { %v455_v20 = vpop.f32.mrf.mxu2  ;;  %v431_v60 = vpop.f32.mrf.mxu0 }
  0xa9   :  { %v456_v21 = vadd.f32 %v455_v20, %v443_v19  ;;  %v468_v22 = vpop.f32.mrf.mxu3  ;;  %v444_v24 = vpop.f32.mrf.mxu1 }
  0xab   :  { %v469_v23 = vadd.f32 %v468_v22, %v456_v21 }
  0xad   :  { %v524_v62 = vmax.f32 %v469_v23, 0.0 }
  0xaf   :  { %526 = vst [vmem:[%s1290_s3] sm:$0xff] %v524_v62 }
  0xb0   :  { %v457_v56 = vpop.f32.mrf.mxu2 }
  0xb1   :  { %v470_v59 = vpop.f32.mrf.mxu3 }
  0xc0   :  { %v481_v26 = vpop.f32.mrf.mxu0 }
  0xc1   :  { %v482_v27 = vadd.f32 %v481_v26, %v83_v25  ;;  %v494_v28 = vpop.f32.mrf.mxu1 }
  0xc3   :  { %v495_v29 = vadd.f32 %v494_v28, %v482_v27 }
  0xc8   :  { %v507_v30 = vpop.f32.mrf.mxu2  ;;  %v483_v33 = vpop.f32.mrf.mxu0 }
  0xc9   :  { %v508_v31 = vadd.f32 %v507_v30, %v495_v29  ;;  %v520_v32 = vpop.f32.mrf.mxu3  ;;  %v496_v34 = vpop.f32.mrf.mxu1 }
  0xcb   :  { %v521_v35 = vadd.f32 %v520_v32, %v508_v31 }
  0xcd   :  { %v525_v36 = vmax.f32 %v521_v35, 0.0 }
  0xcf   :  { %527 = vst [vmem:[%s1290_s3 + $0x8] sm:$0xff] %v525_v36 }
  0xd0   :  { %v509_v37 = vpop.f32.mrf.mxu2 }
  0xd1   :  { %v522_v38 = vpop.f32.mrf.mxu3 }

</bundles_post_ra>
